<compile_context>
chip_gen: v6e
topology: v6e:2x2x1
jax: 0.10.0
libtpu: 0.0.40
codegen_flags: <defaults>
</compile_context>

<pallas_src>
import jax
import jax.numpy as jnp
from jax.experimental import pallas as pl
from jax.experimental.pallas import tpu as pltpu


# ----------------------------------------------------------------------------
# Pallas kernels
# ----------------------------------------------------------------------------
def _matmul_bias_relu_kernel(x_ref, w_ref, b_ref, o_ref):
    """o = relu(x @ w + b) for one M tile.  x:(TM,K) w:(K,N) b:(1,N)."""
    acc = jnp.dot(x_ref[...], w_ref[...], preferred_element_type=jnp.float32)
    o_ref[...] = jnp.maximum(acc + b_ref[...], 0.0)


def _conv3x3_s1_relu_kernel(x_ref, w_ref, b_ref, o_ref):
    """One output row of a 3x3 stride-1 conv (+bias+ReLU).

    x_ref: full padded map (N, Hp, Wp, C)   (resident, fetched once)
    w_ref: (9*C, Cout) rows ordered (kh, kw, cin)
    b_ref: (1, Cout)
    o_ref: (1, 1, Wo, Cout) block at (n, ho)
    """
    n = pl.program_id(0)
    ho = pl.program_id(1)
    Wo = o_ref.shape[2]
    # gather the 9 taps for this output row and fuse them on the lane axis
    taps = [x_ref[n, ho + dh, pl.ds(dw, Wo), :]
            for dh in range(3) for dw in range(3)]          # 9 x (Wo, C)
    patch = jnp.concatenate(taps, axis=-1)                  # (Wo, 9*C)
    acc = jnp.dot(patch, w_ref[...], preferred_element_type=jnp.float32)
    o_ref[0, 0] = jnp.maximum(acc + b_ref[...], 0.0)


def _maxpool_kernel(x_ref, o_ref):
    """2x2 max over window axes. x:(B,2,Q,2C) -> o:(B,Q,C)."""
    C = o_ref.shape[-1]
    h = jnp.maximum(x_ref[:, 0], x_ref[:, 1])               # (B, Q, 2C)
    o_ref[...] = jnp.maximum(h[..., :C], h[..., C:])


def _fc_head_kernel(x_ref, w1_ref, b1_ref, w2_ref, b2_ref, o_ref, acc_ref):
    """Fused fc1 + ReLU + fc2 (+ folded CONST).  Grid = K tiles of fc1."""
    @pl.when(pl.program_id(0) == 0)
    def _():
        acc_ref[...] = jnp.zeros_like(acc_ref)

    acc_ref[...] += jnp.dot(x_ref[...], w1_ref[...],
                            preferred_element_type=jnp.float32)

    @pl.when(pl.program_id(0) == pl.num_programs(0) - 1)
    def _():
        h = jnp.maximum(acc_ref[...] + b1_ref[...], 0.0)
        o_ref[...] = (jnp.dot(h, w2_ref[...],
                              preferred_element_type=jnp.float32)
                      + b2_ref[...]).astype(o_ref.dtype)


# ----------------------------------------------------------------------------
# Pallas wrappers
# ----------------------------------------------------------------------------
def _pick_m_split(M, max_split=4):
    for s in range(max_split, 1, -1):
        if M % s == 0 and (M // s) % 8 == 0:
            return s
    return 1


def matmul_bias_relu(x, w, b_row):
    """relu(x @ w + b), full-array blocks (no M padding), M split for 2-TC chips."""
    M, K = x.shape
    N = w.shape[1]
    m_split = _pick_m_split(M)
    tm = M // m_split
    return pl.pallas_call(
        _matmul_bias_relu_kernel,
        out_shape=jax.ShapeDtypeStruct((M, N), jnp.float32),
        grid=(m_split,),
        in_specs=[
            pl.BlockSpec((tm, K), lambda i: (i, 0)),
            pl.BlockSpec((K, N), lambda i: (0, 0)),
            pl.BlockSpec((1, N), lambda i: (0, 0)),
        ],
        out_specs=pl.BlockSpec((tm, N), lambda i: (i, 0)),
        compiler_params=pltpu.CompilerParams(
            dimension_semantics=("parallel",)),
    )(x, w, b_row)


def conv3x3_s1_relu(x, w_mat, b_row):
    """3x3 stride-1 pad-2 conv + ReLU on NHWC input, fused in one pallas_call."""
    N, H, W, C = x.shape
    Ho, Wo = H + 2, W + 2
    Hp, Wp = H + 4, W + 4
    Cout = w_mat.shape[1]
    assert w_mat.shape[0] == 9 * C
    xp = jnp.pad(x, ((0, 0), (2, 2), (2, 2), (0, 0)))
    return pl.pallas_call(
        _conv3x3_s1_relu_kernel,
        out_shape=jax.ShapeDtypeStruct((N, Ho, Wo, Cout), jnp.float32),
        grid=(N, Ho),
        in_specs=[
            pl.BlockSpec((N, Hp, Wp, C), lambda n, h: (0, 0, 0, 0)),  # resident
            pl.BlockSpec((9 * C, Cout), lambda n, h: (0, 0)),
            pl.BlockSpec((1, Cout), lambda n, h: (0, 0)),
        ],
        out_specs=pl.BlockSpec((1, 1, Wo, Cout), lambda n, h: (n, h, 0, 0)),
        compiler_params=pltpu.CompilerParams(
            dimension_semantics=("parallel", "parallel")),
    )(xp, w_mat, b_row)


def maxpool_2x2_s2_p1(x):
    """PyTorch MaxPool2d(kernel=2, stride=2, padding=1) on NHWC input."""
    N, H, W, C = x.shape
    P, Q = H // 2 + 1, W // 2 + 1
    # -inf padding is safe ONLY because the input is post-ReLU (>= 0) and every
    # 2x2 window contains at least one real element.
    neg = -3.0e38
    xp = jnp.pad(x, ((0, 0), (1, 2 * P - H - 1), (1, 2 * Q - W - 1), (0, 0)),
                 constant_values=neg)
    # fold the 2x2 window into a leading pair dim and the lane dim
    xr = xp.reshape(N * P, 2, Q, 2 * C)
    B = N * P
    gb = B // 2 if B % 2 == 0 else B        # 2-way split for dual-core chips
    out = pl.pallas_call(
        _maxpool_kernel,
        out_shape=jax.ShapeDtypeStruct((B, Q, C), x.dtype),
        grid=(B // gb,),
        in_specs=[pl.BlockSpec((gb, 2, Q, 2 * C), lambda i: (i, 0, 0, 0))],
        out_specs=pl.BlockSpec((gb, Q, C), lambda i: (i, 0, 0)),
        compiler_params=pltpu.CompilerParams(
            dimension_semantics=("parallel",)),
    )(xr)
    return out.reshape(N, P, Q, C)


def fc_head(x, w1, b1, w2, b2, k_split=5):
    """relu(x @ w1 + b1) @ w2 + b2 in a single pallas_call (fc1 K-tiled)."""
    M, K = x.shape
    E = w1.shape[1]
    O = w2.shape[1]
    assert K % k_split == 0 and (K // k_split) % 128 == 0
    kt = K // k_split
    return pl.pallas_call(
        _fc_head_kernel,
        out_shape=jax.ShapeDtypeStruct((M, O), jnp.float32),
        grid=(k_split,),
        in_specs=[
            pl.BlockSpec((M, kt), lambda k: (0, k)),
            pl.BlockSpec((kt, E), lambda k: (k, 0)),
            pl.BlockSpec((1, E), lambda k: (0, 0)),
            pl.BlockSpec((E, O), lambda k: (0, 0)),
            pl.BlockSpec((1, O), lambda k: (0, 0)),
        ],
        out_specs=pl.BlockSpec((M, O), lambda k: (0, 0)),
        scratch_shapes=[pltpu.VMEM((M, E), jnp.float32)],
        compiler_params=pltpu.CompilerParams(
            dimension_semantics=("arbitrary",)),
    )(x, w1, b1, w2, b2)


# ----------------------------------------------------------------------------
# conv1 (stride 2, Cin=4) via small im2col + one matmul
# ----------------------------------------------------------------------------
def _im2col_s2(x, k=3, stride=2, pad=2):
    """x:(N,H,W,C) -> patches:(N*Ho*Wo, k*k*C), cols ordered (kh, kw, cin)."""
    N, H, W, C = x.shape
    Ho = (H + 2 * pad - k) // stride + 1
    Wo = (W + 2 * pad - k) // stride + 1
    xp = jnp.pad(x, ((0, 0), (pad, pad), (pad, pad), (0, 0)))
    cols = [xp[:, dh:dh + stride * Ho:stride, dw:dw + stride * Wo:stride, :]
            for dh in range(k) for dw in range(k)]
    patches = jnp.concatenate(cols, axis=-1)                # (N,Ho,Wo,k*k*C)
    return patches.reshape(N * Ho * Wo, k * k * C), Ho, Wo


# ----------------------------------------------------------------------------
# Parameter preparation (done once, outside the jitted forward)
# ----------------------------------------------------------------------------
def prepare_params(p):
    C = 128  # lane-dense channel width carried through the conv stack

    def conv_w(w, cin_p, cout_p):
        Cout, Cin, kh, kw = w.shape
        wt = jnp.transpose(w, (2, 3, 1, 0))                 # (kh,kw,Cin,Cout)
        wt = jnp.pad(wt, ((0, 0), (0, 0),
                          (0, cin_p - Cin), (0, cout_p - Cout)))
        return wt.reshape(kh * kw * cin_p, cout_p)

    def bias_row(b, cout_p):
        # padded output channels get bias 0 -> stay exactly 0 after ReLU/pool
        return jnp.pad(b, (0, cout_p - b.shape[0])).reshape(1, cout_p)

    # fc1: torch flattens NCHW (128,5,7); our features are NHWC-flattened,
    # so permute the weight rows once: (h*7+w)*128 + c  <-  c*35 + h*7 + w.
    fc1_w = (p["fc1_w"].reshape(512, 128, 5, 7)
             .transpose(2, 3, 1, 0).reshape(4480, 512))
    fc2_w = p["fc2_w"].T                                    # (512, 2)
    # fold the trailing `x -= [[0, 5]]` into the fc2 bias
    fc2_b = (p["fc2_b"] - jnp.array([0.0, 5.0], jnp.float32)).reshape(1, 2)

    return {
        "c1_w": conv_w(p["w1"], 4, C),  "c1_b": bias_row(p["b1"], C),
        "c2_w": conv_w(p["w2"], C, C),  "c2_b": bias_row(p["b2"], C),
        "c3_w": conv_w(p["w3"], C, C),  "c3_b": bias_row(p["b3"], C),
        "c4_w": conv_w(p["w4"], C, C),  "c4_b": bias_row(p["b4"], C),
        "fc1_w": fc1_w, "fc1_b": p["fc1_b"].reshape(1, 512),
        "fc2_w": fc2_w, "fc2_b": fc2_b,
    }


# ----------------------------------------------------------------------------
# Full NN forward
# ----------------------------------------------------------------------------
def nn_forward(x_nchw, prep):
    x = jnp.transpose(x_nchw, (0, 2, 3, 1)).astype(jnp.float32)   # NCHW -> NHWC
    N = x.shape[0]

    # conv1: 3x3 stride-2 pad-2, Cin=4 -> 128 (lane-dense, padded channels = 0)
    patches, Ho, Wo = _im2col_s2(x, k=3, stride=2, pad=2)
    x = matmul_bias_relu(patches, prep["c1_w"], prep["c1_b"])
    x = x.reshape(N, Ho, Wo, 128)
    x = maxpool_2x2_s2_p1(x)

    x = conv3x3_s1_relu(x, prep["c2_w"], prep["c2_b"])
    x = maxpool_2x2_s2_p1(x)
    x = conv3x3_s1_relu(x, prep["c3_w"], prep["c3_b"])
    x = maxpool_2x2_s2_p1(x)
    x = conv3x3_s1_relu(x, prep["c4_w"], prep["c4_b"])
    x = maxpool_2x2_s2_p1(x)                                      # (N,5,7,128)

    # NHWC flatten; fc1 weight rows were pre-permuted to match torch's flatten.
    x = x.reshape(N, -1)                                          # (N, 4480)
    return fc_head(x, prep["fc1_w"], prep["fc1_b"],
                   prep["fc2_w"], prep["fc2_b"])


def init_params(key):
    """nn.init.normal_(w, 0, 0.02); nn.init.constant_(b, 0.01), torch layouts."""
    ks = jax.random.split(key, 6)

    def w(k, shape):
        return 0.02 * jax.random.normal(k, shape, dtype=jnp.float32)

    def b(n):
        return jnp.full((n,), 0.01, dtype=jnp.float32)

    return {
        "w1": w(ks[0], (32, 4, 3, 3)),    "b1": b(32),
        "w2": w(ks[1], (64, 32, 3, 3)),   "b2": b(64),
        "w3": w(ks[2], (128, 64, 3, 3)),  "b3": b(128),
        "w4": w(ks[3], (128, 128, 3, 3)), "b4": b(128),
        "fc1_w": w(ks[4], (512, 4480)),   "fc1_b": b(512),
        "fc2_w": w(ks[5], (2, 512)),      "fc2_b": b(2),
    }


if __name__ == "__main__":
    root = jax.random.PRNGKey(0)
    k_params, k_x = jax.random.split(root)
    params = init_params(k_params)
    prep = prepare_params(params)

    # Smallest spatial size consistent with Linear(4480,...) after the conv
    # stack: final feature map is (128, 5, 7)  =>  input H=41, W=105.
    x = jax.random.normal(k_x, (2, 4, 41, 105), dtype=jnp.float32)

    fwd = jax.jit(nn_forward)
    out = jax.block_until_ready(fwd(x, prep))

    assert out.shape == (2, 2), out.shape
    assert out.dtype == jnp.float32
    print("KERNEL_OK")
</pallas_src>

<mosaic_0001>
module attributes {stable_mosaic.version = 11 : i64} {
  func.func @_matmul_bias_relu_kernel(%arg0: i32, %arg1: memref<792x36xf32, #tpu.memory_space<vmem>>, %arg2: memref<36x128xf32, #tpu.memory_space<vmem>>, %arg3: memref<1x128xf32, #tpu.memory_space<vmem>>, %arg4: memref<792x128xf32, #tpu.memory_space<vmem>>) attributes {dimension_semantics = [#tpu.dimension_semantics<parallel>], iteration_bounds = array<i64: 3>, scalar_prefetch = 0 : i64, scratch_operands = 0 : i64, tpu.core_type = #tpu.core_type<tc>, window_params = [{transform_indices = @transform_0, window_bounds = array<i64: 792, 36>}, {pipeline_mode = #tpu.pipeline_mode<synchronous>, transform_indices = @transform_1, window_bounds = array<i64: 36, 128>}, {pipeline_mode = #tpu.pipeline_mode<synchronous>, transform_indices = @transform_2, window_bounds = array<i64: 1, 128>}, {transform_indices = @transform_3, window_bounds = array<i64: 792, 128>}]} {
    %c0 = arith.constant 0 : index
    %c0_0 = arith.constant 0 : index
    %0 = vector.load %arg1[%c0, %c0_0] : memref<792x36xf32, #tpu.memory_space<vmem>>, vector<792x36xf32>
    %c0_1 = arith.constant 0 : index
    %c0_2 = arith.constant 0 : index
    %1 = vector.load %arg2[%c0_1, %c0_2] : memref<36x128xf32, #tpu.memory_space<vmem>>, vector<36x128xf32>
    %cst = arith.constant dense<0.000000e+00> : vector<792x128xf32>
    %2 = tpu.matmul %0, %1, %cst {dimension_numbers = #tpu.dot_dimension_numbers<[1], [0], [0], [1], [0, 0, 1, 1], [], []>} : vector<792x36xf32>, vector<36x128xf32>, vector<792x128xf32> -> vector<792x128xf32>
    %c0_3 = arith.constant 0 : index
    %c0_4 = arith.constant 0 : index
    %3 = vector.load %arg3[%c0_3, %c0_4] : memref<1x128xf32, #tpu.memory_space<vmem>>, vector<1x128xf32>
    %4 = vector.broadcast %3 : vector<1x128xf32> to vector<792x128xf32>
    %5 = arith.addf %2, %4 : vector<792x128xf32>
    %cst_5 = arith.constant 0.000000e+00 : f32
    %6 = vector.broadcast %cst_5 : f32 to vector<792x128xf32>
    %7 = arith.maximumf %5, %6 : vector<792x128xf32>
    %c0_6 = arith.constant 0 : index
    %c0_7 = arith.constant 0 : index
    %8 = vector.load %arg4[%c0_6, %c0_7] : memref<792x128xf32, #tpu.memory_space<vmem>>, vector<792x128xf32>
    tpu.vector_store %arg4[%c0_6, %c0_7], %7 {strides = array<i32>} : memref<792x128xf32, #tpu.memory_space<vmem>>, vector<792x128xf32>,
    return
  }
  func.func @transform_0(%arg0: i32) -> (i32, i32) {
    %c0_i32 = arith.constant 0 : i32
    %c0_i32_0 = arith.constant 0 : i32
    return %arg0, %c0_i32 : i32, i32
  }
  func.func @transform_1(%arg0: i32) -> (i32, i32) {
    %c0_i32 = arith.constant 0 : i32
    %c0_i32_0 = arith.constant 0 : i32
    %c0_i32_1 = arith.constant 0 : i32
    return %c0_i32, %c0_i32_0 : i32, i32
  }
  func.func @transform_2(%arg0: i32) -> (i32, i32) {
    %c0_i32 = arith.constant 0 : i32
    %c0_i32_0 = arith.constant 0 : i32
    %c0_i32_1 = arith.constant 0 : i32
    return %c0_i32, %c0_i32_0 : i32, i32
  }
  func.func @transform_3(%arg0: i32) -> (i32, i32) {
    %c0_i32 = arith.constant 0 : i32
    %c0_i32_0 = arith.constant 0 : i32
    return %arg0, %c0_i32 : i32, i32
  }
}

module attributes {stable_mosaic.version = 11 : i64} {
  func.func @_maxpool_kernel(%arg0: i32, %arg1: memref<12x2x28x256xf32, #tpu.memory_space<vmem>>, %arg2: memref<12x28x128xf32, #tpu.memory_space<vmem>>) attributes {dimension_semantics = [#tpu.dimension_semantics<parallel>], iteration_bounds = array<i64: 2>, scalar_prefetch = 0 : i64, scratch_operands = 0 : i64, tpu.core_type = #tpu.core_type<tc>, window_params = [{transform_indices = @transform_0, window_bounds = array<i64: 12, 2, 28, 256>}, {transform_indices = @transform_1, window_bounds = array<i64: 12, 28, 128>}]} {
    %c0 = arith.constant 0 : index
    %c0_0 = arith.constant 0 : index
    %c0_1 = arith.constant 0 : index
    %c0_2 = arith.constant 0 : index
    %0 = vector.load %arg1[%c0, %c0_0, %c0_1, %c0_2] : memref<12x2x28x256xf32, #tpu.memory_space<vmem>>, vector<12x1x28x256xf32>
    %1 = vector.shape_cast %0 : vector<12x1x28x256xf32> to vector<12x28x256xf32>
    %c0_3 = arith.constant 0 : index
    %c1 = arith.constant 1 : index
    %c0_4 = arith.constant 0 : index
    %c0_5 = arith.constant 0 : index
    %2 = vector.load %arg1[%c0_3, %c1, %c0_4, %c0_5] : memref<12x2x28x256xf32, #tpu.memory_space<vmem>>, vector<12x1x28x256xf32>
    %3 = vector.shape_cast %2 : vector<12x1x28x256xf32> to vector<12x28x256xf32>
    %4 = arith.maximumf %1, %3 : vector<12x28x256xf32>
    %5 = vector.extract_strided_slice %4 {offsets = [0, 0, 0], sizes = [12, 28, 128], strides = [1, 1, 1]} : vector<12x28x256xf32> to vector<12x28x128xf32>
    %6 = vector.extract_strided_slice %4 {offsets = [0, 0, 128], sizes = [12, 28, 128], strides = [1, 1, 1]} : vector<12x28x256xf32> to vector<12x28x128xf32>
    %7 = arith.maximumf %5, %6 : vector<12x28x128xf32>
    %c0_6 = arith.constant 0 : index
    %c0_7 = arith.constant 0 : index
    %c0_8 = arith.constant 0 : index
    %8 = vector.load %arg2[%c0_6, %c0_7, %c0_8] : memref<12x28x128xf32, #tpu.memory_space<vmem>>, vector<12x28x128xf32>
    tpu.vector_store %arg2[%c0_6, %c0_7, %c0_8], %7 {strides = array<i32>} : memref<12x28x128xf32, #tpu.memory_space<vmem>>, vector<12x28x128xf32>,
    return
  }
  func.func @transform_0(%arg0: i32) -> (i32, i32, i32, i32) {
    %c0_i32 = arith.constant 0 : i32
    %c0_i32_0 = arith.constant 0 : i32
    %c0_i32_1 = arith.constant 0 : i32
    %c0_i32_2 = arith.constant 0 : i32
    return %arg0, %c0_i32, %c0_i32_0, %c0_i32_1 : i32, i32, i32, i32
  }
  func.func @transform_1(%arg0: i32) -> (i32, i32, i32) {
    %c0_i32 = arith.constant 0 : i32
    %c0_i32_0 = arith.constant 0 : i32
    %c0_i32_1 = arith.constant 0 : i32
    return %arg0, %c0_i32, %c0_i32_0 : i32, i32, i32
  }
}

module attributes {stable_mosaic.version = 11 : i64} {
  func.func @_conv3x3_s1_relu_kernel(%arg0: i32, %arg1: i32, %arg2: memref<2x16x32x128xf32, #tpu.memory_space<vmem>>, %arg3: memref<1152x128xf32, #tpu.memory_space<vmem>>, %arg4: memref<1x128xf32, #tpu.memory_space<vmem>>, %arg5: memref<1x1x30x128xf32, #tpu.memory_space<vmem>>) attributes {dimension_semantics = [#tpu.dimension_semantics<parallel>, #tpu.dimension_semantics<parallel>], iteration_bounds = array<i64: 2, 14>, scalar_prefetch = 0 : i64, scratch_operands = 0 : i64, tpu.core_type = #tpu.core_type<tc>, window_params = [{pipeline_mode = #tpu.pipeline_mode<synchronous>, transform_indices = @transform_0, window_bounds = array<i64: 2, 16, 32, 128>}, {pipeline_mode = #tpu.pipeline_mode<synchronous>, transform_indices = @transform_1, window_bounds = array<i64: 1152, 128>}, {pipeline_mode = #tpu.pipeline_mode<synchronous>, transform_indices = @transform_2, window_bounds = array<i64: 1, 128>}, {transform_indices = @transform_3, window_bounds = array<i64: 1, 1, 30, 128>}]} {
    %c0_i32 = arith.constant 0 : i32
    %0 = arith.addi %arg1, %c0_i32 : i32
    %1 = arith.index_cast %arg0 : i32 to index
    %2 = arith.index_cast %0 : i32 to index
    %c0 = arith.constant 0 : index
    %c0_0 = arith.constant 0 : index
    %3 = vector.load %arg2[%1, %2, %c0, %c0_0] : memref<2x16x32x128xf32, #tpu.memory_space<vmem>>, vector<1x1x30x128xf32>
    %4 = vector.shape_cast %3 : vector<1x1x30x128xf32> to vector<30x128xf32>
    %c0_i32_1 = arith.constant 0 : i32
    %5 = arith.addi %arg1, %c0_i32_1 : i32
    %6 = arith.index_cast %arg0 : i32 to index
    %7 = arith.index_cast %5 : i32 to index
    %c1 = arith.constant 1 : index
    %c0_2 = arith.constant 0 : index
    %8 = vector.load %arg2[%6, %7, %c1, %c0_2] : memref<2x16x32x128xf32, #tpu.memory_space<vmem>>, vector<1x1x30x128xf32>
    %9 = vector.shape_cast %8 : vector<1x1x30x128xf32> to vector<30x128xf32>
    %c0_i32_3 = arith.constant 0 : i32
    %10 = arith.addi %arg1, %c0_i32_3 : i32
    %11 = arith.index_cast %arg0 : i32 to index
    %12 = arith.index_cast %10 : i32 to index
    %c2 = arith.constant 2 : index
    %c0_4 = arith.constant 0 : index
    %13 = vector.load %arg2[%11, %12, %c2, %c0_4] : memref<2x16x32x128xf32, #tpu.memory_space<vmem>>, vector<1x1x30x128xf32>
    %14 = vector.shape_cast %13 : vector<1x1x30x128xf32> to vector<30x128xf32>
    %c1_i32 = arith.constant 1 : i32
    %15 = arith.addi %arg1, %c1_i32 : i32
    %16 = arith.index_cast %arg0 : i32 to index
    %17 = arith.index_cast %15 : i32 to index
    %c0_5 = arith.constant 0 : index
    %c0_6 = arith.constant 0 : index
    %18 = vector.load %arg2[%16, %17, %c0_5, %c0_6] : memref<2x16x32x128xf32, #tpu.memory_space<vmem>>, vector<1x1x30x128xf32>
    %19 = vector.shape_cast %18 : vector<1x1x30x128xf32> to vector<30x128xf32>
    %c1_i32_7 = arith.constant 1 : i32
    %20 = arith.addi %arg1, %c1_i32_7 : i32
    %21 = arith.index_cast %arg0 : i32 to index
    %22 = arith.index_cast %20 : i32 to index
    %c1_8 = arith.constant 1 : index
    %c0_9 = arith.constant 0 : index
    %23 = vector.load %arg2[%21, %22, %c1_8, %c0_9] : memref<2x16x32x128xf32, #tpu.memory_space<vmem>>, vector<1x1x30x128xf32>
    %24 = vector.shape_cast %23 : vector<1x1x30x128xf32> to vector<30x128xf32>
    %c1_i32_10 = arith.constant 1 : i32
    %25 = arith.addi %arg1, %c1_i32_10 : i32
    %26 = arith.index_cast %arg0 : i32 to index
    %27 = arith.index_cast %25 : i32 to index
    %c2_11 = arith.constant 2 : index
    %c0_12 = arith.constant 0 : index
    %28 = vector.load %arg2[%26, %27, %c2_11, %c0_12] : memref<2x16x32x128xf32, #tpu.memory_space<vmem>>, vector<1x1x30x128xf32>
    %29 = vector.shape_cast %28 : vector<1x1x30x128xf32> to vector<30x128xf32>
    %c2_i32 = arith.constant 2 : i32
    %30 = arith.addi %arg1, %c2_i32 : i32
    %31 = arith.index_cast %arg0 : i32 to index
    %32 = arith.index_cast %30 : i32 to index
    %c0_13 = arith.constant 0 : index
    %c0_14 = arith.constant 0 : index
    %33 = vector.load %arg2[%31, %32, %c0_13, %c0_14] : memref<2x16x32x128xf32, #tpu.memory_space<vmem>>, vector<1x1x30x128xf32>
    %34 = vector.shape_cast %33 : vector<1x1x30x128xf32> to vector<30x128xf32>
    %c2_i32_15 = arith.constant 2 : i32
    %35 = arith.addi %arg1, %c2_i32_15 : i32
    %36 = arith.index_cast %arg0 : i32 to index
    %37 = arith.index_cast %35 : i32 to index
    %c1_16 = arith.constant 1 : index
    %c0_17 = arith.constant 0 : index
    %38 = vector.load %arg2[%36, %37, %c1_16, %c0_17] : memref<2x16x32x128xf32, #tpu.memory_space<vmem>>, vector<1x1x30x128xf32>
    %39 = vector.shape_cast %38 : vector<1x1x30x128xf32> to vector<30x128xf32>
    %c2_i32_18 = arith.constant 2 : i32
    %40 = arith.addi %arg1, %c2_i32_18 : i32
    %41 = arith.index_cast %arg0 : i32 to index
    %42 = arith.index_cast %40 : i32 to index
    %c2_19 = arith.constant 2 : index
    %c0_20 = arith.constant 0 : index
    %43 = vector.load %arg2[%41, %42, %c2_19, %c0_20] : memref<2x16x32x128xf32, #tpu.memory_space<vmem>>, vector<1x1x30x128xf32>
    %44 = vector.shape_cast %43 : vector<1x1x30x128xf32> to vector<30x128xf32>
    %45 = tpu.concatenate %4, %9, %14, %19, %24, %29, %34, %39, %44 in 1 : vector<30x128xf32>, vector<30x128xf32>, vector<30x128xf32>, vector<30x128xf32>, vector<30x128xf32>, vector<30x128xf32>, vector<30x128xf32>, vector<30x128xf32>, vector<30x128xf32> -> vector<30x1152xf32>
    %c0_21 = arith.constant 0 : index
    %c0_22 = arith.constant 0 : index
    %46 = vector.load %arg3[%c0_21, %c0_22] : memref<1152x128xf32, #tpu.memory_space<vmem>>, vector<1152x128xf32>
    %cst = arith.constant dense<0.000000e+00> : vector<30x128xf32>
    %47 = tpu.matmul %45, %46, %cst {dimension_numbers = #tpu.dot_dimension_numbers<[1], [0], [0], [1], [0, 0, 1, 1], [], []>} : vector<30x1152xf32>, vector<1152x128xf32>, vector<30x128xf32> -> vector<30x128xf32>
    %c0_23 = arith.constant 0 : index
    %c0_24 = arith.constant 0 : index
    %48 = vector.load %arg4[%c0_23, %c0_24] : memref<1x128xf32, #tpu.memory_space<vmem>>, vector<1x128xf32>
    %49 = vector.broadcast %48 : vector<1x128xf32> to vector<30x128xf32>
    %50 = arith.addf %47, %49 : vector<30x128xf32>
    %cst_25 = arith.constant 0.000000e+00 : f32
    %51 = vector.broadcast %cst_25 : f32 to vector<30x128xf32>
    %52 = arith.maximumf %50, %51 : vector<30x128xf32>
    %c0_26 = arith.constant 0 : index
    %c0_27 = arith.constant 0 : index
    %c0_28 = arith.constant 0 : index
    %c0_29 = arith.constant 0 : index
    %53 = vector.load %arg5[%c0_26, %c0_27, %c0_28, %c0_29] : memref<1x1x30x128xf32, #tpu.memory_space<vmem>>, vector<1x1x30x128xf32>
    %54 = vector.shape_cast %53 : vector<1x1x30x128xf32> to vector<30x128xf32>
    %55 = vector.shape_cast %52 : vector<30x128xf32> to vector<1x1x30x128xf32>
    tpu.vector_store %arg5[%c0_26, %c0_27, %c0_28, %c0_29], %55 {strides = array<i32>} : memref<1x1x30x128xf32, #tpu.memory_space<vmem>>, vector<1x1x30x128xf32>,
    return
  }
  func.func @transform_0(%arg0: i32, %arg1: i32) -> (i32, i32, i32, i32) {
    %c0_i32 = arith.constant 0 : i32
    %c0_i32_0 = arith.constant 0 : i32
    %c0_i32_1 = arith.constant 0 : i32
    %c0_i32_2 = arith.constant 0 : i32
    %c0_i32_3 = arith.constant 0 : i32
    return %c0_i32, %c0_i32_0, %c0_i32_1, %c0_i32_2 : i32, i32, i32, i32
  }
  func.func @transform_1(%arg0: i32, %arg1: i32) -> (i32, i32) {
    %c0_i32 = arith.constant 0 : i32
    %c0_i32_0 = arith.constant 0 : i32
    %c0_i32_1 = arith.constant 0 : i32
    return %c0_i32, %c0_i32_0 : i32, i32
  }
  func.func @transform_2(%arg0: i32, %arg1: i32) -> (i32, i32) {
    %c0_i32 = arith.constant 0 : i32
    %c0_i32_0 = arith.constant 0 : i32
    %c0_i32_1 = arith.constant 0 : i32
    return %c0_i32, %c0_i32_0 : i32, i32
  }
  func.func @transform_3(%arg0: i32, %arg1: i32) -> (i32, i32, i32, i32) {
    %c0_i32 = arith.constant 0 : i32
    %c0_i32_0 = arith.constant 0 : i32
    %c0_i32_1 = arith.constant 0 : i32
    return %arg0, %arg1, %c0_i32, %c0_i32_0 : i32, i32, i32, i32
  }
}

module attributes {stable_mosaic.version = 11 : i64} {
  func.func @_maxpool_kernel(%arg0: i32, %arg1: memref<8x2x16x256xf32, #tpu.memory_space<vmem>>, %arg2: memref<8x16x128xf32, #tpu.memory_space<vmem>>) attributes {dimension_semantics = [#tpu.dimension_semantics<parallel>], iteration_bounds = array<i64: 2>, scalar_prefetch = 0 : i64, scratch_operands = 0 : i64, tpu.core_type = #tpu.core_type<tc>, window_params = [{transform_indices = @transform_0, window_bounds = array<i64: 8, 2, 16, 256>}, {transform_indices = @transform_1, window_bounds = array<i64: 8, 16, 128>}]} {
    %c0 = arith.constant 0 : index
    %c0_0 = arith.constant 0 : index
    %c0_1 = arith.constant 0 : index
    %c0_2 = arith.constant 0 : index
    %0 = vector.load %arg1[%c0, %c0_0, %c0_1, %c0_2] : memref<8x2x16x256xf32, #tpu.memory_space<vmem>>, vector<8x1x16x256xf32>
    %1 = vector.shape_cast %0 : vector<8x1x16x256xf32> to vector<8x16x256xf32>
    %c0_3 = arith.constant 0 : index
    %c1 = arith.constant 1 : index
    %c0_4 = arith.constant 0 : index
    %c0_5 = arith.constant 0 : index
    %2 = vector.load %arg1[%c0_3, %c1, %c0_4, %c0_5] : memref<8x2x16x256xf32, #tpu.memory_space<vmem>>, vector<8x1x16x256xf32>
    %3 = vector.shape_cast %2 : vector<8x1x16x256xf32> to vector<8x16x256xf32>
    %4 = arith.maximumf %1, %3 : vector<8x16x256xf32>
    %5 = vector.extract_strided_slice %4 {offsets = [0, 0, 0], sizes = [8, 16, 128], strides = [1, 1, 1]} : vector<8x16x256xf32> to vector<8x16x128xf32>
    %6 = vector.extract_strided_slice %4 {offsets = [0, 0, 128], sizes = [8, 16, 128], strides = [1, 1, 1]} : vector<8x16x256xf32> to vector<8x16x128xf32>
    %7 = arith.maximumf %5, %6 : vector<8x16x128xf32>
    %c0_6 = arith.constant 0 : index
    %c0_7 = arith.constant 0 : index
    %c0_8 = arith.constant 0 : index
    %8 = vector.load %arg2[%c0_6, %c0_7, %c0_8] : memref<8x16x128xf32, #tpu.memory_space<vmem>>, vector<8x16x128xf32>
    tpu.vector_store %arg2[%c0_6, %c0_7, %c0_8], %7 {strides = array<i32>} : memref<8x16x128xf32, #tpu.memory_space<vmem>>, vector<8x16x128xf32>,
    return
  }
  func.func @transform_0(%arg0: i32) -> (i32, i32, i32, i32) {
    %c0_i32 = arith.constant 0 : i32
    %c0_i32_0 = arith.constant 0 : i32
    %c0_i32_1 = arith.constant 0 : i32
    %c0_i32_2 = arith.constant 0 : i32
    return %arg0, %c0_i32, %c0_i32_0, %c0_i32_1 : i32, i32, i32, i32
  }
  func.func @transform_1(%arg0: i32) -> (i32, i32, i32) {
    %c0_i32 = arith.constant 0 : i32
    %c0_i32_0 = arith.constant 0 : i32
    %c0_i32_1 = arith.constant 0 : i32
    return %arg0, %c0_i32, %c0_i32_0 : i32, i32, i32
  }
}

module attributes {stable_mosaic.version = 11 : i64} {
  func.func @_conv3x3_s1_relu_kernel(%arg0: i32, %arg1: i32, %arg2: memref<2x10x14x128xf32, #tpu.memory_space<vmem>>, %arg3: memref<1152x128xf32, #tpu.memory_space<vmem>>, %arg4: memref<1x128xf32, #tpu.memory_space<vmem>>, %arg5: memref<1x1x12x128xf32, #tpu.memory_space<vmem>>) attributes {dimension_semantics = [#tpu.dimension_semantics<parallel>, #tpu.dimension_semantics<parallel>], iteration_bounds = array<i64: 2, 8>, scalar_prefetch = 0 : i64, scratch_operands = 0 : i64, tpu.core_type = #tpu.core_type<tc>, window_params = [{pipeline_mode = #tpu.pipeline_mode<synchronous>, transform_indices = @transform_0, window_bounds = array<i64: 2, 10, 14, 128>}, {pipeline_mode = #tpu.pipeline_mode<synchronous>, transform_indices = @transform_1, window_bounds = array<i64: 1152, 128>}, {pipeline_mode = #tpu.pipeline_mode<synchronous>, transform_indices = @transform_2, window_bounds = array<i64: 1, 128>}, {transform_indices = @transform_3, window_bounds = array<i64: 1, 1, 12, 128>}]} {
    %c0_i32 = arith.constant 0 : i32
    %0 = arith.addi %arg1, %c0_i32 : i32
    %1 = arith.index_cast %arg0 : i32 to index
    %2 = arith.index_cast %0 : i32 to index
    %c0 = arith.constant 0 : index
    %c0_0 = arith.constant 0 : index
    %3 = vector.load %arg2[%1, %2, %c0, %c0_0] : memref<2x10x14x128xf32, #tpu.memory_space<vmem>>, vector<1x1x12x128xf32>
    %4 = vector.shape_cast %3 : vector<1x1x12x128xf32> to vector<12x128xf32>
    %c0_i32_1 = arith.constant 0 : i32
    %5 = arith.addi %arg1, %c0_i32_1 : i32
    %6 = arith.index_cast %arg0 : i32 to index
    %7 = arith.index_cast %5 : i32 to index
    %c1 = arith.constant 1 : index
    %c0_2 = arith.constant 0 : index
    %8 = vector.load %arg2[%6, %7, %c1, %c0_2] : memref<2x10x14x128xf32, #tpu.memory_space<vmem>>, vector<1x1x12x128xf32>
    %9 = vector.shape_cast %8 : vector<1x1x12x128xf32> to vector<12x128xf32>
    %c0_i32_3 = arith.constant 0 : i32
    %10 = arith.addi %arg1, %c0_i32_3 : i32
    %11 = arith.index_cast %arg0 : i32 to index
    %12 = arith.index_cast %10 : i32 to index
    %c2 = arith.constant 2 : index
    %c0_4 = arith.constant 0 : index
    %13 = vector.load %arg2[%11, %12, %c2, %c0_4] : memref<2x10x14x128xf32, #tpu.memory_space<vmem>>, vector<1x1x12x128xf32>
    %14 = vector.shape_cast %13 : vector<1x1x12x128xf32> to vector<12x128xf32>
    %c1_i32 = arith.constant 1 : i32
    %15 = arith.addi %arg1, %c1_i32 : i32
    %16 = arith.index_cast %arg0 : i32 to index
    %17 = arith.index_cast %15 : i32 to index
    %c0_5 = arith.constant 0 : index
    %c0_6 = arith.constant 0 : index
    %18 = vector.load %arg2[%16, %17, %c0_5, %c0_6] : memref<2x10x14x128xf32, #tpu.memory_space<vmem>>, vector<1x1x12x128xf32>
    %19 = vector.shape_cast %18 : vector<1x1x12x128xf32> to vector<12x128xf32>
    %c1_i32_7 = arith.constant 1 : i32
    %20 = arith.addi %arg1, %c1_i32_7 : i32
    %21 = arith.index_cast %arg0 : i32 to index
    %22 = arith.index_cast %20 : i32 to index
    %c1_8 = arith.constant 1 : index
    %c0_9 = arith.constant 0 : index
    %23 = vector.load %arg2[%21, %22, %c1_8, %c0_9] : memref<2x10x14x128xf32, #tpu.memory_space<vmem>>, vector<1x1x12x128xf32>
    %24 = vector.shape_cast %23 : vector<1x1x12x128xf32> to vector<12x128xf32>
    %c1_i32_10 = arith.constant 1 : i32
    %25 = arith.addi %arg1, %c1_i32_10 : i32
    %26 = arith.index_cast %arg0 : i32 to index
    %27 = arith.index_cast %25 : i32 to index
    %c2_11 = arith.constant 2 : index
    %c0_12 = arith.constant 0 : index
    %28 = vector.load %arg2[%26, %27, %c2_11, %c0_12] : memref<2x10x14x128xf32, #tpu.memory_space<vmem>>, vector<1x1x12x128xf32>
    %29 = vector.shape_cast %28 : vector<1x1x12x128xf32> to vector<12x128xf32>
    %c2_i32 = arith.constant 2 : i32
    %30 = arith.addi %arg1, %c2_i32 : i32
    %31 = arith.index_cast %arg0 : i32 to index
    %32 = arith.index_cast %30 : i32 to index
    %c0_13 = arith.constant 0 : index
    %c0_14 = arith.constant 0 : index
    %33 = vector.load %arg2[%31, %32, %c0_13, %c0_14] : memref<2x10x14x128xf32, #tpu.memory_space<vmem>>, vector<1x1x12x128xf32>
    %34 = vector.shape_cast %33 : vector<1x1x12x128xf32> to vector<12x128xf32>
    %c2_i32_15 = arith.constant 2 : i32
    %35 = arith.addi %arg1, %c2_i32_15 : i32
    %36 = arith.index_cast %arg0 : i32 to index
    %37 = arith.index_cast %35 : i32 to index
    %c1_16 = arith.constant 1 : index
    %c0_17 = arith.constant 0 : index
    %38 = vector.load %arg2[%36, %37, %c1_16, %c0_17] : memref<2x10x14x128xf32, #tpu.memory_space<vmem>>, vector<1x1x12x128xf32>
    %39 = vector.shape_cast %38 : vector<1x1x12x128xf32> to vector<12x128xf32>
    %c2_i32_18 = arith.constant 2 : i32
    %40 = arith.addi %arg1, %c2_i32_18 : i32
    %41 = arith.index_cast %arg0 : i32 to index
    %42 = arith.index_cast %40 : i32 to index
    %c2_19 = arith.constant 2 : index
    %c0_20 = arith.constant 0 : index
    %43 = vector.load %arg2[%41, %42, %c2_19, %c0_20] : memref<2x10x14x128xf32, #tpu.memory_space<vmem>>, vector<1x1x12x128xf32>
    %44 = vector.shape_cast %43 : vector<1x1x12x128xf32> to vector<12x128xf32>
    %45 = tpu.concatenate %4, %9, %14, %19, %24, %29, %34, %39, %44 in 1 : vector<12x128xf32>, vector<12x128xf32>, vector<12x128xf32>, vector<12x128xf32>, vector<12x128xf32>, vector<12x128xf32>, vector<12x128xf32>, vector<12x128xf32>, vector<12x128xf32> -> vector<12x1152xf32>
    %c0_21 = arith.constant 0 : index
    %c0_22 = arith.constant 0 : index
    %46 = vector.load %arg3[%c0_21, %c0_22] : memref<1152x128xf32, #tpu.memory_space<vmem>>, vector<1152x128xf32>
    %cst = arith.constant dense<0.000000e+00> : vector<12x128xf32>
    %47 = tpu.matmul %45, %46, %cst {dimension_numbers = #tpu.dot_dimension_numbers<[1], [0], [0], [1], [0, 0, 1, 1], [], []>} : vector<12x1152xf32>, vector<1152x128xf32>, vector<12x128xf32> -> vector<12x128xf32>
    %c0_23 = arith.constant 0 : index
    %c0_24 = arith.constant 0 : index
    %48 = vector.load %arg4[%c0_23, %c0_24] : memref<1x128xf32, #tpu.memory_space<vmem>>, vector<1x128xf32>
    %49 = vector.broadcast %48 : vector<1x128xf32> to vector<12x128xf32>
    %50 = arith.addf %47, %49 : vector<12x128xf32>
    %cst_25 = arith.constant 0.000000e+00 : f32
    %51 = vector.broadcast %cst_25 : f32 to vector<12x128xf32>
    %52 = arith.maximumf %50, %51 : vector<12x128xf32>
    %c0_26 = arith.constant 0 : index
    %c0_27 = arith.constant 0 : index
    %c0_28 = arith.constant 0 : index
    %c0_29 = arith.constant 0 : index
    %53 = vector.load %arg5[%c0_26, %c0_27, %c0_28, %c0_29] : memref<1x1x12x128xf32, #tpu.memory_space<vmem>>, vector<1x1x12x128xf32>
    %54 = vector.shape_cast %53 : vector<1x1x12x128xf32> to vector<12x128xf32>
    %55 = vector.shape_cast %52 : vector<12x128xf32> to vector<1x1x12x128xf32>
    tpu.vector_store %arg5[%c0_26, %c0_27, %c0_28, %c0_29], %55 {strides = array<i32>} : memref<1x1x12x128xf32, #tpu.memory_space<vmem>>, vector<1x1x12x128xf32>,
    return
  }
  func.func @transform_0(%arg0: i32, %arg1: i32) -> (i32, i32, i32, i32) {
    %c0_i32 = arith.constant 0 : i32
    %c0_i32_0 = arith.constant 0 : i32
    %c0_i32_1 = arith.constant 0 : i32
    %c0_i32_2 = arith.constant 0 : i32
    %c0_i32_3 = arith.constant 0 : i32
    return %c0_i32, %c0_i32_0, %c0_i32_1, %c0_i32_2 : i32, i32, i32, i32
  }
  func.func @transform_1(%arg0: i32, %arg1: i32) -> (i32, i32) {
    %c0_i32 = arith.constant 0 : i32
    %c0_i32_0 = arith.constant 0 : i32
    %c0_i32_1 = arith.constant 0 : i32
    return %c0_i32, %c0_i32_0 : i32, i32
  }
  func.func @transform_2(%arg0: i32, %arg1: i32) -> (i32, i32) {
    %c0_i32 = arith.constant 0 : i32
    %c0_i32_0 = arith.constant 0 : i32
    %c0_i32_1 = arith.constant 0 : i32
    return %c0_i32, %c0_i32_0 : i32, i32
  }
  func.func @transform_3(%arg0: i32, %arg1: i32) -> (i32, i32, i32, i32) {
    %c0_i32 = arith.constant 0 : i32
    %c0_i32_0 = arith.constant 0 : i32
    %c0_i32_1 = arith.constant 0 : i32
    return %arg0, %arg1, %c0_i32, %c0_i32_0 : i32, i32, i32, i32
  }
}

module attributes {stable_mosaic.version = 11 : i64} {
  func.func @_maxpool_kernel(%arg0: i32, %arg1: memref<6x2x10x256xf32, #tpu.memory_space<vmem>>, %arg2: memref<6x10x128xf32, #tpu.memory_space<vmem>>) attributes {dimension_semantics = [#tpu.dimension_semantics<parallel>], iteration_bounds = array<i64: 2>, scalar_prefetch = 0 : i64, scratch_operands = 0 : i64, tpu.core_type = #tpu.core_type<tc>, window_params = [{transform_indices = @transform_0, window_bounds = array<i64: 6, 2, 10, 256>}, {transform_indices = @transform_1, window_bounds = array<i64: 6, 10, 128>}]} {
    %c0 = arith.constant 0 : index
    %c0_0 = arith.constant 0 : index
    %c0_1 = arith.constant 0 : index
    %c0_2 = arith.constant 0 : index
    %0 = vector.load %arg1[%c0, %c0_0, %c0_1, %c0_2] : memref<6x2x10x256xf32, #tpu.memory_space<vmem>>, vector<6x1x10x256xf32>
    %1 = vector.shape_cast %0 : vector<6x1x10x256xf32> to vector<6x10x256xf32>
    %c0_3 = arith.constant 0 : index
    %c1 = arith.constant 1 : index
    %c0_4 = arith.constant 0 : index
    %c0_5 = arith.constant 0 : index
    %2 = vector.load %arg1[%c0_3, %c1, %c0_4, %c0_5] : memref<6x2x10x256xf32, #tpu.memory_space<vmem>>, vector<6x1x10x256xf32>
    %3 = vector.shape_cast %2 : vector<6x1x10x256xf32> to vector<6x10x256xf32>
    %4 = arith.maximumf %1, %3 : vector<6x10x256xf32>
    %5 = vector.extract_strided_slice %4 {offsets = [0, 0, 0], sizes = [6, 10, 128], strides = [1, 1, 1]} : vector<6x10x256xf32> to vector<6x10x128xf32>
    %6 = vector.extract_strided_slice %4 {offsets = [0, 0, 128], sizes = [6, 10, 128], strides = [1, 1, 1]} : vector<6x10x256xf32> to vector<6x10x128xf32>
    %7 = arith.maximumf %5, %6 : vector<6x10x128xf32>
    %c0_6 = arith.constant 0 : index
    %c0_7 = arith.constant 0 : index
    %c0_8 = arith.constant 0 : index
    %8 = vector.load %arg2[%c0_6, %c0_7, %c0_8] : memref<6x10x128xf32, #tpu.memory_space<vmem>>, vector<6x10x128xf32>
    tpu.vector_store %arg2[%c0_6, %c0_7, %c0_8], %7 {strides = array<i32>} : memref<6x10x128xf32, #tpu.memory_space<vmem>>, vector<6x10x128xf32>,
    return
  }
  func.func @transform_0(%arg0: i32) -> (i32, i32, i32, i32) {
    %c0_i32 = arith.constant 0 : i32
    %c0_i32_0 = arith.constant 0 : i32
    %c0_i32_1 = arith.constant 0 : i32
    %c0_i32_2 = arith.constant 0 : i32
    return %arg0, %c0_i32, %c0_i32_0, %c0_i32_1 : i32, i32, i32, i32
  }
  func.func @transform_1(%arg0: i32) -> (i32, i32, i32) {
    %c0_i32 = arith.constant 0 : i32
    %c0_i32_0 = arith.constant 0 : i32
    %c0_i32_1 = arith.constant 0 : i32
    return %arg0, %c0_i32, %c0_i32_0 : i32, i32, i32
  }
}

module attributes {stable_mosaic.version = 11 : i64} {
  func.func @_conv3x3_s1_relu_kernel(%arg0: i32, %arg1: i32, %arg2: memref<2x12x20x128xf32, #tpu.memory_space<vmem>>, %arg3: memref<1152x128xf32, #tpu.memory_space<vmem>>, %arg4: memref<1x128xf32, #tpu.memory_space<vmem>>, %arg5: memref<1x1x18x128xf32, #tpu.memory_space<vmem>>) attributes {dimension_semantics = [#tpu.dimension_semantics<parallel>, #tpu.dimension_semantics<parallel>], iteration_bounds = array<i64: 2, 10>, scalar_prefetch = 0 : i64, scratch_operands = 0 : i64, tpu.core_type = #tpu.core_type<tc>, window_params = [{pipeline_mode = #tpu.pipeline_mode<synchronous>, transform_indices = @transform_0, window_bounds = array<i64: 2, 12, 20, 128>}, {pipeline_mode = #tpu.pipeline_mode<synchronous>, transform_indices = @transform_1, window_bounds = array<i64: 1152, 128>}, {pipeline_mode = #tpu.pipeline_mode<synchronous>, transform_indices = @transform_2, window_bounds = array<i64: 1, 128>}, {transform_indices = @transform_3, window_bounds = array<i64: 1, 1, 18, 128>}]} {
    %c0_i32 = arith.constant 0 : i32
    %0 = arith.addi %arg1, %c0_i32 : i32
    %1 = arith.index_cast %arg0 : i32 to index
    %2 = arith.index_cast %0 : i32 to index
    %c0 = arith.constant 0 : index
    %c0_0 = arith.constant 0 : index
    %3 = vector.load %arg2[%1, %2, %c0, %c0_0] : memref<2x12x20x128xf32, #tpu.memory_space<vmem>>, vector<1x1x18x128xf32>
    %4 = vector.shape_cast %3 : vector<1x1x18x128xf32> to vector<18x128xf32>
    %c0_i32_1 = arith.constant 0 : i32
    %5 = arith.addi %arg1, %c0_i32_1 : i32
    %6 = arith.index_cast %arg0 : i32 to index
    %7 = arith.index_cast %5 : i32 to index
    %c1 = arith.constant 1 : index
    %c0_2 = arith.constant 0 : index
    %8 = vector.load %arg2[%6, %7, %c1, %c0_2] : memref<2x12x20x128xf32, #tpu.memory_space<vmem>>, vector<1x1x18x128xf32>
    %9 = vector.shape_cast %8 : vector<1x1x18x128xf32> to vector<18x128xf32>
    %c0_i32_3 = arith.constant 0 : i32
    %10 = arith.addi %arg1, %c0_i32_3 : i32
    %11 = arith.index_cast %arg0 : i32 to index
    %12 = arith.index_cast %10 : i32 to index
    %c2 = arith.constant 2 : index
    %c0_4 = arith.constant 0 : index
    %13 = vector.load %arg2[%11, %12, %c2, %c0_4] : memref<2x12x20x128xf32, #tpu.memory_space<vmem>>, vector<1x1x18x128xf32>
    %14 = vector.shape_cast %13 : vector<1x1x18x128xf32> to vector<18x128xf32>
    %c1_i32 = arith.constant 1 : i32
    %15 = arith.addi %arg1, %c1_i32 : i32
    %16 = arith.index_cast %arg0 : i32 to index
    %17 = arith.index_cast %15 : i32 to index
    %c0_5 = arith.constant 0 : index
    %c0_6 = arith.constant 0 : index
    %18 = vector.load %arg2[%16, %17, %c0_5, %c0_6] : memref<2x12x20x128xf32, #tpu.memory_space<vmem>>, vector<1x1x18x128xf32>
    %19 = vector.shape_cast %18 : vector<1x1x18x128xf32> to vector<18x128xf32>
    %c1_i32_7 = arith.constant 1 : i32
    %20 = arith.addi %arg1, %c1_i32_7 : i32
    %21 = arith.index_cast %arg0 : i32 to index
    %22 = arith.index_cast %20 : i32 to index
    %c1_8 = arith.constant 1 : index
    %c0_9 = arith.constant 0 : index
    %23 = vector.load %arg2[%21, %22, %c1_8, %c0_9] : memref<2x12x20x128xf32, #tpu.memory_space<vmem>>, vector<1x1x18x128xf32>
    %24 = vector.shape_cast %23 : vector<1x1x18x128xf32> to vector<18x128xf32>
    %c1_i32_10 = arith.constant 1 : i32
    %25 = arith.addi %arg1, %c1_i32_10 : i32
    %26 = arith.index_cast %arg0 : i32 to index
    %27 = arith.index_cast %25 : i32 to index
    %c2_11 = arith.constant 2 : index
    %c0_12 = arith.constant 0 : index
    %28 = vector.load %arg2[%26, %27, %c2_11, %c0_12] : memref<2x12x20x128xf32, #tpu.memory_space<vmem>>, vector<1x1x18x128xf32>
    %29 = vector.shape_cast %28 : vector<1x1x18x128xf32> to vector<18x128xf32>
    %c2_i32 = arith.constant 2 : i32
    %30 = arith.addi %arg1, %c2_i32 : i32
    %31 = arith.index_cast %arg0 : i32 to index
    %32 = arith.index_cast %30 : i32 to index
    %c0_13 = arith.constant 0 : index
    %c0_14 = arith.constant 0 : index
    %33 = vector.load %arg2[%31, %32, %c0_13, %c0_14] : memref<2x12x20x128xf32, #tpu.memory_space<vmem>>, vector<1x1x18x128xf32>
    %34 = vector.shape_cast %33 : vector<1x1x18x128xf32> to vector<18x128xf32>
    %c2_i32_15 = arith.constant 2 : i32
    %35 = arith.addi %arg1, %c2_i32_15 : i32
    %36 = arith.index_cast %arg0 : i32 to index
    %37 = arith.index_cast %35 : i32 to index
    %c1_16 = arith.constant 1 : index
    %c0_17 = arith.constant 0 : index
    %38 = vector.load %arg2[%36, %37, %c1_16, %c0_17] : memref<2x12x20x128xf32, #tpu.memory_space<vmem>>, vector<1x1x18x128xf32>
    %39 = vector.shape_cast %38 : vector<1x1x18x128xf32> to vector<18x128xf32>
    %c2_i32_18 = arith.constant 2 : i32
    %40 = arith.addi %arg1, %c2_i32_18 : i32
    %41 = arith.index_cast %arg0 : i32 to index
    %42 = arith.index_cast %40 : i32 to index
    %c2_19 = arith.constant 2 : index
    %c0_20 = arith.constant 0 : index
    %43 = vector.load %arg2[%41, %42, %c2_19, %c0_20] : memref<2x12x20x128xf32, #tpu.memory_space<vmem>>, vector<1x1x18x128xf32>
    %44 = vector.shape_cast %43 : vector<1x1x18x128xf32> to vector<18x128xf32>
    %45 = tpu.concatenate %4, %9, %14, %19, %24, %29, %34, %39, %44 in 1 : vector<18x128xf32>, vector<18x128xf32>, vector<18x128xf32>, vector<18x128xf32>, vector<18x128xf32>, vector<18x128xf32>, vector<18x128xf32>, vector<18x128xf32>, vector<18x128xf32> -> vector<18x1152xf32>
    %c0_21 = arith.constant 0 : index
    %c0_22 = arith.constant 0 : index
    %46 = vector.load %arg3[%c0_21, %c0_22] : memref<1152x128xf32, #tpu.memory_space<vmem>>, vector<1152x128xf32>
    %cst = arith.constant dense<0.000000e+00> : vector<18x128xf32>
    %47 = tpu.matmul %45, %46, %cst {dimension_numbers = #tpu.dot_dimension_numbers<[1], [0], [0], [1], [0, 0, 1, 1], [], []>} : vector<18x1152xf32>, vector<1152x128xf32>, vector<18x128xf32> -> vector<18x128xf32>
    %c0_23 = arith.constant 0 : index
    %c0_24 = arith.constant 0 : index
    %48 = vector.load %arg4[%c0_23, %c0_24] : memref<1x128xf32, #tpu.memory_space<vmem>>, vector<1x128xf32>
    %49 = vector.broadcast %48 : vector<1x128xf32> to vector<18x128xf32>
    %50 = arith.addf %47, %49 : vector<18x128xf32>
    %cst_25 = arith.constant 0.000000e+00 : f32
    %51 = vector.broadcast %cst_25 : f32 to vector<18x128xf32>
    %52 = arith.maximumf %50, %51 : vector<18x128xf32>
    %c0_26 = arith.constant 0 : index
    %c0_27 = arith.constant 0 : index
    %c0_28 = arith.constant 0 : index
    %c0_29 = arith.constant 0 : index
    %53 = vector.load %arg5[%c0_26, %c0_27, %c0_28, %c0_29] : memref<1x1x18x128xf32, #tpu.memory_space<vmem>>, vector<1x1x18x128xf32>
    %54 = vector.shape_cast %53 : vector<1x1x18x128xf32> to vector<18x128xf32>
    %55 = vector.shape_cast %52 : vector<18x128xf32> to vector<1x1x18x128xf32>
    tpu.vector_store %arg5[%c0_26, %c0_27, %c0_28, %c0_29], %55 {strides = array<i32>} : memref<1x1x18x128xf32, #tpu.memory_space<vmem>>, vector<1x1x18x128xf32>,
    return
  }
  func.func @transform_0(%arg0: i32, %arg1: i32) -> (i32, i32, i32, i32) {
    %c0_i32 = arith.constant 0 : i32
    %c0_i32_0 = arith.constant 0 : i32
    %c0_i32_1 = arith.constant 0 : i32
    %c0_i32_2 = arith.constant 0 : i32
    %c0_i32_3 = arith.constant 0 : i32
    return %c0_i32, %c0_i32_0, %c0_i32_1, %c0_i32_2 : i32, i32, i32, i32
  }
  func.func @transform_1(%arg0: i32, %arg1: i32) -> (i32, i32) {
    %c0_i32 = arith.constant 0 : i32
    %c0_i32_0 = arith.constant 0 : i32
    %c0_i32_1 = arith.constant 0 : i32
    return %c0_i32, %c0_i32_0 : i32, i32
  }
  func.func @transform_2(%arg0: i32, %arg1: i32) -> (i32, i32) {
    %c0_i32 = arith.constant 0 : i32
    %c0_i32_0 = arith.constant 0 : i32
    %c0_i32_1 = arith.constant 0 : i32
    return %c0_i32, %c0_i32_0 : i32, i32
  }
  func.func @transform_3(%arg0: i32, %arg1: i32) -> (i32, i32, i32, i32) {
    %c0_i32 = arith.constant 0 : i32
    %c0_i32_0 = arith.constant 0 : i32
    %c0_i32_1 = arith.constant 0 : i32
    return %arg0, %arg1, %c0_i32, %c0_i32_0 : i32, i32, i32, i32
  }
}

module attributes {stable_mosaic.version = 11 : i64} {
  func.func @_maxpool_kernel(%arg0: i32, %arg1: memref<5x2x7x256xf32, #tpu.memory_space<vmem>>, %arg2: memref<5x7x128xf32, #tpu.memory_space<vmem>>) attributes {dimension_semantics = [#tpu.dimension_semantics<parallel>], iteration_bounds = array<i64: 2>, scalar_prefetch = 0 : i64, scratch_operands = 0 : i64, tpu.core_type = #tpu.core_type<tc>, window_params = [{transform_indices = @transform_0, window_bounds = array<i64: 5, 2, 7, 256>}, {transform_indices = @transform_1, window_bounds = array<i64: 5, 7, 128>}]} {
    %c0 = arith.constant 0 : index
    %c0_0 = arith.constant 0 : index
    %c0_1 = arith.constant 0 : index
    %c0_2 = arith.constant 0 : index
    %0 = vector.load %arg1[%c0, %c0_0, %c0_1, %c0_2] : memref<5x2x7x256xf32, #tpu.memory_space<vmem>>, vector<5x1x7x256xf32>
    %1 = vector.shape_cast %0 : vector<5x1x7x256xf32> to vector<5x7x256xf32>
    %c0_3 = arith.constant 0 : index
    %c1 = arith.constant 1 : index
    %c0_4 = arith.constant 0 : index
    %c0_5 = arith.constant 0 : index
    %2 = vector.load %arg1[%c0_3, %c1, %c0_4, %c0_5] : memref<5x2x7x256xf32, #tpu.memory_space<vmem>>, vector<5x1x7x256xf32>
    %3 = vector.shape_cast %2 : vector<5x1x7x256xf32> to vector<5x7x256xf32>
    %4 = arith.maximumf %1, %3 : vector<5x7x256xf32>
    %5 = vector.extract_strided_slice %4 {offsets = [0, 0, 0], sizes = [5, 7, 128], strides = [1, 1, 1]} : vector<5x7x256xf32> to vector<5x7x128xf32>
    %6 = vector.extract_strided_slice %4 {offsets = [0, 0, 128], sizes = [5, 7, 128], strides = [1, 1, 1]} : vector<5x7x256xf32> to vector<5x7x128xf32>
    %7 = arith.maximumf %5, %6 : vector<5x7x128xf32>
    %c0_6 = arith.constant 0 : index
    %c0_7 = arith.constant 0 : index
    %c0_8 = arith.constant 0 : index
    %8 = vector.load %arg2[%c0_6, %c0_7, %c0_8] : memref<5x7x128xf32, #tpu.memory_space<vmem>>, vector<5x7x128xf32>
    tpu.vector_store %arg2[%c0_6, %c0_7, %c0_8], %7 {strides = array<i32>} : memref<5x7x128xf32, #tpu.memory_space<vmem>>, vector<5x7x128xf32>,
    return
  }
  func.func @transform_0(%arg0: i32) -> (i32, i32, i32, i32) {
    %c0_i32 = arith.constant 0 : i32
    %c0_i32_0 = arith.constant 0 : i32
    %c0_i32_1 = arith.constant 0 : i32
    %c0_i32_2 = arith.constant 0 : i32
    return %arg0, %c0_i32, %c0_i32_0, %c0_i32_1 : i32, i32, i32, i32
  }
  func.func @transform_1(%arg0: i32) -> (i32, i32, i32) {
    %c0_i32 = arith.constant 0 : i32
    %c0_i32_0 = arith.constant 0 : i32
    %c0_i32_1 = arith.constant 0 : i32
    return %arg0, %c0_i32, %c0_i32_0 : i32, i32, i32
  }
}

module attributes {stable_mosaic.version = 11 : i64} {
  func.func @_fc_head_kernel(%arg0: i32, %arg1: memref<2x896xf32, #tpu.memory_space<vmem>>, %arg2: memref<896x512xf32, #tpu.memory_space<vmem>>, %arg3: memref<1x512xf32, #tpu.memory_space<vmem>>, %arg4: memref<512x2xf32, #tpu.memory_space<vmem>>, %arg5: memref<1x2xf32, #tpu.memory_space<vmem>>, %arg6: memref<2x2xf32, #tpu.memory_space<vmem>>, %arg7: memref<2x512xf32, #tpu.memory_space<vmem>>) attributes {dimension_semantics = [#tpu.dimension_semantics<arbitrary>], iteration_bounds = array<i64: 5>, scalar_prefetch = 0 : i64, scratch_operands = 1 : i64, tpu.core_type = #tpu.core_type<tc>, window_params = [{transform_indices = @transform_0, window_bounds = array<i64: 2, 896>}, {transform_indices = @transform_1, window_bounds = array<i64: 896, 512>}, {pipeline_mode = #tpu.pipeline_mode<synchronous>, transform_indices = @transform_2, window_bounds = array<i64: 1, 512>}, {pipeline_mode = #tpu.pipeline_mode<synchronous>, transform_indices = @transform_3, window_bounds = array<i64: 512, 2>}, {pipeline_mode = #tpu.pipeline_mode<synchronous>, transform_indices = @transform_4, window_bounds = array<i64: 1, 2>}, {pipeline_mode = #tpu.pipeline_mode<synchronous>, transform_indices = @transform_5, window_bounds = array<i64: 2, 2>}]} {
    %c0_i32 = arith.constant 0 : i32
    %0 = arith.cmpi eq, %arg0, %c0_i32 : i32
    %1 = arith.extui %0 : i1 to i32
    %c0_i32_0 = arith.constant 0 : i32
    %2 = arith.cmpi ne, %1, %c0_i32_0 : i32
    scf.if %2 {
      %cst_9 = arith.constant 0.000000e+00 : f32
      %12 = vector.broadcast %cst_9 : f32 to vector<2x512xf32>
      %c0_10 = arith.constant 0 : index
      %c0_11 = arith.constant 0 : index
      %13 = vector.load %arg7[%c0_10, %c0_11] : memref<2x512xf32, #tpu.memory_space<vmem>>, vector<2x512xf32>
      tpu.vector_store %arg7[%c0_10, %c0_11], %12 {strides = array<i32>} : memref<2x512xf32, #tpu.memory_space<vmem>>, vector<2x512xf32>,
    } else {
    }
    %c0 = arith.constant 0 : index
    %c0_1 = arith.constant 0 : index
    %3 = vector.load %arg7[%c0, %c0_1] : memref<2x512xf32, #tpu.memory_space<vmem>>, vector<2x512xf32>
    %c0_2 = arith.constant 0 : index
    %c0_3 = arith.constant 0 : index
    %4 = vector.load %arg1[%c0_2, %c0_3] : memref<2x896xf32, #tpu.memory_space<vmem>>, vector<2x896xf32>
    %c0_4 = arith.constant 0 : index
    %c0_5 = arith.constant 0 : index
    %5 = vector.load %arg2[%c0_4, %c0_5] : memref<896x512xf32, #tpu.memory_space<vmem>>, vector<896x512xf32>
    %cst = arith.constant dense<0.000000e+00> : vector<2x512xf32>
    %6 = tpu.matmul %4, %5, %cst {dimension_numbers = #tpu.dot_dimension_numbers<[1], [0], [0], [1], [0, 0, 1, 1], [], []>} : vector<2x896xf32>, vector<896x512xf32>, vector<2x512xf32> -> vector<2x512xf32>
    %7 = arith.addf %3, %6 : vector<2x512xf32>
    %c0_6 = arith.constant 0 : index
    %c0_7 = arith.constant 0 : index
    %8 = vector.load %arg7[%c0_6, %c0_7] : memref<2x512xf32, #tpu.memory_space<vmem>>, vector<2x512xf32>
    tpu.vector_store %arg7[%c0_6, %c0_7], %7 {strides = array<i32>} : memref<2x512xf32, #tpu.memory_space<vmem>>, vector<2x512xf32>,
    %c4_i32 = arith.constant 4 : i32
    %9 = arith.cmpi eq, %arg0, %c4_i32 : i32
    %10 = arith.extui %9 : i1 to i32
    %c0_i32_8 = arith.constant 0 : i32
    %11 = arith.cmpi ne, %10, %c0_i32_8 : i32
    scf.if %11 {
      %c0_9 = arith.constant 0 : index
      %c0_10 = arith.constant 0 : index
      %12 = vector.load %arg7[%c0_9, %c0_10] : memref<2x512xf32, #tpu.memory_space<vmem>>, vector<2x512xf32>
      %c0_11 = arith.constant 0 : index
      %c0_12 = arith.constant 0 : index
      %13 = vector.load %arg3[%c0_11, %c0_12] : memref<1x512xf32, #tpu.memory_space<vmem>>, vector<1x512xf32>
      %14 = vector.broadcast %13 : vector<1x512xf32> to vector<2x512xf32>
      %15 = arith.addf %12, %14 : vector<2x512xf32>
      %cst_13 = arith.constant 0.000000e+00 : f32
      %16 = vector.broadcast %cst_13 : f32 to vector<2x512xf32>
      %17 = arith.maximumf %15, %16 : vector<2x512xf32>
      %c0_14 = arith.constant 0 : index
      %c0_15 = arith.constant 0 : index
      %18 = vector.load %arg4[%c0_14, %c0_15] : memref<512x2xf32, #tpu.memory_space<vmem>>, vector<512x2xf32>
      %cst_16 = arith.constant dense<0.000000e+00> : vector<2x2xf32>
      %19 = tpu.matmul %17, %18, %cst_16 {dimension_numbers = #tpu.dot_dimension_numbers<[1], [0], [0], [1], [0, 0, 1, 1], [], []>} : vector<2x512xf32>, vector<512x2xf32>, vector<2x2xf32> -> vector<2x2xf32>
      %c0_17 = arith.constant 0 : index
      %c0_18 = arith.constant 0 : index
      %20 = vector.load %arg5[%c0_17, %c0_18] : memref<1x2xf32, #tpu.memory_space<vmem>>, vector<1x2xf32>
      %21 = vector.broadcast %20 : vector<1x2xf32> to vector<2x2xf32>
      %22 = arith.addf %19, %21 : vector<2x2xf32>
      %c0_19 = arith.constant 0 : index
      %c0_20 = arith.constant 0 : index
      %23 = vector.load %arg6[%c0_19, %c0_20] : memref<2x2xf32, #tpu.memory_space<vmem>>, vector<2x2xf32>
      tpu.vector_store %arg6[%c0_19, %c0_20], %22 {strides = array<i32>} : memref<2x2xf32, #tpu.memory_space<vmem>>, vector<2x2xf32>,
    } else {
    }
    return
  }
  func.func @transform_0(%arg0: i32) -> (i32, i32) {
    %c0_i32 = arith.constant 0 : i32
    %c0_i32_0 = arith.constant 0 : i32
    return %c0_i32, %arg0 : i32, i32
  }
  func.func @transform_1(%arg0: i32) -> (i32, i32) {
    %c0_i32 = arith.constant 0 : i32
    %c0_i32_0 = arith.constant 0 : i32
    return %arg0, %c0_i32 : i32, i32
  }
  func.func @transform_2(%arg0: i32) -> (i32, i32) {
    %c0_i32 = arith.constant 0 : i32
    %c0_i32_0 = arith.constant 0 : i32
    %c0_i32_1 = arith.constant 0 : i32
    return %c0_i32, %c0_i32_0 : i32, i32
  }
  func.func @transform_3(%arg0: i32) -> (i32, i32) {
    %c0_i32 = arith.constant 0 : i32
    %c0_i32_0 = arith.constant 0 : i32
    %c0_i32_1 = arith.constant 0 : i32
    return %c0_i32, %c0_i32_0 : i32, i32
  }
  func.func @transform_4(%arg0: i32) -> (i32, i32) {
    %c0_i32 = arith.constant 0 : i32
    %c0_i32_0 = arith.constant 0 : i32
    %c0_i32_1 = arith.constant 0 : i32
    return %c0_i32, %c0_i32_0 : i32, i32
  }
  func.func @transform_5(%arg0: i32) -> (i32, i32) {
    %c0_i32 = arith.constant 0 : i32
    %c0_i32_0 = arith.constant 0 : i32
    %c0_i32_1 = arith.constant 0 : i32
    return %c0_i32, %c0_i32_0 : i32, i32
  }
}

</mosaic_0001>

<bundles_post_ra>
// kernel: nn_forward.9
= control target key start
LH: loop header
LB: loop body
LE: loop exit
PB: predicated region body
PF: predicated region fallthrough
CT: control target
= control target key end

     0   :  { %s1972_s12 = smov 0   ;;  %s2624_s0 = inlined_call_operand.vmem [shape: f32[2376,36], index: 0, kind: input, shape index: {}]   ;;  %s2625_s1 = inlined_call_operand.vmem [shape: f32[36,128], index: 1, kind: input, shape index: {}]   ;;  %s2626_s2 = inlined_call_operand.vmem [shape: f32[1,128], index: 2, kind: input, shape index: {}]   ;;  %s2627_s3 = inlined_call_operand.vmem [shape: f32[2376,128], index: 3, kind: output, shape index: {}]  }
   0x1 LB: > { %s1401_s13 = sadd.s32 4294967295, %s1948_s12   ;;  %p1405_p0 = scmp.ge.s32.totalorder %s1948_s12, 1  ;;  %s1948_s12 = sphi %s1972_s12, %s13_s12  }
   0x2   : > { %p138_p1 = scmp.lt.s32.totalorder %s1948_s12, 4 }
   0x4   : > { %p139_p2 = pnand %p1405_p0, %p138_p1 }
   0x5   : > { %s162_s18 = smul.u32 (!%p139_p2), 99, %s1401_s13 }
   0x6   : > { %142 = sbr.rel (%p139_p2) target bundleno = 416 (0x1a0), region = 32 }
   0x7   : > { %p163_p3 = scmp.lt.s32.totalorder (!%p139_p2), %s162_s18, 296 }
   0xb   : > { %v277_v0 = vld [vmem:[%s2625_s1 + $0x20] sm:$0xf]  ;;  %vm583_vm0 = vcmask 1043456   ;;  %v1950_v1 = vmov 0.0   ;;  %v276_v2 = vld [vmem:[%s2625_s1 + $0x18] sm:$0xff]  ;;  %v275_v3 = vld [vmem:[%s2625_s1 + $0x10] sm:$0xff] }
   0xc   : > { %1615 = vmatprep.subr.mxu0 %v1950_v1  ;;  %1922 = vmatprep.subr.mxu1 %v1950_v1  ;;  %v274_v4 = vld [vmem:[%s2625_s1 + $0x8] sm:$0xff]  ;;  %s2629_s18 = smov (!%p163_p3, %s162_s18), 296  ;;  %v273_v5 = vld [vmem:[%s2625_s1] sm:$0xff]  ;;  %vm285_vm1 = vcmask 293888   ;;  %vm1951_vm2 = vmmov 0  }
   0xd   : > { %1616 = vmatpush3.msk.msra.mxu0 %vm583_vm0, %v277_v0  ;;  %1927 = vmatpush3.msk.msra.mxu1 %vm583_vm0, %v277_v0  ;;  %s1406_s25 = sshll.u32 %s2629_s18, 3 }
   0xe   : > { %1617 = vmatprep.subr.mxu0 %v1950_v1  ;;  %1923 = vmatprep.subr.mxu1 %v1950_v1  ;;  %s2011_s28 = scalar_lea.vmem %s2624_s0, %s1406_s25  ;;  %s2420_s6 = scalar_lea.vmem %s2627_s3, %s1406_s25 }
   0xf   : > { %1618 = vmatpush3.msra.mxu0 %v276_v2  ;;  %1928 = vmatpush3.msra.mxu1 %v276_v2  ;;  %v174_v6 = vld [vmem:[%s2011_s28] sm:$0xff]  ;;  %v224_v7 = vld [vmem:[%s2011_s28 + $0x190] sm:$0xff]  ;;  %v175_v8 = vld [vmem:[%s2011_s28 + $0x8] sm:$0xff] }
  0x10   : > { %1619 = vmatprep.subr.mxu0 %v1950_v1  ;;  %1924 = vmatprep.subr.mxu1 %v1950_v1  ;;  %v225_v9 = vld [vmem:[%s2011_s28 + $0x198] sm:$0xff]  ;;  %v176_v10 = vld [vmem:[%s2011_s28 + $0x10] sm:$0xff]  ;;  %v226_v11 = vld [vmem:[%s2011_s28 + $0x1a0] sm:$0xff] }
  0x11   : > { %1620 = vmatpush3.msra.mxu0 %v275_v3  ;;  %1929 = vmatpush3.msra.mxu1 %v275_v3  ;;  %v177_v12 = vld [vmem:[%s2011_s28 + $0x18] sm:$0xff]  ;;  %v227_v13 = vld [vmem:[%s2011_s28 + $0x1a8] sm:$0xff]  ;;  %v178_v14 = vld [vmem:[%s2011_s28 + $0x20] sm:$0xff] }
  0x12   : > { %1621 = vmatprep.subr.mxu0 %v1950_v1  ;;  %1925 = vmatprep.subr.mxu1 %v1950_v1  ;;  %v228_v15 = vld [vmem:[%s2011_s28 + $0x1b0] sm:$0xff]  ;;  %v179_v16 = vld [vmem:[%s2011_s28 + $0x28] sm:$0xff]  ;;  %v229_v17 = vld [vmem:[%s2011_s28 + $0x1b8] sm:$0xff] }
  0x13   : > { %1622 = vmatpush3.msra.mxu0 %v274_v4  ;;  %1930 = vmatpush3.msra.mxu1 %v274_v4  ;;  %v180_v18 = vld [vmem:[%s2011_s28 + $0x30] sm:$0xff]  ;;  %v230_v19 = vld [vmem:[%s2011_s28 + $0x1c0] sm:$0xff]  ;;  %v181_v20 = vld [vmem:[%s2011_s28 + $0x38] sm:$0xff] }
  0x14   : > { %1623 = vmatprep.subr.mxu0 %v1950_v1  ;;  %1625 = vmatprep.mubr.msk.f32.mxu0 %vm1951_vm2, %v1950_v1  ;;  %v231_v21 = vld [vmem:[%s2011_s28 + $0x1c8] sm:$0xff]  ;;  %v182_v22 = vld [vmem:[%s2011_s28 + $0x40] sm:$0xff]  ;;  %v232_v23 = vld [vmem:[%s2011_s28 + $0x1d0] sm:$0xff] }
  0x15   : > { %1624 = vmatpush3.msra.mxu0 %v273_v5  ;;  %1926 = vmatprep.subr.mxu1 %v1950_v1  ;;  %v183_v24 = vld [vmem:[%s2011_s28 + $0x48] sm:$0xff]  ;;  %v233_v25 = vld [vmem:[%s2011_s28 + $0x1d8] sm:$0xff]  ;;  %v184_v26 = vld [vmem:[%s2011_s28 + $0x50] sm:$0xff] }
  0x16   : > { %1626 = vmatmul.mubr.msk.f32.vlgmr.msra.gmra.mxu0 %vm285_vm1, %v174_v6  ;;  %1931 = vmatpush3.msra.mxu1 %v273_v5  ;;  %v234_v27 = vld [vmem:[%s2011_s28 + $0x1e0] sm:$0xff]  ;;  %v185_v28 = vld [vmem:[%s2011_s28 + $0x58] sm:$0xff]  ;;  %v235_v29 = vld [vmem:[%s2011_s28 + $0x1e8] sm:$0xff] }
  0x17   : > { %1775 = vmatprep.mubr.msk.f32.mxu1 %vm1951_vm2, %v1950_v1  ;;  %1628 = vmatprep.mubr.msk.f32.mxu0 %vm1951_vm2, %v1950_v1  ;;  %v186_v30 = vld [vmem:[%s2011_s28 + $0x60] sm:$0xff]  ;;  %v236_v31 = vld [vmem:[%s2011_s28 + $0x1f0] sm:$0xff]  ;;  %v187_v32 = vld [vmem:[%s2011_s28 + $0x68] sm:$0xff] }
  0x18   : > { %1776 = vmatmul.mubr.msk.f32.vlgmr.msra.gmra.mxu1 %vm285_vm1, %v224_v7  ;;  %v237_v33 = vld [vmem:[%s2011_s28 + $0x1f8] sm:$0xff]  ;;  %v188_v34 = vld [vmem:[%s2011_s28 + $0x70] sm:$0xff]  ;;  %v238_v35 = vld [vmem:[%s2011_s28 + $0x200] sm:$0xff] }
  0x19   : > { %1778 = vmatprep.mubr.msk.f32.mxu1 %vm1951_vm2, %v1950_v1  ;;  %v189_v36 = vld [vmem:[%s2011_s28 + $0x78] sm:$0xff]  ;;  %v239_v37 = vld [vmem:[%s2011_s28 + $0x208] sm:$0xff]  ;;  %v190_v38 = vld [vmem:[%s2011_s28 + $0x80] sm:$0xff] }
  0x1a   : > { %1629 = vmatmul.mubr.msk.f32.gmra.mxu0 %vm285_vm1, %v175_v8  ;;  %v240_v39 = vld [vmem:[%s2011_s28 + $0x210] sm:$0xff]  ;;  %v191_v40 = vld [vmem:[%s2011_s28 + $0x88] sm:$0xff]  ;;  %v241_v41 = vld [vmem:[%s2011_s28 + $0x218] sm:$0xff] }
  0x1b   : > { %1631 = vmatprep.mubr.msk.f32.mxu0 %vm1951_vm2, %v1950_v1  ;;  %v192_v42 = vld [vmem:[%s2011_s28 + $0x90] sm:$0xff]  ;;  %v242_v43 = vld [vmem:[%s2011_s28 + $0x220] sm:$0xff]  ;;  %v193_v44 = vld [vmem:[%s2011_s28 + $0x98] sm:$0xff] }
  0x1c   : > { %1779 = vmatmul.mubr.msk.f32.gmra.mxu1 %vm285_vm1, %v225_v9  ;;  %v243_v45 = vld [vmem:[%s2011_s28 + $0x228] sm:$0xff]  ;;  %v194_v46 = vld [vmem:[%s2011_s28 + $0xa0] sm:$0xff]  ;;  %v244_v47 = vld [vmem:[%s2011_s28 + $0x230] sm:$0xff] }
  0x1d   : > { %1781 = vmatprep.mubr.msk.f32.mxu1 %vm1951_vm2, %v1950_v1  ;;  %v195_v48 = vld [vmem:[%s2011_s28 + $0xa8] sm:$0xff]  ;;  %v245_v49 = vld [vmem:[%s2011_s28 + $0x238] sm:$0xff]  ;;  %v196_v50 = vld [vmem:[%s2011_s28 + $0xb0] sm:$0xff] }
  0x1e   : > { %1632 = vmatmul.mubr.msk.f32.gmra.mxu0 %vm285_vm1, %v176_v10  ;;  %v246_v51 = vld [vmem:[%s2011_s28 + $0x240] sm:$0xff]  ;;  %v197_v52 = vld [vmem:[%s2011_s28 + $0xb8] sm:$0xff]  ;;  %v247_v53 = vld [vmem:[%s2011_s28 + $0x248] sm:$0xff] }
  0x1f   : > { %1634 = vmatprep.mubr.msk.f32.mxu0 %vm1951_vm2, %v1950_v1  ;;  %v198_v54 = vld [vmem:[%s2011_s28 + $0xc0] sm:$0xff]  ;;  %v248_v55 = vld [vmem:[%s2011_s28 + $0x250] sm:$0xff]  ;;  %v199_v56 = vld [vmem:[%s2011_s28 + $0xc8] sm:$0xff] }
  0x20   : > { %1782 = vmatmul.mubr.msk.f32.gmra.mxu1 %vm285_vm1, %v226_v11  ;;  %v249_v57 = vld [vmem:[%s2011_s28 + $0x258] sm:$0xff]  ;;  %v200_v58 = vld [vmem:[%s2011_s28 + $0xd0] sm:$0xff]  ;;  %v250_v59 = vld [vmem:[%s2011_s28 + $0x260] sm:$0xff] }
  0x21   : > { %1784 = vmatprep.mubr.msk.f32.mxu1 %vm1951_vm2, %v1950_v1  ;;  %v201_v60 = vld [vmem:[%s2011_s28 + $0xd8] sm:$0xff]  ;;  %v251_v61 = vld [vmem:[%s2011_s28 + $0x268] sm:$0xff]  ;;  %v202_v62 = vld [vmem:[%s2011_s28 + $0xe0] sm:$0xff] }
  0x22   : > { %1635 = vmatmul.mubr.msk.f32.gmra.mxu0 %vm285_vm1, %v177_v12  ;;  %v252_v63 = vld [vmem:[%s2011_s28 + $0x270] sm:$0xff]  ;;  %v203_v0 = vld [vmem:[%s2011_s28 + $0xe8] sm:$0xff]  ;;  %v253_v2 = vld [vmem:[%s2011_s28 + $0x278] sm:$0xff] }
  0x23   : > { %1637 = vmatprep.mubr.msk.f32.mxu0 %vm1951_vm2, %v1950_v1  ;;  %v204_v3 = vld [vmem:[%s2011_s28 + $0xf0] sm:$0xff]  ;;  %v254_v4 = vld [vmem:[%s2011_s28 + $0x280] sm:$0xff]  ;;  %v205_v5 = vld [vmem:[%s2011_s28 + $0xf8] sm:$0xff] }
  0x24   : > { %1785 = vmatmul.mubr.msk.f32.gmra.mxu1 %vm285_vm1, %v227_v13  ;;  %v255_v6 = vld [vmem:[%s2011_s28 + $0x288] sm:$0xff]  ;;  %v206_v7 = vld [vmem:[%s2011_s28 + $0x100] sm:$0xff]  ;;  %v256_v8 = vld [vmem:[%s2011_s28 + $0x290] sm:$0xff] }
  0x25   : > { %1787 = vmatprep.mubr.msk.f32.mxu1 %vm1951_vm2, %v1950_v1  ;;  %v207_v9 = vld [vmem:[%s2011_s28 + $0x108] sm:$0xff]  ;;  %v257_v10 = vld [vmem:[%s2011_s28 + $0x298] sm:$0xff]  ;;  %v208_v11 = vld [vmem:[%s2011_s28 + $0x110] sm:$0xff] }
  0x26   : > { %1638 = vmatmul.mubr.msk.f32.gmra.mxu0 %vm285_vm1, %v178_v14  ;;  %v258_v12 = vld [vmem:[%s2011_s28 + $0x2a0] sm:$0xff]  ;;  %v209_v13 = vld [vmem:[%s2011_s28 + $0x118] sm:$0xff]  ;;  %v259_v14 = vld [vmem:[%s2011_s28 + $0x2a8] sm:$0xff] }
  0x27   : > { %1640 = vmatprep.mubr.msk.f32.mxu0 %vm1951_vm2, %v1950_v1 }
  0x28   : > { %1788 = vmatmul.mubr.msk.f32.gmra.mxu1 %vm285_vm1, %v228_v15  ;;  %v210_v15 = vld [vmem:[%s2011_s28 + $0x120] sm:$0xff] }
  0x29   : > { %1790 = vmatprep.mubr.msk.f32.mxu1 %vm1951_vm2, %v1950_v1 }
  0x2a   : > { %1641 = vmatmul.mubr.msk.f32.gmra.mxu0 %vm285_vm1, %v179_v16  ;;  %v260_v16 = vld [vmem:[%s2011_s28 + $0x2b0] sm:$0xff] }
  0x2b   : > { %1643 = vmatprep.mubr.msk.f32.mxu0 %vm1951_vm2, %v1950_v1 }
  0x2c   : > { %1791 = vmatmul.mubr.msk.f32.gmra.mxu1 %vm285_vm1, %v229_v17  ;;  %v211_v17 = vld [vmem:[%s2011_s28 + $0x128] sm:$0xff] }
  0x2d   : > { %1793 = vmatprep.mubr.msk.f32.mxu1 %vm1951_vm2, %v1950_v1 }
  0x2e   : > { %1644 = vmatmul.mubr.msk.f32.gmra.mxu0 %vm285_vm1, %v180_v18  ;;  %v261_v18 = vld [vmem:[%s2011_s28 + $0x2b8] sm:$0xff] }
  0x2f   : > { %1646 = vmatprep.mubr.msk.f32.mxu0 %vm1951_vm2, %v1950_v1 }
  0x30   : > { %1794 = vmatmul.mubr.msk.f32.gmra.mxu1 %vm285_vm1, %v230_v19  ;;  %v212_v19 = vld [vmem:[%s2011_s28 + $0x130] sm:$0xff] }
  0x31   : > { %1796 = vmatprep.mubr.msk.f32.mxu1 %vm1951_vm2, %v1950_v1 }
  0x32   : > { %1647 = vmatmul.mubr.msk.f32.gmra.mxu0 %vm285_vm1, %v181_v20  ;;  %v262_v20 = vld [vmem:[%s2011_s28 + $0x2c0] sm:$0xff] }
  0x33   : > { %1649 = vmatprep.mubr.msk.f32.mxu0 %vm1951_vm2, %v1950_v1 }
  0x34   : > { %1797 = vmatmul.mubr.msk.f32.gmra.mxu1 %vm285_vm1, %v231_v21  ;;  %v213_v21 = vld [vmem:[%s2011_s28 + $0x138] sm:$0xff] }
  0x35   : > { %1799 = vmatprep.mubr.msk.f32.mxu1 %vm1951_vm2, %v1950_v1 }
  0x36   : > { %1650 = vmatmul.mubr.msk.f32.gmra.mxu0 %vm285_vm1, %v182_v22  ;;  %v263_v22 = vld [vmem:[%s2011_s28 + $0x2c8] sm:$0xff] }
  0x37   : > { %1652 = vmatprep.mubr.msk.f32.mxu0 %vm1951_vm2, %v1950_v1 }
  0x38   : > { %1800 = vmatmul.mubr.msk.f32.gmra.mxu1 %vm285_vm1, %v232_v23  ;;  %v214_v23 = vld [vmem:[%s2011_s28 + $0x140] sm:$0xff] }
  0x39   : > { %1802 = vmatprep.mubr.msk.f32.mxu1 %vm1951_vm2, %v1950_v1 }
  0x3a   : > { %1653 = vmatmul.mubr.msk.f32.gmra.mxu0 %vm285_vm1, %v183_v24  ;;  %v264_v24 = vld [vmem:[%s2011_s28 + $0x2d0] sm:$0xff] }
  0x3b   : > { %1655 = vmatprep.mubr.msk.f32.mxu0 %vm1951_vm2, %v1950_v1 }
  0x3c   : > { %1803 = vmatmul.mubr.msk.f32.gmra.mxu1 %vm285_vm1, %v233_v25  ;;  %v215_v25 = vld [vmem:[%s2011_s28 + $0x148] sm:$0xff] }
  0x3d   : > { %1805 = vmatprep.mubr.msk.f32.mxu1 %vm1951_vm2, %v1950_v1 }
  0x3e   : > { %1656 = vmatmul.mubr.msk.f32.gmra.mxu0 %vm285_vm1, %v184_v26  ;;  %v265_v26 = vld [vmem:[%s2011_s28 + $0x2d8] sm:$0xff] }
  0x3f   : > { %1658 = vmatprep.mubr.msk.f32.mxu0 %vm1951_vm2, %v1950_v1 }
  0x40   : > { %1806 = vmatmul.mubr.msk.f32.gmra.mxu1 %vm285_vm1, %v234_v27  ;;  %v216_v27 = vld [vmem:[%s2011_s28 + $0x150] sm:$0xff] }
  0x41   : > { %1808 = vmatprep.mubr.msk.f32.mxu1 %vm1951_vm2, %v1950_v1 }
  0x42   : > { %1659 = vmatmul.mubr.msk.f32.gmra.mxu0 %vm285_vm1, %v185_v28  ;;  %v266_v28 = vld [vmem:[%s2011_s28 + $0x2e0] sm:$0xff] }
  0x43   : > { %1661 = vmatprep.mubr.msk.f32.mxu0 %vm1951_vm2, %v1950_v1 }
  0x44   : > { %1809 = vmatmul.mubr.msk.f32.gmra.mxu1 %vm285_vm1, %v235_v29  ;;  %v217_v29 = vld [vmem:[%s2011_s28 + $0x158] sm:$0xff] }
  0x45   : > { %1811 = vmatprep.mubr.msk.f32.mxu1 %vm1951_vm2, %v1950_v1 }
  0x46   : > { %1662 = vmatmul.mubr.msk.f32.gmra.mxu0 %vm285_vm1, %v186_v30  ;;  %v267_v30 = vld [vmem:[%s2011_s28 + $0x2e8] sm:$0xff] }
  0x47   : > { %1664 = vmatprep.mubr.msk.f32.mxu0 %vm1951_vm2, %v1950_v1 }
  0x48   : > { %1812 = vmatmul.mubr.msk.f32.gmra.mxu1 %vm285_vm1, %v236_v31  ;;  %v218_v31 = vld [vmem:[%s2011_s28 + $0x160] sm:$0xff] }
  0x49   : > { %1814 = vmatprep.mubr.msk.f32.mxu1 %vm1951_vm2, %v1950_v1 }
  0x4a   : > { %1665 = vmatmul.mubr.msk.f32.gmra.mxu0 %vm285_vm1, %v187_v32  ;;  %v268_v32 = vld [vmem:[%s2011_s28 + $0x2f0] sm:$0xff] }
  0x4b   : > { %1667 = vmatprep.mubr.msk.f32.mxu0 %vm1951_vm2, %v1950_v1 }
  0x4c   : > { %1815 = vmatmul.mubr.msk.f32.gmra.mxu1 %vm285_vm1, %v237_v33  ;;  %v219_v33 = vld [vmem:[%s2011_s28 + $0x168] sm:$0xff] }
  0x4d   : > { %1817 = vmatprep.mubr.msk.f32.mxu1 %vm1951_vm2, %v1950_v1 }
  0x4e   : > { %1668 = vmatmul.mubr.msk.f32.gmra.mxu0 %vm285_vm1, %v188_v34  ;;  %v269_v34 = vld [vmem:[%s2011_s28 + $0x2f8] sm:$0xff] }
  0x4f   : > { %1670 = vmatprep.mubr.msk.f32.mxu0 %vm1951_vm2, %v1950_v1 }
  0x50   : > { %1818 = vmatmul.mubr.msk.f32.gmra.mxu1 %vm285_vm1, %v238_v35  ;;  %v220_v35 = vld [vmem:[%s2011_s28 + $0x170] sm:$0xff] }
  0x51   : > { %1820 = vmatprep.mubr.msk.f32.mxu1 %vm1951_vm2, %v1950_v1 }
  0x52   : > { %1671 = vmatmul.mubr.msk.f32.gmra.mxu0 %vm285_vm1, %v189_v36  ;;  %v270_v36 = vld [vmem:[%s2011_s28 + $0x300] sm:$0xff] }
  0x53   : > { %1673 = vmatprep.mubr.msk.f32.mxu0 %vm1951_vm2, %v1950_v1 }
  0x54   : > { %1821 = vmatmul.mubr.msk.f32.gmra.mxu1 %vm285_vm1, %v239_v37  ;;  %v221_v37 = vld [vmem:[%s2011_s28 + $0x178] sm:$0xff] }
  0x55   : > { %1823 = vmatprep.mubr.msk.f32.mxu1 %vm1951_vm2, %v1950_v1 }
  0x56   : > { %1674 = vmatmul.mubr.msk.f32.gmra.mxu0 %vm285_vm1, %v190_v38  ;;  %v271_v38 = vld [vmem:[%s2011_s28 + $0x308] sm:$0xff] }
  0x57   : > { %1676 = vmatprep.mubr.msk.f32.mxu0 %vm1951_vm2, %v1950_v1 }
  0x58   : > { %1824 = vmatmul.mubr.msk.f32.gmra.mxu1 %vm285_vm1, %v240_v39  ;;  %v222_v39 = vld [vmem:[%s2011_s28 + $0x180] sm:$0xff] }
  0x59   : > { %1826 = vmatprep.mubr.msk.f32.mxu1 %vm1951_vm2, %v1950_v1 }
  0x5a   : > { %1677 = vmatmul.mubr.msk.f32.gmra.mxu0 %vm285_vm1, %v191_v40  ;;  %v2405_v40 = vld [vmem:[%s2626_s2] ss:$0 sm:$0xff] }
  0x5b   : > { %1679 = vmatprep.mubr.msk.f32.mxu0 %vm1951_vm2, %v1950_v1 }
  0x5c   : > { %1827 = vmatmul.mubr.msk.f32.gmra.mxu1 %vm285_vm1, %v241_v41  ;;  %v272_v41 = vld [vmem:[%s2011_s28 + $0x310] sm:$0xff] }
  0x5d   : > { %1829 = vmatprep.mubr.msk.f32.mxu1 %vm1951_vm2, %v1950_v1 }
  0x5e   : > { %1680 = vmatmul.mubr.msk.f32.gmra.mxu0 %vm285_vm1, %v192_v42 }
  0x5f   : > { %1682 = vmatprep.mubr.msk.f32.mxu0 %vm1951_vm2, %v1950_v1 }
  0x60   : > { %1830 = vmatmul.mubr.msk.f32.gmra.mxu1 %vm285_vm1, %v242_v43 }
  0x61   : > { %1832 = vmatprep.mubr.msk.f32.mxu1 %vm1951_vm2, %v1950_v1 }
  0x62   : > { %1683 = vmatmul.mubr.msk.f32.gmra.mxu0 %vm285_vm1, %v193_v44  ;;  %v223_v44 = vld [vmem:[%s2011_s28 + $0x188] sm:$0xff] }
  0x63   : > { %1685 = vmatprep.mubr.msk.f32.mxu0 %vm1951_vm2, %v1950_v1 }
  0x64   : > { %1833 = vmatmul.mubr.msk.f32.gmra.mxu1 %vm285_vm1, %v243_v45 }
  0x65   : > { %1835 = vmatprep.mubr.msk.f32.mxu1 %vm1951_vm2, %v1950_v1 }
  0x66   : > { %1686 = vmatmul.mubr.msk.f32.gmra.mxu0 %vm285_vm1, %v194_v46 }
  0x67   : > { %1688 = vmatprep.mubr.msk.f32.mxu0 %vm1951_vm2, %v1950_v1 }
  0x68   : > { %1836 = vmatmul.mubr.msk.f32.gmra.mxu1 %vm285_vm1, %v244_v47 }
  0x69   : > { %1838 = vmatprep.mubr.msk.f32.mxu1 %vm1951_vm2, %v1950_v1 }
  0x6a   : > { %1689 = vmatmul.mubr.msk.f32.gmra.mxu0 %vm285_vm1, %v195_v48 }
  0x6b   : > { %1691 = vmatprep.mubr.msk.f32.mxu0 %vm1951_vm2, %v1950_v1 }
  0x6c   : > { %1839 = vmatmul.mubr.msk.f32.gmra.mxu1 %vm285_vm1, %v245_v49 }
  0x6d   : > { %1841 = vmatprep.mubr.msk.f32.mxu1 %vm1951_vm2, %v1950_v1 }
  0x6e   : > { %1692 = vmatmul.mubr.msk.f32.gmra.mxu0 %vm285_vm1, %v196_v50 }
  0x6f   : > { %1694 = vmatprep.mubr.msk.f32.mxu0 %vm1951_vm2, %v1950_v1 }
  0x70   : > { %1842 = vmatmul.mubr.msk.f32.gmra.mxu1 %vm285_vm1, %v246_v51 }
  0x71   : > { %1844 = vmatprep.mubr.msk.f32.mxu1 %vm1951_vm2, %v1950_v1 }
  0x72   : > { %1695 = vmatmul.mubr.msk.f32.gmra.mxu0 %vm285_vm1, %v197_v52 }
  0x73   : > { %1697 = vmatprep.mubr.msk.f32.mxu0 %vm1951_vm2, %v1950_v1 }
  0x74   : > { %1845 = vmatmul.mubr.msk.f32.gmra.mxu1 %vm285_vm1, %v247_v53 }
  0x75   : > { %1847 = vmatprep.mubr.msk.f32.mxu1 %vm1951_vm2, %v1950_v1 }
  0x76   : > { %1698 = vmatmul.mubr.msk.f32.gmra.mxu0 %vm285_vm1, %v198_v54 }
  0x77   : > { %1700 = vmatprep.mubr.msk.f32.mxu0 %vm1951_vm2, %v1950_v1 }
  0x78   : > { %1848 = vmatmul.mubr.msk.f32.gmra.mxu1 %vm285_vm1, %v248_v55 }
  0x79   : > { %1850 = vmatprep.mubr.msk.f32.mxu1 %vm1951_vm2, %v1950_v1 }
  0x7a   : > { %1701 = vmatmul.mubr.msk.f32.gmra.mxu0 %vm285_vm1, %v199_v56 }
  0x7b   : > { %1703 = vmatprep.mubr.msk.f32.mxu0 %vm1951_vm2, %v1950_v1 }
  0x7c   : > { %1851 = vmatmul.mubr.msk.f32.gmra.mxu1 %vm285_vm1, %v249_v57 }
  0x7d   : > { %1853 = vmatprep.mubr.msk.f32.mxu1 %vm1951_vm2, %v1950_v1 }
  0x7e   : > { %1704 = vmatmul.mubr.msk.f32.gmra.mxu0 %vm285_vm1, %v200_v58 }
  0x7f   : > { %1706 = vmatprep.mubr.msk.f32.mxu0 %vm1951_vm2, %v1950_v1 }
  0x80   : > { %1854 = vmatmul.mubr.msk.f32.gmra.mxu1 %vm285_vm1, %v250_v59 }
  0x81   : > { %1856 = vmatprep.mubr.msk.f32.mxu1 %vm1951_vm2, %v1950_v1 }
  0x82   : > { %1707 = vmatmul.mubr.msk.f32.gmra.mxu0 %vm285_vm1, %v201_v60 }
  0x83   : > { %1709 = vmatprep.mubr.msk.f32.mxu0 %vm1951_vm2, %v1950_v1 }
  0x84   : > { %1857 = vmatmul.mubr.msk.f32.gmra.mxu1 %vm285_vm1, %v251_v61 }
  0x85   : > { %1859 = vmatprep.mubr.msk.f32.mxu1 %vm1951_vm2, %v1950_v1 }
  0x86   : > { %1710 = vmatmul.mubr.msk.f32.gmra.mxu0 %vm285_vm1, %v202_v62 }
  0x87   : > { %1712 = vmatprep.mubr.msk.f32.mxu0 %vm1951_vm2, %v1950_v1 }
  0x88   : > { %1860 = vmatmul.mubr.msk.f32.gmra.mxu1 %vm285_vm1, %v252_v63 }
  0x89   : > { %1862 = vmatprep.mubr.msk.f32.mxu1 %vm1951_vm2, %v1950_v1 }
  0x8a   : > { %1713 = vmatmul.mubr.msk.f32.gmra.mxu0 %vm285_vm1, %v203_v0 }
  0x8b   : > { %1715 = vmatprep.mubr.msk.f32.mxu0 %vm1951_vm2, %v1950_v1 }
  0x8c   : > { %1863 = vmatmul.mubr.msk.f32.gmra.mxu1 %vm285_vm1, %v253_v2 }
  0x8d   : > { %1865 = vmatprep.mubr.msk.f32.mxu1 %vm1951_vm2, %v1950_v1 }
  0x8e   : > { %1716 = vmatmul.mubr.msk.f32.gmra.mxu0 %vm285_vm1, %v204_v3 }
  0x8f   : > { %1718 = vmatprep.mubr.msk.f32.mxu0 %vm1951_vm2, %v1950_v1 }
  0x90   : > { %1866 = vmatmul.mubr.msk.f32.gmra.mxu1 %vm285_vm1, %v254_v4 }
  0x91   : > { %1868 = vmatprep.mubr.msk.f32.mxu1 %vm1951_vm2, %v1950_v1 }
  0x92   : > { %1719 = vmatmul.mubr.msk.f32.gmra.mxu0 %vm285_vm1, %v205_v5 }
  0x93   : > { %1721 = vmatprep.mubr.msk.f32.mxu0 %vm1951_vm2, %v1950_v1 }
  0x94   : > { %1869 = vmatmul.mubr.msk.f32.gmra.mxu1 %vm285_vm1, %v255_v6 }
  0x95   : > { %1871 = vmatprep.mubr.msk.f32.mxu1 %vm1951_vm2, %v1950_v1 }
  0x96   : > { %1722 = vmatmul.mubr.msk.f32.gmra.mxu0 %vm285_vm1, %v206_v7 }
  0x97   : > { %1724 = vmatprep.mubr.msk.f32.mxu0 %vm1951_vm2, %v1950_v1 }
  0x98   : > { %1872 = vmatmul.mubr.msk.f32.gmra.mxu1 %vm285_vm1, %v256_v8 }
  0x99   : > { %1874 = vmatprep.mubr.msk.f32.mxu1 %vm1951_vm2, %v1950_v1 }
  0x9a   : > { %1725 = vmatmul.mubr.msk.f32.gmra.mxu0 %vm285_vm1, %v207_v9 }
  0x9b   : > { %1727 = vmatprep.mubr.msk.f32.mxu0 %vm1951_vm2, %v1950_v1 }
  0x9c   : > { %1875 = vmatmul.mubr.msk.f32.gmra.mxu1 %vm285_vm1, %v257_v10 }
  0x9d   : > { %1877 = vmatprep.mubr.msk.f32.mxu1 %vm1951_vm2, %v1950_v1 }
  0x9e   : > { %1728 = vmatmul.mubr.msk.f32.gmra.mxu0 %vm285_vm1, %v208_v11 }
  0x9f   : > { %1730 = vmatprep.mubr.msk.f32.mxu0 %vm1951_vm2, %v1950_v1 }
  0xa0   : > { %1878 = vmatmul.mubr.msk.f32.gmra.mxu1 %vm285_vm1, %v258_v12 }
  0xa1   : > { %1880 = vmatprep.mubr.msk.f32.mxu1 %vm1951_vm2, %v1950_v1 }
  0xa2   : > { %1731 = vmatmul.mubr.msk.f32.gmra.mxu0 %vm285_vm1, %v209_v13 }
  0xa3   : > { %1733 = vmatprep.mubr.msk.f32.mxu0 %vm1951_vm2, %v1950_v1 }
  0xa4   : > { %1881 = vmatmul.mubr.msk.f32.gmra.mxu1 %vm285_vm1, %v259_v14 }
  0xa5   : > { %1883 = vmatprep.mubr.msk.f32.mxu1 %vm1951_vm2, %v1950_v1 }
  0xa6   : > { %1734 = vmatmul.mubr.msk.f32.gmra.mxu0 %vm285_vm1, %v210_v15 }
  0xa7   : > { %1736 = vmatprep.mubr.msk.f32.mxu0 %vm1951_vm2, %v1950_v1 }
  0xa8   : > { %1884 = vmatmul.mubr.msk.f32.gmra.mxu1 %vm285_vm1, %v260_v16 }
  0xa9   : > { %1886 = vmatprep.mubr.msk.f32.mxu1 %vm1951_vm2, %v1950_v1 }
  0xaa   : > { %1737 = vmatmul.mubr.msk.f32.gmra.mxu0 %vm285_vm1, %v211_v17 }
  0xab   : > { %1739 = vmatprep.mubr.msk.f32.mxu0 %vm1951_vm2, %v1950_v1 }
  0xac   : > { %1887 = vmatmul.mubr.msk.f32.gmra.mxu1 %vm285_vm1, %v261_v18 }
  0xad   : > { %1889 = vmatprep.mubr.msk.f32.mxu1 %vm1951_vm2, %v1950_v1 }
  0xae   : > { %1740 = vmatmul.mubr.msk.f32.gmra.mxu0 %vm285_vm1, %v212_v19 }
  0xaf   : > { %1742 = vmatprep.mubr.msk.f32.mxu0 %vm1951_vm2, %v1950_v1 }
  0xb0   : > { %1890 = vmatmul.mubr.msk.f32.gmra.mxu1 %vm285_vm1, %v262_v20 }
  0xb1   : > { %1892 = vmatprep.mubr.msk.f32.mxu1 %vm1951_vm2, %v1950_v1 }
  0xb2   : > { %1743 = vmatmul.mubr.msk.f32.gmra.mxu0 %vm285_vm1, %v213_v21 }
  0xb3   : > { %1745 = vmatprep.mubr.msk.f32.mxu0 %vm1951_vm2, %v1950_v1 }
  0xb4   : > { %1893 = vmatmul.mubr.msk.f32.gmra.mxu1 %vm285_vm1, %v263_v22 }
  0xb5   : > { %1895 = vmatprep.mubr.msk.f32.mxu1 %vm1951_vm2, %v1950_v1 }
  0xb6   : > { %1746 = vmatmul.mubr.msk.f32.gmra.mxu0 %vm285_vm1, %v214_v23 }
  0xb7   : > { %1748 = vmatprep.mubr.msk.f32.mxu0 %vm1951_vm2, %v1950_v1 }
  0xb8   : > { %1896 = vmatmul.mubr.msk.f32.gmra.mxu1 %vm285_vm1, %v264_v24 }
  0xb9   : > { %1898 = vmatprep.mubr.msk.f32.mxu1 %vm1951_vm2, %v1950_v1 }
  0xba   : > { %1749 = vmatmul.mubr.msk.f32.gmra.mxu0 %vm285_vm1, %v215_v25 }
  0xbb   : > { %1751 = vmatprep.mubr.msk.f32.mxu0 %vm1951_vm2, %v1950_v1 }
  0xbc   : > { %1899 = vmatmul.mubr.msk.f32.gmra.mxu1 %vm285_vm1, %v265_v26 }
  0xbd   : > { %1901 = vmatprep.mubr.msk.f32.mxu1 %vm1951_vm2, %v1950_v1 }
  0xbe   : > { %1752 = vmatmul.mubr.msk.f32.gmra.mxu0 %vm285_vm1, %v216_v27 }
  0xbf   : > { %1754 = vmatprep.mubr.msk.f32.mxu0 %vm1951_vm2, %v1950_v1 }
  0xc0   : > { %1902 = vmatmul.mubr.msk.f32.gmra.mxu1 %vm285_vm1, %v266_v28 }
  0xc1   : > { %1904 = vmatprep.mubr.msk.f32.mxu1 %vm1951_vm2, %v1950_v1 }
  0xc2   : > { %1755 = vmatmul.mubr.msk.f32.gmra.mxu0 %vm285_vm1, %v217_v29 }
  0xc3   : > { %1757 = vmatprep.mubr.msk.f32.mxu0 %vm1951_vm2, %v1950_v1 }
  0xc4   : > { %1905 = vmatmul.mubr.msk.f32.gmra.mxu1 %vm285_vm1, %v267_v30 }
  0xc5   : > { %1907 = vmatprep.mubr.msk.f32.mxu1 %vm1951_vm2, %v1950_v1 }
  0xc6   : > { %1758 = vmatmul.mubr.msk.f32.gmra.mxu0 %vm285_vm1, %v218_v31 }
  0xc7   : > { %1760 = vmatprep.mubr.msk.f32.mxu0 %vm1951_vm2, %v1950_v1 }
  0xc8   : > { %1908 = vmatmul.mubr.msk.f32.gmra.mxu1 %vm285_vm1, %v268_v32 }
  0xc9   : > { %1910 = vmatprep.mubr.msk.f32.mxu1 %vm1951_vm2, %v1950_v1 }
  0xca   : > { %1761 = vmatmul.mubr.msk.f32.gmra.mxu0 %vm285_vm1, %v219_v33 }
  0xcb   : > { %1763 = vmatprep.mubr.msk.f32.mxu0 %vm1951_vm2, %v1950_v1 }
  0xcc   : > { %1911 = vmatmul.mubr.msk.f32.gmra.mxu1 %vm285_vm1, %v269_v34 }
  0xcd   : > { %1913 = vmatprep.mubr.msk.f32.mxu1 %vm1951_vm2, %v1950_v1 }
  0xce   : > { %1764 = vmatmul.mubr.msk.f32.gmra.mxu0 %vm285_vm1, %v220_v35 }
  0xcf   : > { %1766 = vmatprep.mubr.msk.f32.mxu0 %vm1951_vm2, %v1950_v1 }
  0xd0   : > { %1914 = vmatmul.mubr.msk.f32.gmra.mxu1 %vm285_vm1, %v270_v36 }
  0xd1   : > { %1916 = vmatprep.mubr.msk.f32.mxu1 %vm1951_vm2, %v1950_v1 }
  0xd2   : > { %1767 = vmatmul.mubr.msk.f32.gmra.mxu0 %vm285_vm1, %v221_v37 }
  0xd3   : > { %1769 = vmatprep.mubr.msk.f32.mxu0 %vm1951_vm2, %v1950_v1 }
  0xd4   : > { %1917 = vmatmul.mubr.msk.f32.gmra.mxu1 %vm285_vm1, %v271_v38 }
  0xd5   : > { %1919 = vmatprep.mubr.msk.f32.mxu1 %vm1951_vm2, %v1950_v1 }
  0xd6   : > { %v653_v42 = vpop.f32.mrf.mxu0  ;;  %1770 = vmatmul.mubr.msk.f32.gmra.mxu0 %vm285_vm1, %v222_v39 }
  0xd7   : > { %v654_v43 = vadd.f32 %v2405_v40, %v653_v42  ;;  %1772 = vmatprep.mubr.msk.f32.mxu0 %vm1951_vm2, %v1950_v1 }
  0xd8   : > { %v1627_v45 = vpop.f32.mrf.mxu0  ;;  %v903_v46 = vpop.f32.mrf.mxu1  ;;  %1920 = vmatmul.mubr.msk.f32.gmra.mxu1 %vm285_vm1, %v272_v41 }
  0xd9   : > { %v1147_v47 = vmax.f32 %v654_v43, 0.0  ;;  %v904_v48 = vadd.f32 %v2405_v40, %v903_v46 }
  0xda   : > { %v658_v49 = vpop.f32.mrf.mxu0  ;;  %1773 = vmatmul.mubr.msk.f32.gmra.mxu0 %vm285_vm1, %v223_v44  ;;  %v1777_v1 = vpop.f32.mrf.mxu1 }
  0xdb   : > { %1246 = vst [vmem:[%s2420_s6] sm:$0xff] %v1147_v47  ;;  %v1197_v50 = vmax.f32 %v904_v48, 0.0  ;;  %v659_v51 = vadd.f32 %v2405_v40, %v658_v49 }
  0xdc   : > { %v1630_v52 = vpop.f32.mrf.mxu0  ;;  %v908_v53 = vpop.f32.mrf.mxu1 }
  0xdd   : > { %1296 = vst [vmem:[%s2420_s6 + $0x190] sm:$0xff] %v1197_v50  ;;  %v1148_v54 = vmax.f32 %v659_v51, 0.0  ;;  %v909_v55 = vadd.f32 %v2405_v40, %v908_v53 }
  0xde   : > { %v663_v56 = vpop.f32.mrf.mxu0  ;;  %v1780_v57 = vpop.f32.mrf.mxu1 }
  0xdf   : > { %1247 = vst [vmem:[%s2420_s6 + $0x8] sm:$0xff] %v1148_v54  ;;  %v1198_v58 = vmax.f32 %v909_v55, 0.0  ;;  %v664_v59 = vadd.f32 %v2405_v40, %v663_v56 }
  0xe0   : > { %v1633_v60 = vpop.f32.mrf.mxu0  ;;  %v913_v61 = vpop.f32.mrf.mxu1 }
  0xe1   : > { %1297 = vst [vmem:[%s2420_s6 + $0x198] sm:$0xff] %v1198_v58  ;;  %v1149_v62 = vmax.f32 %v664_v59, 0.0  ;;  %v914_v63 = vadd.f32 %v2405_v40, %v913_v61 }
  0xe2   : > { %v668_v0 = vpop.f32.mrf.mxu0  ;;  %v1783_v2 = vpop.f32.mrf.mxu1 }
  0xe3   : > { %1248 = vst [vmem:[%s2420_s6 + $0x10] sm:$0xff] %v1149_v62  ;;  %v1199_v3 = vmax.f32 %v914_v63, 0.0  ;;  %v669_v4 = vadd.f32 %v2405_v40, %v668_v0 }
  0xe4   : > { %v1636_v5 = vpop.f32.mrf.mxu0  ;;  %v918_v6 = vpop.f32.mrf.mxu1 }
  0xe5   : > { %1298 = vst [vmem:[%s2420_s6 + $0x1a0] sm:$0xff] %v1199_v3  ;;  %v1150_v7 = vmax.f32 %v669_v4, 0.0  ;;  %v919_v8 = vadd.f32 %v2405_v40, %v918_v6 }
  0xe6   : > { %v673_v9 = vpop.f32.mrf.mxu0  ;;  %v1786_v10 = vpop.f32.mrf.mxu1 }
  0xe7   : > { %1249 = vst [vmem:[%s2420_s6 + $0x18] sm:$0xff] %v1150_v7  ;;  %v1200_v11 = vmax.f32 %v919_v8, 0.0  ;;  %v674_v12 = vadd.f32 %v2405_v40, %v673_v9 }
  0xe8   : > { %v1639_v13 = vpop.f32.mrf.mxu0  ;;  %v923_v14 = vpop.f32.mrf.mxu1 }
  0xe9   : > { %1299 = vst [vmem:[%s2420_s6 + $0x1a8] sm:$0xff] %v1200_v11  ;;  %v1151_v15 = vmax.f32 %v674_v12, 0.0  ;;  %v924_v16 = vadd.f32 %v2405_v40, %v923_v14 }
  0xea   : > { %v678_v17 = vpop.f32.mrf.mxu0  ;;  %v1789_v18 = vpop.f32.mrf.mxu1 }
  0xeb   : > { %1250 = vst [vmem:[%s2420_s6 + $0x20] sm:$0xff] %v1151_v15  ;;  %v1201_v19 = vmax.f32 %v924_v16, 0.0  ;;  %v679_v20 = vadd.f32 %v2405_v40, %v678_v17 }
  0xec   : > { %v1642_v21 = vpop.f32.mrf.mxu0  ;;  %v928_v22 = vpop.f32.mrf.mxu1 }
  0xed   : > { %1300 = vst [vmem:[%s2420_s6 + $0x1b0] sm:$0xff] %v1201_v19  ;;  %v1152_v23 = vmax.f32 %v679_v20, 0.0  ;;  %v929_v24 = vadd.f32 %v2405_v40, %v928_v22 }
  0xee   : > { %v683_v25 = vpop.f32.mrf.mxu0  ;;  %v1792_v26 = vpop.f32.mrf.mxu1 }
  0xef   : > { %1251 = vst [vmem:[%s2420_s6 + $0x28] sm:$0xff] %v1152_v23  ;;  %v1202_v27 = vmax.f32 %v929_v24, 0.0  ;;  %v684_v28 = vadd.f32 %v2405_v40, %v683_v25 }
  0xf0   : > { %v1645_v29 = vpop.f32.mrf.mxu0  ;;  %v933_v30 = vpop.f32.mrf.mxu1 }
  0xf1   : > { %1301 = vst [vmem:[%s2420_s6 + $0x1b8] sm:$0xff] %v1202_v27  ;;  %v1153_v31 = vmax.f32 %v684_v28, 0.0  ;;  %v934_v32 = vadd.f32 %v2405_v40, %v933_v30 }
  0xf2   : > { %v688_v33 = vpop.f32.mrf.mxu0  ;;  %v1795_v34 = vpop.f32.mrf.mxu1 }
  0xf3   : > { %1252 = vst [vmem:[%s2420_s6 + $0x30] sm:$0xff] %v1153_v31  ;;  %v1203_v35 = vmax.f32 %v934_v32, 0.0  ;;  %v689_v36 = vadd.f32 %v2405_v40, %v688_v33 }
  0xf4   : > { %v1648_v37 = vpop.f32.mrf.mxu0  ;;  %v938_v38 = vpop.f32.mrf.mxu1 }
  0xf5   : > { %1302 = vst [vmem:[%s2420_s6 + $0x1c0] sm:$0xff] %v1203_v35  ;;  %v1154_v39 = vmax.f32 %v689_v36, 0.0  ;;  %v939_v41 = vadd.f32 %v2405_v40, %v938_v38 }
  0xf6   : > { %v693_v42 = vpop.f32.mrf.mxu0  ;;  %v1798_v43 = vpop.f32.mrf.mxu1 }
  0xf7   : > { %1253 = vst [vmem:[%s2420_s6 + $0x38] sm:$0xff] %v1154_v39  ;;  %v1204_v44 = vmax.f32 %v939_v41, 0.0  ;;  %v694_v45 = vadd.f32 %v2405_v40, %v693_v42 }
  0xf8   : > { %v1651_v46 = vpop.f32.mrf.mxu0  ;;  %v943_v47 = vpop.f32.mrf.mxu1 }
  0xf9   : > { %1303 = vst [vmem:[%s2420_s6 + $0x1c8] sm:$0xff] %v1204_v44  ;;  %v1155_v48 = vmax.f32 %v694_v45, 0.0  ;;  %v944_v49 = vadd.f32 %v2405_v40, %v943_v47 }
  0xfa   : > { %v698_v1 = vpop.f32.mrf.mxu0  ;;  %v1801_v50 = vpop.f32.mrf.mxu1 }
  0xfb   : > { %1254 = vst [vmem:[%s2420_s6 + $0x40] sm:$0xff] %v1155_v48  ;;  %v1205_v51 = vmax.f32 %v944_v49, 0.0  ;;  %v699_v52 = vadd.f32 %v2405_v40, %v698_v1 }
  0xfc   : > { %v1654_v53 = vpop.f32.mrf.mxu0  ;;  %v948_v54 = vpop.f32.mrf.mxu1 }
  0xfd   : > { %1304 = vst [vmem:[%s2420_s6 + $0x1d0] sm:$0xff] %v1205_v51  ;;  %v1156_v55 = vmax.f32 %v699_v52, 0.0  ;;  %v949_v56 = vadd.f32 %v2405_v40, %v948_v54 }
  0xfe   : > { %v703_v57 = vpop.f32.mrf.mxu0  ;;  %v1804_v58 = vpop.f32.mrf.mxu1 }
  0xff   : > { %1255 = vst [vmem:[%s2420_s6 + $0x48] sm:$0xff] %v1156_v55  ;;  %v1206_v59 = vmax.f32 %v949_v56, 0.0  ;;  %v704_v60 = vadd.f32 %v2405_v40, %v703_v57 }
 0x100   : > { %v1657_v61 = vpop.f32.mrf.mxu0  ;;  %v953_v62 = vpop.f32.mrf.mxu1 }
 0x101   : > { %1305 = vst [vmem:[%s2420_s6 + $0x1d8] sm:$0xff] %v1206_v59  ;;  %v1157_v63 = vmax.f32 %v704_v60, 0.0  ;;  %v954_v0 = vadd.f32 %v2405_v40, %v953_v62 }
 0x102   : > { %v708_v2 = vpop.f32.mrf.mxu0  ;;  %v1807_v3 = vpop.f32.mrf.mxu1 }
 0x103   : > { %1256 = vst [vmem:[%s2420_s6 + $0x50] sm:$0xff] %v1157_v63  ;;  %v1207_v4 = vmax.f32 %v954_v0, 0.0  ;;  %v709_v5 = vadd.f32 %v2405_v40, %v708_v2 }
 0x104   : > { %v1660_v6 = vpop.f32.mrf.mxu0  ;;  %v958_v7 = vpop.f32.mrf.mxu1 }
 0x105   : > { %1306 = vst [vmem:[%s2420_s6 + $0x1e0] sm:$0xff] %v1207_v4  ;;  %v1158_v8 = vmax.f32 %v709_v5, 0.0  ;;  %v959_v9 = vadd.f32 %v2405_v40, %v958_v7 }
 0x106   : > { %v713_v10 = vpop.f32.mrf.mxu0  ;;  %v1810_v11 = vpop.f32.mrf.mxu1 }
 0x107   : > { %1257 = vst [vmem:[%s2420_s6 + $0x58] sm:$0xff] %v1158_v8  ;;  %v1208_v12 = vmax.f32 %v959_v9, 0.0  ;;  %v714_v13 = vadd.f32 %v2405_v40, %v713_v10 }
 0x108   : > { %v1663_v14 = vpop.f32.mrf.mxu0  ;;  %v963_v15 = vpop.f32.mrf.mxu1 }
 0x109   : > { %1307 = vst [vmem:[%s2420_s6 + $0x1e8] sm:$0xff] %v1208_v12  ;;  %v1159_v16 = vmax.f32 %v714_v13, 0.0  ;;  %v964_v17 = vadd.f32 %v2405_v40, %v963_v15 }
 0x10a   : > { %v718_v18 = vpop.f32.mrf.mxu0  ;;  %v1813_v19 = vpop.f32.mrf.mxu1 }
 0x10b   : > { %1258 = vst [vmem:[%s2420_s6 + $0x60] sm:$0xff] %v1159_v16  ;;  %v1209_v20 = vmax.f32 %v964_v17, 0.0  ;;  %v719_v21 = vadd.f32 %v2405_v40, %v718_v18 }
 0x10c   : > { %v1666_v22 = vpop.f32.mrf.mxu0  ;;  %v968_v23 = vpop.f32.mrf.mxu1 }
 0x10d   : > { %1308 = vst [vmem:[%s2420_s6 + $0x1f0] sm:$0xff] %v1209_v20  ;;  %v1160_v24 = vmax.f32 %v719_v21, 0.0  ;;  %v969_v25 = vadd.f32 %v2405_v40, %v968_v23 }
 0x10e   : > { %v723_v26 = vpop.f32.mrf.mxu0  ;;  %v1816_v27 = vpop.f32.mrf.mxu1 }
 0x10f   : > { %1259 = vst [vmem:[%s2420_s6 + $0x68] sm:$0xff] %v1160_v24  ;;  %v1210_v28 = vmax.f32 %v969_v25, 0.0  ;;  %v724_v29 = vadd.f32 %v2405_v40, %v723_v26 }
 0x110   : > { %v1669_v30 = vpop.f32.mrf.mxu0  ;;  %v973_v31 = vpop.f32.mrf.mxu1 }
 0x111   : > { %1309 = vst [vmem:[%s2420_s6 + $0x1f8] sm:$0xff] %v1210_v28  ;;  %v1161_v32 = vmax.f32 %v724_v29, 0.0  ;;  %v974_v33 = vadd.f32 %v2405_v40, %v973_v31 }
 0x112   : > { %v728_v34 = vpop.f32.mrf.mxu0  ;;  %v1819_v35 = vpop.f32.mrf.mxu1 }
 0x113   : > { %1260 = vst [vmem:[%s2420_s6 + $0x70] sm:$0xff] %v1161_v32  ;;  %v1211_v36 = vmax.f32 %v974_v33, 0.0  ;;  %v729_v37 = vadd.f32 %v2405_v40, %v728_v34 }
 0x114   : > { %v1672_v38 = vpop.f32.mrf.mxu0  ;;  %v978_v39 = vpop.f32.mrf.mxu1 }
 0x115   : > { %1310 = vst [vmem:[%s2420_s6 + $0x200] sm:$0xff] %v1211_v36  ;;  %v1162_v41 = vmax.f32 %v729_v37, 0.0  ;;  %v979_v42 = vadd.f32 %v2405_v40, %v978_v39 }
 0x116   : > { %v733_v43 = vpop.f32.mrf.mxu0  ;;  %v1822_v44 = vpop.f32.mrf.mxu1 }
 0x117   : > { %1261 = vst [vmem:[%s2420_s6 + $0x78] sm:$0xff] %v1162_v41  ;;  %v1212_v45 = vmax.f32 %v979_v42, 0.0  ;;  %v734_v46 = vadd.f32 %v2405_v40, %v733_v43 }
 0x118   : > { %v1675_v47 = vpop.f32.mrf.mxu0  ;;  %v983_v48 = vpop.f32.mrf.mxu1 }
 0x119   : > { %1311 = vst [vmem:[%s2420_s6 + $0x208] sm:$0xff] %v1212_v45  ;;  %v1163_v49 = vmax.f32 %v734_v46, 0.0  ;;  %v984_v1 = vadd.f32 %v2405_v40, %v983_v48 }
 0x11a   : > { %v738_v50 = vpop.f32.mrf.mxu0  ;;  %v1825_v51 = vpop.f32.mrf.mxu1 }
 0x11b   : > { %1262 = vst [vmem:[%s2420_s6 + $0x80] sm:$0xff] %v1163_v49  ;;  %v1213_v52 = vmax.f32 %v984_v1, 0.0  ;;  %v739_v53 = vadd.f32 %v2405_v40, %v738_v50 }
 0x11c   : > { %v1678_v54 = vpop.f32.mrf.mxu0  ;;  %v988_v55 = vpop.f32.mrf.mxu1 }
 0x11d   : > { %1312 = vst [vmem:[%s2420_s6 + $0x210] sm:$0xff] %v1213_v52  ;;  %v1164_v56 = vmax.f32 %v739_v53, 0.0  ;;  %v989_v57 = vadd.f32 %v2405_v40, %v988_v55 }
 0x11e   : > { %v743_v58 = vpop.f32.mrf.mxu0  ;;  %v1828_v59 = vpop.f32.mrf.mxu1 }
 0x11f   : > { %1263 = vst [vmem:[%s2420_s6 + $0x88] sm:$0xff] %v1164_v56  ;;  %v1214_v60 = vmax.f32 %v989_v57, 0.0  ;;  %v744_v61 = vadd.f32 %v2405_v40, %v743_v58 }
 0x120   : > { %v1681_v62 = vpop.f32.mrf.mxu0  ;;  %v993_v63 = vpop.f32.mrf.mxu1 }
 0x121   : > { %1313 = vst [vmem:[%s2420_s6 + $0x218] sm:$0xff] %v1214_v60  ;;  %v1165_v0 = vmax.f32 %v744_v61, 0.0  ;;  %v994_v2 = vadd.f32 %v2405_v40, %v993_v63 }
 0x122   : > { %v748_v3 = vpop.f32.mrf.mxu0  ;;  %v1831_v4 = vpop.f32.mrf.mxu1 }
 0x123   : > { %1264 = vst [vmem:[%s2420_s6 + $0x90] sm:$0xff] %v1165_v0  ;;  %v1215_v5 = vmax.f32 %v994_v2, 0.0  ;;  %v749_v6 = vadd.f32 %v2405_v40, %v748_v3 }
 0x124   : > { %v1684_v7 = vpop.f32.mrf.mxu0  ;;  %v998_v8 = vpop.f32.mrf.mxu1 }
 0x125   : > { %1314 = vst [vmem:[%s2420_s6 + $0x220] sm:$0xff] %v1215_v5  ;;  %v1166_v9 = vmax.f32 %v749_v6, 0.0  ;;  %v999_v10 = vadd.f32 %v2405_v40, %v998_v8 }
 0x126   : > { %v753_v11 = vpop.f32.mrf.mxu0  ;;  %v1834_v12 = vpop.f32.mrf.mxu1 }
 0x127   : > { %1265 = vst [vmem:[%s2420_s6 + $0x98] sm:$0xff] %v1166_v9  ;;  %v1216_v13 = vmax.f32 %v999_v10, 0.0  ;;  %v754_v14 = vadd.f32 %v2405_v40, %v753_v11 }
 0x128   : > { %v1687_v15 = vpop.f32.mrf.mxu0  ;;  %v1003_v16 = vpop.f32.mrf.mxu1 }
 0x129   : > { %1315 = vst [vmem:[%s2420_s6 + $0x228] sm:$0xff] %v1216_v13  ;;  %v1167_v17 = vmax.f32 %v754_v14, 0.0  ;;  %v1004_v18 = vadd.f32 %v2405_v40, %v1003_v16 }
 0x12a   : > { %v758_v19 = vpop.f32.mrf.mxu0  ;;  %v1837_v20 = vpop.f32.mrf.mxu1 }
 0x12b   : > { %1266 = vst [vmem:[%s2420_s6 + $0xa0] sm:$0xff] %v1167_v17  ;;  %v1217_v21 = vmax.f32 %v1004_v18, 0.0  ;;  %v759_v22 = vadd.f32 %v2405_v40, %v758_v19 }
 0x12c   : > { %v1690_v23 = vpop.f32.mrf.mxu0  ;;  %v1008_v24 = vpop.f32.mrf.mxu1 }
 0x12d   : > { %1316 = vst [vmem:[%s2420_s6 + $0x230] sm:$0xff] %v1217_v21  ;;  %v1168_v25 = vmax.f32 %v759_v22, 0.0  ;;  %v1009_v26 = vadd.f32 %v2405_v40, %v1008_v24 }
 0x12e   : > { %v763_v27 = vpop.f32.mrf.mxu0  ;;  %v1840_v28 = vpop.f32.mrf.mxu1 }
 0x12f   : > { %1267 = vst [vmem:[%s2420_s6 + $0xa8] sm:$0xff] %v1168_v25  ;;  %v1218_v29 = vmax.f32 %v1009_v26, 0.0  ;;  %v764_v30 = vadd.f32 %v2405_v40, %v763_v27 }
 0x130   : > { %v1693_v31 = vpop.f32.mrf.mxu0  ;;  %v1013_v32 = vpop.f32.mrf.mxu1 }
 0x131   : > { %1317 = vst [vmem:[%s2420_s6 + $0x238] sm:$0xff] %v1218_v29  ;;  %v1169_v33 = vmax.f32 %v764_v30, 0.0  ;;  %v1014_v34 = vadd.f32 %v2405_v40, %v1013_v32 }
 0x132   : > { %v768_v35 = vpop.f32.mrf.mxu0  ;;  %v1843_v36 = vpop.f32.mrf.mxu1 }
 0x133   : > { %1268 = vst [vmem:[%s2420_s6 + $0xb0] sm:$0xff] %v1169_v33  ;;  %v1219_v37 = vmax.f32 %v1014_v34, 0.0  ;;  %v769_v38 = vadd.f32 %v2405_v40, %v768_v35 }
 0x134   : > { %v1696_v39 = vpop.f32.mrf.mxu0  ;;  %v1018_v41 = vpop.f32.mrf.mxu1 }
 0x135   : > { %1318 = vst [vmem:[%s2420_s6 + $0x240] sm:$0xff] %v1219_v37  ;;  %v1170_v42 = vmax.f32 %v769_v38, 0.0  ;;  %v1019_v43 = vadd.f32 %v2405_v40, %v1018_v41 }
 0x136   : > { %v773_v44 = vpop.f32.mrf.mxu0  ;;  %v1846_v45 = vpop.f32.mrf.mxu1 }
 0x137   : > { %1269 = vst [vmem:[%s2420_s6 + $0xb8] sm:$0xff] %v1170_v42  ;;  %v1220_v46 = vmax.f32 %v1019_v43, 0.0  ;;  %v774_v47 = vadd.f32 %v2405_v40, %v773_v44 }
 0x138   : > { %v1699_v48 = vpop.f32.mrf.mxu0  ;;  %v1023_v49 = vpop.f32.mrf.mxu1 }
 0x139   : > { %1319 = vst [vmem:[%s2420_s6 + $0x248] sm:$0xff] %v1220_v46  ;;  %v1171_v1 = vmax.f32 %v774_v47, 0.0  ;;  %v1024_v50 = vadd.f32 %v2405_v40, %v1023_v49 }
 0x13a   : > { %v778_v51 = vpop.f32.mrf.mxu0  ;;  %v1849_v52 = vpop.f32.mrf.mxu1 }
 0x13b   : > { %1270 = vst [vmem:[%s2420_s6 + $0xc0] sm:$0xff] %v1171_v1  ;;  %v1221_v53 = vmax.f32 %v1024_v50, 0.0  ;;  %v779_v54 = vadd.f32 %v2405_v40, %v778_v51 }
 0x13c   : > { %v1702_v55 = vpop.f32.mrf.mxu0  ;;  %v1028_v56 = vpop.f32.mrf.mxu1 }
 0x13d   : > { %1320 = vst [vmem:[%s2420_s6 + $0x250] sm:$0xff] %v1221_v53  ;;  %v1172_v57 = vmax.f32 %v779_v54, 0.0  ;;  %v1029_v58 = vadd.f32 %v2405_v40, %v1028_v56 }
 0x13e   : > { %v783_v59 = vpop.f32.mrf.mxu0  ;;  %v1852_v60 = vpop.f32.mrf.mxu1 }
 0x13f   : > { %1271 = vst [vmem:[%s2420_s6 + $0xc8] sm:$0xff] %v1172_v57  ;;  %v1222_v61 = vmax.f32 %v1029_v58, 0.0  ;;  %v784_v62 = vadd.f32 %v2405_v40, %v783_v59 }
 0x140   : > { %v1705_v63 = vpop.f32.mrf.mxu0  ;;  %v1033_v0 = vpop.f32.mrf.mxu1 }
 0x141   : > { %1321 = vst [vmem:[%s2420_s6 + $0x258] sm:$0xff] %v1222_v61  ;;  %v1173_v2 = vmax.f32 %v784_v62, 0.0  ;;  %v1034_v3 = vadd.f32 %v2405_v40, %v1033_v0 }
 0x142   : > { %v788_v4 = vpop.f32.mrf.mxu0  ;;  %v1855_v5 = vpop.f32.mrf.mxu1 }
 0x143   : > { %1272 = vst [vmem:[%s2420_s6 + $0xd0] sm:$0xff] %v1173_v2  ;;  %v1223_v6 = vmax.f32 %v1034_v3, 0.0  ;;  %v789_v7 = vadd.f32 %v2405_v40, %v788_v4 }
 0x144   : > { %v1708_v8 = vpop.f32.mrf.mxu0  ;;  %v1038_v9 = vpop.f32.mrf.mxu1 }
 0x145   : > { %1322 = vst [vmem:[%s2420_s6 + $0x260] sm:$0xff] %v1223_v6  ;;  %v1174_v10 = vmax.f32 %v789_v7, 0.0  ;;  %v1039_v11 = vadd.f32 %v2405_v40, %v1038_v9 }
 0x146   : > { %v793_v12 = vpop.f32.mrf.mxu0  ;;  %v1858_v13 = vpop.f32.mrf.mxu1 }
 0x147   : > { %1273 = vst [vmem:[%s2420_s6 + $0xd8] sm:$0xff] %v1174_v10  ;;  %v1224_v14 = vmax.f32 %v1039_v11, 0.0  ;;  %v794_v15 = vadd.f32 %v2405_v40, %v793_v12 }
 0x148   : > { %v1711_v16 = vpop.f32.mrf.mxu0  ;;  %v1043_v17 = vpop.f32.mrf.mxu1 }
 0x149   : > { %1323 = vst [vmem:[%s2420_s6 + $0x268] sm:$0xff] %v1224_v14  ;;  %v1175_v18 = vmax.f32 %v794_v15, 0.0  ;;  %v1044_v19 = vadd.f32 %v2405_v40, %v1043_v17 }
 0x14a   : > { %v798_v20 = vpop.f32.mrf.mxu0  ;;  %v1861_v21 = vpop.f32.mrf.mxu1 }
 0x14b   : > { %1274 = vst [vmem:[%s2420_s6 + $0xe0] sm:$0xff] %v1175_v18  ;;  %v1225_v22 = vmax.f32 %v1044_v19, 0.0  ;;  %v799_v23 = vadd.f32 %v2405_v40, %v798_v20 }
 0x14c   : > { %v1714_v24 = vpop.f32.mrf.mxu0  ;;  %v1048_v25 = vpop.f32.mrf.mxu1 }
 0x14d   : > { %1324 = vst [vmem:[%s2420_s6 + $0x270] sm:$0xff] %v1225_v22  ;;  %v1176_v26 = vmax.f32 %v799_v23, 0.0  ;;  %v1049_v27 = vadd.f32 %v2405_v40, %v1048_v25 }
 0x14e   : > { %v803_v28 = vpop.f32.mrf.mxu0  ;;  %v1864_v29 = vpop.f32.mrf.mxu1 }
 0x14f   : > { %1275 = vst [vmem:[%s2420_s6 + $0xe8] sm:$0xff] %v1176_v26  ;;  %v1226_v30 = vmax.f32 %v1049_v27, 0.0  ;;  %v804_v31 = vadd.f32 %v2405_v40, %v803_v28 }
 0x150   : > { %v1717_v32 = vpop.f32.mrf.mxu0  ;;  %v1053_v33 = vpop.f32.mrf.mxu1 }
 0x151   : > { %1325 = vst [vmem:[%s2420_s6 + $0x278] sm:$0xff] %v1226_v30  ;;  %v1177_v34 = vmax.f32 %v804_v31, 0.0  ;;  %v1054_v35 = vadd.f32 %v2405_v40, %v1053_v33 }
 0x152   : > { %v808_v36 = vpop.f32.mrf.mxu0  ;;  %v1867_v37 = vpop.f32.mrf.mxu1 }
 0x153   : > { %1276 = vst [vmem:[%s2420_s6 + $0xf0] sm:$0xff] %v1177_v34  ;;  %v1227_v38 = vmax.f32 %v1054_v35, 0.0  ;;  %v809_v39 = vadd.f32 %v2405_v40, %v808_v36 }
 0x154   : > { %v1720_v41 = vpop.f32.mrf.mxu0  ;;  %v1058_v42 = vpop.f32.mrf.mxu1 }
 0x155   : > { %1326 = vst [vmem:[%s2420_s6 + $0x280] sm:$0xff] %v1227_v38  ;;  %v1178_v43 = vmax.f32 %v809_v39, 0.0  ;;  %v1059_v44 = vadd.f32 %v2405_v40, %v1058_v42 }
 0x156   : > { %v813_v45 = vpop.f32.mrf.mxu0  ;;  %v1870_v46 = vpop.f32.mrf.mxu1 }
 0x157   : > { %1277 = vst [vmem:[%s2420_s6 + $0xf8] sm:$0xff] %v1178_v43  ;;  %v1228_v47 = vmax.f32 %v1059_v44, 0.0  ;;  %v814_v48 = vadd.f32 %v2405_v40, %v813_v45 }
 0x158   : > { %v1723_v49 = vpop.f32.mrf.mxu0  ;;  %v1063_v1 = vpop.f32.mrf.mxu1 }
 0x159   : > { %1327 = vst [vmem:[%s2420_s6 + $0x288] sm:$0xff] %v1228_v47  ;;  %v1179_v50 = vmax.f32 %v814_v48, 0.0  ;;  %v1064_v51 = vadd.f32 %v2405_v40, %v1063_v1 }
 0x15a   : > { %v818_v52 = vpop.f32.mrf.mxu0  ;;  %v1873_v53 = vpop.f32.mrf.mxu1 }
 0x15b   : > { %1278 = vst [vmem:[%s2420_s6 + $0x100] sm:$0xff] %v1179_v50  ;;  %v1229_v54 = vmax.f32 %v1064_v51, 0.0  ;;  %v819_v55 = vadd.f32 %v2405_v40, %v818_v52 }
 0x15c   : > { %v1726_v56 = vpop.f32.mrf.mxu0  ;;  %v1068_v57 = vpop.f32.mrf.mxu1 }
 0x15d   : > { %1328 = vst [vmem:[%s2420_s6 + $0x290] sm:$0xff] %v1229_v54  ;;  %v1180_v58 = vmax.f32 %v819_v55, 0.0  ;;  %v1069_v59 = vadd.f32 %v2405_v40, %v1068_v57 }
 0x15e   : > { %v823_v60 = vpop.f32.mrf.mxu0  ;;  %v1876_v61 = vpop.f32.mrf.mxu1 }
 0x15f   : > { %1279 = vst [vmem:[%s2420_s6 + $0x108] sm:$0xff] %v1180_v58  ;;  %v1230_v62 = vmax.f32 %v1069_v59, 0.0  ;;  %v824_v63 = vadd.f32 %v2405_v40, %v823_v60 }
 0x160   : > { %v1729_v0 = vpop.f32.mrf.mxu0  ;;  %v1073_v2 = vpop.f32.mrf.mxu1 }
 0x161   : > { %1329 = vst [vmem:[%s2420_s6 + $0x298] sm:$0xff] %v1230_v62  ;;  %v1181_v3 = vmax.f32 %v824_v63, 0.0  ;;  %v1074_v4 = vadd.f32 %v2405_v40, %v1073_v2 }
 0x162   : > { %v828_v5 = vpop.f32.mrf.mxu0  ;;  %v1879_v6 = vpop.f32.mrf.mxu1 }
 0x163   : > { %1280 = vst [vmem:[%s2420_s6 + $0x110] sm:$0xff] %v1181_v3  ;;  %v1231_v7 = vmax.f32 %v1074_v4, 0.0  ;;  %v829_v8 = vadd.f32 %v2405_v40, %v828_v5 }
 0x164   : > { %v1732_v9 = vpop.f32.mrf.mxu0  ;;  %v1078_v10 = vpop.f32.mrf.mxu1 }
 0x165   : > { %1330 = vst [vmem:[%s2420_s6 + $0x2a0] sm:$0xff] %v1231_v7  ;;  %v1182_v11 = vmax.f32 %v829_v8, 0.0  ;;  %v1079_v12 = vadd.f32 %v2405_v40, %v1078_v10 }
 0x166   : > { %v833_v13 = vpop.f32.mrf.mxu0  ;;  %v1882_v14 = vpop.f32.mrf.mxu1 }
 0x167   : > { %1281 = vst [vmem:[%s2420_s6 + $0x118] sm:$0xff] %v1182_v11  ;;  %v1232_v15 = vmax.f32 %v1079_v12, 0.0  ;;  %v834_v16 = vadd.f32 %v2405_v40, %v833_v13 }
 0x168   : > { %v1735_v17 = vpop.f32.mrf.mxu0  ;;  %v1083_v18 = vpop.f32.mrf.mxu1 }
 0x169   : > { %1331 = vst [vmem:[%s2420_s6 + $0x2a8] sm:$0xff] %v1232_v15  ;;  %v1183_v19 = vmax.f32 %v834_v16, 0.0  ;;  %v1084_v20 = vadd.f32 %v2405_v40, %v1083_v18 }
 0x16a   : > { %v838_v21 = vpop.f32.mrf.mxu0  ;;  %v1885_v22 = vpop.f32.mrf.mxu1 }
 0x16b   : > { %1282 = vst [vmem:[%s2420_s6 + $0x120] sm:$0xff] %v1183_v19  ;;  %v1233_v23 = vmax.f32 %v1084_v20, 0.0  ;;  %v839_v24 = vadd.f32 %v2405_v40, %v838_v21 }
 0x16c   : > { %v1738_v25 = vpop.f32.mrf.mxu0  ;;  %v1088_v26 = vpop.f32.mrf.mxu1 }
 0x16d   : > { %1332 = vst [vmem:[%s2420_s6 + $0x2b0] sm:$0xff] %v1233_v23  ;;  %v1184_v27 = vmax.f32 %v839_v24, 0.0  ;;  %v1089_v28 = vadd.f32 %v2405_v40, %v1088_v26 }
 0x16e   : > { %v843_v29 = vpop.f32.mrf.mxu0  ;;  %v1888_v30 = vpop.f32.mrf.mxu1 }
 0x16f   : > { %1283 = vst [vmem:[%s2420_s6 + $0x128] sm:$0xff] %v1184_v27  ;;  %v1234_v31 = vmax.f32 %v1089_v28, 0.0  ;;  %v844_v32 = vadd.f32 %v2405_v40, %v843_v29 }
 0x170   : > { %v1741_v33 = vpop.f32.mrf.mxu0  ;;  %v1093_v34 = vpop.f32.mrf.mxu1 }
 0x171   : > { %1333 = vst [vmem:[%s2420_s6 + $0x2b8] sm:$0xff] %v1234_v31  ;;  %v1185_v35 = vmax.f32 %v844_v32, 0.0  ;;  %v1094_v36 = vadd.f32 %v2405_v40, %v1093_v34 }
 0x172   : > { %v848_v37 = vpop.f32.mrf.mxu0  ;;  %v1891_v38 = vpop.f32.mrf.mxu1 }
 0x173   : > { %1284 = vst [vmem:[%s2420_s6 + $0x130] sm:$0xff] %v1185_v35  ;;  %v1235_v39 = vmax.f32 %v1094_v36, 0.0  ;;  %v849_v41 = vadd.f32 %v2405_v40, %v848_v37 }
 0x174   : > { %v1744_v42 = vpop.f32.mrf.mxu0  ;;  %v1098_v43 = vpop.f32.mrf.mxu1 }
 0x175   : > { %1334 = vst [vmem:[%s2420_s6 + $0x2c0] sm:$0xff] %v1235_v39  ;;  %v1186_v44 = vmax.f32 %v849_v41, 0.0  ;;  %v1099_v45 = vadd.f32 %v2405_v40, %v1098_v43 }
 0x176   : > { %v853_v46 = vpop.f32.mrf.mxu0  ;;  %v1894_v47 = vpop.f32.mrf.mxu1 }
 0x177   : > { %1285 = vst [vmem:[%s2420_s6 + $0x138] sm:$0xff] %v1186_v44  ;;  %v1236_v48 = vmax.f32 %v1099_v45, 0.0  ;;  %v854_v49 = vadd.f32 %v2405_v40, %v853_v46 }
 0x178   : > { %v1747_v1 = vpop.f32.mrf.mxu0  ;;  %v1103_v50 = vpop.f32.mrf.mxu1 }
 0x179   : > { %1335 = vst [vmem:[%s2420_s6 + $0x2c8] sm:$0xff] %v1236_v48  ;;  %v1187_v51 = vmax.f32 %v854_v49, 0.0  ;;  %v1104_v52 = vadd.f32 %v2405_v40, %v1103_v50 }
 0x17a   : > { %v858_v53 = vpop.f32.mrf.mxu0  ;;  %v1897_v54 = vpop.f32.mrf.mxu1 }
 0x17b   : > { %1286 = vst [vmem:[%s2420_s6 + $0x140] sm:$0xff] %v1187_v51  ;;  %v1237_v55 = vmax.f32 %v1104_v52, 0.0  ;;  %v859_v56 = vadd.f32 %v2405_v40, %v858_v53 }
 0x17c   : > { %v1750_v57 = vpop.f32.mrf.mxu0  ;;  %v1108_v58 = vpop.f32.mrf.mxu1 }
 0x17d   : > { %1336 = vst [vmem:[%s2420_s6 + $0x2d0] sm:$0xff] %v1237_v55  ;;  %v1188_v59 = vmax.f32 %v859_v56, 0.0  ;;  %v1109_v60 = vadd.f32 %v2405_v40, %v1108_v58 }
 0x17e   : > { %v863_v61 = vpop.f32.mrf.mxu0  ;;  %v1900_v62 = vpop.f32.mrf.mxu1 }
 0x17f   : > { %1287 = vst [vmem:[%s2420_s6 + $0x148] sm:$0xff] %v1188_v59  ;;  %v1238_v63 = vmax.f32 %v1109_v60, 0.0  ;;  %v864_v0 = vadd.f32 %v2405_v40, %v863_v61 }
 0x180   : > { %v1753_v2 = vpop.f32.mrf.mxu0  ;;  %v1113_v3 = vpop.f32.mrf.mxu1 }
 0x181   : > { %1337 = vst [vmem:[%s2420_s6 + $0x2d8] sm:$0xff] %v1238_v63  ;;  %v1189_v4 = vmax.f32 %v864_v0, 0.0  ;;  %v1114_v5 = vadd.f32 %v2405_v40, %v1113_v3 }
 0x182   : > { %v868_v6 = vpop.f32.mrf.mxu0  ;;  %v1903_v7 = vpop.f32.mrf.mxu1 }
 0x183   : > { %1288 = vst [vmem:[%s2420_s6 + $0x150] sm:$0xff] %v1189_v4  ;;  %v1239_v8 = vmax.f32 %v1114_v5, 0.0  ;;  %v869_v9 = vadd.f32 %v2405_v40, %v868_v6 }
 0x184   : > { %v1756_v10 = vpop.f32.mrf.mxu0  ;;  %v1118_v11 = vpop.f32.mrf.mxu1 }
 0x185   : > { %1338 = vst [vmem:[%s2420_s6 + $0x2e0] sm:$0xff] %v1239_v8  ;;  %v1190_v12 = vmax.f32 %v869_v9, 0.0  ;;  %v1119_v13 = vadd.f32 %v2405_v40, %v1118_v11 }
 0x186   : > { %v873_v14 = vpop.f32.mrf.mxu0  ;;  %v1906_v15 = vpop.f32.mrf.mxu1 }
 0x187   : > { %1289 = vst [vmem:[%s2420_s6 + $0x158] sm:$0xff] %v1190_v12  ;;  %v1240_v16 = vmax.f32 %v1119_v13, 0.0  ;;  %v874_v17 = vadd.f32 %v2405_v40, %v873_v14 }
 0x188   : > { %v1759_v18 = vpop.f32.mrf.mxu0  ;;  %v1123_v19 = vpop.f32.mrf.mxu1 }
 0x189   : > { %1339 = vst [vmem:[%s2420_s6 + $0x2e8] sm:$0xff] %v1240_v16  ;;  %v1191_v20 = vmax.f32 %v874_v17, 0.0  ;;  %v1124_v21 = vadd.f32 %v2405_v40, %v1123_v19 }
 0x18a   : > { %v878_v22 = vpop.f32.mrf.mxu0  ;;  %v1909_v23 = vpop.f32.mrf.mxu1 }
 0x18b   : > { %1290 = vst [vmem:[%s2420_s6 + $0x160] sm:$0xff] %v1191_v20  ;;  %v1241_v24 = vmax.f32 %v1124_v21, 0.0  ;;  %v879_v25 = vadd.f32 %v2405_v40, %v878_v22 }
 0x18c   : > { %v1762_v26 = vpop.f32.mrf.mxu0  ;;  %v1128_v27 = vpop.f32.mrf.mxu1 }
 0x18d   : > { %1340 = vst [vmem:[%s2420_s6 + $0x2f0] sm:$0xff] %v1241_v24  ;;  %v1192_v28 = vmax.f32 %v879_v25, 0.0  ;;  %v1129_v29 = vadd.f32 %v2405_v40, %v1128_v27 }
 0x18e   : > { %v883_v30 = vpop.f32.mrf.mxu0  ;;  %v1912_v31 = vpop.f32.mrf.mxu1 }
 0x18f   : > { %1291 = vst [vmem:[%s2420_s6 + $0x168] sm:$0xff] %v1192_v28  ;;  %v1242_v32 = vmax.f32 %v1129_v29, 0.0  ;;  %v884_v33 = vadd.f32 %v2405_v40, %v883_v30 }
 0x190   : > { %v1765_v34 = vpop.f32.mrf.mxu0  ;;  %v1133_v35 = vpop.f32.mrf.mxu1 }
 0x191   : > { %1341 = vst [vmem:[%s2420_s6 + $0x2f8] sm:$0xff] %v1242_v32  ;;  %v1193_v36 = vmax.f32 %v884_v33, 0.0  ;;  %v1134_v37 = vadd.f32 %v2405_v40, %v1133_v35 }
 0x192   : > { %v888_v38 = vpop.f32.mrf.mxu0  ;;  %v1915_v39 = vpop.f32.mrf.mxu1 }
 0x193   : > { %1292 = vst [vmem:[%s2420_s6 + $0x170] sm:$0xff] %v1193_v36  ;;  %v1243_v41 = vmax.f32 %v1134_v37, 0.0  ;;  %v889_v42 = vadd.f32 %v2405_v40, %v888_v38 }
 0x194   : > { %v1768_v43 = vpop.f32.mrf.mxu0  ;;  %v1138_v44 = vpop.f32.mrf.mxu1 }
 0x195   : > { %1342 = vst [vmem:[%s2420_s6 + $0x300] sm:$0xff] %v1243_v41  ;;  %v1194_v45 = vmax.f32 %v889_v42, 0.0  ;;  %v1139_v46 = vadd.f32 %v2405_v40, %v1138_v44 }
 0x196   : > { %v893_v47 = vpop.f32.mrf.mxu0  ;;  %v1918_v48 = vpop.f32.mrf.mxu1 }
 0x197   : > { %1293 = vst [vmem:[%s2420_s6 + $0x178] sm:$0xff] %v1194_v45  ;;  %v1244_v49 = vmax.f32 %v1139_v46, 0.0  ;;  %v894_v1 = vadd.f32 %v2405_v40, %v893_v47 }
 0x198   : > { %v1771_v50 = vpop.f32.mrf.mxu0  ;;  %v1143_v51 = vpop.f32.mrf.mxu1 }
 0x199   : > { %1343 = vst [vmem:[%s2420_s6 + $0x308] sm:$0xff] %v1244_v49  ;;  %v1195_v52 = vmax.f32 %v894_v1, 0.0  ;;  %v1144_v53 = vadd.f32 %v2405_v40, %v1143_v51 }
 0x19a   : > { %v898_v54 = vpop.f32.mrf.mxu0  ;;  %v1921_v55 = vpop.f32.mrf.mxu1 }
 0x19b   : > { %1294 = vst [vmem:[%s2420_s6 + $0x180] sm:$0xff] %v1195_v52  ;;  %v1245_v56 = vmax.f32 %v1144_v53, 0.0  ;;  %v899_v57 = vadd.f32 %v2405_v40, %v898_v54 }
 0x19c   : > { %v1774_v58 = vpop.f32.mrf.mxu0 }
 0x19d   : > { %1344 = vst [vmem:[%s2420_s6 + $0x310] sm:$0xff] %v1245_v56  ;;  %v1196_v59 = vmax.f32 %v899_v57, 0.0 }
 0x19f   : > { %1295 = vst [vmem:[%s2420_s6 + $0x188] sm:$0xff] %v1196_v59 }
 0x1a0 PF: > { %s13_s12 = sadd.s32 1, %s1948_s12  }
 0x1a1   : > { %p10_p4 = scmp.ge.s32.totalorder %s13_s12, 5  }
 0x1a3   :  { %12 = sbr.rel (!%p10_p4) target bundleno = 1 (0x1), region = 62 }

// kernel: nn_forward.10
= control target key start
LH: loop header
LB: loop body
LE: loop exit
PB: predicated region body
PF: predicated region fallthrough
CT: control target
= control target key end

     0   :  { %s703_s6 = smov 0   ;;  %s964_s0 = inlined_call_operand.vmem [shape: f32[24,2,28,256], index: 0, kind: input, shape index: {}]   ;;  %s965_s1 = inlined_call_operand.vmem [shape: f32[24,28,128], index: 1, kind: output, shape index: {}]  }
   0x1 LB: > { %s568_s7 = sadd.s32 4294967295, %s691_s6   ;;  %p572_p0 = scmp.ge.s32.totalorder %s691_s6, 1  ;;  %s691_s6 = sphi %s703_s6, %s11_s6  }
   0x2   : > { %p89_p1 = scmp.lt.s32.totalorder %s691_s6, 3 }
   0x4   : > { %p90_p2 = pnand %p572_p0, %p89_p1 }
   0x5   : > { %s111_s8 = smul.u32 (!%p90_p2), 12, %s568_s7 }
   0x6   : > { %93 = sbr.rel (%p90_p2) target bundleno = 85 (0x55), region = 24 }
   0x7   : > { %p112_p3 = scmp.lt.s32.totalorder (!%p90_p2), %s111_s8, 23 }
   0xb   : > { %s967_s8 = smov (!%p112_p3, %s111_s8), 23 }
   0xc   : > { %s675_s9 = sshll.u32 %s967_s8, 7  ;;  %s676_s13 = sshll.u32 %s967_s8, 5 }
   0xd   : > { %s714_s12 = scalar_lea.vmem %s964_s0, %s675_s9  ;;  %s728_s16 = scalar_lea.vmem %s965_s1, %s676_s13 }
   0xe   : > { %v125_v0 = vld [vmem:[%s714_s12] sm:$0xff]  ;;  %v126_v1 = vld [vmem:[%s714_s12 + $0x8] sm:$0xff]  ;;  %v127_v5 = vld [vmem:[%s714_s12 + $0x10] sm:$0xff] }
   0xf   : > { %v577_v2 = vld [vmem:[%s714_s12 + $0x40] sm:$0xff]  ;;  %v578_v3 = vld [vmem:[%s714_s12 + $0x48] sm:$0xff]  ;;  %v128_v6 = vld [vmem:[%s714_s12 + $0x18] sm:$0xff] }
  0x10   : > { %v318_v4 = vmax.f32 %v125_v0, %v577_v2  ;;  %v319_v7 = vmax.f32 %v126_v1, %v578_v3  ;;  %v579_v8 = vld [vmem:[%s714_s12 + $0x50] sm:$0xff]  ;;  %v580_v9 = vld [vmem:[%s714_s12 + $0x58] sm:$0xff]  ;;  %v129_v10 = vld [vmem:[%s714_s12 + $0x20] sm:$0xff] }
  0x11   : > { %v320_v11 = vmax.f32 %v127_v5, %v579_v8  ;;  %v321_v12 = vmax.f32 %v128_v6, %v580_v9  ;;  %v130_v13 = vld [vmem:[%s714_s12 + $0x28] sm:$0xff]  ;;  %v581_v14 = vld [vmem:[%s714_s12 + $0x60] sm:$0xff]  ;;  %v131_v19 = vld [vmem:[%s714_s12 + $0x30] sm:$0xf] }
  0x12   : > { %v582_v15 = vld [vmem:[%s714_s12 + $0x68] sm:$0xff]  ;;  %v414_v16 = vmax.f32 %v318_v4, %v319_v7  ;;  %v322_v17 = vmax.f32 %v129_v10, %v581_v14  ;;  %v132_v20 = vld [vmem:[%s714_s12 + $0x38] sm:$0xf]  ;;  %v583_v21 = vld [vmem:[%s714_s12 + $0x70] sm:$0xf] }
  0x13   : > { %v323_v18 = vmax.f32 %v130_v13, %v582_v15  ;;  %v415_v22 = vmax.f32 %v320_v11, %v321_v12  ;;  %v584_v23 = vld [vmem:[%s714_s12 + $0x78] sm:$0xf]  ;;  %v324_v24 = vmax.f32 %v131_v19, %v583_v21  ;;  %v133_v25 = vld [vmem:[%s714_s12 + $0x80] sm:$0xff]  ;;  %v134_v26 = vld [vmem:[%s714_s12 + $0x88] sm:$0xff] }
  0x14   : > { %462 = vst [vmem:[%s728_s16] sm:$0xff] %v414_v16  ;;  %v325_v28 = vmax.f32 %v132_v20, %v584_v23  ;;  %v585_v29 = vld [vmem:[%s714_s12 + $0xc0] sm:$0xff]  ;;  %v586_v30 = vld [vmem:[%s714_s12 + $0xc8] sm:$0xff]  ;;  %v135_v31 = vld [vmem:[%s714_s12 + $0x90] sm:$0xff] }
  0x15   : > { %v416_v27 = vmax.f32 %v322_v17, %v323_v18  ;;  %463 = vst [vmem:[%s728_s16 + $0x8] sm:$0xff] %v415_v22  ;;  %v326_v32 = vmax.f32 %v133_v25, %v585_v29  ;;  %v327_v33 = vmax.f32 %v134_v26, %v586_v30  ;;  %v136_v34 = vld [vmem:[%s714_s12 + $0x98] sm:$0xff]  ;;  %v587_v35 = vld [vmem:[%s714_s12 + $0xd0] sm:$0xff]  ;;  %v137_v40 = vld [vmem:[%s714_s12 + $0xa0] sm:$0xff] }
  0x16   : > { %v588_v36 = vld [vmem:[%s714_s12 + $0xd8] sm:$0xff]  ;;  %v417_v37 = vmax.f32 %v324_v24, %v325_v28  ;;  %v328_v38 = vmax.f32 %v135_v31, %v587_v35  ;;  %v138_v41 = vld [vmem:[%s714_s12 + $0xa8] sm:$0xff]  ;;  %v589_v42 = vld [vmem:[%s714_s12 + $0xe0] sm:$0xff] }
  0x17   : > { %464 = vst [vmem:[%s728_s16 + $0x10] sm:$0xff] %v416_v27  ;;  %v329_v39 = vmax.f32 %v136_v34, %v588_v36  ;;  %v418_v43 = vmax.f32 %v326_v32, %v327_v33  ;;  %v590_v44 = vld [vmem:[%s714_s12 + $0xe8] sm:$0xff]  ;;  %v330_v45 = vmax.f32 %v137_v40, %v589_v42  ;;  %v139_v46 = vld [vmem:[%s714_s12 + $0xb0] sm:$0xf]  ;;  %v140_v47 = vld [vmem:[%s714_s12 + $0xb8] sm:$0xf] }
  0x18   : > { %465 = vst [vmem:[%s728_s16 + $0x18] sm:$0xf] %v417_v37  ;;  %v331_v49 = vmax.f32 %v138_v41, %v590_v44  ;;  %v591_v50 = vld [vmem:[%s714_s12 + $0xf0] sm:$0xf]  ;;  %v592_v51 = vld [vmem:[%s714_s12 + $0xf8] sm:$0xf] }
  0x19   : > { %v419_v48 = vmax.f32 %v328_v38, %v329_v39  ;;  %v141_v52 = vld [vmem:[%s714_s12 + $0x100] sm:$0xff]  ;;  %466 = vst [vmem:[%s728_s16 + $0x20] sm:$0xff] %v418_v43  ;;  %v332_v53 = vmax.f32 %v139_v46, %v591_v50  ;;  %v333_v54 = vmax.f32 %v140_v47, %v592_v51  ;;  %v142_v55 = vld [vmem:[%s714_s12 + $0x108] sm:$0xff]  ;;  %v143_v61 = vld [vmem:[%s714_s12 + $0x110] sm:$0xff] }
  0x1a   : > { %v593_v56 = vld [vmem:[%s714_s12 + $0x140] sm:$0xff]  ;;  %v594_v57 = vld [vmem:[%s714_s12 + $0x148] sm:$0xff]  ;;  %v420_v58 = vmax.f32 %v330_v45, %v331_v49  ;;  %v144_v62 = vld [vmem:[%s714_s12 + $0x118] sm:$0xff] }
  0x1b   : > { %467 = vst [vmem:[%s728_s16 + $0x28] sm:$0xff] %v419_v48  ;;  %v334_v59 = vmax.f32 %v141_v52, %v593_v56  ;;  %v335_v60 = vmax.f32 %v142_v55, %v594_v57  ;;  %v595_v63 = vld [vmem:[%s714_s12 + $0x150] sm:$0xff]  ;;  %v421_v0 = vmax.f32 %v332_v53, %v333_v54  ;;  %v596_v1 = vld [vmem:[%s714_s12 + $0x158] sm:$0xff]  ;;  %v145_v3 = vld [vmem:[%s714_s12 + $0x120] sm:$0xff] }
  0x1c   : > { %v336_v2 = vmax.f32 %v143_v61, %v595_v63  ;;  %v146_v4 = vld [vmem:[%s714_s12 + $0x128] sm:$0xff]  ;;  %468 = vst [vmem:[%s728_s16 + $0x30] sm:$0xff] %v420_v58  ;;  %v337_v6 = vmax.f32 %v144_v62, %v596_v1  ;;  %v597_v7 = vld [vmem:[%s714_s12 + $0x160] sm:$0xff]  ;;  %v147_v9 = vld [vmem:[%s714_s12 + $0x130] sm:$0xf] }
  0x1d   : > { %v422_v5 = vmax.f32 %v334_v59, %v335_v60  ;;  %v598_v8 = vld [vmem:[%s714_s12 + $0x168] sm:$0xff]  ;;  %469 = vst [vmem:[%s728_s16 + $0x38] sm:$0xf] %v421_v0  ;;  %v338_v10 = vmax.f32 %v145_v3, %v597_v7  ;;  %v148_v12 = vld [vmem:[%s714_s12 + $0x138] sm:$0xf]  ;;  %v149_v18 = vld [vmem:[%s714_s12 + $0x180] sm:$0xff] }
  0x1e   : > { %v339_v11 = vmax.f32 %v146_v4, %v598_v8  ;;  %v599_v13 = vld [vmem:[%s714_s12 + $0x170] sm:$0xf]  ;;  %v600_v14 = vld [vmem:[%s714_s12 + $0x178] sm:$0xf]  ;;  %v423_v15 = vmax.f32 %v336_v2, %v337_v6  ;;  %v150_v19 = vld [vmem:[%s714_s12 + $0x188] sm:$0xff] }
  0x1f   : > { %470 = vst [vmem:[%s728_s16 + $0x40] sm:$0xff] %v422_v5  ;;  %v340_v16 = vmax.f32 %v147_v9, %v599_v13  ;;  %v341_v17 = vmax.f32 %v148_v12, %v600_v14  ;;  %v601_v20 = vld [vmem:[%s714_s12 + $0x1c0] sm:$0xff]  ;;  %v602_v22 = vld [vmem:[%s714_s12 + $0x1c8] sm:$0xff]  ;;  %v151_v24 = vld [vmem:[%s714_s12 + $0x190] sm:$0xff] }
  0x20   : > { %v424_v21 = vmax.f32 %v338_v10, %v339_v11  ;;  %v342_v23 = vmax.f32 %v149_v18, %v601_v20  ;;  %v152_v25 = vld [vmem:[%s714_s12 + $0x198] sm:$0xff]  ;;  %471 = vst [vmem:[%s728_s16 + $0x48] sm:$0xff] %v423_v15  ;;  %v343_v27 = vmax.f32 %v150_v19, %v602_v22  ;;  %v603_v28 = vld [vmem:[%s714_s12 + $0x1d0] sm:$0xff]  ;;  %v153_v30 = vld [vmem:[%s714_s12 + $0x1a0] sm:$0xff] }
  0x21   : > { %v425_v26 = vmax.f32 %v340_v16, %v341_v17  ;;  %v604_v29 = vld [vmem:[%s714_s12 + $0x1d8] sm:$0xff]  ;;  %v344_v31 = vmax.f32 %v151_v24, %v603_v28  ;;  %v154_v33 = vld [vmem:[%s714_s12 + $0x1a8] sm:$0xff]  ;;  %v605_v34 = vld [vmem:[%s714_s12 + $0x1e0] sm:$0xff] }
  0x22   : > { %472 = vst [vmem:[%s728_s16 + $0x50] sm:$0xff] %v424_v21  ;;  %v345_v32 = vmax.f32 %v152_v25, %v604_v29  ;;  %v606_v35 = vld [vmem:[%s714_s12 + $0x1e8] sm:$0xff]  ;;  %v426_v36 = vmax.f32 %v342_v23, %v343_v27  ;;  %v346_v37 = vmax.f32 %v153_v30, %v605_v34  ;;  %v155_v39 = vld [vmem:[%s714_s12 + $0x1b0] sm:$0xf]  ;;  %v156_v40 = vld [vmem:[%s714_s12 + $0x1b8] sm:$0xf] }
  0x23   : > { %473 = vst [vmem:[%s728_s16 + $0x58] sm:$0xf] %v425_v26  ;;  %v347_v38 = vmax.f32 %v154_v33, %v606_v35  ;;  %v607_v41 = vld [vmem:[%s714_s12 + $0x1f0] sm:$0xf]  ;;  %v608_v43 = vld [vmem:[%s714_s12 + $0x1f8] sm:$0xf] }
  0x24   : > { %v427_v42 = vmax.f32 %v344_v31, %v345_v32  ;;  %v348_v44 = vmax.f32 %v155_v39, %v607_v41  ;;  %v157_v45 = vld [vmem:[%s714_s12 + $0x200] sm:$0xff]  ;;  %v158_v46 = vld [vmem:[%s714_s12 + $0x208] sm:$0xff]  ;;  %474 = vst [vmem:[%s728_s16 + $0x60] sm:$0xff] %v426_v36  ;;  %v349_v48 = vmax.f32 %v156_v40, %v608_v43  ;;  %v159_v51 = vld [vmem:[%s714_s12 + $0x210] sm:$0xff] }
  0x25   : > { %v428_v47 = vmax.f32 %v346_v37, %v347_v38  ;;  %v609_v49 = vld [vmem:[%s714_s12 + $0x240] sm:$0xff]  ;;  %v610_v50 = vld [vmem:[%s714_s12 + $0x248] sm:$0xff]  ;;  %v160_v54 = vld [vmem:[%s714_s12 + $0x218] sm:$0xff] }
  0x26   : > { %475 = vst [vmem:[%s728_s16 + $0x68] sm:$0xff] %v427_v42  ;;  %v350_v52 = vmax.f32 %v157_v45, %v609_v49  ;;  %v351_v53 = vmax.f32 %v158_v46, %v610_v50  ;;  %v611_v55 = vld [vmem:[%s714_s12 + $0x250] sm:$0xff]  ;;  %v612_v56 = vld [vmem:[%s714_s12 + $0x258] sm:$0xff]  ;;  %v429_v57 = vmax.f32 %v348_v44, %v349_v48  ;;  %v161_v60 = vld [vmem:[%s714_s12 + $0x220] sm:$0xff] }
  0x27   : > { %476 = vst [vmem:[%s728_s16 + $0x70] sm:$0xff] %v428_v47  ;;  %v352_v58 = vmax.f32 %v159_v51, %v611_v55  ;;  %v353_v59 = vmax.f32 %v160_v54, %v612_v56  ;;  %v162_v61 = vld [vmem:[%s714_s12 + $0x228] sm:$0xff]  ;;  %v613_v62 = vld [vmem:[%s714_s12 + $0x260] sm:$0xff]  ;;  %v163_v2 = vld [vmem:[%s714_s12 + $0x230] sm:$0xf] }
  0x28   : > { %v430_v63 = vmax.f32 %v350_v52, %v351_v53  ;;  %v614_v0 = vld [vmem:[%s714_s12 + $0x268] sm:$0xff]  ;;  %v354_v1 = vmax.f32 %v161_v60, %v613_v62  ;;  %v164_v3 = vld [vmem:[%s714_s12 + $0x238] sm:$0xf]  ;;  %477 = vst [vmem:[%s728_s16 + $0x78] sm:$0xf] %v429_v57  ;;  %v165_v8 = vld [vmem:[%s714_s12 + $0x280] sm:$0xff] }
  0x29   : > { %v431_v4 = vmax.f32 %v352_v58, %v353_v59  ;;  %v355_v5 = vmax.f32 %v162_v61, %v614_v0  ;;  %v615_v6 = vld [vmem:[%s714_s12 + $0x270] sm:$0xf]  ;;  %v616_v7 = vld [vmem:[%s714_s12 + $0x278] sm:$0xf]  ;;  %v166_v11 = vld [vmem:[%s714_s12 + $0x288] sm:$0xff] }
  0x2a   : > { %478 = vst [vmem:[%s728_s16 + $0x80] sm:$0xff] %v430_v63  ;;  %v356_v9 = vmax.f32 %v163_v2, %v615_v6  ;;  %v357_v10 = vmax.f32 %v164_v3, %v616_v7  ;;  %v617_v12 = vld [vmem:[%s714_s12 + $0x2c0] sm:$0xff]  ;;  %v618_v13 = vld [vmem:[%s714_s12 + $0x2c8] sm:$0xff]  ;;  %v167_v17 = vld [vmem:[%s714_s12 + $0x290] sm:$0xff] }
  0x2b   : > { %479 = vst [vmem:[%s728_s16 + $0x88] sm:$0xff] %v431_v4  ;;  %v432_v14 = vmax.f32 %v354_v1, %v355_v5  ;;  %v358_v15 = vmax.f32 %v165_v8, %v617_v12  ;;  %v359_v16 = vmax.f32 %v166_v11, %v618_v13  ;;  %v168_v18 = vld [vmem:[%s714_s12 + $0x298] sm:$0xff]  ;;  %v619_v19 = vld [vmem:[%s714_s12 + $0x2d0] sm:$0xff]  ;;  %v169_v23 = vld [vmem:[%s714_s12 + $0x2a0] sm:$0xff] }
  0x2c   : > { %v433_v20 = vmax.f32 %v356_v9, %v357_v10  ;;  %v620_v21 = vld [vmem:[%s714_s12 + $0x2d8] sm:$0xff]  ;;  %v360_v22 = vmax.f32 %v167_v17, %v619_v19  ;;  %v170_v24 = vld [vmem:[%s714_s12 + $0x2a8] sm:$0xff]  ;;  %v621_v27 = vld [vmem:[%s714_s12 + $0x2e0] sm:$0xff] }
  0x2d   : > { %480 = vst [vmem:[%s728_s16 + $0x90] sm:$0xff] %v432_v14  ;;  %v434_v25 = vmax.f32 %v358_v15, %v359_v16  ;;  %v361_v26 = vmax.f32 %v168_v18, %v620_v21  ;;  %v622_v28 = vld [vmem:[%s714_s12 + $0x2e8] sm:$0xff]  ;;  %v171_v29 = vld [vmem:[%s714_s12 + $0x2b0] sm:$0xf]  ;;  %v362_v30 = vmax.f32 %v169_v23, %v621_v27  ;;  %v172_v32 = vld [vmem:[%s714_s12 + $0x2b8] sm:$0xf] }
  0x2e   : > { %481 = vst [vmem:[%s728_s16 + $0x98] sm:$0xf] %v433_v20  ;;  %v363_v31 = vmax.f32 %v170_v24, %v622_v28  ;;  %v623_v33 = vld [vmem:[%s714_s12 + $0x2f0] sm:$0xf]  ;;  %v624_v34 = vld [vmem:[%s714_s12 + $0x2f8] sm:$0xf] }
  0x2f   : > { %482 = vst [vmem:[%s728_s16 + $0xa0] sm:$0xff] %v434_v25  ;;  %v435_v35 = vmax.f32 %v360_v22, %v361_v26  ;;  %v364_v36 = vmax.f32 %v171_v29, %v623_v33  ;;  %v365_v37 = vmax.f32 %v172_v32, %v624_v34  ;;  %v173_v38 = vld [vmem:[%s714_s12 + $0x300] sm:$0xff]  ;;  %v174_v39 = vld [vmem:[%s714_s12 + $0x308] sm:$0xff]  ;;  %v175_v44 = vld [vmem:[%s714_s12 + $0x310] sm:$0xff] }
  0x30   : > { %v625_v40 = vld [vmem:[%s714_s12 + $0x340] sm:$0xff]  ;;  %v436_v41 = vmax.f32 %v362_v30, %v363_v31  ;;  %v626_v42 = vld [vmem:[%s714_s12 + $0x348] sm:$0xff]  ;;  %v176_v45 = vld [vmem:[%s714_s12 + $0x318] sm:$0xff] }
  0x31   : > { %v366_v43 = vmax.f32 %v173_v38, %v625_v40  ;;  %483 = vst [vmem:[%s728_s16 + $0xa8] sm:$0xff] %v435_v35  ;;  %v437_v46 = vmax.f32 %v364_v36, %v365_v37  ;;  %v367_v47 = vmax.f32 %v174_v39, %v626_v42  ;;  %v627_v48 = vld [vmem:[%s714_s12 + $0x350] sm:$0xff]  ;;  %v628_v49 = vld [vmem:[%s714_s12 + $0x358] sm:$0xff]  ;;  %v177_v50 = vld [vmem:[%s714_s12 + $0x320] sm:$0xff] }
  0x32   : > { %484 = vst [vmem:[%s728_s16 + $0xb0] sm:$0xff] %v436_v41  ;;  %v368_v51 = vmax.f32 %v175_v44, %v627_v48  ;;  %v369_v52 = vmax.f32 %v176_v45, %v628_v49  ;;  %v178_v53 = vld [vmem:[%s714_s12 + $0x328] sm:$0xff]  ;;  %v629_v54 = vld [vmem:[%s714_s12 + $0x360] sm:$0xff]  ;;  %v179_v59 = vld [vmem:[%s714_s12 + $0x330] sm:$0xf] }
  0x33   : > { %v630_v55 = vld [vmem:[%s714_s12 + $0x368] sm:$0xff]  ;;  %485 = vst [vmem:[%s728_s16 + $0xb8] sm:$0xf] %v437_v46  ;;  %v438_v56 = vmax.f32 %v366_v43, %v367_v47  ;;  %v370_v57 = vmax.f32 %v177_v50, %v629_v54  ;;  %v180_v60 = vld [vmem:[%s714_s12 + $0x338] sm:$0xf]  ;;  %v181_v1 = vld [vmem:[%s714_s12 + $0x380] sm:$0xff] }
  0x34   : > { %v371_v58 = vmax.f32 %v178_v53, %v630_v55  ;;  %v631_v61 = vld [vmem:[%s714_s12 + $0x370] sm:$0xf]  ;;  %v439_v62 = vmax.f32 %v368_v51, %v369_v52  ;;  %v632_v63 = vld [vmem:[%s714_s12 + $0x378] sm:$0xf]  ;;  %v182_v2 = vld [vmem:[%s714_s12 + $0x388] sm:$0xff] }
  0x35   : > { %v372_v0 = vmax.f32 %v179_v59, %v631_v61  ;;  %486 = vst [vmem:[%s728_s16 + $0xc0] sm:$0xff] %v438_v56  ;;  %v373_v4 = vmax.f32 %v180_v60, %v632_v63  ;;  %v633_v5 = vld [vmem:[%s714_s12 + $0x3c0] sm:$0xff]  ;;  %v634_v6 = vld [vmem:[%s714_s12 + $0x3c8] sm:$0xff]  ;;  %v183_v7 = vld [vmem:[%s714_s12 + $0x390] sm:$0xff] }
  0x36   : > { %v440_v3 = vmax.f32 %v370_v57, %v371_v58  ;;  %487 = vst [vmem:[%s728_s16 + $0xc8] sm:$0xff] %v439_v62  ;;  %v374_v8 = vmax.f32 %v181_v1, %v633_v5  ;;  %v375_v9 = vmax.f32 %v182_v2, %v634_v6  ;;  %v184_v10 = vld [vmem:[%s714_s12 + $0x398] sm:$0xff]  ;;  %v635_v11 = vld [vmem:[%s714_s12 + $0x3d0] sm:$0xff]  ;;  %v185_v16 = vld [vmem:[%s714_s12 + $0x3a0] sm:$0xff] }
  0x37   : > { %v636_v12 = vld [vmem:[%s714_s12 + $0x3d8] sm:$0xff]  ;;  %v441_v13 = vmax.f32 %v372_v0, %v373_v4  ;;  %v376_v14 = vmax.f32 %v183_v7, %v635_v11  ;;  %v186_v17 = vld [vmem:[%s714_s12 + $0x3a8] sm:$0xff]  ;;  %v637_v18 = vld [vmem:[%s714_s12 + $0x3e0] sm:$0xff] }
  0x38   : > { %488 = vst [vmem:[%s728_s16 + $0xd0] sm:$0xff] %v440_v3  ;;  %v377_v15 = vmax.f32 %v184_v10, %v636_v12  ;;  %v442_v19 = vmax.f32 %v374_v8, %v375_v9  ;;  %v638_v20 = vld [vmem:[%s714_s12 + $0x3e8] sm:$0xff]  ;;  %v378_v21 = vmax.f32 %v185_v16, %v637_v18  ;;  %v187_v22 = vld [vmem:[%s714_s12 + $0x3b0] sm:$0xf]  ;;  %v188_v23 = vld [vmem:[%s714_s12 + $0x3b8] sm:$0xf] }
  0x39   : > { %489 = vst [vmem:[%s728_s16 + $0xd8] sm:$0xf] %v441_v13  ;;  %v379_v25 = vmax.f32 %v186_v17, %v638_v20  ;;  %v639_v26 = vld [vmem:[%s714_s12 + $0x3f0] sm:$0xf]  ;;  %v640_v27 = vld [vmem:[%s714_s12 + $0x3f8] sm:$0xf] }
  0x3a   : > { %v443_v24 = vmax.f32 %v376_v14, %v377_v15  ;;  %v189_v28 = vld [vmem:[%s714_s12 + $0x400] sm:$0xff]  ;;  %490 = vst [vmem:[%s728_s16 + $0xe0] sm:$0xff] %v442_v19  ;;  %v380_v29 = vmax.f32 %v187_v22, %v639_v26  ;;  %v381_v30 = vmax.f32 %v188_v23, %v640_v27  ;;  %v190_v31 = vld [vmem:[%s714_s12 + $0x408] sm:$0xff]  ;;  %v191_v37 = vld [vmem:[%s714_s12 + $0x410] sm:$0xff] }
  0x3b   : > { %v641_v32 = vld [vmem:[%s714_s12 + $0x440] sm:$0xff]  ;;  %v642_v33 = vld [vmem:[%s714_s12 + $0x448] sm:$0xff]  ;;  %v444_v34 = vmax.f32 %v378_v21, %v379_v25  ;;  %v192_v38 = vld [vmem:[%s714_s12 + $0x418] sm:$0xff] }
  0x3c   : > { %491 = vst [vmem:[%s728_s16 + $0xe8] sm:$0xff] %v443_v24  ;;  %v382_v35 = vmax.f32 %v189_v28, %v641_v32  ;;  %v383_v36 = vmax.f32 %v190_v31, %v642_v33  ;;  %v643_v39 = vld [vmem:[%s714_s12 + $0x450] sm:$0xff]  ;;  %v445_v40 = vmax.f32 %v380_v29, %v381_v30  ;;  %v644_v41 = vld [vmem:[%s714_s12 + $0x458] sm:$0xff]  ;;  %v193_v43 = vld [vmem:[%s714_s12 + $0x420] sm:$0xff] }
  0x3d   : > { %v384_v42 = vmax.f32 %v191_v37, %v643_v39  ;;  %v194_v44 = vld [vmem:[%s714_s12 + $0x428] sm:$0xff]  ;;  %492 = vst [vmem:[%s728_s16 + $0xf0] sm:$0xff] %v444_v34  ;;  %v385_v46 = vmax.f32 %v192_v38, %v644_v41  ;;  %v645_v47 = vld [vmem:[%s714_s12 + $0x460] sm:$0xff]  ;;  %v195_v49 = vld [vmem:[%s714_s12 + $0x430] sm:$0xf] }
  0x3e   : > { %v446_v45 = vmax.f32 %v382_v35, %v383_v36  ;;  %v646_v48 = vld [vmem:[%s714_s12 + $0x468] sm:$0xff]  ;;  %493 = vst [vmem:[%s728_s16 + $0xf8] sm:$0xf] %v445_v40  ;;  %v386_v50 = vmax.f32 %v193_v43, %v645_v47  ;;  %v196_v52 = vld [vmem:[%s714_s12 + $0x438] sm:$0xf]  ;;  %v197_v58 = vld [vmem:[%s714_s12 + $0x480] sm:$0xff] }
  0x3f   : > { %v387_v51 = vmax.f32 %v194_v44, %v646_v48  ;;  %v647_v53 = vld [vmem:[%s714_s12 + $0x470] sm:$0xf]  ;;  %v648_v54 = vld [vmem:[%s714_s12 + $0x478] sm:$0xf]  ;;  %v447_v55 = vmax.f32 %v384_v42, %v385_v46  ;;  %v198_v59 = vld [vmem:[%s714_s12 + $0x488] sm:$0xff] }
  0x40   : > { %494 = vst [vmem:[%s728_s16 + $0x100] sm:$0xff] %v446_v45  ;;  %v388_v56 = vmax.f32 %v195_v49, %v647_v53  ;;  %v389_v57 = vmax.f32 %v196_v52, %v648_v54  ;;  %v649_v60 = vld [vmem:[%s714_s12 + $0x4c0] sm:$0xff]  ;;  %v650_v62 = vld [vmem:[%s714_s12 + $0x4c8] sm:$0xff]  ;;  %v199_v0 = vld [vmem:[%s714_s12 + $0x490] sm:$0xff] }
  0x41   : > { %v448_v61 = vmax.f32 %v386_v50, %v387_v51  ;;  %v390_v63 = vmax.f32 %v197_v58, %v649_v60  ;;  %v200_v1 = vld [vmem:[%s714_s12 + $0x498] sm:$0xff]  ;;  %495 = vst [vmem:[%s728_s16 + $0x108] sm:$0xff] %v447_v55  ;;  %v391_v3 = vmax.f32 %v198_v59, %v650_v62  ;;  %v651_v4 = vld [vmem:[%s714_s12 + $0x4d0] sm:$0xff]  ;;  %v201_v6 = vld [vmem:[%s714_s12 + $0x4a0] sm:$0xff] }
  0x42   : > { %v449_v2 = vmax.f32 %v388_v56, %v389_v57  ;;  %v652_v5 = vld [vmem:[%s714_s12 + $0x4d8] sm:$0xff]  ;;  %v392_v7 = vmax.f32 %v199_v0, %v651_v4  ;;  %v202_v9 = vld [vmem:[%s714_s12 + $0x4a8] sm:$0xff]  ;;  %v653_v10 = vld [vmem:[%s714_s12 + $0x4e0] sm:$0xff] }
  0x43   : > { %496 = vst [vmem:[%s728_s16 + $0x110] sm:$0xff] %v448_v61  ;;  %v393_v8 = vmax.f32 %v200_v1, %v652_v5  ;;  %v654_v11 = vld [vmem:[%s714_s12 + $0x4e8] sm:$0xff]  ;;  %v450_v12 = vmax.f32 %v390_v63, %v391_v3  ;;  %v394_v13 = vmax.f32 %v201_v6, %v653_v10  ;;  %v203_v15 = vld [vmem:[%s714_s12 + $0x4b0] sm:$0xf]  ;;  %v204_v16 = vld [vmem:[%s714_s12 + $0x4b8] sm:$0xf] }
  0x44   : > { %497 = vst [vmem:[%s728_s16 + $0x118] sm:$0xf] %v449_v2  ;;  %v395_v14 = vmax.f32 %v202_v9, %v654_v11  ;;  %v655_v17 = vld [vmem:[%s714_s12 + $0x4f0] sm:$0xf]  ;;  %v656_v19 = vld [vmem:[%s714_s12 + $0x4f8] sm:$0xf] }
  0x45   : > { %v451_v18 = vmax.f32 %v392_v7, %v393_v8  ;;  %v396_v20 = vmax.f32 %v203_v15, %v655_v17  ;;  %v205_v21 = vld [vmem:[%s714_s12 + $0x500] sm:$0xff]  ;;  %v206_v22 = vld [vmem:[%s714_s12 + $0x508] sm:$0xff]  ;;  %498 = vst [vmem:[%s728_s16 + $0x120] sm:$0xff] %v450_v12  ;;  %v397_v24 = vmax.f32 %v204_v16, %v656_v19  ;;  %v207_v27 = vld [vmem:[%s714_s12 + $0x510] sm:$0xff] }
  0x46   : > { %v452_v23 = vmax.f32 %v394_v13, %v395_v14  ;;  %v657_v25 = vld [vmem:[%s714_s12 + $0x540] sm:$0xff]  ;;  %v658_v26 = vld [vmem:[%s714_s12 + $0x548] sm:$0xff]  ;;  %v208_v30 = vld [vmem:[%s714_s12 + $0x518] sm:$0xff] }
  0x47   : > { %499 = vst [vmem:[%s728_s16 + $0x128] sm:$0xff] %v451_v18  ;;  %v398_v28 = vmax.f32 %v205_v21, %v657_v25  ;;  %v399_v29 = vmax.f32 %v206_v22, %v658_v26  ;;  %v659_v31 = vld [vmem:[%s714_s12 + $0x550] sm:$0xff]  ;;  %v660_v32 = vld [vmem:[%s714_s12 + $0x558] sm:$0xff]  ;;  %v453_v33 = vmax.f32 %v396_v20, %v397_v24  ;;  %v209_v36 = vld [vmem:[%s714_s12 + $0x520] sm:$0xff] }
  0x48   : > { %500 = vst [vmem:[%s728_s16 + $0x130] sm:$0xff] %v452_v23  ;;  %v400_v34 = vmax.f32 %v207_v27, %v659_v31  ;;  %v401_v35 = vmax.f32 %v208_v30, %v660_v32  ;;  %v210_v37 = vld [vmem:[%s714_s12 + $0x528] sm:$0xff]  ;;  %v661_v38 = vld [vmem:[%s714_s12 + $0x560] sm:$0xff]  ;;  %v211_v42 = vld [vmem:[%s714_s12 + $0x530] sm:$0xf] }
  0x49   : > { %v454_v39 = vmax.f32 %v398_v28, %v399_v29  ;;  %v662_v40 = vld [vmem:[%s714_s12 + $0x568] sm:$0xff]  ;;  %v402_v41 = vmax.f32 %v209_v36, %v661_v38  ;;  %v212_v43 = vld [vmem:[%s714_s12 + $0x538] sm:$0xf]  ;;  %501 = vst [vmem:[%s728_s16 + $0x138] sm:$0xf] %v453_v33  ;;  %v213_v48 = vld [vmem:[%s714_s12 + $0x580] sm:$0xff] }
  0x4a   : > { %v455_v44 = vmax.f32 %v400_v34, %v401_v35  ;;  %v403_v45 = vmax.f32 %v210_v37, %v662_v40  ;;  %v663_v46 = vld [vmem:[%s714_s12 + $0x570] sm:$0xf]  ;;  %v664_v47 = vld [vmem:[%s714_s12 + $0x578] sm:$0xf]  ;;  %v214_v51 = vld [vmem:[%s714_s12 + $0x588] sm:$0xff] }
  0x4b   : > { %502 = vst [vmem:[%s728_s16 + $0x140] sm:$0xff] %v454_v39  ;;  %v404_v49 = vmax.f32 %v211_v42, %v663_v46  ;;  %v405_v50 = vmax.f32 %v212_v43, %v664_v47  ;;  %v665_v52 = vld [vmem:[%s714_s12 + $0x5c0] sm:$0xff]  ;;  %v666_v53 = vld [vmem:[%s714_s12 + $0x5c8] sm:$0xff]  ;;  %v215_v57 = vld [vmem:[%s714_s12 + $0x590] sm:$0xff] }
  0x4c   : > { %503 = vst [vmem:[%s728_s16 + $0x148] sm:$0xff] %v455_v44  ;;  %v456_v54 = vmax.f32 %v402_v41, %v403_v45  ;;  %v406_v55 = vmax.f32 %v213_v48, %v665_v52  ;;  %v407_v56 = vmax.f32 %v214_v51, %v666_v53  ;;  %v216_v58 = vld [vmem:[%s714_s12 + $0x598] sm:$0xff]  ;;  %v667_v59 = vld [vmem:[%s714_s12 + $0x5d0] sm:$0xff]  ;;  %v217_v63 = vld [vmem:[%s714_s12 + $0x5a0] sm:$0xff] }
  0x4d   : > { %v457_v60 = vmax.f32 %v404_v49, %v405_v50  ;;  %v668_v61 = vld [vmem:[%s714_s12 + $0x5d8] sm:$0xff]  ;;  %v408_v62 = vmax.f32 %v215_v57, %v667_v59  ;;  %v218_v0 = vld [vmem:[%s714_s12 + $0x5a8] sm:$0xff]  ;;  %v669_v3 = vld [vmem:[%s714_s12 + $0x5e0] sm:$0xff] }
  0x4e   : > { %504 = vst [vmem:[%s728_s16 + $0x150] sm:$0xff] %v456_v54  ;;  %v458_v1 = vmax.f32 %v406_v55, %v407_v56  ;;  %v409_v2 = vmax.f32 %v216_v58, %v668_v61  ;;  %v670_v4 = vld [vmem:[%s714_s12 + $0x5e8] sm:$0xff]  ;;  %v219_v5 = vld [vmem:[%s714_s12 + $0x5b0] sm:$0xf]  ;;  %v410_v6 = vmax.f32 %v217_v63, %v669_v3  ;;  %v220_v8 = vld [vmem:[%s714_s12 + $0x5b8] sm:$0xf] }
  0x4f   : > { %505 = vst [vmem:[%s728_s16 + $0x158] sm:$0xf] %v457_v60  ;;  %v411_v7 = vmax.f32 %v218_v0, %v670_v4  ;;  %v671_v9 = vld [vmem:[%s714_s12 + $0x5f0] sm:$0xf]  ;;  %v672_v10 = vld [vmem:[%s714_s12 + $0x5f8] sm:$0xf] }
  0x50   : > { %506 = vst [vmem:[%s728_s16 + $0x160] sm:$0xff] %v458_v1  ;;  %v459_v11 = vmax.f32 %v408_v62, %v409_v2  ;;  %v412_v12 = vmax.f32 %v219_v5, %v671_v9  ;;  %v413_v13 = vmax.f32 %v220_v8, %v672_v10 }
  0x51   : > { %v460_v14 = vmax.f32 %v410_v6, %v411_v7 }
  0x52   : > { %507 = vst [vmem:[%s728_s16 + $0x168] sm:$0xff] %v459_v11  ;;  %v461_v15 = vmax.f32 %v412_v12, %v413_v13 }
  0x53   : > { %508 = vst [vmem:[%s728_s16 + $0x170] sm:$0xff] %v460_v14 }
  0x54   : > { %509 = vst [vmem:[%s728_s16 + $0x178] sm:$0xf] %v461_v15 }
  0x55 PF: > { %s11_s6 = sadd.s32 1, %s691_s6  }
  0x56   : > { %p8_p4 = scmp.ge.s32.totalorder %s11_s6, 4  }
  0x58   :  { %10 = sbr.rel (!%p8_p4) target bundleno = 1 (0x1), region = 55 }

// kernel: nn_forward.11
= control target key start
LH: loop header
LB: loop body
LE: loop exit
PB: predicated region body
PF: predicated region fallthrough
CT: control target
= control target key end

     0   :  { %s1299_s12 = smov 0   ;;  %s1301_s13 = smov 0   ;;  %s1833_s0 = inlined_call_operand.vmem [shape: f32[2,16,32,128], index: 0, kind: input, shape index: {}]   ;;  %s1834_s1 = inlined_call_operand.vmem [shape: f32[1152,128], index: 1, kind: input, shape index: {}]   ;;  %s1835_s2 = inlined_call_operand.vmem [shape: f32[1,128], index: 2, kind: input, shape index: {}]   ;;  %s1836_s3 = inlined_call_operand.vmem [shape: f32[2,14,30,128], index: 3, kind: output, shape index: {}]  }
   0x1   :  { %s1303_s14 = smov 0   ;;  %s1305_s15 = smov 0  }
   0x2   :  { %s1307_s16 = smov 0  }
   0x3 LB: > { %s22_s17 = sadd.s32 1, %s1269_s14  ;;  %s25_s18 = sadd.s32 1, %s1273_s15  ;;  %s1277_s16 = sphi %s1307_s16, %s13_s16   ;;  %s1273_s15 = sphi %s1305_s15, %s1840_s15   ;;  %s1269_s14 = sphi %s1303_s14, %s1839_s14   ;;  %s1265_s13 = sphi %s1301_s13, %s1838_s13   ;;  %s1261_s12 = sphi %s1299_s12, %s1837_s12  }
   0x4   : > { %p23_p0 = scmp.ge.s32.totalorder %s22_s17, 14  ;;  %p896_p1 = scmp.ge.s32.totalorder %s1277_s16, 1 }
   0x5   : > { %p141_p2 = scmp.lt.s32.totalorder %s1277_s16, 29 }
   0x6   : > { %s1842_s17 = smov (%p23_p0, %s22_s17), 0  ;;  %s1844_s18 = smov (!%p23_p0, %s25_s18), %s1273_s15 }
   0x7   : > { %p142_p3 = pnand %p896_p1, %p141_p2  ;;  %p27_p4 = scmp.ge.s32.totalorder %s1844_s18, 2 }
   0x8   : > { %s899_s4 = sshll.u32 (!%p142_p3), %s1261_s12, 5  ;;  %s900_s5 = sshll.u32 (!%p142_p3), %s1265_s13, 9 }
   0x9   : > { %s1846_s18 = smov (%p27_p4, %s1844_s18), 0  ;;  %145 = sbr.rel (%p142_p3) target bundleno = 330 (0x14a), region = 32 }
   0xa   : > { %s175_s25 = sadd.s32 (!%p142_p3), %s900_s5, %s899_s4  ;;  %p164_p5 = scmp.lt.s32.totalorder (!%p142_p3), %s1265_s13, 1 }
   0xb   : > { %s1512_s20 = scalar_lea.vmem (!%p142_p3), %s1833_s0, %s175_s25  ;;  %p166_p6 = scmp.lt.s32.totalorder (!%p142_p3), %s1261_s12, 13 }
   0xe   : > { %v252_v0 = vld [vmem:[%s1834_s1 + $0xf8] sm:$0xff]  ;;  %v251_v4 = vld [vmem:[%s1834_s1 + $0xf0] sm:$0xff]  ;;  %v250_v8 = vld [vmem:[%s1834_s1 + $0xe8] sm:$0xff]  ;;  %s1848_s13 = smov (!%p164_p5, %s1265_s13), 1  ;;  %s1850_s12 = smov (!%p166_p6, %s1261_s12), 13 }
   0xf   : > { %v284_v1 = vld [vmem:[%s1834_s1 + $0x1f8] sm:$0xff]  ;;  %932 = vmatprep.subr.mxu0 %v252_v0  ;;  %v283_v5 = vld [vmem:[%s1834_s1 + $0x1f0] sm:$0xff]  ;;  %v282_v9 = vld [vmem:[%s1834_s1 + $0x1e8] sm:$0xff]  ;;  %s1198_s23 = smul.u32 56, %s1848_s13  ;;  %s897_s24 = sshll.u32 %s1850_s12, 2 }
  0x10   : > { %v236_v2 = vld [vmem:[%s1834_s1 + $0x78] sm:$0xff]  ;;  %976 = vmatprep.subr.mxu1 %v284_v1  ;;  %v235_v6 = vld [vmem:[%s1834_s1 + $0x70] sm:$0xff]  ;;  %v234_v10 = vld [vmem:[%s1834_s1 + $0x68] sm:$0xff] }
  0x11   : > { %v268_v3 = vld [vmem:[%s1834_s1 + $0x178] sm:$0xff]  ;;  %933 = vmatpush3.msra.mxu0 %v236_v2  ;;  %v267_v7 = vld [vmem:[%s1834_s1 + $0x170] sm:$0xff]  ;;  %v266_v11 = vld [vmem:[%s1834_s1 + $0x168] sm:$0xff]  ;;  %s170_s26 = sadd.s32 %s1198_s23, %s897_s24 }
  0x12   : > { %977 = vmatpush3.msra.mxu1 %v268_v3  ;;  %934 = vmatprep.subr.mxu0 %v251_v4  ;;  %v249_v12 = vld [vmem:[%s1834_s1 + $0xe0] sm:$0xff]  ;;  %v248_v16 = vld [vmem:[%s1834_s1 + $0xd8] sm:$0xff]  ;;  %v247_v20 = vld [vmem:[%s1834_s1 + $0xd0] sm:$0xff]  ;;  %s898_s27 = sshll.u32 %s170_s26, 3 }
  0x13   : > { %978 = vmatprep.subr.mxu1 %v283_v5  ;;  %935 = vmatpush3.msra.mxu0 %v235_v6  ;;  %v281_v13 = vld [vmem:[%s1834_s1 + $0x1e0] sm:$0xff]  ;;  %v280_v17 = vld [vmem:[%s1834_s1 + $0x1d8] sm:$0xff]  ;;  %v279_v21 = vld [vmem:[%s1834_s1 + $0x1d0] sm:$0xff]  ;;  %s172_s25 = scalar_lea.vmem %s1836_s3, %s898_s27 }
  0x14   : > { %979 = vmatpush3.msra.mxu1 %v267_v7  ;;  %936 = vmatprep.subr.mxu0 %v250_v8  ;;  %v233_v14 = vld [vmem:[%s1834_s1 + $0x60] sm:$0xff]  ;;  %v232_v18 = vld [vmem:[%s1834_s1 + $0x58] sm:$0xff]  ;;  %v231_v22 = vld [vmem:[%s1834_s1 + $0x50] sm:$0xff] }
  0x15   : > { %980 = vmatprep.subr.mxu1 %v282_v9  ;;  %v265_v15 = vld [vmem:[%s1834_s1 + $0x160] sm:$0xff]  ;;  %937 = vmatpush3.msra.mxu0 %v234_v10  ;;  %v264_v19 = vld [vmem:[%s1834_s1 + $0x158] sm:$0xff]  ;;  %v263_v23 = vld [vmem:[%s1834_s1 + $0x150] sm:$0xff] }
  0x16   : > { %981 = vmatpush3.msra.mxu1 %v266_v11  ;;  %938 = vmatprep.subr.mxu0 %v249_v12  ;;  %v246_v24 = vld [vmem:[%s1834_s1 + $0xc8] sm:$0xff]  ;;  %v245_v28 = vld [vmem:[%s1834_s1 + $0xc0] sm:$0xff]  ;;  %v244_v32 = vld [vmem:[%s1834_s1 + $0xb8] sm:$0xff] }
  0x17   : > { %982 = vmatprep.subr.mxu1 %v281_v13  ;;  %939 = vmatpush3.msra.mxu0 %v233_v14  ;;  %v278_v25 = vld [vmem:[%s1834_s1 + $0x1c8] sm:$0xff]  ;;  %v277_v29 = vld [vmem:[%s1834_s1 + $0x1c0] sm:$0xff]  ;;  %v276_v33 = vld [vmem:[%s1834_s1 + $0x1b8] sm:$0xff] }
  0x18   : > { %983 = vmatpush3.msra.mxu1 %v265_v15  ;;  %940 = vmatprep.subr.mxu0 %v248_v16  ;;  %v230_v26 = vld [vmem:[%s1834_s1 + $0x48] sm:$0xff]  ;;  %v229_v30 = vld [vmem:[%s1834_s1 + $0x40] sm:$0xff]  ;;  %v228_v34 = vld [vmem:[%s1834_s1 + $0x38] sm:$0xff] }
  0x19   : > { %984 = vmatprep.subr.mxu1 %v280_v17  ;;  %941 = vmatpush3.msra.mxu0 %v232_v18  ;;  %v262_v27 = vld [vmem:[%s1834_s1 + $0x148] sm:$0xff]  ;;  %v261_v31 = vld [vmem:[%s1834_s1 + $0x140] sm:$0xff]  ;;  %v260_v35 = vld [vmem:[%s1834_s1 + $0x138] sm:$0xff] }
  0x1a   : > { %985 = vmatpush3.msra.mxu1 %v264_v19  ;;  %942 = vmatprep.subr.mxu0 %v247_v20  ;;  %v243_v36 = vld [vmem:[%s1834_s1 + $0xb0] sm:$0xff]  ;;  %v242_v40 = vld [vmem:[%s1834_s1 + $0xa8] sm:$0xff]  ;;  %v241_v44 = vld [vmem:[%s1834_s1 + $0xa0] sm:$0xff] }
  0x1b   : > { %986 = vmatprep.subr.mxu1 %v279_v21  ;;  %943 = vmatpush3.msra.mxu0 %v231_v22  ;;  %v275_v37 = vld [vmem:[%s1834_s1 + $0x1b0] sm:$0xff]  ;;  %v274_v41 = vld [vmem:[%s1834_s1 + $0x1a8] sm:$0xff]  ;;  %v273_v45 = vld [vmem:[%s1834_s1 + $0x1a0] sm:$0xff] }
  0x1c   : > { %987 = vmatpush3.msra.mxu1 %v263_v23  ;;  %944 = vmatprep.subr.mxu0 %v246_v24  ;;  %v227_v38 = vld [vmem:[%s1834_s1 + $0x30] sm:$0xff]  ;;  %v226_v42 = vld [vmem:[%s1834_s1 + $0x28] sm:$0xff]  ;;  %v225_v46 = vld [vmem:[%s1834_s1 + $0x20] sm:$0xff] }
  0x1d   : > { %988 = vmatprep.subr.mxu1 %v278_v25  ;;  %945 = vmatpush3.msra.mxu0 %v230_v26  ;;  %v259_v39 = vld [vmem:[%s1834_s1 + $0x130] sm:$0xff]  ;;  %v258_v43 = vld [vmem:[%s1834_s1 + $0x128] sm:$0xff]  ;;  %v257_v47 = vld [vmem:[%s1834_s1 + $0x120] sm:$0xff] }
  0x1e   : > { %989 = vmatpush3.msra.mxu1 %v262_v27  ;;  %946 = vmatprep.subr.mxu0 %v245_v28  ;;  %v240_v48 = vld [vmem:[%s1834_s1 + $0x98] sm:$0xff]  ;;  %v239_v52 = vld [vmem:[%s1834_s1 + $0x90] sm:$0xff]  ;;  %v238_v56 = vld [vmem:[%s1834_s1 + $0x88] sm:$0xff] }
  0x1f   : > { %990 = vmatprep.subr.mxu1 %v277_v29  ;;  %947 = vmatpush3.msra.mxu0 %v229_v30  ;;  %v272_v49 = vld [vmem:[%s1834_s1 + $0x198] sm:$0xff]  ;;  %v271_v53 = vld [vmem:[%s1834_s1 + $0x190] sm:$0xff]  ;;  %v270_v57 = vld [vmem:[%s1834_s1 + $0x188] sm:$0xff] }
  0x20   : > { %991 = vmatpush3.msra.mxu1 %v261_v31  ;;  %948 = vmatprep.subr.mxu0 %v244_v32  ;;  %v224_v50 = vld [vmem:[%s1834_s1 + $0x18] sm:$0xff]  ;;  %v223_v54 = vld [vmem:[%s1834_s1 + $0x10] sm:$0xff]  ;;  %v222_v58 = vld [vmem:[%s1834_s1 + $0x8] sm:$0xff] }
  0x21   : > { %992 = vmatprep.subr.mxu1 %v276_v33  ;;  %949 = vmatpush3.msra.mxu0 %v228_v34  ;;  %v256_v51 = vld [vmem:[%s1834_s1 + $0x118] sm:$0xff]  ;;  %v255_v55 = vld [vmem:[%s1834_s1 + $0x110] sm:$0xff]  ;;  %v254_v59 = vld [vmem:[%s1834_s1 + $0x108] sm:$0xff] }
  0x22   : > { %993 = vmatpush3.msra.mxu1 %v260_v35  ;;  %950 = vmatprep.subr.mxu0 %v243_v36  ;;  %v237_v60 = vld [vmem:[%s1834_s1 + $0x80] sm:$0xff]  ;;  %v316_v4 = vld [vmem:[%s1834_s1 + $0x2f8] sm:$0xff]  ;;  %v315_v8 = vld [vmem:[%s1834_s1 + $0x2f0] sm:$0xff] }
  0x23   : > { %994 = vmatprep.subr.mxu1 %v275_v37  ;;  %951 = vmatpush3.msra.mxu0 %v227_v38  ;;  %v269_v61 = vld [vmem:[%s1834_s1 + $0x180] sm:$0xff]  ;;  %v348_v5 = vld [vmem:[%s1834_s1 + $0x3f8] sm:$0xff]  ;;  %v347_v9 = vld [vmem:[%s1834_s1 + $0x3f0] sm:$0xff] }
  0x24   : > { %995 = vmatpush3.msra.mxu1 %v259_v39  ;;  %952 = vmatprep.subr.mxu0 %v242_v40  ;;  %v221_v62 = vld [vmem:[%s1834_s1] sm:$0xff]  ;;  %v300_v6 = vld [vmem:[%s1834_s1 + $0x278] sm:$0xff]  ;;  %v299_v10 = vld [vmem:[%s1834_s1 + $0x270] sm:$0xff] }
  0x25   : > { %996 = vmatprep.subr.mxu1 %v274_v41  ;;  %953 = vmatpush3.msra.mxu0 %v226_v42  ;;  %v181_v63 = vld [vmem:[%s1512_s20 + $0x1] sm:$0xff]  ;;  %v332_v7 = vld [vmem:[%s1834_s1 + $0x378] sm:$0xff]  ;;  %v331_v11 = vld [vmem:[%s1834_s1 + $0x370] sm:$0xff] }
  0x26   : > { %997 = vmatpush3.msra.mxu1 %v258_v43  ;;  %954 = vmatprep.subr.mxu0 %v241_v44  ;;  %v253_v0 = vld [vmem:[%s1834_s1 + $0x100] sm:$0xff]  ;;  %v314_v12 = vld [vmem:[%s1834_s1 + $0x2e8] sm:$0xff]  ;;  %v312_v20 = vld [vmem:[%s1834_s1 + $0x2d8] sm:$0xff] }
  0x27   : > { %998 = vmatprep.subr.mxu1 %v273_v45  ;;  %955 = vmatpush3.msra.mxu0 %v225_v46  ;;  %v903_v1 = vld [vmem:[%s1512_s20 + $0x20] sm:$0xff]  ;;  %v346_v13 = vld [vmem:[%s1834_s1 + $0x3e8] sm:$0xff]  ;;  %v344_v21 = vld [vmem:[%s1834_s1 + $0x3d8] sm:$0xff] }
  0x28   : > { %999 = vmatpush3.msra.mxu1 %v257_v47  ;;  %956 = vmatprep.subr.mxu0 %v240_v48  ;;  %v177_v2 = vld [vmem:[%s1512_s20] sm:$0xff]  ;;  %v298_v14 = vld [vmem:[%s1834_s1 + $0x268] sm:$0xff]  ;;  %v296_v22 = vld [vmem:[%s1834_s1 + $0x258] sm:$0xff] }
  0x29   : > { %1000 = vmatprep.subr.mxu1 %v272_v49  ;;  %957 = vmatpush3.msra.mxu0 %v224_v50  ;;  %v185_v3 = vld [vmem:[%s1512_s20 + $0x2] sm:$0xff]  ;;  %v328_v23 = vld [vmem:[%s1834_s1 + $0x358] sm:$0xff]  ;;  %v311_v24 = vld [vmem:[%s1834_s1 + $0x2d0] sm:$0xff] }
  0x2a   : > { %1001 = vmatpush3.msra.mxu1 %v256_v51  ;;  %958 = vmatprep.subr.mxu0 %v239_v52  ;;  %v330_v15 = vld [vmem:[%s1834_s1 + $0x368] sm:$0xff]  ;;  %v313_v16 = vld [vmem:[%s1834_s1 + $0x2e0] sm:$0xff]  ;;  %v343_v25 = vld [vmem:[%s1834_s1 + $0x3d0] sm:$0xff] }
  0x2b   : > { %1002 = vmatprep.subr.mxu1 %v271_v53  ;;  %959 = vmatpush3.msra.mxu0 %v223_v54  ;;  %v345_v17 = vld [vmem:[%s1834_s1 + $0x3e0] sm:$0xff]  ;;  %v295_v26 = vld [vmem:[%s1834_s1 + $0x250] sm:$0xff]  ;;  %v310_v28 = vld [vmem:[%s1834_s1 + $0x2c8] sm:$0xff] }
  0x2c   : > { %1003 = vmatpush3.msra.mxu1 %v255_v55  ;;  %960 = vmatprep.subr.mxu0 %v238_v56  ;;  %v297_v18 = vld [vmem:[%s1834_s1 + $0x260] sm:$0xff]  ;;  %v327_v27 = vld [vmem:[%s1834_s1 + $0x350] sm:$0xff]  ;;  %v342_v29 = vld [vmem:[%s1834_s1 + $0x3c8] sm:$0xff] }
  0x2d   : > { %1004 = vmatprep.subr.mxu1 %v270_v57  ;;  %961 = vmatpush3.msra.mxu0 %v222_v58  ;;  %v329_v19 = vld [vmem:[%s1834_s1 + $0x360] sm:$0xff]  ;;  %v294_v30 = vld [vmem:[%s1834_s1 + $0x248] sm:$0xff]  ;;  %v308_v37 = vld [vmem:[%s1834_s1 + $0x2b8] sm:$0xff] }
  0x2e   : > { %1005 = vmatpush3.msra.mxu1 %v254_v59  ;;  %962 = vmatprep.subr.mxu0 %v237_v60  ;;  %v326_v31 = vld [vmem:[%s1834_s1 + $0x348] sm:$0xff]  ;;  %v309_v32 = vld [vmem:[%s1834_s1 + $0x2c0] sm:$0xff]  ;;  %v340_v38 = vld [vmem:[%s1834_s1 + $0x3b8] sm:$0xff] }
  0x2f   : > { %1006 = vmatprep.subr.mxu1 %v269_v61  ;;  %963 = vmatpush3.msra.mxu0 %v221_v62  ;;  %v341_v33 = vld [vmem:[%s1834_s1 + $0x3c0] sm:$0xff]  ;;  %v182_v36 = vld [vmem:[%s1512_s20 + $0x9] sm:$0xff]  ;;  %v292_v40 = vld [vmem:[%s1834_s1 + $0x238] sm:$0xff] }
  0x30   : > { %436 = vmatprep.mubr.f32.mxu0 %v181_v63  ;;  %1007 = vmatpush3.msra.mxu1 %v253_v0  ;;  %v293_v34 = vld [vmem:[%s1834_s1 + $0x240] sm:$0xff]  ;;  %v178_v39 = vld [vmem:[%s1512_s20 + $0x8] sm:$0xff]  ;;  %v324_v41 = vld [vmem:[%s1834_s1 + $0x338] sm:$0xff] }
  0x31   : > { %521 = vmatprep.mubr.f32.mxu1 %v903_v1  ;;  %437 = vmatmul.mubr.f32.vlgmr.msra.gmra.mxu0 %v177_v2  ;;  %v325_v35 = vld [vmem:[%s1834_s1 + $0x340] sm:$0xff]  ;;  %v904_v42 = vld [vmem:[%s1512_s20 + $0x28] sm:$0xff]  ;;  %v307_v43 = vld [vmem:[%s1834_s1 + $0x2b0] sm:$0xff] }
  0x32   : > { %522 = vmatmul.mubr.f32.vlgmr.msra.gmra.mxu1 %v185_v3  ;;  %1020 = vmatprep.subr.mxu0 %v316_v4  ;;  %v339_v44 = vld [vmem:[%s1834_s1 + $0x3b0] sm:$0xff]  ;;  %v306_v49 = vld [vmem:[%s1834_s1 + $0x2a8] sm:$0xff]  ;;  %v305_v55 = vld [vmem:[%s1834_s1 + $0x2a0] sm:$0xff] }
  0x33   : > { %1064 = vmatprep.subr.mxu1 %v348_v5  ;;  %1021 = vmatpush3.msra.mxu0 %v300_v6  ;;  %v186_v45 = vld [vmem:[%s1512_s20 + $0xa] sm:$0xff]  ;;  %v337_v56 = vld [vmem:[%s1834_s1 + $0x3a0] sm:$0xff]  ;;  %v187_v57 = vld [vmem:[%s1512_s20 + $0x12] sm:$0xff] }
  0x34   : > { %1065 = vmatpush3.msra.mxu1 %v332_v7  ;;  %1022 = vmatprep.subr.mxu0 %v315_v8  ;;  %v291_v46 = vld [vmem:[%s1834_s1 + $0x230] sm:$0xff]  ;;  %v338_v50 = vld [vmem:[%s1834_s1 + $0x3a8] sm:$0xff]  ;;  %v289_v58 = vld [vmem:[%s1834_s1 + $0x220] sm:$0xff] }
  0x35   : > { %1066 = vmatprep.subr.mxu1 %v347_v9  ;;  %1023 = vmatpush3.msra.mxu0 %v299_v10  ;;  %v323_v47 = vld [vmem:[%s1834_s1 + $0x330] sm:$0xff]  ;;  %v290_v52 = vld [vmem:[%s1834_s1 + $0x228] sm:$0xff]  ;;  %v321_v59 = vld [vmem:[%s1834_s1 + $0x320] sm:$0xff] }
  0x36   : > { %1067 = vmatpush3.msra.mxu1 %v331_v11  ;;  %1024 = vmatprep.subr.mxu0 %v314_v12  ;;  %v183_v48 = vld [vmem:[%s1512_s20 + $0x11] sm:$0xff]  ;;  %v322_v53 = vld [vmem:[%s1834_s1 + $0x328] sm:$0xff]  ;;  %v184_v60 = vld [vmem:[%s1512_s20 + $0x19] sm:$0x3f] }
  0x37   : > { %1068 = vmatprep.subr.mxu1 %v346_v13  ;;  %1025 = vmatpush3.msra.mxu0 %v298_v14  ;;  %v179_v51 = vld [vmem:[%s1512_s20 + $0x10] sm:$0xff]  ;;  %v304_v61 = vld [vmem:[%s1834_s1 + $0x298] sm:$0xff]  ;;  %v302_v8 = vld [vmem:[%s1834_s1 + $0x288] sm:$0xff] }
  0x38   : > { %1069 = vmatpush3.msra.mxu1 %v330_v15  ;;  %1026 = vmatprep.subr.mxu0 %v313_v16  ;;  %v905_v54 = vld [vmem:[%s1512_s20 + $0x30] sm:$0xff]  ;;  %v336_v62 = vld [vmem:[%s1834_s1 + $0x398] sm:$0xff]  ;;  %v334_v9 = vld [vmem:[%s1834_s1 + $0x388] sm:$0xff] }
  0x39   : > { %1070 = vmatprep.subr.mxu1 %v345_v17  ;;  %1027 = vmatpush3.msra.mxu0 %v297_v18  ;;  %v180_v63 = vld [vmem:[%s1512_s20 + $0x18] sm:$0x3f]  ;;  %v303_v3 = vld [vmem:[%s1834_s1 + $0x290] sm:$0xff]  ;;  %v286_v10 = vld [vmem:[%s1834_s1 + $0x208] sm:$0xff] }
  0x3a   : > { %1071 = vmatpush3.msra.mxu1 %v329_v19  ;;  %1028 = vmatprep.subr.mxu0 %v312_v20  ;;  %v288_v0 = vld [vmem:[%s1834_s1 + $0x218] sm:$0xff]  ;;  %v335_v4 = vld [vmem:[%s1834_s1 + $0x390] sm:$0xff]  ;;  %v318_v11 = vld [vmem:[%s1834_s1 + $0x308] sm:$0xff] }
  0x3b   : > { %1072 = vmatprep.subr.mxu1 %v344_v21  ;;  %1029 = vmatpush3.msra.mxu0 %v296_v22  ;;  %v320_v1 = vld [vmem:[%s1834_s1 + $0x318] sm:$0xff]  ;;  %v287_v6 = vld [vmem:[%s1834_s1 + $0x210] sm:$0xff]  ;;  %v301_v12 = vld [vmem:[%s1834_s1 + $0x280] sm:$0xff] }
  0x3c   : > { %1073 = vmatpush3.msra.mxu1 %v328_v23  ;;  %1030 = vmatprep.subr.mxu0 %v311_v24  ;;  %v906_v2 = vld [vmem:[%s1512_s20 + $0x38] sm:$0x3f]  ;;  %v319_v7 = vld [vmem:[%s1834_s1 + $0x310] sm:$0xff]  ;;  %v333_v13 = vld [vmem:[%s1834_s1 + $0x380] sm:$0xff] }
  0x3d   : > { %1074 = vmatprep.subr.mxu1 %v343_v25  ;;  %1031 = vmatpush3.msra.mxu0 %v295_v26  ;;  %v188_v5 = vld [vmem:[%s1512_s20 + $0x1a] sm:$0x3f]  ;;  %v285_v14 = vld [vmem:[%s1834_s1 + $0x200] sm:$0xff]  ;;  %v363_v21 = vld [vmem:[%s1834_s1 + $0x470] sm:$0xff] }
  0x3e   : > { %1075 = vmatpush3.msra.mxu1 %v327_v27  ;;  %1032 = vmatprep.subr.mxu0 %v310_v28  ;;  %v911_v15 = vld [vmem:[%s1512_s20 + $0x22] sm:$0xff]  ;;  %v364_v20 = vld [vmem:[%s1834_s1 + $0x478] sm:$0xff]  ;;  %v912_v22 = vld [vmem:[%s1512_s20 + $0x2a] sm:$0xff] }
  0x3f   : > { %1076 = vmatprep.subr.mxu1 %v342_v29  ;;  %1033 = vmatpush3.msra.mxu0 %v294_v30  ;;  %v317_v16 = vld [vmem:[%s1834_s1 + $0x300] sm:$0xff]  ;;  %v908_v23 = vld [vmem:[%s1512_s20 + $0x29] sm:$0xff]  ;;  %v913_v28 = vld [vmem:[%s1512_s20 + $0x32] sm:$0xff] }
  0x40   : > { %1077 = vmatpush3.msra.mxu1 %v326_v31  ;;  %1034 = vmatprep.subr.mxu0 %v309_v32  ;;  %v921_v17 = vld [vmem:[%s1512_s20 + $0x41] sm:$0xff]  ;;  %v922_v25 = vld [vmem:[%s1512_s20 + $0x49] sm:$0xff]  ;;  %v909_v29 = vld [vmem:[%s1512_s20 + $0x31] sm:$0xff] }
  0x41   : > { %1078 = vmatprep.subr.mxu1 %v341_v33  ;;  %1035 = vmatpush3.msra.mxu0 %v293_v34  ;;  %v907_v18 = vld [vmem:[%s1512_s20 + $0x21] sm:$0xff]  ;;  %v360_v30 = vld [vmem:[%s1834_s1 + $0x458] sm:$0xff]  ;;  %v359_v32 = vld [vmem:[%s1834_s1 + $0x450] sm:$0xff] }
  0x42   : > { %1079 = vmatpush3.msra.mxu1 %v325_v35  ;;  %441 = vmatprep.mubr.f32.mxu0 %v182_v36  ;;  %v917_v19 = vld [vmem:[%s1512_s20 + $0x40] sm:$0xff]  ;;  %v362_v24 = vld [vmem:[%s1834_s1 + $0x468] sm:$0xff]  ;;  %v923_v31 = vld [vmem:[%s1512_s20 + $0x51] sm:$0xff] }
  0x43   : > { %1036 = vmatprep.subr.mxu0 %v308_v37  ;;  %1080 = vmatprep.subr.mxu1 %v340_v38  ;;  %v361_v26 = vld [vmem:[%s1834_s1 + $0x460] sm:$0xff]  ;;  %v918_v27 = vld [vmem:[%s1512_s20 + $0x48] sm:$0xff]  ;;  %v919_v33 = vld [vmem:[%s1512_s20 + $0x50] sm:$0xff] }
  0x44   : > { %442 = vmatmul.mubr.f32.gmra.mxu0 %v178_v39  ;;  %1081 = vmatpush3.msra.mxu1 %v324_v41  ;;  %v914_v34 = vld [vmem:[%s1512_s20 + $0x3a] sm:$0x3f]  ;;  %v358_v36 = vld [vmem:[%s1834_s1 + $0x448] sm:$0xff]  ;;  %v357_v38 = vld [vmem:[%s1834_s1 + $0x440] sm:$0xff] }
  0x45   : > { %1037 = vmatpush3.msra.mxu0 %v292_v40  ;;  %526 = vmatprep.mubr.f32.mxu1 %v904_v42  ;;  %v910_v35 = vld [vmem:[%s1512_s20 + $0x39] sm:$0x3f]  ;;  %v355_v41 = vld [vmem:[%s1834_s1 + $0x430] sm:$0xff]  ;;  %v354_v42 = vld [vmem:[%s1834_s1 + $0x428] sm:$0xff] }
  0x46   : > { %1038 = vmatprep.subr.mxu0 %v307_v43  ;;  %1082 = vmatprep.subr.mxu1 %v339_v44  ;;  %v924_v37 = vld [vmem:[%s1512_s20 + $0x59] sm:$0x3f]  ;;  %v353_v43 = vld [vmem:[%s1834_s1 + $0x420] sm:$0xff] }
  0x47   : > { %527 = vmatmul.mubr.f32.gmra.mxu1 %v186_v45  ;;  %1039 = vmatpush3.msra.mxu0 %v291_v46  ;;  %v920_v39 = vld [vmem:[%s1512_s20 + $0x58] sm:$0x3f]  ;;  %v351_v45 = vld [vmem:[%s1834_s1 + $0x410] sm:$0xff]  ;;  %v350_v46 = vld [vmem:[%s1834_s1 + $0x408] sm:$0xff] }
  0x48   : > { %1083 = vmatpush3.msra.mxu1 %v323_v47  ;;  %446 = vmatprep.mubr.f32.mxu0 %v183_v48  ;;  %v356_v40 = vld [vmem:[%s1834_s1 + $0x438] sm:$0xff]  ;;  %v349_v47 = vld [vmem:[%s1834_s1 + $0x400] sm:$0xff] }
  0x49   : > { %1040 = vmatprep.subr.mxu0 %v306_v49  ;;  %1084 = vmatprep.subr.mxu1 %v338_v50  ;;  %v352_v44 = vld [vmem:[%s1834_s1 + $0x418] sm:$0xff]  ;;  %v925_v48 = vld [vmem:[%s1512_s20 + $0x42] sm:$0xff]  ;;  %v926_v50 = vld [vmem:[%s1512_s20 + $0x4a] sm:$0xff] }
  0x4a   : > { %447 = vmatmul.mubr.f32.gmra.mxu0 %v179_v51  ;;  %1085 = vmatpush3.msra.mxu1 %v322_v53  ;;  %v927_v49 = vld [vmem:[%s1512_s20 + $0x52] sm:$0xff]  ;;  %v928_v51 = vld [vmem:[%s1512_s20 + $0x5a] sm:$0x3f] }
  0x4b   : > { %1041 = vmatpush3.msra.mxu0 %v290_v52  ;;  %531 = vmatprep.mubr.f32.mxu1 %v905_v54 }
  0x4c   : > { %1042 = vmatprep.subr.mxu0 %v305_v55  ;;  %1086 = vmatprep.subr.mxu1 %v337_v56 }
  0x4d   : > { %532 = vmatmul.mubr.f32.gmra.mxu1 %v187_v57  ;;  %1043 = vmatpush3.msra.mxu0 %v289_v58 }
  0x4e   : > { %1087 = vmatpush3.msra.mxu1 %v321_v59  ;;  %451 = vmatprep.mubr.f32.mxu0 %v184_v60 }
  0x4f   : > { %1044 = vmatprep.subr.mxu0 %v304_v61  ;;  %1088 = vmatprep.subr.mxu1 %v336_v62 }
  0x50   : > { %452 = vmatmul.mubr.f32.gmra.mxu0 %v180_v63  ;;  %1089 = vmatpush3.msra.mxu1 %v320_v1 }
  0x51   : > { %1045 = vmatpush3.msra.mxu0 %v288_v0  ;;  %536 = vmatprep.mubr.f32.mxu1 %v906_v2 }
  0x52   : > { %1046 = vmatprep.subr.mxu0 %v303_v3  ;;  %1090 = vmatprep.subr.mxu1 %v335_v4 }
  0x53   : > { %537 = vmatmul.mubr.f32.gmra.mxu1 %v188_v5  ;;  %1047 = vmatpush3.msra.mxu0 %v287_v6 }
  0x54   : > { %1091 = vmatpush3.msra.mxu1 %v319_v7  ;;  %1048 = vmatprep.subr.mxu0 %v302_v8 }
  0x55   : > { %1092 = vmatprep.subr.mxu1 %v334_v9  ;;  %1049 = vmatpush3.msra.mxu0 %v286_v10 }
  0x56   : > { %1093 = vmatpush3.msra.mxu1 %v318_v11  ;;  %1050 = vmatprep.subr.mxu0 %v301_v12 }
  0x57   : > { %1094 = vmatprep.subr.mxu1 %v333_v13  ;;  %1051 = vmatpush3.msra.mxu0 %v285_v14 }
  0x58   : > { %606 = vmatprep.mubr.f32.mxu0 %v911_v15  ;;  %1095 = vmatpush3.msra.mxu1 %v317_v16 }
  0x59   : > { %691 = vmatprep.mubr.f32.mxu1 %v921_v17  ;;  %607 = vmatmul.mubr.f32.vlgmr.msra.gmra.mxu0 %v907_v18 }
  0x5a   : > { %692 = vmatmul.mubr.f32.vlgmr.msra.gmra.mxu1 %v917_v19  ;;  %1128 = vmatprep.subr.mxu0 %v364_v20 }
  0x5b   : > { %1166 = vmatprep.subr.mxu1 %v364_v20  ;;  %1129 = vmatpush3.msra.mxu0 %v364_v20 }
  0x5c   : > { %1182 = vmatpush3.msra.mxu1 %v364_v20  ;;  %1130 = vmatprep.subr.mxu0 %v363_v21 }
  0x5d   : > { %1167 = vmatprep.subr.mxu1 %v363_v21  ;;  %611 = vmatprep.mubr.f32.mxu0 %v912_v22 }
  0x5e   : > { %1131 = vmatpush3.msra.mxu0 %v363_v21  ;;  %1183 = vmatpush3.msra.mxu1 %v363_v21  ;;  %v929_v21 = vld [vmem:[%s1835_s2] ss:$0 sm:$0xff] }
  0x5f   : > { %612 = vmatmul.mubr.f32.gmra.mxu0 %v908_v23  ;;  %1132 = vmatprep.subr.mxu0 %v362_v24 }
  0x60   : > { %1168 = vmatprep.subr.mxu1 %v362_v24  ;;  %696 = vmatprep.mubr.f32.mxu1 %v922_v25 }
  0x61   : > { %1133 = vmatpush3.msra.mxu0 %v362_v24  ;;  %1184 = vmatpush3.msra.mxu1 %v362_v24 }
  0x62   : > { %1134 = vmatprep.subr.mxu0 %v361_v26  ;;  %697 = vmatmul.mubr.f32.gmra.mxu1 %v918_v27 }
  0x63   : > { %1169 = vmatprep.subr.mxu1 %v361_v26  ;;  %616 = vmatprep.mubr.f32.mxu0 %v913_v28 }
  0x64   : > { %1135 = vmatpush3.msra.mxu0 %v361_v26  ;;  %1185 = vmatpush3.msra.mxu1 %v361_v26 }
  0x65   : > { %617 = vmatmul.mubr.f32.gmra.mxu0 %v909_v29  ;;  %1136 = vmatprep.subr.mxu0 %v360_v30 }
  0x66   : > { %1170 = vmatprep.subr.mxu1 %v360_v30  ;;  %701 = vmatprep.mubr.f32.mxu1 %v923_v31 }
  0x67   : > { %1137 = vmatpush3.msra.mxu0 %v360_v30  ;;  %1186 = vmatpush3.msra.mxu1 %v360_v30 }
  0x68   : > { %1138 = vmatprep.subr.mxu0 %v359_v32  ;;  %702 = vmatmul.mubr.f32.gmra.mxu1 %v919_v33 }
  0x69   : > { %1171 = vmatprep.subr.mxu1 %v359_v32  ;;  %621 = vmatprep.mubr.f32.mxu0 %v914_v34 }
  0x6a   : > { %1139 = vmatpush3.msra.mxu0 %v359_v32  ;;  %1187 = vmatpush3.msra.mxu1 %v359_v32 }
  0x6b   : > { %622 = vmatmul.mubr.f32.gmra.mxu0 %v910_v35  ;;  %1140 = vmatprep.subr.mxu0 %v358_v36 }
  0x6c   : > { %1172 = vmatprep.subr.mxu1 %v358_v36  ;;  %706 = vmatprep.mubr.f32.mxu1 %v924_v37 }
  0x6d   : > { %1141 = vmatpush3.msra.mxu0 %v358_v36  ;;  %1188 = vmatpush3.msra.mxu1 %v358_v36 }
  0x6e   : > { %1142 = vmatprep.subr.mxu0 %v357_v38  ;;  %707 = vmatmul.mubr.f32.gmra.mxu1 %v920_v39 }
  0x6f   : > { %1173 = vmatprep.subr.mxu1 %v357_v38  ;;  %1143 = vmatpush3.msra.mxu0 %v357_v38 }
  0x70   : > { %1189 = vmatpush3.msra.mxu1 %v357_v38  ;;  %1144 = vmatprep.subr.mxu0 %v356_v40 }
  0x71   : > { %1174 = vmatprep.subr.mxu1 %v356_v40  ;;  %1145 = vmatpush3.msra.mxu0 %v356_v40 }
  0x72   : > { %1190 = vmatpush3.msra.mxu1 %v356_v40  ;;  %1146 = vmatprep.subr.mxu0 %v355_v41 }
  0x73   : > { %1175 = vmatprep.subr.mxu1 %v355_v41  ;;  %1147 = vmatpush3.msra.mxu0 %v355_v41 }
  0x74   : > { %1191 = vmatpush3.msra.mxu1 %v355_v41  ;;  %1148 = vmatprep.subr.mxu0 %v354_v42 }
  0x75   : > { %1176 = vmatprep.subr.mxu1 %v354_v42  ;;  %1149 = vmatpush3.msra.mxu0 %v354_v42 }
  0x76   : > { %1192 = vmatpush3.msra.mxu1 %v354_v42  ;;  %1150 = vmatprep.subr.mxu0 %v353_v43 }
  0x77   : > { %1177 = vmatprep.subr.mxu1 %v353_v43  ;;  %1151 = vmatpush3.msra.mxu0 %v353_v43 }
  0x78   : > { %1193 = vmatpush3.msra.mxu1 %v353_v43  ;;  %1152 = vmatprep.subr.mxu0 %v352_v44 }
  0x79   : > { %1178 = vmatprep.subr.mxu1 %v352_v44  ;;  %1153 = vmatpush3.msra.mxu0 %v352_v44 }
  0x7a   : > { %1194 = vmatpush3.msra.mxu1 %v352_v44  ;;  %1154 = vmatprep.subr.mxu0 %v351_v45 }
  0x7b   : > { %1179 = vmatprep.subr.mxu1 %v351_v45  ;;  %1155 = vmatpush3.msra.mxu0 %v351_v45 }
  0x7c   : > { %1195 = vmatpush3.msra.mxu1 %v351_v45  ;;  %1156 = vmatprep.subr.mxu0 %v350_v46 }
  0x7d   : > { %1180 = vmatprep.subr.mxu1 %v350_v46  ;;  %1157 = vmatpush3.msra.mxu0 %v350_v46 }
  0x7e   : > { %1196 = vmatpush3.msra.mxu1 %v350_v46  ;;  %1158 = vmatprep.subr.mxu0 %v349_v47 }
  0x7f   : > { %1181 = vmatprep.subr.mxu1 %v349_v47  ;;  %1159 = vmatpush3.msra.mxu0 %v349_v47 }
  0x80   : > { %1197 = vmatpush3.msra.mxu1 %v349_v47  ;;  %1160 = vmatprep.mubr.f32.mxu0 %v925_v48 }
  0x81   : > { %1163 = vmatprep.mubr.f32.mxu1 %v927_v49  ;;  %1161 = vmatmul.mubr.f32.vlgmr.msra.gmra.mxu0 %v926_v50 }
  0x82   : > { %1164 = vmatmul.mubr.f32.vlgmr.msra.gmra.mxu1 %v928_v51 }
  0xf1   : > { %v964_v52 = vpop.f32.mrf.mxu0 }
  0xf2   : > { %v1008_v53 = vpop.f32.mrf.mxu1 }
  0xf3   : > { %v965_v54 = vpop.f32.mrf.mxu0 }
  0xf4   : > { %v1009_v56 = vpop.f32.mrf.mxu1  ;;  %v966_v19 = vadd.f32 %v965_v54, %v964_v52 }
  0xf5   : > { %v1010_v33 = vadd.f32 %v1009_v56, %v1008_v53 }
  0xf6   : > { %v439_v28 = vadd.f32 %v966_v19, %v929_v21 }
  0xf8   : > { %v524_v39 = vadd.f32 %v1010_v33, %v439_v28 }
 0x104   : > { %v967_v55 = vpop.f32.mrf.mxu0 }
 0x106   : > { %v968_v57 = vpop.f32.mrf.mxu0 }
 0x107   : > { %v1011_v58 = vpop.f32.mrf.mxu1  ;;  %v969_v17 = vadd.f32 %v968_v57, %v967_v55 }
 0x109   : > { %v1012_v60 = vpop.f32.mrf.mxu1  ;;  %v444_v24 = vadd.f32 %v969_v17, %v929_v21 }
 0x10a   : > { %v970_v59 = vpop.f32.mrf.mxu0  ;;  %v1013_v25 = vadd.f32 %v1012_v60, %v1011_v58 }
 0x10c   : > { %v971_v61 = vpop.f32.mrf.mxu0  ;;  %v529_v35 = vadd.f32 %v1013_v25, %v444_v24 }
 0x10d   : > { %v1014_v62 = vpop.f32.mrf.mxu1  ;;  %v972_v20 = vadd.f32 %v971_v61, %v970_v59 }
 0x10f   : > { %v1015_v0 = vpop.f32.mrf.mxu1  ;;  %v449_v29 = vadd.f32 %v972_v20, %v929_v21 }
 0x110   : > { %v973_v63 = vpop.f32.mrf.mxu0  ;;  %v1016_v30 = vadd.f32 %v1015_v0, %v1014_v62 }
 0x112   : > { %v974_v1 = vpop.f32.mrf.mxu0  ;;  %v534_v40 = vadd.f32 %v1016_v30, %v449_v29 }
 0x113   : > { %v1017_v2 = vpop.f32.mrf.mxu1  ;;  %v975_v18 = vadd.f32 %v974_v1, %v973_v63 }
 0x115   : > { %v1018_v4 = vpop.f32.mrf.mxu1  ;;  %v454_v26 = vadd.f32 %v975_v18, %v929_v21 }
 0x116   : > { %v1019_v27 = vadd.f32 %v1018_v4, %v1017_v2 }
 0x118   : > { %v539_v36 = vadd.f32 %v1019_v27, %v454_v26 }
 0x119   : > { %v1052_v3 = vpop.f32.mrf.mxu0 }
 0x11a   : > { %v1096_v6 = vpop.f32.mrf.mxu1 }
 0x11b   : > { %v1053_v5 = vpop.f32.mrf.mxu0 }
 0x11c   : > { %v1097_v8 = vpop.f32.mrf.mxu1  ;;  %v1054_v37 = vadd.f32 %v1053_v5, %v1052_v3 }
 0x11d   : > { %v1098_v48 = vadd.f32 %v1097_v8, %v1096_v6 }
 0x11e   : > { %v609_v45 = vadd.f32 %v1054_v37, %v524_v39 }
 0x11f   : > { %v1055_v7 = vpop.f32.mrf.mxu0 }
 0x120   : > { %v694_v55 = vadd.f32 %v1098_v48, %v609_v45 }
 0x121   : > { %v1056_v9 = vpop.f32.mrf.mxu0 }
 0x122   : > { %v1099_v10 = vpop.f32.mrf.mxu1  ;;  %v1057_v31 = vadd.f32 %v1056_v9, %v1055_v7 }
 0x124   : > { %v1100_v12 = vpop.f32.mrf.mxu1  ;;  %v614_v41 = vadd.f32 %v1057_v31, %v529_v35 }
 0x125   : > { %v1058_v11 = vpop.f32.mrf.mxu0  ;;  %v1101_v42 = vadd.f32 %v1100_v12, %v1099_v10 }
 0x127   : > { %v1059_v13 = vpop.f32.mrf.mxu0  ;;  %v699_v49 = vadd.f32 %v1101_v42, %v614_v41 }
 0x128   : > { %v1102_v14 = vpop.f32.mrf.mxu1  ;;  %v1060_v38 = vadd.f32 %v1059_v13, %v1058_v11 }
 0x12a   : > { %v1103_v16 = vpop.f32.mrf.mxu1  ;;  %v619_v46 = vadd.f32 %v1060_v38, %v534_v40 }
 0x12b   : > { %v1061_v15 = vpop.f32.mrf.mxu0  ;;  %v1104_v47 = vadd.f32 %v1103_v16, %v1102_v14 }
 0x12d   : > { %v1062_v22 = vpop.f32.mrf.mxu0  ;;  %v704_v56 = vadd.f32 %v1104_v47, %v619_v46 }
 0x12e   : > { %v1105_v23 = vpop.f32.mrf.mxu1  ;;  %v1063_v32 = vadd.f32 %v1062_v22, %v1061_v15 }
 0x130   : > { %v1106_v34 = vpop.f32.mrf.mxu1  ;;  %v624_v43 = vadd.f32 %v1063_v32, %v539_v36 }
 0x131   : > { %v1107_v44 = vadd.f32 %v1106_v34, %v1105_v23 }
 0x133   : > { %v709_v50 = vadd.f32 %v1107_v44, %v624_v43 }
 0x141   : > { %v1162_v51 = vpop.f32.mrf.mxu0 }
 0x142   : > { %v1165_v52 = vpop.f32.mrf.mxu1  ;;  %v784_v53 = vadd.f32 %v1162_v51, %v699_v49 }
 0x143   : > { %v794_v54 = vadd.f32 %v1165_v52, %v709_v50  ;;  %v778_v57 = vpop.f32.mrf.mxu0 }
 0x144   : > { %v788_v58 = vpop.f32.mrf.mxu1  ;;  %v798_v59 = vmax.f32 %v784_v53, 0.0  ;;  %v779_v61 = vadd.f32 %v778_v57, %v694_v55 }
 0x145   : > { %v800_v60 = vmax.f32 %v794_v54, 0.0  ;;  %v789_v62 = vadd.f32 %v788_v58, %v704_v56 }
 0x146   : > { %802 = vst [vmem:[%s172_s25 + $0x8] sm:$0xff] %v798_v59  ;;  %v797_v63 = vmax.f32 %v779_v61, 0.0 }
 0x147   : > { %804 = vst [vmem:[%s172_s25 + $0x18] sm:$0x3f] %v800_v60  ;;  %v799_v0 = vmax.f32 %v789_v62, 0.0 }
 0x148   : > { %801 = vst [vmem:[%s172_s25] sm:$0xff] %v797_v63 }
 0x149   : > { %803 = vst [vmem:[%s172_s25 + $0x10] sm:$0xff] %v799_v0 }
 0x14a PF: > { %s13_s16 = sadd.s32 1, %s1277_s16   ;;  %s1837_s12 = smov %s1269_s14 }
 0x14b   : > { %p10_p7 = scmp.ge.s32.totalorder %s13_s16, 30   ;;  %s1838_s13 = smov %s1273_s15 }
 0x14c   : > { %s1839_s14 = smov %s1842_s17  ;;  %s1840_s15 = smov %s1846_s18 }
 0x14d   :  { %12 = sbr.rel (!%p10_p7) target bundleno = 3 (0x3), region = 62 }

// kernel: nn_forward.12
= control target key start
LH: loop header
LB: loop body
LE: loop exit
PB: predicated region body
PF: predicated region fallthrough
CT: control target
= control target key end

     0   :  { %s385_s6 = smov 0   ;;  %s486_s0 = inlined_call_operand.vmem [shape: f32[16,2,16,256], index: 0, kind: input, shape index: {}]   ;;  %s487_s1 = inlined_call_operand.vmem [shape: f32[16,16,128], index: 1, kind: output, shape index: {}]  }
   0x1 LB: > { %s312_s7 = sadd.s32 4294967295, %s373_s6   ;;  %p316_p0 = scmp.ge.s32.totalorder %s373_s6, 1  ;;  %s373_s6 = sphi %s385_s6, %s11_s6  }
   0x2   : > { %p89_p1 = scmp.lt.s32.totalorder %s373_s6, 3 }
   0x4   : > { %p90_p2 = pnand %p316_p0, %p89_p1 }
   0x5   : > { %s317_s8 = sshll.u32 (!%p90_p2), %s312_s7, 3 }
   0x6   : > { %93 = sbr.rel (%p90_p2) target bundleno = 41 (0x29), region = 24  ;;  %p112_p3 = scmp.lt.s32.totalorder (!%p90_p2), %s317_s8, 15 }
   0xb   : > { %s489_s8 = smov (!%p112_p3, %s317_s8), 15 }
   0xc   : > { %s357_s9 = sshll.u32 %s489_s8, 6  ;;  %s358_s13 = sshll.u32 %s489_s8, 4 }
   0xd   : > { %s396_s12 = scalar_lea.vmem %s486_s0, %s357_s9  ;;  %s410_s16 = scalar_lea.vmem %s487_s1, %s358_s13 }
   0xe   : > { %v125_v0 = vld [vmem:[%s396_s12] sm:$0xff]  ;;  %v126_v1 = vld [vmem:[%s396_s12 + $0x8] sm:$0xff]  ;;  %v127_v5 = vld [vmem:[%s396_s12 + $0x10] sm:$0xff] }
   0xf   : > { %v323_v2 = vld [vmem:[%s396_s12 + $0x20] sm:$0xff]  ;;  %v324_v3 = vld [vmem:[%s396_s12 + $0x28] sm:$0xff]  ;;  %v128_v6 = vld [vmem:[%s396_s12 + $0x18] sm:$0xff] }
  0x10   : > { %v190_v4 = vmax.f32 %v125_v0, %v323_v2  ;;  %v191_v7 = vmax.f32 %v126_v1, %v324_v3  ;;  %v325_v8 = vld [vmem:[%s396_s12 + $0x30] sm:$0xff]  ;;  %v326_v9 = vld [vmem:[%s396_s12 + $0x38] sm:$0xff]  ;;  %v129_v10 = vld [vmem:[%s396_s12 + $0x40] sm:$0xff] }
  0x11   : > { %v192_v11 = vmax.f32 %v127_v5, %v325_v8  ;;  %v193_v12 = vmax.f32 %v128_v6, %v326_v9  ;;  %v130_v13 = vld [vmem:[%s396_s12 + $0x48] sm:$0xff]  ;;  %v327_v14 = vld [vmem:[%s396_s12 + $0x60] sm:$0xff]  ;;  %v131_v19 = vld [vmem:[%s396_s12 + $0x50] sm:$0xff] }
  0x12   : > { %v328_v15 = vld [vmem:[%s396_s12 + $0x68] sm:$0xff]  ;;  %v222_v16 = vmax.f32 %v190_v4, %v191_v7  ;;  %v194_v17 = vmax.f32 %v129_v10, %v327_v14  ;;  %v132_v20 = vld [vmem:[%s396_s12 + $0x58] sm:$0xff]  ;;  %v329_v21 = vld [vmem:[%s396_s12 + $0x70] sm:$0xff] }
  0x13   : > { %v195_v18 = vmax.f32 %v130_v13, %v328_v15  ;;  %v223_v22 = vmax.f32 %v192_v11, %v193_v12  ;;  %v330_v23 = vld [vmem:[%s396_s12 + $0x78] sm:$0xff]  ;;  %v196_v24 = vmax.f32 %v131_v19, %v329_v21  ;;  %v133_v25 = vld [vmem:[%s396_s12 + $0x80] sm:$0xff]  ;;  %v134_v26 = vld [vmem:[%s396_s12 + $0x88] sm:$0xff] }
  0x14   : > { %238 = vst [vmem:[%s410_s16] sm:$0xff] %v222_v16  ;;  %v197_v28 = vmax.f32 %v132_v20, %v330_v23  ;;  %v331_v29 = vld [vmem:[%s396_s12 + $0xa0] sm:$0xff]  ;;  %v332_v30 = vld [vmem:[%s396_s12 + $0xa8] sm:$0xff]  ;;  %v135_v31 = vld [vmem:[%s396_s12 + $0x90] sm:$0xff] }
  0x15   : > { %v224_v27 = vmax.f32 %v194_v17, %v195_v18  ;;  %239 = vst [vmem:[%s410_s16 + $0x8] sm:$0xff] %v223_v22  ;;  %v198_v32 = vmax.f32 %v133_v25, %v331_v29  ;;  %v199_v33 = vmax.f32 %v134_v26, %v332_v30  ;;  %v136_v34 = vld [vmem:[%s396_s12 + $0x98] sm:$0xff]  ;;  %v333_v35 = vld [vmem:[%s396_s12 + $0xb0] sm:$0xff]  ;;  %v137_v40 = vld [vmem:[%s396_s12 + $0xc0] sm:$0xff] }
  0x16   : > { %v334_v36 = vld [vmem:[%s396_s12 + $0xb8] sm:$0xff]  ;;  %v225_v37 = vmax.f32 %v196_v24, %v197_v28  ;;  %v200_v38 = vmax.f32 %v135_v31, %v333_v35  ;;  %v138_v41 = vld [vmem:[%s396_s12 + $0xc8] sm:$0xff]  ;;  %v335_v42 = vld [vmem:[%s396_s12 + $0xe0] sm:$0xff] }
  0x17   : > { %240 = vst [vmem:[%s410_s16 + $0x10] sm:$0xff] %v224_v27  ;;  %v201_v39 = vmax.f32 %v136_v34, %v334_v36  ;;  %v226_v43 = vmax.f32 %v198_v32, %v199_v33  ;;  %v336_v44 = vld [vmem:[%s396_s12 + $0xe8] sm:$0xff]  ;;  %v202_v45 = vmax.f32 %v137_v40, %v335_v42  ;;  %v139_v46 = vld [vmem:[%s396_s12 + $0xd0] sm:$0xff]  ;;  %v140_v47 = vld [vmem:[%s396_s12 + $0xd8] sm:$0xff] }
  0x18   : > { %241 = vst [vmem:[%s410_s16 + $0x18] sm:$0xff] %v225_v37  ;;  %v203_v49 = vmax.f32 %v138_v41, %v336_v44  ;;  %v337_v50 = vld [vmem:[%s396_s12 + $0xf0] sm:$0xff]  ;;  %v338_v51 = vld [vmem:[%s396_s12 + $0xf8] sm:$0xff]  ;;  %v141_v52 = vld [vmem:[%s396_s12 + $0x100] sm:$0xff] }
  0x19   : > { %v227_v48 = vmax.f32 %v200_v38, %v201_v39  ;;  %242 = vst [vmem:[%s410_s16 + $0x20] sm:$0xff] %v226_v43  ;;  %v204_v53 = vmax.f32 %v139_v46, %v337_v50  ;;  %v205_v54 = vmax.f32 %v140_v47, %v338_v51  ;;  %v142_v55 = vld [vmem:[%s396_s12 + $0x108] sm:$0xff]  ;;  %v339_v56 = vld [vmem:[%s396_s12 + $0x120] sm:$0xff]  ;;  %v143_v61 = vld [vmem:[%s396_s12 + $0x110] sm:$0xff] }
  0x1a   : > { %v340_v57 = vld [vmem:[%s396_s12 + $0x128] sm:$0xff]  ;;  %v228_v58 = vmax.f32 %v202_v45, %v203_v49  ;;  %v206_v59 = vmax.f32 %v141_v52, %v339_v56  ;;  %v144_v62 = vld [vmem:[%s396_s12 + $0x118] sm:$0xff]  ;;  %v341_v63 = vld [vmem:[%s396_s12 + $0x130] sm:$0xff] }
  0x1b   : > { %243 = vst [vmem:[%s410_s16 + $0x28] sm:$0xff] %v227_v48  ;;  %v207_v60 = vmax.f32 %v142_v55, %v340_v57  ;;  %v229_v0 = vmax.f32 %v204_v53, %v205_v54  ;;  %v342_v1 = vld [vmem:[%s396_s12 + $0x138] sm:$0xff]  ;;  %v208_v2 = vmax.f32 %v143_v61, %v341_v63  ;;  %v145_v3 = vld [vmem:[%s396_s12 + $0x140] sm:$0xff]  ;;  %v146_v4 = vld [vmem:[%s396_s12 + $0x148] sm:$0xff] }
  0x1c   : > { %244 = vst [vmem:[%s410_s16 + $0x30] sm:$0xff] %v228_v58  ;;  %v209_v6 = vmax.f32 %v144_v62, %v342_v1  ;;  %v343_v7 = vld [vmem:[%s396_s12 + $0x160] sm:$0xff]  ;;  %v344_v8 = vld [vmem:[%s396_s12 + $0x168] sm:$0xff]  ;;  %v147_v9 = vld [vmem:[%s396_s12 + $0x150] sm:$0xff] }
  0x1d   : > { %v230_v5 = vmax.f32 %v206_v59, %v207_v60  ;;  %245 = vst [vmem:[%s410_s16 + $0x38] sm:$0xff] %v229_v0  ;;  %v210_v10 = vmax.f32 %v145_v3, %v343_v7  ;;  %v211_v11 = vmax.f32 %v146_v4, %v344_v8  ;;  %v148_v12 = vld [vmem:[%s396_s12 + $0x158] sm:$0xff]  ;;  %v345_v13 = vld [vmem:[%s396_s12 + $0x170] sm:$0xff]  ;;  %v149_v18 = vld [vmem:[%s396_s12 + $0x180] sm:$0xff] }
  0x1e   : > { %v346_v14 = vld [vmem:[%s396_s12 + $0x178] sm:$0xff]  ;;  %v231_v15 = vmax.f32 %v208_v2, %v209_v6  ;;  %v212_v16 = vmax.f32 %v147_v9, %v345_v13  ;;  %v150_v19 = vld [vmem:[%s396_s12 + $0x188] sm:$0xff]  ;;  %v347_v20 = vld [vmem:[%s396_s12 + $0x1a0] sm:$0xff] }
  0x1f   : > { %246 = vst [vmem:[%s410_s16 + $0x40] sm:$0xff] %v230_v5  ;;  %v213_v17 = vmax.f32 %v148_v12, %v346_v14  ;;  %v232_v21 = vmax.f32 %v210_v10, %v211_v11  ;;  %v348_v22 = vld [vmem:[%s396_s12 + $0x1a8] sm:$0xff]  ;;  %v214_v23 = vmax.f32 %v149_v18, %v347_v20  ;;  %v151_v24 = vld [vmem:[%s396_s12 + $0x190] sm:$0xff]  ;;  %v152_v25 = vld [vmem:[%s396_s12 + $0x198] sm:$0xff] }
  0x20   : > { %247 = vst [vmem:[%s410_s16 + $0x48] sm:$0xff] %v231_v15  ;;  %v215_v27 = vmax.f32 %v150_v19, %v348_v22  ;;  %v349_v28 = vld [vmem:[%s396_s12 + $0x1b0] sm:$0xff]  ;;  %v350_v29 = vld [vmem:[%s396_s12 + $0x1b8] sm:$0xff]  ;;  %v153_v30 = vld [vmem:[%s396_s12 + $0x1c0] sm:$0xff] }
  0x21   : > { %v233_v26 = vmax.f32 %v212_v16, %v213_v17  ;;  %248 = vst [vmem:[%s410_s16 + $0x50] sm:$0xff] %v232_v21  ;;  %v216_v31 = vmax.f32 %v151_v24, %v349_v28  ;;  %v217_v32 = vmax.f32 %v152_v25, %v350_v29  ;;  %v154_v33 = vld [vmem:[%s396_s12 + $0x1c8] sm:$0xff]  ;;  %v351_v34 = vld [vmem:[%s396_s12 + $0x1e0] sm:$0xff]  ;;  %v155_v39 = vld [vmem:[%s396_s12 + $0x1d0] sm:$0xff] }
  0x22   : > { %v352_v35 = vld [vmem:[%s396_s12 + $0x1e8] sm:$0xff]  ;;  %v234_v36 = vmax.f32 %v214_v23, %v215_v27  ;;  %v218_v37 = vmax.f32 %v153_v30, %v351_v34  ;;  %v156_v40 = vld [vmem:[%s396_s12 + $0x1d8] sm:$0xff]  ;;  %v353_v41 = vld [vmem:[%s396_s12 + $0x1f0] sm:$0xff] }
  0x23   : > { %249 = vst [vmem:[%s410_s16 + $0x58] sm:$0xff] %v233_v26  ;;  %v219_v38 = vmax.f32 %v154_v33, %v352_v35  ;;  %v235_v42 = vmax.f32 %v216_v31, %v217_v32  ;;  %v354_v43 = vld [vmem:[%s396_s12 + $0x1f8] sm:$0xff]  ;;  %v220_v44 = vmax.f32 %v155_v39, %v353_v41 }
  0x24   : > { %250 = vst [vmem:[%s410_s16 + $0x60] sm:$0xff] %v234_v36  ;;  %v221_v46 = vmax.f32 %v156_v40, %v354_v43 }
  0x25   : > { %v236_v45 = vmax.f32 %v218_v37, %v219_v38  ;;  %251 = vst [vmem:[%s410_s16 + $0x68] sm:$0xff] %v235_v42 }
  0x26   : > { %v237_v47 = vmax.f32 %v220_v44, %v221_v46 }
  0x27   : > { %252 = vst [vmem:[%s410_s16 + $0x70] sm:$0xff] %v236_v45 }
  0x28   : > { %253 = vst [vmem:[%s410_s16 + $0x78] sm:$0xff] %v237_v47 }
  0x29 PF: > { %s11_s6 = sadd.s32 1, %s373_s6  }
  0x2a   : > { %p8_p4 = scmp.ge.s32.totalorder %s11_s6, 4  }
  0x2c   :  { %10 = sbr.rel (!%p8_p4) target bundleno = 1 (0x1), region = 55 }

// kernel: nn_forward.14
= control target key start
LH: loop header
LB: loop body
LE: loop exit
PB: predicated region body
PF: predicated region fallthrough
CT: control target
= control target key end

     0   :  { %s343_s6 = smov 0   ;;  %s424_s0 = inlined_call_operand.vmem [shape: f32[12,2,10,256], index: 0, kind: input, shape index: {}]   ;;  %s425_s1 = inlined_call_operand.vmem [shape: f32[12,10,128], index: 1, kind: output, shape index: {}]  }
   0x1 LB: > { %s280_s7 = sadd.s32 4294967295, %s331_s6   ;;  %p284_p0 = scmp.ge.s32.totalorder %s331_s6, 1  ;;  %s331_s6 = sphi %s343_s6, %s11_s6  }
   0x2   : > { %p89_p1 = scmp.lt.s32.totalorder %s331_s6, 3 }
   0x4   : > { %p90_p2 = pnand %p284_p0, %p89_p1 }
   0x5   : > { %s111_s8 = smul.u32 (!%p90_p2), 6, %s280_s7 }
   0x6   : > { %93 = sbr.rel (%p90_p2) target bundleno = 37 (0x25), region = 24 }
   0x7   : > { %p112_p3 = scmp.lt.s32.totalorder (!%p90_p2), %s111_s8, 11 }
   0xb   : > { %s427_s8 = smov (!%p112_p3, %s111_s8), 11 }
   0xc   : > { %s315_s9 = sshll.u32 %s427_s8, 6  ;;  %s316_s13 = sshll.u32 %s427_s8, 4 }
   0xd   : > { %s354_s12 = scalar_lea.vmem %s424_s0, %s315_s9  ;;  %s368_s16 = scalar_lea.vmem %s425_s1, %s316_s13 }
   0xe   : > { %v125_v0 = vld [vmem:[%s354_s12] sm:$0xff]  ;;  %v126_v1 = vld [vmem:[%s354_s12 + $0x8] sm:$0xff]  ;;  %v127_v5 = vld [vmem:[%s354_s12 + $0x10] sm:$0x3] }
   0xf   : > { %v289_v2 = vld [vmem:[%s354_s12 + $0x20] sm:$0xff]  ;;  %v290_v3 = vld [vmem:[%s354_s12 + $0x28] sm:$0xff]  ;;  %v128_v6 = vld [vmem:[%s354_s12 + $0x18] sm:$0x3] }
  0x10   : > { %v174_v4 = vmax.f32 %v125_v0, %v289_v2  ;;  %v175_v7 = vmax.f32 %v126_v1, %v290_v3  ;;  %v291_v8 = vld [vmem:[%s354_s12 + $0x30] sm:$0x3]  ;;  %v292_v9 = vld [vmem:[%s354_s12 + $0x38] sm:$0x3]  ;;  %v129_v10 = vld [vmem:[%s354_s12 + $0x40] sm:$0xff] }
  0x11   : > { %v176_v11 = vmax.f32 %v127_v5, %v291_v8  ;;  %v177_v12 = vmax.f32 %v128_v6, %v292_v9  ;;  %v130_v13 = vld [vmem:[%s354_s12 + $0x48] sm:$0xff]  ;;  %v293_v14 = vld [vmem:[%s354_s12 + $0x60] sm:$0xff]  ;;  %v131_v19 = vld [vmem:[%s354_s12 + $0x50] sm:$0x3] }
  0x12   : > { %v294_v15 = vld [vmem:[%s354_s12 + $0x68] sm:$0xff]  ;;  %v198_v16 = vmax.f32 %v174_v4, %v175_v7  ;;  %v178_v17 = vmax.f32 %v129_v10, %v293_v14  ;;  %v132_v20 = vld [vmem:[%s354_s12 + $0x58] sm:$0x3]  ;;  %v295_v21 = vld [vmem:[%s354_s12 + $0x70] sm:$0x3] }
  0x13   : > { %v179_v18 = vmax.f32 %v130_v13, %v294_v15  ;;  %v199_v22 = vmax.f32 %v176_v11, %v177_v12  ;;  %v296_v23 = vld [vmem:[%s354_s12 + $0x78] sm:$0x3]  ;;  %v180_v24 = vmax.f32 %v131_v19, %v295_v21  ;;  %v133_v25 = vld [vmem:[%s354_s12 + $0x80] sm:$0xff]  ;;  %v134_v26 = vld [vmem:[%s354_s12 + $0x88] sm:$0xff] }
  0x14   : > { %210 = vst [vmem:[%s368_s16] sm:$0xff] %v198_v16  ;;  %v181_v28 = vmax.f32 %v132_v20, %v296_v23  ;;  %v297_v29 = vld [vmem:[%s354_s12 + $0xa0] sm:$0xff]  ;;  %v298_v30 = vld [vmem:[%s354_s12 + $0xa8] sm:$0xff]  ;;  %v135_v31 = vld [vmem:[%s354_s12 + $0x90] sm:$0x3] }
  0x15   : > { %v200_v27 = vmax.f32 %v178_v17, %v179_v18  ;;  %211 = vst [vmem:[%s368_s16 + $0x8] sm:$0x3] %v199_v22  ;;  %v182_v32 = vmax.f32 %v133_v25, %v297_v29  ;;  %v183_v33 = vmax.f32 %v134_v26, %v298_v30  ;;  %v136_v34 = vld [vmem:[%s354_s12 + $0x98] sm:$0x3]  ;;  %v299_v35 = vld [vmem:[%s354_s12 + $0xb0] sm:$0x3] }
  0x16   : > { %v300_v36 = vld [vmem:[%s354_s12 + $0xb8] sm:$0x3]  ;;  %v201_v37 = vmax.f32 %v180_v24, %v181_v28  ;;  %v184_v38 = vmax.f32 %v135_v31, %v299_v35  ;;  %v137_v40 = vld [vmem:[%s354_s12 + $0xc0] sm:$0xff]  ;;  %v138_v41 = vld [vmem:[%s354_s12 + $0xc8] sm:$0xff] }
  0x17   : > { %212 = vst [vmem:[%s368_s16 + $0x10] sm:$0xff] %v200_v27  ;;  %v185_v39 = vmax.f32 %v136_v34, %v300_v36  ;;  %v301_v42 = vld [vmem:[%s354_s12 + $0xe0] sm:$0xff]  ;;  %v202_v43 = vmax.f32 %v182_v32, %v183_v33  ;;  %v302_v44 = vld [vmem:[%s354_s12 + $0xe8] sm:$0xff]  ;;  %v139_v46 = vld [vmem:[%s354_s12 + $0xd0] sm:$0x3] }
  0x18   : > { %v186_v45 = vmax.f32 %v137_v40, %v301_v42  ;;  %v140_v47 = vld [vmem:[%s354_s12 + $0xd8] sm:$0x3]  ;;  %213 = vst [vmem:[%s368_s16 + $0x18] sm:$0x3] %v201_v37  ;;  %v187_v49 = vmax.f32 %v138_v41, %v302_v44  ;;  %v303_v50 = vld [vmem:[%s354_s12 + $0xf0] sm:$0x3] }
  0x19   : > { %v203_v48 = vmax.f32 %v184_v38, %v185_v39  ;;  %v304_v51 = vld [vmem:[%s354_s12 + $0xf8] sm:$0x3]  ;;  %v141_v52 = vld [vmem:[%s354_s12 + $0x100] sm:$0xff]  ;;  %214 = vst [vmem:[%s368_s16 + $0x20] sm:$0xff] %v202_v43  ;;  %v188_v53 = vmax.f32 %v139_v46, %v303_v50  ;;  %v142_v55 = vld [vmem:[%s354_s12 + $0x108] sm:$0xff] }
  0x1a   : > { %v189_v54 = vmax.f32 %v140_v47, %v304_v51  ;;  %v305_v56 = vld [vmem:[%s354_s12 + $0x120] sm:$0xff]  ;;  %v306_v57 = vld [vmem:[%s354_s12 + $0x128] sm:$0xff]  ;;  %v204_v58 = vmax.f32 %v186_v45, %v187_v49  ;;  %v143_v61 = vld [vmem:[%s354_s12 + $0x110] sm:$0x3] }
  0x1b   : > { %215 = vst [vmem:[%s368_s16 + $0x28] sm:$0x3] %v203_v48  ;;  %v190_v59 = vmax.f32 %v141_v52, %v305_v56  ;;  %v191_v60 = vmax.f32 %v142_v55, %v306_v57  ;;  %v144_v62 = vld [vmem:[%s354_s12 + $0x118] sm:$0x3]  ;;  %v307_v63 = vld [vmem:[%s354_s12 + $0x130] sm:$0x3] }
  0x1c   : > { %v205_v0 = vmax.f32 %v188_v53, %v189_v54  ;;  %v308_v1 = vld [vmem:[%s354_s12 + $0x138] sm:$0x3]  ;;  %v192_v2 = vmax.f32 %v143_v61, %v307_v63  ;;  %v145_v3 = vld [vmem:[%s354_s12 + $0x140] sm:$0xff]  ;;  %v146_v4 = vld [vmem:[%s354_s12 + $0x148] sm:$0xff]  ;;  %216 = vst [vmem:[%s368_s16 + $0x30] sm:$0xff] %v204_v58 }
  0x1d   : > { %v206_v5 = vmax.f32 %v190_v59, %v191_v60  ;;  %v193_v6 = vmax.f32 %v144_v62, %v308_v1  ;;  %v309_v7 = vld [vmem:[%s354_s12 + $0x160] sm:$0xff]  ;;  %v310_v8 = vld [vmem:[%s354_s12 + $0x168] sm:$0xff]  ;;  %v147_v9 = vld [vmem:[%s354_s12 + $0x150] sm:$0x3] }
  0x1e   : > { %217 = vst [vmem:[%s368_s16 + $0x38] sm:$0x3] %v205_v0  ;;  %v194_v10 = vmax.f32 %v145_v3, %v309_v7  ;;  %v195_v11 = vmax.f32 %v146_v4, %v310_v8  ;;  %v148_v12 = vld [vmem:[%s354_s12 + $0x158] sm:$0x3]  ;;  %v311_v13 = vld [vmem:[%s354_s12 + $0x170] sm:$0x3] }
  0x1f   : > { %v312_v14 = vld [vmem:[%s354_s12 + $0x178] sm:$0x3]  ;;  %218 = vst [vmem:[%s368_s16 + $0x40] sm:$0xff] %v206_v5  ;;  %v207_v15 = vmax.f32 %v192_v2, %v193_v6  ;;  %v196_v16 = vmax.f32 %v147_v9, %v311_v13 }
  0x20   : > { %v197_v17 = vmax.f32 %v148_v12, %v312_v14  ;;  %v208_v18 = vmax.f32 %v194_v10, %v195_v11 }
  0x21   : > { %219 = vst [vmem:[%s368_s16 + $0x48] sm:$0x3] %v207_v15 }
  0x22   : > { %v209_v19 = vmax.f32 %v196_v16, %v197_v17  ;;  %220 = vst [vmem:[%s368_s16 + $0x50] sm:$0xff] %v208_v18 }
  0x24   : > { %221 = vst [vmem:[%s368_s16 + $0x58] sm:$0x3] %v209_v19 }
  0x25 PF: > { %s11_s6 = sadd.s32 1, %s331_s6  }
  0x26   : > { %p8_p4 = scmp.ge.s32.totalorder %s11_s6, 4  }
  0x28   :  { %10 = sbr.rel (!%p8_p4) target bundleno = 1 (0x1), region = 55 }

// kernel: nn_forward.13
= control target key start
LH: loop header
LB: loop body
LE: loop exit
PB: predicated region body
PF: predicated region fallthrough
CT: control target
= control target key end

     0   :  { %s1245_s12 = smov 0   ;;  %s1247_s13 = smov 0   ;;  %s1805_s0 = inlined_call_operand.vmem [shape: f32[2,12,20,128], index: 0, kind: input, shape index: {}]   ;;  %s1806_s1 = inlined_call_operand.vmem [shape: f32[1152,128], index: 1, kind: input, shape index: {}]   ;;  %s1807_s2 = inlined_call_operand.vmem [shape: f32[1,128], index: 2, kind: input, shape index: {}]   ;;  %s1808_s3 = inlined_call_operand.vmem [shape: f32[2,10,18,128], index: 3, kind: output, shape index: {}]  }
   0x1   :  { %s1249_s14 = smov 0   ;;  %s1251_s15 = smov 0  }
   0x2   :  { %s1253_s16 = smov 0  }
   0x3 LB: > { %s22_s17 = sadd.s32 1, %s1213_s14  ;;  %s25_s18 = sadd.s32 1, %s1217_s15  ;;  %s1221_s16 = sphi %s1253_s16, %s13_s16   ;;  %s1217_s15 = sphi %s1251_s15, %s1812_s15   ;;  %s1213_s14 = sphi %s1249_s14, %s1811_s14   ;;  %s1209_s13 = sphi %s1247_s13, %s1810_s13   ;;  %s1205_s12 = sphi %s1245_s12, %s1809_s12  }
   0x4   : > { %p23_p0 = scmp.ge.s32.totalorder %s22_s17, 10  ;;  %p860_p1 = scmp.ge.s32.totalorder %s1221_s16, 1 }
   0x5   : > { %p141_p2 = scmp.lt.s32.totalorder %s1221_s16, 21 }
   0x6   : > { %s1814_s17 = smov (%p23_p0, %s22_s17), 0  ;;  %s1816_s18 = smov (!%p23_p0, %s25_s18), %s1217_s15 }
   0x7   : > { %p142_p3 = pnand %p860_p1, %p141_p2  ;;  %p27_p4 = scmp.ge.s32.totalorder %s1816_s18, 2 }
   0x8   : > { %s173_s23 = smul.u32 (!%p142_p3), 24, %s1205_s12  ;;  %p164_p5 = scmp.lt.s32.totalorder (!%p142_p3), %s1209_s13, 1 }
   0x9   : > { %s1818_s18 = smov (%p27_p4, %s1816_s18), 0  ;;  %145 = sbr.rel (%p142_p3) target bundleno = 328 (0x148), region = 32 }
   0xa   : > { %s174_s28 = smul.u32 (!%p142_p3), 288, %s1209_s13  ;;  %p166_p6 = scmp.lt.s32.totalorder (!%p142_p3), %s1205_s12, 9 }
   0xc   : > { %s175_s26 = sadd.s32 (!%p142_p3), %s174_s28, %s173_s23 }
   0xd   : > { %s1458_s20 = scalar_lea.vmem (!%p142_p3), %s1805_s0, %s175_s26 }
   0xe   : > { %v243_v0 = vld [vmem:[%s1806_s1 + $0xf8] sm:$0xff]  ;;  %v242_v4 = vld [vmem:[%s1806_s1 + $0xf0] sm:$0xff]  ;;  %v241_v8 = vld [vmem:[%s1806_s1 + $0xe8] sm:$0xff]  ;;  %vm1224_vm0 = vmmov 0   ;;  %s1820_s13 = smov (!%p164_p5, %s1209_s13), 1  ;;  %s1822_s12 = smov (!%p166_p6, %s1205_s12), 9 }
   0xf   : > { %v275_v1 = vld [vmem:[%s1806_s1 + $0x1f8] sm:$0xff]  ;;  %883 = vmatprep.subr.mxu0 %v243_v0  ;;  %v274_v5 = vld [vmem:[%s1806_s1 + $0x1f0] sm:$0xff]  ;;  %v273_v9 = vld [vmem:[%s1806_s1 + $0x1e8] sm:$0xff]  ;;  %s1140_s24 = smul.u32 30, %s1820_s13 }
  0x10   : > { %v227_v2 = vld [vmem:[%s1806_s1 + $0x78] sm:$0xff]  ;;  %924 = vmatprep.subr.mxu1 %v275_v1  ;;  %v226_v6 = vld [vmem:[%s1806_s1 + $0x70] sm:$0xff]  ;;  %v225_v10 = vld [vmem:[%s1806_s1 + $0x68] sm:$0xff]  ;;  %s1139_s25 = smul.u32 3, %s1822_s12 }
  0x11   : > { %v259_v3 = vld [vmem:[%s1806_s1 + $0x178] sm:$0xff]  ;;  %884 = vmatpush3.msra.mxu0 %v227_v2  ;;  %v258_v7 = vld [vmem:[%s1806_s1 + $0x170] sm:$0xff]  ;;  %v257_v11 = vld [vmem:[%s1806_s1 + $0x168] sm:$0xff] }
  0x12   : > { %925 = vmatpush3.msra.mxu1 %v259_v3  ;;  %885 = vmatprep.subr.mxu0 %v242_v4  ;;  %v240_v12 = vld [vmem:[%s1806_s1 + $0xe0] sm:$0xff]  ;;  %v239_v16 = vld [vmem:[%s1806_s1 + $0xd8] sm:$0xff]  ;;  %v238_v20 = vld [vmem:[%s1806_s1 + $0xd0] sm:$0xff]  ;;  %s170_s27 = sadd.s32 %s1140_s24, %s1139_s25 }
  0x13   : > { %926 = vmatprep.subr.mxu1 %v274_v5  ;;  %886 = vmatpush3.msra.mxu0 %v226_v6  ;;  %v272_v13 = vld [vmem:[%s1806_s1 + $0x1e0] sm:$0xff]  ;;  %v271_v17 = vld [vmem:[%s1806_s1 + $0x1d8] sm:$0xff]  ;;  %v270_v21 = vld [vmem:[%s1806_s1 + $0x1d0] sm:$0xff]  ;;  %s861_s29 = sshll.u32 %s170_s27, 3 }
  0x14   : > { %927 = vmatpush3.msra.mxu1 %v258_v7  ;;  %887 = vmatprep.subr.mxu0 %v241_v8  ;;  %v224_v14 = vld [vmem:[%s1806_s1 + $0x60] sm:$0xff]  ;;  %v223_v18 = vld [vmem:[%s1806_s1 + $0x58] sm:$0xff]  ;;  %v222_v22 = vld [vmem:[%s1806_s1 + $0x50] sm:$0xff]  ;;  %s172_s26 = scalar_lea.vmem %s1808_s3, %s861_s29 }
  0x15   : > { %928 = vmatprep.subr.mxu1 %v273_v9  ;;  %v256_v15 = vld [vmem:[%s1806_s1 + $0x160] sm:$0xff]  ;;  %888 = vmatpush3.msra.mxu0 %v225_v10  ;;  %v255_v19 = vld [vmem:[%s1806_s1 + $0x158] sm:$0xff]  ;;  %v254_v23 = vld [vmem:[%s1806_s1 + $0x150] sm:$0xff] }
  0x16   : > { %929 = vmatpush3.msra.mxu1 %v257_v11  ;;  %889 = vmatprep.subr.mxu0 %v240_v12  ;;  %v237_v24 = vld [vmem:[%s1806_s1 + $0xc8] sm:$0xff]  ;;  %v236_v28 = vld [vmem:[%s1806_s1 + $0xc0] sm:$0xff]  ;;  %v235_v32 = vld [vmem:[%s1806_s1 + $0xb8] sm:$0xff] }
  0x17   : > { %930 = vmatprep.subr.mxu1 %v272_v13  ;;  %890 = vmatpush3.msra.mxu0 %v224_v14  ;;  %v269_v25 = vld [vmem:[%s1806_s1 + $0x1c8] sm:$0xff]  ;;  %v268_v29 = vld [vmem:[%s1806_s1 + $0x1c0] sm:$0xff]  ;;  %v267_v33 = vld [vmem:[%s1806_s1 + $0x1b8] sm:$0xff] }
  0x18   : > { %931 = vmatpush3.msra.mxu1 %v256_v15  ;;  %891 = vmatprep.subr.mxu0 %v239_v16  ;;  %v221_v26 = vld [vmem:[%s1806_s1 + $0x48] sm:$0xff]  ;;  %v220_v30 = vld [vmem:[%s1806_s1 + $0x40] sm:$0xff]  ;;  %v219_v34 = vld [vmem:[%s1806_s1 + $0x38] sm:$0xff] }
  0x19   : > { %932 = vmatprep.subr.mxu1 %v271_v17  ;;  %892 = vmatpush3.msra.mxu0 %v223_v18  ;;  %v253_v27 = vld [vmem:[%s1806_s1 + $0x148] sm:$0xff]  ;;  %v252_v31 = vld [vmem:[%s1806_s1 + $0x140] sm:$0xff]  ;;  %v251_v35 = vld [vmem:[%s1806_s1 + $0x138] sm:$0xff] }
  0x1a   : > { %933 = vmatpush3.msra.mxu1 %v255_v19  ;;  %893 = vmatprep.subr.mxu0 %v238_v20  ;;  %v234_v36 = vld [vmem:[%s1806_s1 + $0xb0] sm:$0xff]  ;;  %v233_v40 = vld [vmem:[%s1806_s1 + $0xa8] sm:$0xff]  ;;  %v232_v44 = vld [vmem:[%s1806_s1 + $0xa0] sm:$0xff] }
  0x1b   : > { %934 = vmatprep.subr.mxu1 %v270_v21  ;;  %894 = vmatpush3.msra.mxu0 %v222_v22  ;;  %v266_v37 = vld [vmem:[%s1806_s1 + $0x1b0] sm:$0xff]  ;;  %v265_v41 = vld [vmem:[%s1806_s1 + $0x1a8] sm:$0xff]  ;;  %v264_v45 = vld [vmem:[%s1806_s1 + $0x1a0] sm:$0xff] }
  0x1c   : > { %935 = vmatpush3.msra.mxu1 %v254_v23  ;;  %895 = vmatprep.subr.mxu0 %v237_v24  ;;  %v218_v38 = vld [vmem:[%s1806_s1 + $0x30] sm:$0xff]  ;;  %v217_v42 = vld [vmem:[%s1806_s1 + $0x28] sm:$0xff]  ;;  %v216_v46 = vld [vmem:[%s1806_s1 + $0x20] sm:$0xff] }
  0x1d   : > { %936 = vmatprep.subr.mxu1 %v269_v25  ;;  %896 = vmatpush3.msra.mxu0 %v221_v26  ;;  %v250_v39 = vld [vmem:[%s1806_s1 + $0x130] sm:$0xff]  ;;  %v249_v43 = vld [vmem:[%s1806_s1 + $0x128] sm:$0xff]  ;;  %v248_v47 = vld [vmem:[%s1806_s1 + $0x120] sm:$0xff] }
  0x1e   : > { %937 = vmatpush3.msra.mxu1 %v253_v27  ;;  %897 = vmatprep.subr.mxu0 %v236_v28  ;;  %v231_v48 = vld [vmem:[%s1806_s1 + $0x98] sm:$0xff]  ;;  %v230_v52 = vld [vmem:[%s1806_s1 + $0x90] sm:$0xff]  ;;  %v229_v56 = vld [vmem:[%s1806_s1 + $0x88] sm:$0xff] }
  0x1f   : > { %938 = vmatprep.subr.mxu1 %v268_v29  ;;  %898 = vmatpush3.msra.mxu0 %v220_v30  ;;  %v263_v49 = vld [vmem:[%s1806_s1 + $0x198] sm:$0xff]  ;;  %v262_v53 = vld [vmem:[%s1806_s1 + $0x190] sm:$0xff]  ;;  %v261_v57 = vld [vmem:[%s1806_s1 + $0x188] sm:$0xff] }
  0x20   : > { %939 = vmatpush3.msra.mxu1 %v252_v31  ;;  %899 = vmatprep.subr.mxu0 %v235_v32  ;;  %v215_v50 = vld [vmem:[%s1806_s1 + $0x18] sm:$0xff]  ;;  %v214_v54 = vld [vmem:[%s1806_s1 + $0x10] sm:$0xff]  ;;  %v213_v58 = vld [vmem:[%s1806_s1 + $0x8] sm:$0xff] }
  0x21   : > { %940 = vmatprep.subr.mxu1 %v267_v33  ;;  %900 = vmatpush3.msra.mxu0 %v219_v34  ;;  %v247_v51 = vld [vmem:[%s1806_s1 + $0x118] sm:$0xff]  ;;  %v246_v55 = vld [vmem:[%s1806_s1 + $0x110] sm:$0xff]  ;;  %v245_v59 = vld [vmem:[%s1806_s1 + $0x108] sm:$0xff] }
  0x22   : > { %941 = vmatpush3.msra.mxu1 %v251_v35  ;;  %901 = vmatprep.subr.mxu0 %v234_v36  ;;  %v228_v60 = vld [vmem:[%s1806_s1 + $0x80] sm:$0xff]  ;;  %v862_v1 = vld [vmem:[%s1458_s20 + $0x18] sm:$0xff]  ;;  %v306_v8 = vld [vmem:[%s1806_s1 + $0x2f0] sm:$0xff] }
  0x23   : > { %942 = vmatprep.subr.mxu1 %v266_v37  ;;  %902 = vmatpush3.msra.mxu0 %v218_v38  ;;  %v260_v61 = vld [vmem:[%s1806_s1 + $0x180] sm:$0xff]  ;;  %v307_v4 = vld [vmem:[%s1806_s1 + $0x2f8] sm:$0xff]  ;;  %v338_v9 = vld [vmem:[%s1806_s1 + $0x3f0] sm:$0xff] }
  0x24   : > { %943 = vmatpush3.msra.mxu1 %v250_v39  ;;  %903 = vmatprep.subr.mxu0 %v233_v40  ;;  %v212_v62 = vld [vmem:[%s1806_s1] sm:$0xff]  ;;  %v339_v5 = vld [vmem:[%s1806_s1 + $0x3f8] sm:$0xff]  ;;  %v290_v10 = vld [vmem:[%s1806_s1 + $0x270] sm:$0xff] }
  0x25   : > { %944 = vmatprep.subr.mxu1 %v265_v41  ;;  %904 = vmatpush3.msra.mxu0 %v217_v42  ;;  %v180_v63 = vld [vmem:[%s1458_s20 + $0x1] sm:$0xff]  ;;  %v291_v6 = vld [vmem:[%s1806_s1 + $0x278] sm:$0xff]  ;;  %v322_v11 = vld [vmem:[%s1806_s1 + $0x370] sm:$0xff] }
  0x26   : > { %945 = vmatpush3.msra.mxu1 %v249_v43  ;;  %905 = vmatprep.subr.mxu0 %v232_v44  ;;  %v244_v0 = vld [vmem:[%s1806_s1 + $0x100] sm:$0xff]  ;;  %v323_v7 = vld [vmem:[%s1806_s1 + $0x378] sm:$0xff]  ;;  %v305_v12 = vld [vmem:[%s1806_s1 + $0x2e8] sm:$0xff] }
  0x27   : > { %946 = vmatprep.subr.mxu1 %v264_v45  ;;  %906 = vmatpush3.msra.mxu0 %v216_v46  ;;  %v177_v2 = vld [vmem:[%s1458_s20] sm:$0xff]  ;;  %v337_v13 = vld [vmem:[%s1806_s1 + $0x3e8] sm:$0xff]  ;;  %v303_v20 = vld [vmem:[%s1806_s1 + $0x2d8] sm:$0xff] }
  0x28   : > { %947 = vmatpush3.msra.mxu1 %v248_v47  ;;  %907 = vmatprep.subr.mxu0 %v231_v48  ;;  %v183_v3 = vld [vmem:[%s1458_s20 + $0x2] sm:$0xff]  ;;  %v335_v21 = vld [vmem:[%s1806_s1 + $0x3d8] sm:$0xff]  ;;  %v302_v24 = vld [vmem:[%s1806_s1 + $0x2d0] sm:$0xff] }
  0x29   : > { %948 = vmatprep.subr.mxu1 %v263_v49  ;;  %908 = vmatpush3.msra.mxu0 %v215_v50  ;;  %v289_v14 = vld [vmem:[%s1806_s1 + $0x268] sm:$0xff]  ;;  %v304_v16 = vld [vmem:[%s1806_s1 + $0x2e0] sm:$0xff]  ;;  %v287_v22 = vld [vmem:[%s1806_s1 + $0x258] sm:$0xff] }
  0x2a   : > { %949 = vmatpush3.msra.mxu1 %v247_v51  ;;  %909 = vmatprep.subr.mxu0 %v230_v52  ;;  %v321_v15 = vld [vmem:[%s1806_s1 + $0x368] sm:$0xff]  ;;  %v336_v17 = vld [vmem:[%s1806_s1 + $0x3e0] sm:$0xff]  ;;  %v319_v23 = vld [vmem:[%s1806_s1 + $0x358] sm:$0xff] }
  0x2b   : > { %950 = vmatprep.subr.mxu1 %v262_v53  ;;  %910 = vmatpush3.msra.mxu0 %v214_v54  ;;  %v288_v18 = vld [vmem:[%s1806_s1 + $0x260] sm:$0xff]  ;;  %v334_v25 = vld [vmem:[%s1806_s1 + $0x3d0] sm:$0xff]  ;;  %v301_v28 = vld [vmem:[%s1806_s1 + $0x2c8] sm:$0xff] }
  0x2c   : > { %951 = vmatpush3.msra.mxu1 %v246_v55  ;;  %911 = vmatprep.subr.mxu0 %v229_v56  ;;  %v320_v19 = vld [vmem:[%s1806_s1 + $0x360] sm:$0xff]  ;;  %v286_v26 = vld [vmem:[%s1806_s1 + $0x250] sm:$0xff]  ;;  %v333_v29 = vld [vmem:[%s1806_s1 + $0x3c8] sm:$0xff] }
  0x2d   : > { %952 = vmatprep.subr.mxu1 %v261_v57  ;;  %912 = vmatpush3.msra.mxu0 %v213_v58  ;;  %v318_v27 = vld [vmem:[%s1806_s1 + $0x350] sm:$0xff]  ;;  %v285_v30 = vld [vmem:[%s1806_s1 + $0x248] sm:$0xff]  ;;  %v300_v32 = vld [vmem:[%s1806_s1 + $0x2c0] sm:$0xff] }
  0x2e   : > { %953 = vmatpush3.msra.mxu1 %v245_v59  ;;  %913 = vmatprep.subr.mxu0 %v228_v60  ;;  %v317_v31 = vld [vmem:[%s1806_s1 + $0x348] sm:$0xff]  ;;  %v332_v33 = vld [vmem:[%s1806_s1 + $0x3c0] sm:$0xff]  ;;  %v299_v36 = vld [vmem:[%s1806_s1 + $0x2b8] sm:$0xff] }
  0x2f   : > { %954 = vmatprep.subr.mxu1 %v260_v61  ;;  %914 = vmatpush3.msra.mxu0 %v212_v62  ;;  %v284_v34 = vld [vmem:[%s1806_s1 + $0x240] sm:$0xff]  ;;  %v331_v37 = vld [vmem:[%s1806_s1 + $0x3b8] sm:$0xff]  ;;  %v298_v40 = vld [vmem:[%s1806_s1 + $0x2b0] sm:$0xff] }
  0x30   : > { %427 = vmatprep.mubr.f32.mxu0 %v180_v63  ;;  %955 = vmatpush3.msra.mxu1 %v244_v0  ;;  %v316_v35 = vld [vmem:[%s1806_s1 + $0x340] sm:$0xff]  ;;  %v283_v38 = vld [vmem:[%s1806_s1 + $0x238] sm:$0xff]  ;;  %v330_v41 = vld [vmem:[%s1806_s1 + $0x3b0] sm:$0xff] }
  0x31   : > { %507 = vmatprep.mubr.f32.mxu1 %v862_v1  ;;  %428 = vmatmul.mubr.f32.vlgmr.msra.gmra.mxu0 %v177_v2  ;;  %v315_v39 = vld [vmem:[%s1806_s1 + $0x338] sm:$0xff]  ;;  %v282_v42 = vld [vmem:[%s1806_s1 + $0x230] sm:$0xff]  ;;  %v297_v45 = vld [vmem:[%s1806_s1 + $0x2a8] sm:$0xff] }
  0x32   : > { %508 = vmatmul.mubr.f32.vlgmr.msra.gmra.mxu1 %v183_v3  ;;  %965 = vmatprep.subr.mxu0 %v307_v4  ;;  %v314_v43 = vld [vmem:[%s1806_s1 + $0x330] sm:$0xff]  ;;  %v329_v46 = vld [vmem:[%s1806_s1 + $0x3a8] sm:$0xff]  ;;  %v863_v50 = vld [vmem:[%s1458_s20 + $0x20] sm:$0xff] }
  0x33   : > { %1006 = vmatprep.subr.mxu1 %v339_v5  ;;  %966 = vmatpush3.msra.mxu0 %v291_v6  ;;  %v181_v44 = vld [vmem:[%s1458_s20 + $0x9] sm:$0xff]  ;;  %v296_v51 = vld [vmem:[%s1806_s1 + $0x2a0] sm:$0xff]  ;;  %v182_v56 = vld [vmem:[%s1458_s20 + $0x11] sm:$0x3] }
  0x34   : > { %1007 = vmatpush3.msra.mxu1 %v323_v7  ;;  %967 = vmatprep.subr.mxu0 %v306_v8  ;;  %v178_v47 = vld [vmem:[%s1458_s20 + $0x8] sm:$0xff]  ;;  %v328_v52 = vld [vmem:[%s1806_s1 + $0x3a0] sm:$0xff]  ;;  %v295_v57 = vld [vmem:[%s1806_s1 + $0x298] sm:$0xff] }
  0x35   : > { %1008 = vmatprep.subr.mxu1 %v338_v9  ;;  %968 = vmatpush3.msra.mxu0 %v290_v10  ;;  %v281_v48 = vld [vmem:[%s1806_s1 + $0x228] sm:$0xff]  ;;  %v280_v54 = vld [vmem:[%s1806_s1 + $0x220] sm:$0xff]  ;;  %v327_v58 = vld [vmem:[%s1806_s1 + $0x398] sm:$0xff] }
  0x36   : > { %1009 = vmatpush3.msra.mxu1 %v322_v11  ;;  %969 = vmatprep.subr.mxu0 %v305_v12  ;;  %v313_v49 = vld [vmem:[%s1806_s1 + $0x328] sm:$0xff]  ;;  %v312_v55 = vld [vmem:[%s1806_s1 + $0x320] sm:$0xff]  ;;  %v179_v59 = vld [vmem:[%s1458_s20 + $0x10] sm:$0x3] }
  0x37   : > { %1010 = vmatprep.subr.mxu1 %v337_v13  ;;  %970 = vmatpush3.msra.mxu0 %v289_v14  ;;  %v184_v53 = vld [vmem:[%s1458_s20 + $0xa] sm:$0xff]  ;;  %v279_v60 = vld [vmem:[%s1806_s1 + $0x218] sm:$0xff]  ;;  %v864_v62 = vld [vmem:[%s1458_s20 + $0x28] sm:$0x3] }
  0x38   : > { %1011 = vmatpush3.msra.mxu1 %v321_v15  ;;  %971 = vmatprep.subr.mxu0 %v304_v16  ;;  %v311_v61 = vld [vmem:[%s1806_s1 + $0x318] sm:$0xff]  ;;  %v294_v63 = vld [vmem:[%s1806_s1 + $0x290] sm:$0xff]  ;;  %v293_v4 = vld [vmem:[%s1806_s1 + $0x288] sm:$0xff] }
  0x39   : > { %1012 = vmatprep.subr.mxu1 %v336_v17  ;;  %972 = vmatpush3.msra.mxu0 %v288_v18  ;;  %v326_v0 = vld [vmem:[%s1806_s1 + $0x390] sm:$0xff]  ;;  %v325_v5 = vld [vmem:[%s1806_s1 + $0x388] sm:$0xff]  ;;  %v292_v8 = vld [vmem:[%s1806_s1 + $0x280] sm:$0xff]  ;;  %v1223_v17 = vmov 0.0  }
  0x3a   : > { %1013 = vmatpush3.msra.mxu1 %v320_v19  ;;  %973 = vmatprep.subr.mxu0 %v303_v20  ;;  %v185_v1 = vld [vmem:[%s1458_s20 + $0x12] sm:$0x3]  ;;  %v277_v6 = vld [vmem:[%s1806_s1 + $0x208] sm:$0xff]  ;;  %v324_v9 = vld [vmem:[%s1806_s1 + $0x380] sm:$0xff] }
  0x3b   : > { %1014 = vmatprep.subr.mxu1 %v335_v21  ;;  %974 = vmatpush3.msra.mxu0 %v287_v22  ;;  %v278_v2 = vld [vmem:[%s1806_s1 + $0x210] sm:$0xff]  ;;  %v309_v7 = vld [vmem:[%s1806_s1 + $0x308] sm:$0xff]  ;;  %v276_v10 = vld [vmem:[%s1806_s1 + $0x200] sm:$0xff] }
  0x3c   : > { %1015 = vmatpush3.msra.mxu1 %v319_v23  ;;  %975 = vmatprep.subr.mxu0 %v302_v24  ;;  %v310_v3 = vld [vmem:[%s1806_s1 + $0x310] sm:$0xff]  ;;  %v868_v11 = vld [vmem:[%s1458_s20 + $0x1a] sm:$0xff]  ;;  %v869_v18 = vld [vmem:[%s1458_s20 + $0x22] sm:$0xff] }
  0x3d   : > { %1016 = vmatprep.subr.mxu1 %v334_v25  ;;  %976 = vmatpush3.msra.mxu0 %v286_v26  ;;  %v308_v12 = vld [vmem:[%s1806_s1 + $0x300] sm:$0xff]  ;;  %v874_v13 = vld [vmem:[%s1458_s20 + $0x31] sm:$0xff]  ;;  %v353_v22 = vld [vmem:[%s1806_s1 + $0x468] sm:$0xff] }
  0x3e   : > { %1017 = vmatpush3.msra.mxu1 %v318_v27  ;;  %977 = vmatprep.subr.mxu0 %v301_v28  ;;  %v865_v14 = vld [vmem:[%s1458_s20 + $0x19] sm:$0xff]  ;;  %v871_v15 = vld [vmem:[%s1458_s20 + $0x30] sm:$0xff]  ;;  %v866_v20 = vld [vmem:[%s1458_s20 + $0x21] sm:$0xff] }
  0x3f   : > { %1018 = vmatprep.subr.mxu1 %v333_v29  ;;  %978 = vmatpush3.msra.mxu0 %v285_v30  ;;  %v355_v16 = vld [vmem:[%s1806_s1 + $0x478] sm:$0xff]  ;;  %v354_v19 = vld [vmem:[%s1806_s1 + $0x470] sm:$0xff]  ;;  %v870_v24 = vld [vmem:[%s1458_s20 + $0x2a] sm:$0x3] }
  0x40   : > { %1019 = vmatpush3.msra.mxu1 %v317_v31  ;;  %979 = vmatprep.subr.mxu0 %v300_v32  ;;  %v875_v21 = vld [vmem:[%s1458_s20 + $0x39] sm:$0xff]  ;;  %v867_v26 = vld [vmem:[%s1458_s20 + $0x29] sm:$0x3]  ;;  %v876_v27 = vld [vmem:[%s1458_s20 + $0x41] sm:$0x3] }
  0x41   : > { %1020 = vmatprep.subr.mxu1 %v332_v33  ;;  %980 = vmatpush3.msra.mxu0 %v284_v34  ;;  %v872_v23 = vld [vmem:[%s1458_s20 + $0x38] sm:$0xff]  ;;  %v352_v25 = vld [vmem:[%s1806_s1 + $0x460] sm:$0xff]  ;;  %v350_v30 = vld [vmem:[%s1806_s1 + $0x450] sm:$0xff] }
  0x42   : > { %1021 = vmatpush3.msra.mxu1 %v316_v35  ;;  %981 = vmatprep.subr.mxu0 %v299_v36  ;;  %v351_v28 = vld [vmem:[%s1806_s1 + $0x458] sm:$0xff]  ;;  %v873_v29 = vld [vmem:[%s1458_s20 + $0x40] sm:$0x3]  ;;  %v349_v31 = vld [vmem:[%s1806_s1 + $0x448] sm:$0xff] }
  0x43   : > { %1022 = vmatprep.subr.mxu1 %v331_v37  ;;  %982 = vmatpush3.msra.mxu0 %v283_v38  ;;  %v348_v32 = vld [vmem:[%s1806_s1 + $0x440] sm:$0xff]  ;;  %v347_v33 = vld [vmem:[%s1806_s1 + $0x438] sm:$0xff]  ;;  %v346_v34 = vld [vmem:[%s1806_s1 + $0x430] sm:$0xff] }
  0x44   : > { %1023 = vmatpush3.msra.mxu1 %v315_v39  ;;  %983 = vmatprep.subr.mxu0 %v298_v40  ;;  %v345_v35 = vld [vmem:[%s1806_s1 + $0x428] sm:$0xff]  ;;  %v344_v36 = vld [vmem:[%s1806_s1 + $0x420] sm:$0xff]  ;;  %v343_v37 = vld [vmem:[%s1806_s1 + $0x418] sm:$0xff] }
  0x45   : > { %1024 = vmatprep.subr.mxu1 %v330_v41  ;;  %984 = vmatpush3.msra.mxu0 %v282_v42  ;;  %v342_v38 = vld [vmem:[%s1806_s1 + $0x410] sm:$0xff]  ;;  %v341_v39 = vld [vmem:[%s1806_s1 + $0x408] sm:$0xff]  ;;  %v340_v40 = vld [vmem:[%s1806_s1 + $0x400] sm:$0xff] }
  0x46   : > { %1025 = vmatpush3.msra.mxu1 %v314_v43  ;;  %432 = vmatprep.mubr.f32.mxu0 %v181_v44  ;;  %v877_v41 = vld [vmem:[%s1458_s20 + $0x32] sm:$0xff]  ;;  %v878_v42 = vld [vmem:[%s1458_s20 + $0x3a] sm:$0xff]  ;;  %v879_v43 = vld [vmem:[%s1458_s20 + $0x42] sm:$0x3] }
  0x47   : > { %985 = vmatprep.subr.mxu0 %v297_v45  ;;  %1026 = vmatprep.subr.mxu1 %v329_v46 }
  0x48   : > { %433 = vmatmul.mubr.f32.gmra.mxu0 %v178_v47  ;;  %1027 = vmatpush3.msra.mxu1 %v313_v49 }
  0x49   : > { %986 = vmatpush3.msra.mxu0 %v281_v48  ;;  %512 = vmatprep.mubr.f32.mxu1 %v863_v50 }
  0x4a   : > { %987 = vmatprep.subr.mxu0 %v296_v51  ;;  %1028 = vmatprep.subr.mxu1 %v328_v52 }
  0x4b   : > { %513 = vmatmul.mubr.f32.gmra.mxu1 %v184_v53  ;;  %988 = vmatpush3.msra.mxu0 %v280_v54 }
  0x4c   : > { %1029 = vmatpush3.msra.mxu1 %v312_v55  ;;  %437 = vmatprep.mubr.f32.mxu0 %v182_v56 }
  0x4d   : > { %989 = vmatprep.subr.mxu0 %v295_v57  ;;  %1030 = vmatprep.subr.mxu1 %v327_v58 }
  0x4e   : > { %438 = vmatmul.mubr.f32.gmra.mxu0 %v179_v59  ;;  %1031 = vmatpush3.msra.mxu1 %v311_v61 }
  0x4f   : > { %990 = vmatpush3.msra.mxu0 %v279_v60  ;;  %517 = vmatprep.mubr.f32.mxu1 %v864_v62 }
  0x50   : > { %991 = vmatprep.subr.mxu0 %v294_v63  ;;  %1032 = vmatprep.subr.mxu1 %v326_v0 }
  0x51   : > { %518 = vmatmul.mubr.f32.gmra.mxu1 %v185_v1  ;;  %992 = vmatpush3.msra.mxu0 %v278_v2  ;;  %v880_v1 = vld [vmem:[%s1807_s2] ss:$0 sm:$0xff] }
  0x52   : > { %1033 = vmatpush3.msra.mxu1 %v310_v3  ;;  %993 = vmatprep.subr.mxu0 %v293_v4 }
  0x53   : > { %1034 = vmatprep.subr.mxu1 %v325_v5  ;;  %994 = vmatpush3.msra.mxu0 %v277_v6 }
  0x54   : > { %1035 = vmatpush3.msra.mxu1 %v309_v7  ;;  %995 = vmatprep.subr.mxu0 %v292_v8 }
  0x55   : > { %1036 = vmatprep.subr.mxu1 %v324_v9  ;;  %996 = vmatpush3.msra.mxu0 %v276_v10 }
  0x56   : > { %587 = vmatprep.mubr.f32.mxu0 %v868_v11  ;;  %1037 = vmatpush3.msra.mxu1 %v308_v12 }
  0x57   : > { %667 = vmatprep.mubr.f32.mxu1 %v874_v13  ;;  %588 = vmatmul.mubr.f32.vlgmr.msra.gmra.mxu0 %v865_v14 }
  0x58   : > { %668 = vmatmul.mubr.f32.vlgmr.msra.gmra.mxu1 %v871_v15  ;;  %1066 = vmatprep.subr.mxu0 %v1223_v17 }
  0x59   : > { %1107 = vmatprep.subr.mxu1 %v1223_v17  ;;  %1067 = vmatpush3.msra.mxu0 %v355_v16 }
  0x5a   : > { %1123 = vmatpush3.msra.mxu1 %v355_v16  ;;  %1068 = vmatprep.subr.mxu0 %v1223_v17 }
  0x5b   : > { %1108 = vmatprep.subr.mxu1 %v1223_v17  ;;  %592 = vmatprep.mubr.f32.mxu0 %v869_v18 }
  0x5c   : > { %1069 = vmatpush3.msra.mxu0 %v354_v19  ;;  %1124 = vmatpush3.msra.mxu1 %v354_v19 }
  0x5d   : > { %593 = vmatmul.mubr.f32.gmra.mxu0 %v866_v20  ;;  %1070 = vmatprep.subr.mxu0 %v1223_v17 }
  0x5e   : > { %1109 = vmatprep.subr.mxu1 %v1223_v17  ;;  %672 = vmatprep.mubr.f32.mxu1 %v875_v21 }
  0x5f   : > { %1071 = vmatpush3.msra.mxu0 %v353_v22  ;;  %1125 = vmatpush3.msra.mxu1 %v353_v22 }
  0x60   : > { %1072 = vmatprep.subr.mxu0 %v1223_v17  ;;  %673 = vmatmul.mubr.f32.gmra.mxu1 %v872_v23 }
  0x61   : > { %1110 = vmatprep.subr.mxu1 %v1223_v17  ;;  %597 = vmatprep.mubr.f32.mxu0 %v870_v24 }
  0x62   : > { %1073 = vmatpush3.msra.mxu0 %v352_v25  ;;  %1126 = vmatpush3.msra.mxu1 %v352_v25 }
  0x63   : > { %598 = vmatmul.mubr.f32.gmra.mxu0 %v867_v26  ;;  %1074 = vmatprep.subr.mxu0 %v1223_v17 }
  0x64   : > { %1111 = vmatprep.subr.mxu1 %v1223_v17  ;;  %677 = vmatprep.mubr.f32.mxu1 %v876_v27 }
  0x65   : > { %1075 = vmatpush3.msra.mxu0 %v351_v28  ;;  %1127 = vmatpush3.msra.mxu1 %v351_v28 }
  0x66   : > { %1076 = vmatprep.subr.mxu0 %v1223_v17  ;;  %678 = vmatmul.mubr.f32.gmra.mxu1 %v873_v29 }
  0x67   : > { %1112 = vmatprep.subr.mxu1 %v1223_v17  ;;  %1077 = vmatpush3.msra.mxu0 %v350_v30 }
  0x68   : > { %1128 = vmatpush3.msra.mxu1 %v350_v30  ;;  %1078 = vmatprep.subr.mxu0 %v1223_v17 }
  0x69   : > { %1113 = vmatprep.subr.mxu1 %v1223_v17  ;;  %1079 = vmatpush3.msra.mxu0 %v349_v31 }
  0x6a   : > { %1129 = vmatpush3.msra.mxu1 %v349_v31  ;;  %1080 = vmatprep.subr.mxu0 %v1223_v17 }
  0x6b   : > { %1114 = vmatprep.subr.mxu1 %v1223_v17  ;;  %1081 = vmatpush3.msra.mxu0 %v348_v32 }
  0x6c   : > { %1130 = vmatpush3.msra.mxu1 %v348_v32  ;;  %1082 = vmatprep.subr.mxu0 %v1223_v17 }
  0x6d   : > { %1115 = vmatprep.subr.mxu1 %v1223_v17  ;;  %1083 = vmatpush3.msra.mxu0 %v347_v33 }
  0x6e   : > { %1131 = vmatpush3.msra.mxu1 %v347_v33  ;;  %1084 = vmatprep.subr.mxu0 %v1223_v17 }
  0x6f   : > { %1116 = vmatprep.subr.mxu1 %v1223_v17  ;;  %1085 = vmatpush3.msra.mxu0 %v346_v34 }
  0x70   : > { %1132 = vmatpush3.msra.mxu1 %v346_v34  ;;  %1086 = vmatprep.subr.mxu0 %v1223_v17 }
  0x71   : > { %1117 = vmatprep.subr.mxu1 %v1223_v17  ;;  %1087 = vmatpush3.msra.mxu0 %v345_v35 }
  0x72   : > { %1133 = vmatpush3.msra.mxu1 %v345_v35  ;;  %1088 = vmatprep.subr.mxu0 %v1223_v17 }
  0x73   : > { %1118 = vmatprep.subr.mxu1 %v1223_v17  ;;  %1089 = vmatpush3.msra.mxu0 %v344_v36 }
  0x74   : > { %1134 = vmatpush3.msra.mxu1 %v344_v36  ;;  %1090 = vmatprep.subr.mxu0 %v1223_v17 }
  0x75   : > { %1119 = vmatprep.subr.mxu1 %v1223_v17  ;;  %1091 = vmatpush3.msra.mxu0 %v343_v37 }
  0x76   : > { %1135 = vmatpush3.msra.mxu1 %v343_v37  ;;  %1092 = vmatprep.subr.mxu0 %v1223_v17 }
  0x77   : > { %1120 = vmatprep.subr.mxu1 %v1223_v17  ;;  %1093 = vmatpush3.msra.mxu0 %v342_v38 }
  0x78   : > { %1136 = vmatpush3.msra.mxu1 %v342_v38  ;;  %1094 = vmatprep.subr.mxu0 %v1223_v17 }
  0x79   : > { %1121 = vmatprep.subr.mxu1 %v1223_v17  ;;  %1095 = vmatpush3.msra.mxu0 %v341_v39 }
  0x7a   : > { %1137 = vmatpush3.msra.mxu1 %v341_v39  ;;  %1096 = vmatprep.subr.mxu0 %v1223_v17 }
  0x7b   : > { %1122 = vmatprep.subr.mxu1 %v1223_v17  ;;  %1097 = vmatpush3.msra.mxu0 %v340_v40 }
  0x7c   : > { %1138 = vmatpush3.msra.mxu1 %v340_v40  ;;  %1098 = vmatprep.mubr.msk.f32.mxu0 %vm1224_vm0, %v1223_v17 }
  0x7d   : > { %1101 = vmatprep.mubr.msk.f32.mxu1 %vm1224_vm0, %v1223_v17  ;;  %1099 = vmatmul.mubr.f32.vlgmr.msra.gmra.mxu0 %v877_v41 }
  0x7e   : > { %1102 = vmatmul.mubr.f32.vlgmr.msra.gmra.mxu1 %v878_v42 }
  0x7f   : > { %1104 = vmatprep.mubr.msk.f32.mxu1 %vm1224_vm0, %v1223_v17 }
  0x82   : > { %1105 = vmatmul.mubr.f32.gmra.mxu1 %v879_v43 }
  0xf1   : > { %v915_v44 = vpop.f32.mrf.mxu0 }
  0xf2   : > { %v956_v45 = vpop.f32.mrf.mxu1 }
  0xf3   : > { %v916_v46 = vpop.f32.mrf.mxu0 }
  0xf4   : > { %v957_v48 = vpop.f32.mrf.mxu1  ;;  %v917_v63 = vadd.f32 %v916_v46, %v915_v44 }
  0xf5   : > { %v958_v8 = vadd.f32 %v957_v48, %v956_v45 }
  0xf6   : > { %v430_v4 = vadd.f32 %v917_v63, %v880_v1 }
  0xf8   : > { %v510_v13 = vadd.f32 %v958_v8, %v430_v4 }
 0x108   : > { %v918_v47 = vpop.f32.mrf.mxu0 }
 0x10a   : > { %v919_v49 = vpop.f32.mrf.mxu0 }
 0x10b   : > { %v959_v50 = vpop.f32.mrf.mxu1  ;;  %v920_v0 = vadd.f32 %v919_v49, %v918_v47 }
 0x10d   : > { %v960_v52 = vpop.f32.mrf.mxu1  ;;  %v435_v5 = vadd.f32 %v920_v0, %v880_v1 }
 0x10e   : > { %v921_v51 = vpop.f32.mrf.mxu0  ;;  %v961_v6 = vadd.f32 %v960_v52, %v959_v50 }
 0x110   : > { %v922_v53 = vpop.f32.mrf.mxu0  ;;  %v515_v14 = vadd.f32 %v961_v6, %v435_v5 }
 0x111   : > { %v962_v54 = vpop.f32.mrf.mxu1  ;;  %v923_v7 = vadd.f32 %v922_v53, %v921_v51 }
 0x113   : > { %v963_v56 = vpop.f32.mrf.mxu1  ;;  %v440_v15 = vadd.f32 %v923_v7, %v880_v1 }
 0x114   : > { %v964_v16 = vadd.f32 %v963_v56, %v962_v54 }
 0x116   : > { %v520_v22 = vadd.f32 %v964_v16, %v440_v15 }
 0x117   : > { %v997_v55 = vpop.f32.mrf.mxu0 }
 0x118   : > { %v1038_v58 = vpop.f32.mrf.mxu1 }
 0x119   : > { %v998_v57 = vpop.f32.mrf.mxu0 }
 0x11a   : > { %v1039_v60 = vpop.f32.mrf.mxu1  ;;  %v999_v9 = vadd.f32 %v998_v57, %v997_v55 }
 0x11b   : > { %v1040_v23 = vadd.f32 %v1039_v60, %v1038_v58 }
 0x11c   : > { %v590_v17 = vadd.f32 %v999_v9, %v510_v13 }
 0x11d   : > { %v1000_v59 = vpop.f32.mrf.mxu0 }
 0x11e   : > { %v670_v26 = vadd.f32 %v1040_v23, %v590_v17 }
 0x11f   : > { %v1001_v61 = vpop.f32.mrf.mxu0 }
 0x120   : > { %v1041_v62 = vpop.f32.mrf.mxu1  ;;  %v1002_v10 = vadd.f32 %v1001_v61, %v1000_v59 }
 0x122   : > { %v1042_v3 = vpop.f32.mrf.mxu1  ;;  %v595_v18 = vadd.f32 %v1002_v10, %v515_v14 }
 0x123   : > { %v1003_v2 = vpop.f32.mrf.mxu0  ;;  %v1043_v19 = vadd.f32 %v1042_v3, %v1041_v62 }
 0x125   : > { %v1004_v11 = vpop.f32.mrf.mxu0  ;;  %v675_v27 = vadd.f32 %v1043_v19, %v595_v18 }
 0x126   : > { %v1044_v12 = vpop.f32.mrf.mxu1  ;;  %v1005_v20 = vadd.f32 %v1004_v11, %v1003_v2 }
 0x128   : > { %v1045_v21 = vpop.f32.mrf.mxu1  ;;  %v600_v24 = vadd.f32 %v1005_v20, %v520_v22 }
 0x129   : > { %v1046_v25 = vadd.f32 %v1045_v21, %v1044_v12 }
 0x12b   : > { %v680_v36 = vadd.f32 %v1046_v25, %v600_v24 }
 0x13d   : > { %v749_v28 = vpop.f32.mrf.mxu0 }
 0x13e   : > { %v754_v29 = vpop.f32.mrf.mxu1  ;;  %v750_v30 = vadd.f32 %v749_v28, %v670_v26 }
 0x13f   : > { %v755_v31 = vadd.f32 %v754_v29, %v675_v27  ;;  %v1100_v33 = vpop.f32.mrf.mxu0 }
 0x140   : > { %v1103_v32 = vpop.f32.mrf.mxu1  ;;  %v763_v34 = vmax.f32 %v750_v30, 0.0 }
 0x141   : > { %v764_v35 = vmax.f32 %v755_v31, 0.0 }
 0x142   : > { %v759_v37 = vpop.f32.mrf.mxu1  ;;  %766 = vst [vmem:[%s172_s26] sm:$0xff] %v763_v34 }
 0x143   : > { %767 = vst [vmem:[%s172_s26 + $0x8] sm:$0xff] %v764_v35  ;;  %v760_v38 = vadd.f32 %v759_v37, %v680_v36 }
 0x144   : > { %v1106_v39 = vpop.f32.mrf.mxu1 }
 0x145   : > { %v765_v40 = vmax.f32 %v760_v38, 0.0 }
 0x147   : > { %768 = vst [vmem:[%s172_s26 + $0x10] sm:$0x3] %v765_v40 }
 0x148 PF: > { %s13_s16 = sadd.s32 1, %s1221_s16   ;;  %s1809_s12 = smov %s1213_s14 }
 0x149   : > { %p10_p7 = scmp.ge.s32.totalorder %s13_s16, 22   ;;  %s1810_s13 = smov %s1217_s15 }
 0x14a   : > { %s1811_s14 = smov %s1814_s17  ;;  %s1812_s15 = smov %s1818_s18 }
 0x14b   :  { %12 = sbr.rel (!%p10_p7) target bundleno = 3 (0x3), region = 62 }

// kernel: nn_forward.16
= control target key start
LH: loop header
LB: loop body
LE: loop exit
PB: predicated region body
PF: predicated region fallthrough
CT: control target
= control target key end

     0   :  { %s267_s6 = smov 0   ;;  %s306_s0 = inlined_call_operand.vmem [shape: f32[10,2,7,256], index: 0, kind: input, shape index: {}]   ;;  %s307_s1 = inlined_call_operand.vmem [shape: f32[10,7,128], index: 1, kind: output, shape index: {}]  }
   0x1 LB: > { %s220_s7 = sadd.s32 4294967295, %s255_s6   ;;  %p224_p0 = scmp.ge.s32.totalorder %s255_s6, 1  ;;  %s255_s6 = sphi %s267_s6, %s11_s6  }
   0x2   : > { %p89_p1 = scmp.lt.s32.totalorder %s255_s6, 3 }
   0x4   : > { %p90_p2 = pnand %p224_p0, %p89_p1 }
   0x5   : > { %s110_s8 = smul.u32 (!%p90_p2), 5, %s220_s7 }
   0x6   : > { %93 = sbr.rel (%p90_p2) target bundleno = 26 (0x1a), region = 24 }
   0x7   : > { %p111_p3 = scmp.lt.s32.totalorder (!%p90_p2), %s110_s8, 9 }
   0xb   : > { %s309_s8 = smov (!%p111_p3, %s110_s8), 9 }
   0xc   : > { %s240_s9 = sshll.u32 %s309_s8, 5  ;;  %s227_s13 = sshll.u32 %s309_s8, 3 }
   0xd   : > { %s278_s12 = scalar_lea.vmem %s306_s0, %s240_s9  ;;  %s121_s16 = scalar_lea.vmem %s307_s1, %s227_s13 }
   0xe   : > { %v123_v0 = vld [vmem:[%s278_s12] sm:$0x7f]  ;;  %v124_v1 = vld [vmem:[%s278_s12 + $0x8] sm:$0x7f]  ;;  %v228_v2 = vld [vmem:[%s278_s12 + $0x10] sm:$0x7f] }
   0xf   : > { %v229_v3 = vld [vmem:[%s278_s12 + $0x18] sm:$0x7f]  ;;  %v144_v4 = vmax.f32 %v123_v0, %v228_v2  ;;  %v125_v5 = vld [vmem:[%s278_s12 + $0x20] sm:$0x7f]  ;;  %v126_v6 = vld [vmem:[%s278_s12 + $0x28] sm:$0x7f] }
  0x10   : > { %v145_v7 = vmax.f32 %v124_v1, %v229_v3  ;;  %v230_v8 = vld [vmem:[%s278_s12 + $0x30] sm:$0x7f]  ;;  %v231_v9 = vld [vmem:[%s278_s12 + $0x38] sm:$0x7f]  ;;  %v127_v10 = vld [vmem:[%s278_s12 + $0x40] sm:$0x7f] }
  0x11   : > { %v146_v11 = vmax.f32 %v125_v5, %v230_v8  ;;  %v147_v12 = vmax.f32 %v126_v6, %v231_v9  ;;  %v128_v13 = vld [vmem:[%s278_s12 + $0x48] sm:$0x7f]  ;;  %v232_v14 = vld [vmem:[%s278_s12 + $0x50] sm:$0x7f]  ;;  %v233_v15 = vld [vmem:[%s278_s12 + $0x58] sm:$0x7f] }
  0x12   : > { %v154_v16 = vmax.f32 %v144_v4, %v145_v7  ;;  %v148_v17 = vmax.f32 %v127_v10, %v232_v14  ;;  %v149_v18 = vmax.f32 %v128_v13, %v233_v15  ;;  %v129_v19 = vld [vmem:[%s278_s12 + $0x60] sm:$0x7f]  ;;  %v130_v20 = vld [vmem:[%s278_s12 + $0x68] sm:$0x7f]  ;;  %v234_v21 = vld [vmem:[%s278_s12 + $0x70] sm:$0x7f] }
  0x13   : > { %v155_v22 = vmax.f32 %v146_v11, %v147_v12  ;;  %v235_v23 = vld [vmem:[%s278_s12 + $0x78] sm:$0x7f]  ;;  %v150_v24 = vmax.f32 %v129_v19, %v234_v21  ;;  %v131_v25 = vld [vmem:[%s278_s12 + $0x80] sm:$0x7f]  ;;  %v132_v26 = vld [vmem:[%s278_s12 + $0x88] sm:$0x7f] }
  0x14   : > { %159 = vst [vmem:[%s121_s16] sm:$0x7f] %v154_v16  ;;  %v156_v27 = vmax.f32 %v148_v17, %v149_v18  ;;  %v151_v28 = vmax.f32 %v130_v20, %v235_v23  ;;  %v236_v29 = vld [vmem:[%s278_s12 + $0x90] sm:$0x7f]  ;;  %v237_v30 = vld [vmem:[%s278_s12 + $0x98] sm:$0x7f] }
  0x15   : > { %160 = vst [vmem:[%s121_s16 + $0x8] sm:$0x7f] %v155_v22  ;;  %v152_v31 = vmax.f32 %v131_v25, %v236_v29  ;;  %v153_v32 = vmax.f32 %v132_v26, %v237_v30 }
  0x16   : > { %161 = vst [vmem:[%s121_s16 + $0x10] sm:$0x7f] %v156_v27  ;;  %v157_v33 = vmax.f32 %v150_v24, %v151_v28 }
  0x17   : > { %v158_v34 = vmax.f32 %v152_v31, %v153_v32 }
  0x18   : > { %162 = vst [vmem:[%s121_s16 + $0x18] sm:$0x7f] %v157_v33 }
  0x19   : > { %163 = vst [vmem:[%s121_s16 + $0x20] sm:$0x7f] %v158_v34 }
  0x1a PF: > { %s11_s6 = sadd.s32 1, %s255_s6  }
  0x1b   : > { %p8_p4 = scmp.ge.s32.totalorder %s11_s6, 4  }
  0x1d   :  { %10 = sbr.rel (!%p8_p4) target bundleno = 1 (0x1), region = 55 }

// kernel: nn_forward.15
= control target key start
LH: loop header
LB: loop body
LE: loop exit
PB: predicated region body
PF: predicated region fallthrough
CT: control target
= control target key end

     0   :  { %s1151_s12 = smov 0   ;;  %s1153_s13 = smov 0   ;;  %s1667_s0 = inlined_call_operand.vmem [shape: f32[2,10,14,128], index: 0, kind: input, shape index: {}]   ;;  %s1668_s1 = inlined_call_operand.vmem [shape: f32[1152,128], index: 1, kind: input, shape index: {}]   ;;  %s1669_s2 = inlined_call_operand.vmem [shape: f32[1,128], index: 2, kind: input, shape index: {}]   ;;  %s1670_s3 = inlined_call_operand.vmem [shape: f32[2,8,12,128], index: 3, kind: output, shape index: {}]  }
   0x1   :  { %s1155_s14 = smov 0   ;;  %s1157_s15 = smov 0  }
   0x2   :  { %s1159_s16 = smov 0  }
   0x3 LB: > { %s22_s17 = sadd.s32 1, %s1121_s14  ;;  %s25_s18 = sadd.s32 1, %s1125_s15  ;;  %s1129_s16 = sphi %s1159_s16, %s13_s16   ;;  %s1125_s15 = sphi %s1157_s15, %s1674_s15   ;;  %s1121_s14 = sphi %s1155_s14, %s1673_s14   ;;  %s1117_s13 = sphi %s1153_s13, %s1672_s13   ;;  %s1113_s12 = sphi %s1151_s12, %s1671_s12  }
   0x4   : > { %p23_p0 = scmp.ge.s32.totalorder %s22_s17, 8  ;;  %p824_p1 = scmp.ge.s32.totalorder %s1129_s16, 1 }
   0x5   : > { %p141_p2 = scmp.lt.s32.totalorder %s1129_s16, 17 }
   0x6   : > { %s1676_s17 = smov (%p23_p0, %s22_s17), 0  ;;  %s1678_s18 = smov (!%p23_p0, %s25_s18), %s1125_s15 }
   0x7   : > { %p142_p3 = pnand %p824_p1, %p141_p2  ;;  %p27_p4 = scmp.ge.s32.totalorder %s1678_s18, 2 }
   0x8   : > { %s174_s21 = smul.u32 (!%p142_p3), 160, %s1117_s13  ;;  %s828_s26 = sshll.u32 (!%p142_p3), %s1113_s12, 4 }
   0x9   : > { %s1680_s18 = smov (%p27_p4, %s1678_s18), 0  ;;  %145 = sbr.rel (%p142_p3) target bundleno = 317 (0x13d), region = 32 }
   0xa   : > { %s175_s19 = sadd.s32 (!%p142_p3), %s828_s26, %s174_s21  ;;  %p164_p5 = scmp.lt.s32.totalorder (!%p142_p3), %s1117_s13, 1 }
   0xb   : > { %s1355_s7 = scalar_lea.vmem (!%p142_p3), %s1667_s0, %s175_s19  ;;  %p166_p6 = scmp.lt.s32.totalorder (!%p142_p3), %s1113_s12, 7 }
   0xe   : > { %v234_v0 = vld [vmem:[%s1668_s1 + $0xf8] sm:$0xff]  ;;  %v233_v2 = vld [vmem:[%s1668_s1 + $0xf0] sm:$0xff]  ;;  %v232_v6 = vld [vmem:[%s1668_s1 + $0xe8] sm:$0xff]  ;;  %s1682_s13 = smov (!%p164_p5, %s1117_s13), 1  ;;  %s1684_s12 = smov (!%p166_p6, %s1113_s12), 7 }
   0xf   : > { %v218_v1 = vld [vmem:[%s1668_s1 + $0x78] sm:$0xff]  ;;  %846 = vmatprep.subr.mxu0 %v234_v0  ;;  %v217_v4 = vld [vmem:[%s1668_s1 + $0x70] sm:$0xff]  ;;  %v216_v8 = vld [vmem:[%s1668_s1 + $0x68] sm:$0xff]  ;;  %s825_s24 = sshll.u32 %s1684_s12, 1  ;;  %s826_s25 = sshll.u32 %s1682_s13, 4 }
  0x10   : > { %v266_v3 = vld [vmem:[%s1668_s1 + $0x1f8] sm:$0xff]  ;;  %847 = vmatpush3.msra.mxu0 %v218_v1  ;;  %v265_v7 = vld [vmem:[%s1668_s1 + $0x1f0] sm:$0xff]  ;;  %v264_v10 = vld [vmem:[%s1668_s1 + $0x1e8] sm:$0xff]  ;;  %s170_s27 = sadd.s32 %s826_s25, %s825_s24 }
  0x11   : > { %v250_v5 = vld [vmem:[%s1668_s1 + $0x178] sm:$0xff]  ;;  %884 = vmatprep.subr.mxu1 %v266_v3  ;;  %848 = vmatprep.subr.mxu0 %v233_v2  ;;  %v249_v9 = vld [vmem:[%s1668_s1 + $0x170] sm:$0xff]  ;;  %v231_v11 = vld [vmem:[%s1668_s1 + $0xe0] sm:$0xff]  ;;  %s827_s28 = sshll.u32 %s170_s27, 3 }
  0x12   : > { %885 = vmatpush3.msra.mxu1 %v250_v5  ;;  %849 = vmatpush3.msra.mxu0 %v217_v4  ;;  %v248_v12 = vld [vmem:[%s1668_s1 + $0x168] sm:$0xff]  ;;  %v215_v13 = vld [vmem:[%s1668_s1 + $0x60] sm:$0xff]  ;;  %v230_v15 = vld [vmem:[%s1668_s1 + $0xd8] sm:$0xff]  ;;  %s172_s26 = scalar_lea.vmem %s1670_s3, %s827_s28 }
  0x13   : > { %886 = vmatprep.subr.mxu1 %v265_v7  ;;  %850 = vmatprep.subr.mxu0 %v232_v6  ;;  %v263_v14 = vld [vmem:[%s1668_s1 + $0x1e0] sm:$0xff]  ;;  %v214_v17 = vld [vmem:[%s1668_s1 + $0x58] sm:$0xff]  ;;  %v229_v19 = vld [vmem:[%s1668_s1 + $0xd0] sm:$0xff] }
  0x14   : > { %887 = vmatpush3.msra.mxu1 %v249_v9  ;;  %851 = vmatpush3.msra.mxu0 %v216_v8  ;;  %v247_v16 = vld [vmem:[%s1668_s1 + $0x160] sm:$0xff]  ;;  %v262_v18 = vld [vmem:[%s1668_s1 + $0x1d8] sm:$0xff]  ;;  %v213_v21 = vld [vmem:[%s1668_s1 + $0x50] sm:$0xff] }
  0x15   : > { %888 = vmatprep.subr.mxu1 %v264_v10  ;;  %852 = vmatprep.subr.mxu0 %v231_v11  ;;  %v246_v20 = vld [vmem:[%s1668_s1 + $0x158] sm:$0xff]  ;;  %v261_v22 = vld [vmem:[%s1668_s1 + $0x1d0] sm:$0xff]  ;;  %v228_v23 = vld [vmem:[%s1668_s1 + $0xc8] sm:$0xff] }
  0x16   : > { %889 = vmatpush3.msra.mxu1 %v248_v12  ;;  %853 = vmatpush3.msra.mxu0 %v215_v13  ;;  %v245_v24 = vld [vmem:[%s1668_s1 + $0x150] sm:$0xff]  ;;  %v212_v25 = vld [vmem:[%s1668_s1 + $0x48] sm:$0xff]  ;;  %v227_v27 = vld [vmem:[%s1668_s1 + $0xc0] sm:$0xff] }
  0x17   : > { %890 = vmatprep.subr.mxu1 %v263_v14  ;;  %854 = vmatprep.subr.mxu0 %v230_v15  ;;  %v260_v26 = vld [vmem:[%s1668_s1 + $0x1c8] sm:$0xff]  ;;  %v211_v29 = vld [vmem:[%s1668_s1 + $0x40] sm:$0xff]  ;;  %v226_v31 = vld [vmem:[%s1668_s1 + $0xb8] sm:$0xff] }
  0x18   : > { %891 = vmatpush3.msra.mxu1 %v247_v16  ;;  %855 = vmatpush3.msra.mxu0 %v214_v17  ;;  %v244_v28 = vld [vmem:[%s1668_s1 + $0x148] sm:$0xff]  ;;  %v259_v30 = vld [vmem:[%s1668_s1 + $0x1c0] sm:$0xff]  ;;  %v210_v33 = vld [vmem:[%s1668_s1 + $0x38] sm:$0xff] }
  0x19   : > { %892 = vmatprep.subr.mxu1 %v262_v18  ;;  %856 = vmatprep.subr.mxu0 %v229_v19  ;;  %v243_v32 = vld [vmem:[%s1668_s1 + $0x140] sm:$0xff]  ;;  %v258_v34 = vld [vmem:[%s1668_s1 + $0x1b8] sm:$0xff]  ;;  %v225_v35 = vld [vmem:[%s1668_s1 + $0xb0] sm:$0xff] }
  0x1a   : > { %893 = vmatpush3.msra.mxu1 %v246_v20  ;;  %857 = vmatpush3.msra.mxu0 %v213_v21  ;;  %v242_v36 = vld [vmem:[%s1668_s1 + $0x138] sm:$0xff]  ;;  %v209_v37 = vld [vmem:[%s1668_s1 + $0x30] sm:$0xff]  ;;  %v224_v39 = vld [vmem:[%s1668_s1 + $0xa8] sm:$0xff] }
  0x1b   : > { %894 = vmatprep.subr.mxu1 %v261_v22  ;;  %858 = vmatprep.subr.mxu0 %v228_v23  ;;  %v257_v38 = vld [vmem:[%s1668_s1 + $0x1b0] sm:$0xff]  ;;  %v208_v41 = vld [vmem:[%s1668_s1 + $0x28] sm:$0xff]  ;;  %v223_v43 = vld [vmem:[%s1668_s1 + $0xa0] sm:$0xff] }
  0x1c   : > { %895 = vmatpush3.msra.mxu1 %v245_v24  ;;  %859 = vmatpush3.msra.mxu0 %v212_v25  ;;  %v241_v40 = vld [vmem:[%s1668_s1 + $0x130] sm:$0xff]  ;;  %v256_v42 = vld [vmem:[%s1668_s1 + $0x1a8] sm:$0xff]  ;;  %v207_v45 = vld [vmem:[%s1668_s1 + $0x20] sm:$0xff] }
  0x1d   : > { %896 = vmatprep.subr.mxu1 %v260_v26  ;;  %860 = vmatprep.subr.mxu0 %v227_v27  ;;  %v240_v44 = vld [vmem:[%s1668_s1 + $0x128] sm:$0xff]  ;;  %v255_v46 = vld [vmem:[%s1668_s1 + $0x1a0] sm:$0xff]  ;;  %v222_v47 = vld [vmem:[%s1668_s1 + $0x98] sm:$0xff] }
  0x1e   : > { %897 = vmatpush3.msra.mxu1 %v244_v28  ;;  %861 = vmatpush3.msra.mxu0 %v211_v29  ;;  %v239_v48 = vld [vmem:[%s1668_s1 + $0x120] sm:$0xff]  ;;  %v206_v49 = vld [vmem:[%s1668_s1 + $0x18] sm:$0xff]  ;;  %v221_v51 = vld [vmem:[%s1668_s1 + $0x90] sm:$0xff] }
  0x1f   : > { %898 = vmatprep.subr.mxu1 %v259_v30  ;;  %862 = vmatprep.subr.mxu0 %v226_v31  ;;  %v254_v50 = vld [vmem:[%s1668_s1 + $0x198] sm:$0xff]  ;;  %v205_v53 = vld [vmem:[%s1668_s1 + $0x10] sm:$0xff]  ;;  %v220_v55 = vld [vmem:[%s1668_s1 + $0x88] sm:$0xff] }
  0x20   : > { %899 = vmatpush3.msra.mxu1 %v243_v32  ;;  %863 = vmatpush3.msra.mxu0 %v210_v33  ;;  %v238_v52 = vld [vmem:[%s1668_s1 + $0x118] sm:$0xff]  ;;  %v253_v54 = vld [vmem:[%s1668_s1 + $0x190] sm:$0xff]  ;;  %v204_v57 = vld [vmem:[%s1668_s1 + $0x8] sm:$0xff] }
  0x21   : > { %900 = vmatprep.subr.mxu1 %v258_v34  ;;  %864 = vmatprep.subr.mxu0 %v225_v35  ;;  %v237_v56 = vld [vmem:[%s1668_s1 + $0x110] sm:$0xff]  ;;  %v252_v58 = vld [vmem:[%s1668_s1 + $0x188] sm:$0xff]  ;;  %v219_v59 = vld [vmem:[%s1668_s1 + $0x80] sm:$0xff] }
  0x22   : > { %901 = vmatpush3.msra.mxu1 %v242_v36  ;;  %865 = vmatpush3.msra.mxu0 %v209_v37  ;;  %v179_v60 = vld [vmem:[%s1355_s7 + $0x1] sm:$0xff]  ;;  %v298_v1 = vld [vmem:[%s1668_s1 + $0x2f8] sm:$0xff]  ;;  %v830_v3 = vld [vmem:[%s1355_s7 + $0x10] sm:$0xff] }
  0x23   : > { %902 = vmatprep.subr.mxu1 %v257_v38  ;;  %866 = vmatprep.subr.mxu0 %v224_v39  ;;  %v203_v61 = vld [vmem:[%s1668_s1] sm:$0xff]  ;;  %v236_v62 = vld [vmem:[%s1668_s1 + $0x108] sm:$0xff]  ;;  %v282_v4 = vld [vmem:[%s1668_s1 + $0x278] sm:$0xff] }
  0x24   : > { %903 = vmatpush3.msra.mxu1 %v241_v40  ;;  %867 = vmatpush3.msra.mxu0 %v208_v41  ;;  %v177_v63 = vld [vmem:[%s1355_s7] sm:$0xff]  ;;  %v297_v6 = vld [vmem:[%s1668_s1 + $0x2f0] sm:$0xff]  ;;  %v330_v7 = vld [vmem:[%s1668_s1 + $0x3f8] sm:$0xff] }
  0x25   : > { %904 = vmatprep.subr.mxu1 %v256_v42  ;;  %868 = vmatprep.subr.mxu0 %v223_v43  ;;  %v251_v0 = vld [vmem:[%s1668_s1 + $0x180] sm:$0xff]  ;;  %v281_v8 = vld [vmem:[%s1668_s1 + $0x270] sm:$0xff]  ;;  %v314_v9 = vld [vmem:[%s1668_s1 + $0x378] sm:$0xff] }
  0x26   : > { %905 = vmatpush3.msra.mxu1 %v240_v44  ;;  %869 = vmatpush3.msra.mxu0 %v207_v45  ;;  %v235_v2 = vld [vmem:[%s1668_s1 + $0x100] sm:$0xff]  ;;  %v296_v10 = vld [vmem:[%s1668_s1 + $0x2e8] sm:$0xff]  ;;  %v329_v11 = vld [vmem:[%s1668_s1 + $0x3f0] sm:$0xff] }
  0x27   : > { %906 = vmatprep.subr.mxu1 %v255_v46  ;;  %870 = vmatprep.subr.mxu0 %v222_v47  ;;  %v181_v5 = vld [vmem:[%s1355_s7 + $0x2] sm:$0xff]  ;;  %v313_v13 = vld [vmem:[%s1668_s1 + $0x370] sm:$0xff]  ;;  %v294_v18 = vld [vmem:[%s1668_s1 + $0x2d8] sm:$0xff] }
  0x28   : > { %907 = vmatpush3.msra.mxu1 %v239_v48  ;;  %871 = vmatpush3.msra.mxu0 %v206_v49  ;;  %v280_v12 = vld [vmem:[%s1668_s1 + $0x268] sm:$0xff]  ;;  %v295_v14 = vld [vmem:[%s1668_s1 + $0x2e0] sm:$0xff]  ;;  %v278_v20 = vld [vmem:[%s1668_s1 + $0x258] sm:$0xff] }
  0x29   : > { %908 = vmatprep.subr.mxu1 %v254_v50  ;;  %872 = vmatprep.subr.mxu0 %v221_v51  ;;  %v328_v15 = vld [vmem:[%s1668_s1 + $0x3e8] sm:$0xff]  ;;  %v279_v16 = vld [vmem:[%s1668_s1 + $0x260] sm:$0xff]  ;;  %v293_v22 = vld [vmem:[%s1668_s1 + $0x2d0] sm:$0xff] }
  0x2a   : > { %909 = vmatpush3.msra.mxu1 %v238_v52  ;;  %873 = vmatpush3.msra.mxu0 %v205_v53  ;;  %v312_v17 = vld [vmem:[%s1668_s1 + $0x368] sm:$0xff]  ;;  %v327_v19 = vld [vmem:[%s1668_s1 + $0x3e0] sm:$0xff]  ;;  %v326_v23 = vld [vmem:[%s1668_s1 + $0x3d8] sm:$0xff] }
  0x2b   : > { %910 = vmatprep.subr.mxu1 %v253_v54  ;;  %874 = vmatprep.subr.mxu0 %v220_v55  ;;  %v311_v21 = vld [vmem:[%s1668_s1 + $0x360] sm:$0xff]  ;;  %v277_v24 = vld [vmem:[%s1668_s1 + $0x250] sm:$0xff]  ;;  %v310_v25 = vld [vmem:[%s1668_s1 + $0x358] sm:$0xff] }
  0x2c   : > { %911 = vmatpush3.msra.mxu1 %v237_v56  ;;  %875 = vmatpush3.msra.mxu0 %v204_v57  ;;  %v292_v26 = vld [vmem:[%s1668_s1 + $0x2c8] sm:$0xff]  ;;  %v325_v27 = vld [vmem:[%s1668_s1 + $0x3d0] sm:$0xff]  ;;  %v291_v30 = vld [vmem:[%s1668_s1 + $0x2c0] sm:$0xff] }
  0x2d   : > { %912 = vmatprep.subr.mxu1 %v252_v58  ;;  %876 = vmatprep.subr.mxu0 %v219_v59  ;;  %v276_v28 = vld [vmem:[%s1668_s1 + $0x248] sm:$0xff]  ;;  %v309_v29 = vld [vmem:[%s1668_s1 + $0x350] sm:$0xff]  ;;  %v275_v32 = vld [vmem:[%s1668_s1 + $0x240] sm:$0xff] }
  0x2e   : > { %418 = vmatprep.mubr.f32.mxu0 %v179_v60  ;;  %877 = vmatpush3.msra.mxu0 %v203_v61  ;;  %v324_v31 = vld [vmem:[%s1668_s1 + $0x3c8] sm:$0xff]  ;;  %v290_v34 = vld [vmem:[%s1668_s1 + $0x2b8] sm:$0xff]  ;;  %v323_v35 = vld [vmem:[%s1668_s1 + $0x3c0] sm:$0xff] }
  0x2f   : > { %913 = vmatpush3.msra.mxu1 %v236_v62  ;;  %419 = vmatmul.mubr.f32.vlgmr.msra.gmra.mxu0 %v177_v63  ;;  %v308_v33 = vld [vmem:[%s1668_s1 + $0x348] sm:$0xff]  ;;  %v274_v36 = vld [vmem:[%s1668_s1 + $0x238] sm:$0xff]  ;;  %v307_v37 = vld [vmem:[%s1668_s1 + $0x340] sm:$0xff] }
  0x30   : > { %914 = vmatprep.subr.mxu1 %v251_v0  ;;  %922 = vmatprep.subr.mxu0 %v298_v1  ;;  %v289_v38 = vld [vmem:[%s1668_s1 + $0x2b0] sm:$0xff]  ;;  %v322_v39 = vld [vmem:[%s1668_s1 + $0x3b8] sm:$0xff]  ;;  %v288_v42 = vld [vmem:[%s1668_s1 + $0x2a8] sm:$0xff] }
  0x31   : > { %915 = vmatpush3.msra.mxu1 %v235_v2  ;;  %493 = vmatprep.mubr.f32.mxu1 %v830_v3  ;;  %v273_v40 = vld [vmem:[%s1668_s1 + $0x230] sm:$0xff]  ;;  %v306_v41 = vld [vmem:[%s1668_s1 + $0x338] sm:$0xff]  ;;  %v272_v44 = vld [vmem:[%s1668_s1 + $0x228] sm:$0xff] }
  0x32   : > { %923 = vmatpush3.msra.mxu0 %v282_v4  ;;  %494 = vmatmul.mubr.f32.vlgmr.msra.gmra.mxu1 %v181_v5  ;;  %v321_v43 = vld [vmem:[%s1668_s1 + $0x3b0] sm:$0xff]  ;;  %v287_v46 = vld [vmem:[%s1668_s1 + $0x2a0] sm:$0xff]  ;;  %v320_v47 = vld [vmem:[%s1668_s1 + $0x3a8] sm:$0xff] }
  0x33   : > { %924 = vmatprep.subr.mxu0 %v297_v6  ;;  %960 = vmatprep.subr.mxu1 %v330_v7  ;;  %v305_v45 = vld [vmem:[%s1668_s1 + $0x330] sm:$0xff]  ;;  %v271_v48 = vld [vmem:[%s1668_s1 + $0x220] sm:$0xff]  ;;  %v304_v49 = vld [vmem:[%s1668_s1 + $0x328] sm:$0xff] }
  0x34   : > { %925 = vmatpush3.msra.mxu0 %v281_v8  ;;  %961 = vmatpush3.msra.mxu1 %v314_v9  ;;  %v286_v50 = vld [vmem:[%s1668_s1 + $0x298] sm:$0xff]  ;;  %v319_v51 = vld [vmem:[%s1668_s1 + $0x3a0] sm:$0xff]  ;;  %v180_v54 = vld [vmem:[%s1355_s7 + $0x9] sm:$0xf] }
  0x35   : > { %926 = vmatprep.subr.mxu0 %v296_v10  ;;  %962 = vmatprep.subr.mxu1 %v329_v11  ;;  %v270_v52 = vld [vmem:[%s1668_s1 + $0x218] sm:$0xff]  ;;  %v303_v53 = vld [vmem:[%s1668_s1 + $0x320] sm:$0xff]  ;;  %v285_v55 = vld [vmem:[%s1668_s1 + $0x290] sm:$0xff] }
  0x36   : > { %927 = vmatpush3.msra.mxu0 %v280_v12  ;;  %963 = vmatpush3.msra.mxu1 %v313_v13  ;;  %v318_v56 = vld [vmem:[%s1668_s1 + $0x398] sm:$0xff]  ;;  %v178_v57 = vld [vmem:[%s1355_s7 + $0x8] sm:$0xf]  ;;  %v269_v59 = vld [vmem:[%s1668_s1 + $0x210] sm:$0xff] }
  0x37   : > { %928 = vmatprep.subr.mxu0 %v295_v14  ;;  %964 = vmatprep.subr.mxu1 %v328_v15  ;;  %v302_v58 = vld [vmem:[%s1668_s1 + $0x318] sm:$0xff]  ;;  %v284_v61 = vld [vmem:[%s1668_s1 + $0x288] sm:$0xff]  ;;  %v317_v62 = vld [vmem:[%s1668_s1 + $0x390] sm:$0xff] }
  0x38   : > { %929 = vmatpush3.msra.mxu0 %v279_v16  ;;  %965 = vmatpush3.msra.mxu1 %v312_v17  ;;  %v831_v60 = vld [vmem:[%s1355_s7 + $0x18] sm:$0xf]  ;;  %v182_v63 = vld [vmem:[%s1355_s7 + $0xa] sm:$0xf]  ;;  %v301_v1 = vld [vmem:[%s1668_s1 + $0x310] sm:$0xff] }
  0x39   : > { %930 = vmatprep.subr.mxu0 %v294_v18  ;;  %966 = vmatprep.subr.mxu1 %v327_v19  ;;  %v268_v0 = vld [vmem:[%s1668_s1 + $0x208] sm:$0xff]  ;;  %v283_v2 = vld [vmem:[%s1668_s1 + $0x280] sm:$0xff]  ;;  %v834_v5 = vld [vmem:[%s1355_s7 + $0x12] sm:$0xff] }
  0x3a   : > { %931 = vmatpush3.msra.mxu0 %v278_v20  ;;  %967 = vmatpush3.msra.mxu1 %v311_v21  ;;  %v316_v3 = vld [vmem:[%s1668_s1 + $0x388] sm:$0xff]  ;;  %v267_v4 = vld [vmem:[%s1668_s1 + $0x200] sm:$0xff]  ;;  %v832_v7 = vld [vmem:[%s1355_s7 + $0x11] sm:$0xff] }
  0x3b   : > { %932 = vmatprep.subr.mxu0 %v293_v22  ;;  %968 = vmatprep.subr.mxu1 %v326_v23  ;;  %v300_v6 = vld [vmem:[%s1668_s1 + $0x308] sm:$0xff]  ;;  %v315_v8 = vld [vmem:[%s1668_s1 + $0x380] sm:$0xff]  ;;  %v346_v9 = vld [vmem:[%s1668_s1 + $0x478] sm:$0xff] }
  0x3c   : > { %933 = vmatpush3.msra.mxu0 %v277_v24  ;;  %969 = vmatpush3.msra.mxu1 %v310_v25  ;;  %v299_v10 = vld [vmem:[%s1668_s1 + $0x300] sm:$0xff]  ;;  %v345_v13 = vld [vmem:[%s1668_s1 + $0x470] sm:$0xff]  ;;  %v835_v14 = vld [vmem:[%s1355_s7 + $0x1a] sm:$0xf] }
  0x3d   : > { %934 = vmatprep.subr.mxu0 %v292_v26  ;;  %970 = vmatprep.subr.mxu1 %v325_v27  ;;  %v839_v11 = vld [vmem:[%s1355_s7 + $0x21] sm:$0xff]  ;;  %v833_v15 = vld [vmem:[%s1355_s7 + $0x19] sm:$0xf]  ;;  %v840_v17 = vld [vmem:[%s1355_s7 + $0x29] sm:$0xf] }
  0x3e   : > { %935 = vmatpush3.msra.mxu0 %v276_v28  ;;  %971 = vmatpush3.msra.mxu1 %v309_v29  ;;  %v837_v12 = vld [vmem:[%s1355_s7 + $0x20] sm:$0xff]  ;;  %v344_v16 = vld [vmem:[%s1668_s1 + $0x468] sm:$0xff]  ;;  %v342_v21 = vld [vmem:[%s1668_s1 + $0x458] sm:$0xff] }
  0x3f   : > { %936 = vmatprep.subr.mxu0 %v291_v30  ;;  %972 = vmatprep.subr.mxu1 %v324_v31  ;;  %v838_v18 = vld [vmem:[%s1355_s7 + $0x28] sm:$0xf]  ;;  %v343_v19 = vld [vmem:[%s1668_s1 + $0x460] sm:$0xff]  ;;  %v341_v22 = vld [vmem:[%s1668_s1 + $0x450] sm:$0xff] }
  0x40   : > { %937 = vmatpush3.msra.mxu0 %v275_v32  ;;  %973 = vmatpush3.msra.mxu1 %v308_v33  ;;  %v841_v20 = vld [vmem:[%s1355_s7 + $0x22] sm:$0xff]  ;;  %v338_v25 = vld [vmem:[%s1668_s1 + $0x438] sm:$0xff]  ;;  %v337_v26 = vld [vmem:[%s1668_s1 + $0x430] sm:$0xff] }
  0x41   : > { %938 = vmatprep.subr.mxu0 %v290_v34  ;;  %974 = vmatprep.subr.mxu1 %v323_v35  ;;  %v340_v23 = vld [vmem:[%s1668_s1 + $0x448] sm:$0xff]  ;;  %v339_v24 = vld [vmem:[%s1668_s1 + $0x440] sm:$0xff]  ;;  %v334_v29 = vld [vmem:[%s1668_s1 + $0x418] sm:$0xff] }
  0x42   : > { %939 = vmatpush3.msra.mxu0 %v274_v36  ;;  %975 = vmatpush3.msra.mxu1 %v307_v37  ;;  %v336_v27 = vld [vmem:[%s1668_s1 + $0x428] sm:$0xff]  ;;  %v335_v28 = vld [vmem:[%s1668_s1 + $0x420] sm:$0xff]  ;;  %v333_v30 = vld [vmem:[%s1668_s1 + $0x410] sm:$0xff] }
  0x43   : > { %940 = vmatprep.subr.mxu0 %v289_v38  ;;  %976 = vmatprep.subr.mxu1 %v322_v39  ;;  %v332_v31 = vld [vmem:[%s1668_s1 + $0x408] sm:$0xff]  ;;  %v331_v32 = vld [vmem:[%s1668_s1 + $0x400] sm:$0xff] }
  0x44   : > { %941 = vmatpush3.msra.mxu0 %v273_v40  ;;  %977 = vmatpush3.msra.mxu1 %v306_v41  ;;  %v842_v33 = vld [vmem:[%s1355_s7 + $0x2a] sm:$0xf] }
  0x45   : > { %942 = vmatprep.subr.mxu0 %v288_v42  ;;  %978 = vmatprep.subr.mxu1 %v321_v43 }
  0x46   : > { %943 = vmatpush3.msra.mxu0 %v272_v44  ;;  %979 = vmatpush3.msra.mxu1 %v305_v45 }
  0x47   : > { %944 = vmatprep.subr.mxu0 %v287_v46  ;;  %980 = vmatprep.subr.mxu1 %v320_v47 }
  0x48   : > { %945 = vmatpush3.msra.mxu0 %v271_v48  ;;  %981 = vmatpush3.msra.mxu1 %v304_v49  ;;  %v843_v49 = vld [vmem:[%s1669_s2] ss:$0 sm:$0xff] }
  0x49   : > { %946 = vmatprep.subr.mxu0 %v286_v50  ;;  %982 = vmatprep.subr.mxu1 %v319_v51 }
  0x4a   : > { %947 = vmatpush3.msra.mxu0 %v270_v52  ;;  %983 = vmatpush3.msra.mxu1 %v303_v53 }
  0x4b   : > { %423 = vmatprep.mubr.f32.mxu0 %v180_v54  ;;  %948 = vmatprep.subr.mxu0 %v285_v55 }
  0x4c   : > { %984 = vmatprep.subr.mxu1 %v318_v56  ;;  %424 = vmatmul.mubr.f32.gmra.mxu0 %v178_v57 }
  0x4d   : > { %985 = vmatpush3.msra.mxu1 %v302_v58  ;;  %949 = vmatpush3.msra.mxu0 %v269_v59 }
  0x4e   : > { %498 = vmatprep.mubr.f32.mxu1 %v831_v60  ;;  %950 = vmatprep.subr.mxu0 %v284_v61 }
  0x4f   : > { %986 = vmatprep.subr.mxu1 %v317_v62  ;;  %499 = vmatmul.mubr.f32.gmra.mxu1 %v182_v63 }
  0x50   : > { %951 = vmatpush3.msra.mxu0 %v268_v0  ;;  %987 = vmatpush3.msra.mxu1 %v301_v1 }
  0x51   : > { %952 = vmatprep.subr.mxu0 %v283_v2  ;;  %988 = vmatprep.subr.mxu1 %v316_v3 }
  0x52   : > { %953 = vmatpush3.msra.mxu0 %v267_v4  ;;  %568 = vmatprep.mubr.f32.mxu0 %v834_v5 }
  0x53   : > { %989 = vmatpush3.msra.mxu1 %v300_v6  ;;  %569 = vmatmul.mubr.f32.vlgmr.msra.gmra.mxu0 %v832_v7 }
  0x54   : > { %990 = vmatprep.subr.mxu1 %v315_v8  ;;  %1016 = vmatprep.subr.mxu0 %v346_v9 }
  0x55   : > { %991 = vmatpush3.msra.mxu1 %v299_v10  ;;  %643 = vmatprep.mubr.f32.mxu1 %v839_v11 }
  0x56   : > { %1017 = vmatpush3.msra.mxu0 %v346_v9  ;;  %644 = vmatmul.mubr.f32.vlgmr.msra.gmra.mxu1 %v837_v12 }
  0x57   : > { %1018 = vmatprep.subr.mxu0 %v345_v13  ;;  %573 = vmatprep.mubr.f32.mxu0 %v835_v14 }
  0x58   : > { %1019 = vmatpush3.msra.mxu0 %v345_v13  ;;  %648 = vmatprep.mubr.f32.mxu1 %v840_v17 }
  0x59   : > { %574 = vmatmul.mubr.f32.gmra.mxu0 %v833_v15  ;;  %1020 = vmatprep.subr.mxu0 %v344_v16 }
  0x5a   : > { %1021 = vmatpush3.msra.mxu0 %v344_v16  ;;  %649 = vmatmul.mubr.f32.gmra.mxu1 %v838_v18 }
  0x5b   : > { %1022 = vmatprep.subr.mxu0 %v343_v19  ;;  %1048 = vmatprep.mubr.f32.mxu0 %v841_v20 }
  0x5c   : > { %1023 = vmatpush3.msra.mxu0 %v343_v19 }
  0x5d   : > { %1024 = vmatprep.subr.mxu0 %v342_v21 }
  0x5e   : > { %1025 = vmatpush3.msra.mxu0 %v342_v21 }
  0x5f   : > { %1026 = vmatprep.subr.mxu0 %v341_v22 }
  0x60   : > { %1027 = vmatpush3.msra.mxu0 %v341_v22 }
  0x61   : > { %1028 = vmatprep.subr.mxu0 %v340_v23 }
  0x62   : > { %1029 = vmatpush3.msra.mxu0 %v340_v23 }
  0x63   : > { %1030 = vmatprep.subr.mxu0 %v339_v24 }
  0x64   : > { %1031 = vmatpush3.msra.mxu0 %v339_v24 }
  0x65   : > { %1032 = vmatprep.subr.mxu0 %v338_v25 }
  0x66   : > { %1033 = vmatpush3.msra.mxu0 %v338_v25 }
  0x67   : > { %1034 = vmatprep.subr.mxu0 %v337_v26 }
  0x68   : > { %1035 = vmatpush3.msra.mxu0 %v337_v26 }
  0x69   : > { %1036 = vmatprep.subr.mxu0 %v336_v27 }
  0x6a   : > { %1037 = vmatpush3.msra.mxu0 %v336_v27 }
  0x6b   : > { %1038 = vmatprep.subr.mxu0 %v335_v28 }
  0x6c   : > { %1039 = vmatpush3.msra.mxu0 %v335_v28 }
  0x6d   : > { %1040 = vmatprep.subr.mxu0 %v334_v29 }
  0x6e   : > { %1041 = vmatpush3.msra.mxu0 %v334_v29 }
  0x6f   : > { %1042 = vmatprep.subr.mxu0 %v333_v30 }
  0x70   : > { %1043 = vmatpush3.msra.mxu0 %v333_v30 }
  0x71   : > { %1044 = vmatprep.subr.mxu0 %v332_v31 }
  0x72   : > { %1045 = vmatpush3.msra.mxu0 %v332_v31 }
  0x73   : > { %1046 = vmatprep.subr.mxu0 %v331_v32 }
  0x74   : > { %1047 = vmatpush3.msra.mxu0 %v331_v32 }
  0x75   : > { %1049 = vmatmul.mubr.f32.vlgmr.msra.gmra.mxu0 %v842_v33 }
  0xef   : > { %v878_v34 = vpop.f32.mrf.mxu0 }
  0xf1   : > { %v879_v35 = vpop.f32.mrf.mxu0 }
  0xf2   : > { %v916_v36 = vpop.f32.mrf.mxu1  ;;  %v880_v48 = vadd.f32 %v879_v35, %v878_v34 }
  0xf4   : > { %v917_v38 = vpop.f32.mrf.mxu1  ;;  %v421_v54 = vadd.f32 %v880_v48, %v843_v49 }
  0xf5   : > { %v918_v55 = vadd.f32 %v917_v38, %v916_v36 }
  0xf7   : > { %v496_v60 = vadd.f32 %v918_v55, %v421_v54 }
 0x10c   : > { %v881_v37 = vpop.f32.mrf.mxu0 }
 0x10e   : > { %v882_v39 = vpop.f32.mrf.mxu0 }
 0x10f   : > { %v919_v40 = vpop.f32.mrf.mxu1  ;;  %v883_v47 = vadd.f32 %v882_v39, %v881_v37 }
 0x111   : > { %v920_v41 = vpop.f32.mrf.mxu1  ;;  %v426_v52 = vadd.f32 %v883_v47, %v843_v49 }
 0x112   : > { %v921_v53 = vadd.f32 %v920_v41, %v919_v40 }
 0x113   : > { %v954_v42 = vpop.f32.mrf.mxu0 }
 0x114   : > { %v501_v58 = vadd.f32 %v921_v53, %v426_v52 }
 0x115   : > { %v955_v43 = vpop.f32.mrf.mxu0 }
 0x116   : > { %v992_v44 = vpop.f32.mrf.mxu1  ;;  %v956_v59 = vadd.f32 %v955_v43, %v954_v42 }
 0x118   : > { %v993_v46 = vpop.f32.mrf.mxu1  ;;  %v571_v63 = vadd.f32 %v956_v59, %v496_v60 }
 0x119   : > { %v957_v45 = vpop.f32.mrf.mxu0  ;;  %v994_v0 = vadd.f32 %v993_v46, %v992_v44 }
 0x11a   : > { %v995_v51 = vpop.f32.mrf.mxu1 }
 0x11b   : > { %v958_v50 = vpop.f32.mrf.mxu0  ;;  %v646_v4 = vadd.f32 %v994_v0, %v571_v63 }
 0x11c   : > { %v959_v56 = vadd.f32 %v958_v50, %v957_v45  ;;  %v996_v57 = vpop.f32.mrf.mxu1 }
 0x11d   : > { %v997_v62 = vadd.f32 %v996_v57, %v995_v51 }
 0x11e   : > { %v576_v61 = vadd.f32 %v959_v56, %v501_v58 }
 0x120   : > { %v651_v1 = vadd.f32 %v997_v62, %v576_v61 }
 0x135   : > { %v1050_v2 = vpop.f32.mrf.mxu0 }
 0x136   : > { %v726_v3 = vadd.f32 %v1050_v2, %v651_v1 }
 0x137   : > { %v720_v5 = vpop.f32.mrf.mxu0 }
 0x138   : > { %v730_v6 = vmax.f32 %v726_v3, 0.0  ;;  %v721_v7 = vadd.f32 %v720_v5, %v646_v4 }
 0x13a   : > { %732 = vst [vmem:[%s172_s26 + $0x8] sm:$0xf] %v730_v6  ;;  %v729_v8 = vmax.f32 %v721_v7, 0.0 }
 0x13c   : > { %731 = vst [vmem:[%s172_s26] sm:$0xff] %v729_v8 }
 0x13d PF: > { %s13_s16 = sadd.s32 1, %s1129_s16   ;;  %s1671_s12 = smov %s1121_s14 }
 0x13e   : > { %p10_p7 = scmp.ge.s32.totalorder %s13_s16, 18   ;;  %s1672_s13 = smov %s1125_s15 }
 0x13f   : > { %s1673_s14 = smov %s1676_s17  ;;  %s1674_s15 = smov %s1680_s18 }
 0x140   :  { %12 = sbr.rel (!%p10_p7) target bundleno = 3 (0x3), region = 62 }

// kernel: nn_forward.17
= control target key start
LH: loop header
LB: loop body
LE: loop exit
PB: predicated region body
PF: predicated region fallthrough
CT: control target
= control target key end

     0   :  { %10 = vsyncpa [#allocation4], 0  ;;  %s1839_s18 = smov 0   ;;  %s2586_s0 = inlined_call_operand.vmem [shape: f32[2,4480], index: 0, kind: input, shape index: {}]   ;;  %s2587_s1 = inlined_call_operand.vmem [shape: f32[4480,512], index: 1, kind: input, shape index: {}]   ;;  %s2588_s2 = inlined_call_operand.vmem [shape: f32[1,512], index: 2, kind: input, shape index: {}]   ;;  %s2589_s3 = inlined_call_operand.vmem [shape: f32[512,2], index: 3, kind: input, shape index: {}]   ;;  %s2590_s4 = inlined_call_operand.vmem [shape: f32[1,2], index: 4, kind: input, shape index: {}]   ;;  %s2591_s5 = inlined_call_operand.hbm [shape: f32[2,2], index: 5, kind: output, shape index: {}]  }
   0x1 LB: > { %s1845_s19 = sadd.s32 4294967295, %s1803_s18   ;;  %p1667_p0 = scmp.ge.s32.totalorder %s1803_s18, 1  ;;  %s1803_s18 = sphi %s1839_s18, %s16_s18  }
   0x2   : > { %p196_p1 = scmp.lt.s32.totalorder %s1803_s18, 6 }
   0x4   : > { %p197_p2 = pnand %p1667_p0, %p196_p1 }
   0x5   : > { %s225_s20 = smul.u32 (!%p197_p2), 7, %s1845_s19  ;;  %p1671_p5 = scmp.ne.s32.totalorder (!%p197_p2), %s1845_s19, 0 }
   0x6   : > { %200 = sbr.rel (%p197_p2) target bundleno = 713 (0x2c9), region = 40 }
   0x7   : > { %s231_s21 = smul.u32 (!%p197_p2), 112, %s1845_s19  ;;  %p226_p3 = scmp.lt.s32.totalorder (!%p197_p2), %s225_s20, 34 }
   0x9   : > { %p232_p4 = scmp.lt.s32.totalorder (!%p197_p2), %s231_s21, 559 }
   0xb   : > { %s2593_s20 = smov (!%p226_p3, %s225_s20), 34  ;;  %s2595_s21 = smov (!%p232_p4, %s231_s21), 559 }
   0xc   : > { %s1668_s22 = sshll.u32 %s2593_s20, 1  ;;  %s1678_s26 = sshll.u32 %s2595_s21, 5 }
   0xd   : > { %s1854_s25 = scalar_lea.vmem %s2586_s0, %s1668_s22  ;;  %s1859_s29 = scalar_lea.vmem %s2587_s1, %s1678_s26 }
   0xe   : > { %241 = sbr.rel (%p1671_p5) target bundleno = 21 (0x15), region = 44 }
  0x13   : > { %v1805_v0 = vmov 0.0  }
  0x14   : > { %242 = vst [vmem:[#allocation2] sm:$0xff] %v1805_v0 }
  0x15 PF: > { %v307_v1 = vld [vmem:[%s1859_s29 + $0x1e8] sm:$0xff]  ;;  %v306_v3 = vld [vmem:[%s1859_s29 + $0x1e0] sm:$0xff]  ;;  %p1672_p6 = scmp.ne.s32.totalorder %s1845_s19, 4 }
  0x16   : > { %v435_v2 = vld [vmem:[%s1859_s29 + $0x5e8] sm:$0xff]  ;;  %736 = vmatprep.subr.mxu0 %v307_v1  ;;  %v434_v4 = vld [vmem:[%s1859_s29 + $0x5e0] sm:$0xff] }
  0x17   : > { %807 = vmatprep.subr.mxu1 %v435_v2  ;;  %v303_v5 = vld [vmem:[%s1859_s29 + $0x1c8] sm:$0xff]  ;;  %737 = vmatpush1.msra.mxu0 %v306_v3  ;;  %v302_v7 = vld [vmem:[%s1859_s29 + $0x1c0] sm:$0xff] }
  0x18   : > { %v431_v6 = vld [vmem:[%s1859_s29 + $0x5c8] sm:$0xff]  ;;  %808 = vmatpush1.msra.mxu1 %v434_v4  ;;  %v430_v8 = vld [vmem:[%s1859_s29 + $0x5c0] sm:$0xff]  ;;  %738 = vmatprep.subr.mxu0 %v303_v5 }
  0x19   : > { %v299_v9 = vld [vmem:[%s1859_s29 + $0x1a8] sm:$0xff]  ;;  %809 = vmatprep.subr.mxu1 %v431_v6  ;;  %v298_v11 = vld [vmem:[%s1859_s29 + $0x1a0] sm:$0xff]  ;;  %739 = vmatpush1.msra.mxu0 %v302_v7 }
  0x1a   : > { %v427_v10 = vld [vmem:[%s1859_s29 + $0x5a8] sm:$0xff]  ;;  %v426_v12 = vld [vmem:[%s1859_s29 + $0x5a0] sm:$0xff]  ;;  %810 = vmatpush1.msra.mxu1 %v430_v8  ;;  %740 = vmatprep.subr.mxu0 %v299_v9 }
  0x1b   : > { %v295_v13 = vld [vmem:[%s1859_s29 + $0x188] sm:$0xff]  ;;  %811 = vmatprep.subr.mxu1 %v427_v10  ;;  %v294_v15 = vld [vmem:[%s1859_s29 + $0x180] sm:$0xff]  ;;  %741 = vmatpush1.msra.mxu0 %v298_v11 }
  0x1c   : > { %v423_v14 = vld [vmem:[%s1859_s29 + $0x588] sm:$0xff]  ;;  %v422_v16 = vld [vmem:[%s1859_s29 + $0x580] sm:$0xff]  ;;  %812 = vmatpush1.msra.mxu1 %v426_v12  ;;  %742 = vmatprep.subr.mxu0 %v295_v13 }
  0x1d   : > { %v291_v17 = vld [vmem:[%s1859_s29 + $0x168] sm:$0xff]  ;;  %813 = vmatprep.subr.mxu1 %v423_v14  ;;  %v290_v19 = vld [vmem:[%s1859_s29 + $0x160] sm:$0xff]  ;;  %743 = vmatpush1.msra.mxu0 %v294_v15 }
  0x1e   : > { %v419_v18 = vld [vmem:[%s1859_s29 + $0x568] sm:$0xff]  ;;  %v418_v20 = vld [vmem:[%s1859_s29 + $0x560] sm:$0xff]  ;;  %814 = vmatpush1.msra.mxu1 %v422_v16  ;;  %744 = vmatprep.subr.mxu0 %v291_v17 }
  0x1f   : > { %v287_v21 = vld [vmem:[%s1859_s29 + $0x148] sm:$0xff]  ;;  %815 = vmatprep.subr.mxu1 %v419_v18  ;;  %v286_v23 = vld [vmem:[%s1859_s29 + $0x140] sm:$0xff]  ;;  %745 = vmatpush1.msra.mxu0 %v290_v19 }
  0x20   : > { %v415_v22 = vld [vmem:[%s1859_s29 + $0x548] sm:$0xff]  ;;  %v414_v24 = vld [vmem:[%s1859_s29 + $0x540] sm:$0xff]  ;;  %816 = vmatpush1.msra.mxu1 %v418_v20  ;;  %746 = vmatprep.subr.mxu0 %v287_v21 }
  0x21   : > { %v283_v25 = vld [vmem:[%s1859_s29 + $0x128] sm:$0xff]  ;;  %817 = vmatprep.subr.mxu1 %v415_v22  ;;  %v282_v27 = vld [vmem:[%s1859_s29 + $0x120] sm:$0xff]  ;;  %747 = vmatpush1.msra.mxu0 %v286_v23 }
  0x22   : > { %v411_v26 = vld [vmem:[%s1859_s29 + $0x528] sm:$0xff]  ;;  %v410_v28 = vld [vmem:[%s1859_s29 + $0x520] sm:$0xff]  ;;  %818 = vmatpush1.msra.mxu1 %v414_v24  ;;  %748 = vmatprep.subr.mxu0 %v283_v25 }
  0x23   : > { %v279_v29 = vld [vmem:[%s1859_s29 + $0x108] sm:$0xff]  ;;  %819 = vmatprep.subr.mxu1 %v411_v26  ;;  %v278_v31 = vld [vmem:[%s1859_s29 + $0x100] sm:$0xff]  ;;  %749 = vmatpush1.msra.mxu0 %v282_v27 }
  0x24   : > { %v407_v30 = vld [vmem:[%s1859_s29 + $0x508] sm:$0xff]  ;;  %v406_v32 = vld [vmem:[%s1859_s29 + $0x500] sm:$0xff]  ;;  %820 = vmatpush1.msra.mxu1 %v410_v28  ;;  %750 = vmatprep.subr.mxu0 %v279_v29 }
  0x25   : > { %v275_v33 = vld [vmem:[%s1859_s29 + $0xe8] sm:$0xff]  ;;  %821 = vmatprep.subr.mxu1 %v407_v30  ;;  %v274_v35 = vld [vmem:[%s1859_s29 + $0xe0] sm:$0xff]  ;;  %751 = vmatpush1.msra.mxu0 %v278_v31  ;;  %v1806_v31 = vmov 1983009808  }
  0x26   : > { %v403_v34 = vld [vmem:[%s1859_s29 + $0x4e8] sm:$0xff]  ;;  %v402_v36 = vld [vmem:[%s1859_s29 + $0x4e0] sm:$0xff]  ;;  %822 = vmatpush1.msra.mxu1 %v406_v32  ;;  %752 = vmatprep.subr.mxu0 %v275_v33  ;;  %v698_v32 = vunpack.c.l.s4 %v1806_v31  ;;  %v700_v33 = vlaneseq }
  0x27   : > { %v271_v37 = vld [vmem:[%s1859_s29 + $0xc8] sm:$0xff]  ;;  %823 = vmatprep.subr.mxu1 %v403_v34  ;;  %v270_v39 = vld [vmem:[%s1859_s29 + $0xc0] sm:$0xff]  ;;  %753 = vmatpush1.msra.mxu0 %v274_v35 }
  0x28   : > { %v399_v38 = vld [vmem:[%s1859_s29 + $0x4c8] sm:$0xff]  ;;  %v398_v40 = vld [vmem:[%s1859_s29 + $0x4c0] sm:$0xff]  ;;  %824 = vmatpush1.msra.mxu1 %v402_v36  ;;  %754 = vmatprep.subr.mxu0 %v271_v37 }
  0x29   : > { %v267_v41 = vld [vmem:[%s1859_s29 + $0xa8] sm:$0xff]  ;;  %825 = vmatprep.subr.mxu1 %v399_v38  ;;  %v266_v43 = vld [vmem:[%s1859_s29 + $0xa0] sm:$0xff]  ;;  %755 = vmatpush1.msra.mxu0 %v270_v39 }
  0x2a   : > { %v395_v42 = vld [vmem:[%s1859_s29 + $0x4a8] sm:$0xff]  ;;  %v394_v44 = vld [vmem:[%s1859_s29 + $0x4a0] sm:$0xff]  ;;  %826 = vmatpush1.msra.mxu1 %v398_v40  ;;  %756 = vmatprep.subr.mxu0 %v267_v41 }
  0x2b   : > { %v263_v45 = vld [vmem:[%s1859_s29 + $0x88] sm:$0xff]  ;;  %827 = vmatprep.subr.mxu1 %v395_v42  ;;  %v262_v47 = vld [vmem:[%s1859_s29 + $0x80] sm:$0xff]  ;;  %757 = vmatpush1.msra.mxu0 %v266_v43  ;;  %v699_v42 = vunpack.c.0.s8 %v698_v32  ;;  %v1964_v43 = vshrl.u32 %v700_v33, 7 }
  0x2c   : > { %v391_v46 = vld [vmem:[%s1859_s29 + $0x488] sm:$0xff]  ;;  %v390_v48 = vld [vmem:[%s1859_s29 + $0x480] sm:$0xff]  ;;  %828 = vmatpush1.msra.mxu1 %v394_v44  ;;  %758 = vmatprep.subr.mxu0 %v263_v45 }
  0x2d   : > { %v259_v49 = vld [vmem:[%s1859_s29 + $0x68] sm:$0xff]  ;;  %829 = vmatprep.subr.mxu1 %v391_v46  ;;  %v258_v51 = vld [vmem:[%s1859_s29 + $0x60] sm:$0xff]  ;;  %759 = vmatpush1.msra.mxu0 %v262_v47 }
  0x2e   : > { %v387_v50 = vld [vmem:[%s1859_s29 + $0x468] sm:$0xff]  ;;  %v386_v52 = vld [vmem:[%s1859_s29 + $0x460] sm:$0xff]  ;;  %830 = vmatpush1.msra.mxu1 %v390_v48  ;;  %760 = vmatprep.subr.mxu0 %v259_v49 }
  0x2f   : > { %v255_v53 = vld [vmem:[%s1859_s29 + $0x48] sm:$0xff]  ;;  %831 = vmatprep.subr.mxu1 %v387_v50  ;;  %v254_v55 = vld [vmem:[%s1859_s29 + $0x40] sm:$0xff]  ;;  %761 = vmatpush1.msra.mxu0 %v258_v51 }
  0x30   : > { %v383_v54 = vld [vmem:[%s1859_s29 + $0x448] sm:$0xff]  ;;  %v382_v56 = vld [vmem:[%s1859_s29 + $0x440] sm:$0xff]  ;;  %832 = vmatpush1.msra.mxu1 %v386_v52  ;;  %762 = vmatprep.subr.mxu0 %v255_v53  ;;  %v1976_v53 = vsub.s32 %v699_v42, %v1964_v43 }
  0x31   : > { %v251_v57 = vld [vmem:[%s1859_s29 + $0x28] sm:$0xff]  ;;  %833 = vmatprep.subr.mxu1 %v383_v54  ;;  %v250_v59 = vld [vmem:[%s1859_s29 + $0x20] sm:$0xff]  ;;  %763 = vmatpush1.msra.mxu0 %v254_v55 }
  0x32   : > { %v379_v58 = vld [vmem:[%s1859_s29 + $0x428] sm:$0xff]  ;;  %v378_v60 = vld [vmem:[%s1859_s29 + $0x420] sm:$0xff]  ;;  %834 = vmatpush1.msra.mxu1 %v382_v56  ;;  %764 = vmatprep.subr.mxu0 %v251_v57 }
  0x33   : > { %v247_v61 = vld [vmem:[%s1859_s29 + $0x8] sm:$0xff]  ;;  %835 = vmatprep.subr.mxu1 %v379_v58  ;;  %v246_v63 = vld [vmem:[%s1859_s29] sm:$0xff]  ;;  %765 = vmatpush1.msra.mxu0 %v250_v59 }
  0x34   : > { %v375_v62 = vld [vmem:[%s1859_s29 + $0x408] sm:$0xff]  ;;  %v374_v0 = vld [vmem:[%s1859_s29 + $0x400] sm:$0xff]  ;;  %836 = vmatpush1.msra.mxu1 %v378_v60  ;;  %766 = vmatprep.subr.mxu0 %v247_v61 }
  0x35   : > { %v371_v1 = vld [vmem:[%s1859_s29 + $0x3e8] sm:$0xff]  ;;  %837 = vmatprep.subr.mxu1 %v375_v62  ;;  %v370_v3 = vld [vmem:[%s1859_s29 + $0x3e0] sm:$0xff]  ;;  %767 = vmatpush1.msra.mxu0 %v246_v63 }
  0x36   : > { %v499_v2 = vld [vmem:[%s1859_s29 + $0x7e8] sm:$0xff]  ;;  %v498_v4 = vld [vmem:[%s1859_s29 + $0x7e0] sm:$0xff]  ;;  %838 = vmatpush1.msra.mxu1 %v374_v0  ;;  %768 = vmatprep.subr.mxu0 %v371_v1 }
  0x37   : > { %v367_v5 = vld [vmem:[%s1859_s29 + $0x3c8] sm:$0xff]  ;;  %839 = vmatprep.subr.mxu1 %v499_v2  ;;  %v366_v7 = vld [vmem:[%s1859_s29 + $0x3c0] sm:$0xff]  ;;  %769 = vmatpush2.msra.mxu0 %v370_v3 }
  0x38   : > { %v495_v6 = vld [vmem:[%s1859_s29 + $0x7c8] sm:$0xff]  ;;  %v494_v8 = vld [vmem:[%s1859_s29 + $0x7c0] sm:$0xff]  ;;  %840 = vmatpush2.msra.mxu1 %v498_v4  ;;  %770 = vmatprep.subr.mxu0 %v367_v5 }
  0x39   : > { %v363_v9 = vld [vmem:[%s1859_s29 + $0x3a8] sm:$0xff]  ;;  %841 = vmatprep.subr.mxu1 %v495_v6  ;;  %v362_v11 = vld [vmem:[%s1859_s29 + $0x3a0] sm:$0xff]  ;;  %771 = vmatpush2.msra.mxu0 %v366_v7 }
  0x3a   : > { %v491_v10 = vld [vmem:[%s1859_s29 + $0x7a8] sm:$0xff]  ;;  %v490_v12 = vld [vmem:[%s1859_s29 + $0x7a0] sm:$0xff]  ;;  %842 = vmatpush2.msra.mxu1 %v494_v8  ;;  %772 = vmatprep.subr.mxu0 %v363_v9 }
  0x3b   : > { %v359_v13 = vld [vmem:[%s1859_s29 + $0x388] sm:$0xff]  ;;  %843 = vmatprep.subr.mxu1 %v491_v10  ;;  %v358_v15 = vld [vmem:[%s1859_s29 + $0x380] sm:$0xff]  ;;  %773 = vmatpush2.msra.mxu0 %v362_v11 }
  0x3c   : > { %v487_v14 = vld [vmem:[%s1859_s29 + $0x788] sm:$0xff]  ;;  %v486_v16 = vld [vmem:[%s1859_s29 + $0x780] sm:$0xff]  ;;  %844 = vmatpush2.msra.mxu1 %v490_v12  ;;  %774 = vmatprep.subr.mxu0 %v359_v13 }
  0x3d   : > { %v355_v17 = vld [vmem:[%s1859_s29 + $0x368] sm:$0xff]  ;;  %845 = vmatprep.subr.mxu1 %v487_v14  ;;  %v354_v19 = vld [vmem:[%s1859_s29 + $0x360] sm:$0xff]  ;;  %775 = vmatpush2.msra.mxu0 %v358_v15 }
  0x3e   : > { %v483_v18 = vld [vmem:[%s1859_s29 + $0x768] sm:$0xff]  ;;  %v482_v20 = vld [vmem:[%s1859_s29 + $0x760] sm:$0xff]  ;;  %846 = vmatpush2.msra.mxu1 %v486_v16  ;;  %776 = vmatprep.subr.mxu0 %v355_v17 }
  0x3f   : > { %v351_v21 = vld [vmem:[%s1859_s29 + $0x348] sm:$0xff]  ;;  %847 = vmatprep.subr.mxu1 %v483_v18  ;;  %v350_v23 = vld [vmem:[%s1859_s29 + $0x340] sm:$0xff]  ;;  %777 = vmatpush2.msra.mxu0 %v354_v19 }
  0x40   : > { %v479_v22 = vld [vmem:[%s1859_s29 + $0x748] sm:$0xff]  ;;  %v478_v24 = vld [vmem:[%s1859_s29 + $0x740] sm:$0xff]  ;;  %848 = vmatpush2.msra.mxu1 %v482_v20  ;;  %778 = vmatprep.subr.mxu0 %v351_v21 }
  0x41   : > { %v347_v25 = vld [vmem:[%s1859_s29 + $0x328] sm:$0xff]  ;;  %849 = vmatprep.subr.mxu1 %v479_v22  ;;  %v346_v27 = vld [vmem:[%s1859_s29 + $0x320] sm:$0xff]  ;;  %779 = vmatpush2.msra.mxu0 %v350_v23 }
  0x42   : > { %v475_v26 = vld [vmem:[%s1859_s29 + $0x728] sm:$0xff]  ;;  %v474_v28 = vld [vmem:[%s1859_s29 + $0x720] sm:$0xff]  ;;  %850 = vmatpush2.msra.mxu1 %v478_v24  ;;  %780 = vmatprep.subr.mxu0 %v347_v25 }
  0x43   : > { %v343_v29 = vld [vmem:[%s1859_s29 + $0x308] sm:$0xff]  ;;  %851 = vmatprep.subr.mxu1 %v475_v26  ;;  %v342_v34 = vld [vmem:[%s1859_s29 + $0x300] sm:$0xff]  ;;  %781 = vmatpush2.msra.mxu0 %v346_v27 }
  0x44   : > { %v471_v30 = vld [vmem:[%s1859_s29 + $0x708] sm:$0xff]  ;;  %v470_v35 = vld [vmem:[%s1859_s29 + $0x700] sm:$0xff]  ;;  %852 = vmatpush2.msra.mxu1 %v474_v28  ;;  %782 = vmatprep.subr.mxu0 %v343_v29 }
  0x45   : > { %v339_v36 = vld [vmem:[%s1859_s29 + $0x2e8] sm:$0xff]  ;;  %853 = vmatprep.subr.mxu1 %v471_v30  ;;  %v338_v38 = vld [vmem:[%s1859_s29 + $0x2e0] sm:$0xff]  ;;  %783 = vmatpush2.msra.mxu0 %v342_v34 }
  0x46   : > { %v467_v37 = vld [vmem:[%s1859_s29 + $0x6e8] sm:$0xff]  ;;  %v466_v39 = vld [vmem:[%s1859_s29 + $0x6e0] sm:$0xff]  ;;  %854 = vmatpush2.msra.mxu1 %v470_v35  ;;  %784 = vmatprep.subr.mxu0 %v339_v36 }
  0x47   : > { %v335_v40 = vld [vmem:[%s1859_s29 + $0x2c8] sm:$0xff]  ;;  %855 = vmatprep.subr.mxu1 %v467_v37  ;;  %v334_v44 = vld [vmem:[%s1859_s29 + $0x2c0] sm:$0xff]  ;;  %785 = vmatpush2.msra.mxu0 %v338_v38 }
  0x48   : > { %v463_v41 = vld [vmem:[%s1859_s29 + $0x6c8] sm:$0xff]  ;;  %v462_v45 = vld [vmem:[%s1859_s29 + $0x6c0] sm:$0xff]  ;;  %856 = vmatpush2.msra.mxu1 %v466_v39  ;;  %786 = vmatprep.subr.mxu0 %v335_v40 }
  0x49   : > { %v331_v46 = vld [vmem:[%s1859_s29 + $0x2a8] sm:$0xff]  ;;  %v244_v48 = vld [vmem:[%s1854_s25] sm:$0xff]  ;;  %857 = vmatprep.subr.mxu1 %v463_v41  ;;  %787 = vmatpush2.msra.mxu0 %v334_v44 }
  0x4a   : > { %v459_v47 = vld [vmem:[%s1859_s29 + $0x6a8] sm:$0xff]  ;;  %v330_v49 = vld [vmem:[%s1859_s29 + $0x2a0] sm:$0xff]  ;;  %858 = vmatpush2.msra.mxu1 %v462_v45  ;;  %788 = vmatprep.subr.mxu0 %v331_v46  ;;  %v696_v56 = vcombine.high %v244_v48, %v244_v48  ;;  %v1987_v63 = vrot.slane %v244_v48, %v1976_v53 }
  0x4b   : > { %v458_v50 = vld [vmem:[%s1859_s29 + $0x6a0] sm:$0xff]  ;;  %v327_v51 = vld [vmem:[%s1859_s29 + $0x288] sm:$0xff]  ;;  %859 = vmatprep.subr.mxu1 %v459_v47  ;;  %789 = vmatpush2.msra.mxu0 %v330_v49 }
  0x4c   : > { %v455_v52 = vld [vmem:[%s1859_s29 + $0x688] sm:$0xff]  ;;  %v326_v54 = vld [vmem:[%s1859_s29 + $0x280] sm:$0xff]  ;;  %860 = vmatpush2.msra.mxu1 %v458_v50  ;;  %790 = vmatprep.subr.mxu0 %v327_v51  ;;  %v1992_v2 = vrot.slane %v696_v56, %v1976_v53  ;;  %v2002_v9 = vcombine.high %v1987_v63, %v1987_v63 }
  0x4d   : > { %v454_v55 = vld [vmem:[%s1859_s29 + $0x680] sm:$0xff]  ;;  %v323_v57 = vld [vmem:[%s1859_s29 + $0x268] sm:$0xff]  ;;  %861 = vmatprep.subr.mxu1 %v455_v52  ;;  %791 = vmatpush2.msra.mxu0 %v326_v54 }
  0x4e   : > { %v451_v58 = vld [vmem:[%s1859_s29 + $0x668] sm:$0xff]  ;;  %v322_v59 = vld [vmem:[%s1859_s29 + $0x260] sm:$0xff]  ;;  %862 = vmatpush2.msra.mxu1 %v454_v55  ;;  %792 = vmatprep.subr.mxu0 %v323_v57  ;;  %v2007_v11 = vcombine.high %v1992_v2, %v1992_v2 }
  0x4f   : > { %v450_v60 = vld [vmem:[%s1859_s29 + $0x660] sm:$0xff]  ;;  %v319_v61 = vld [vmem:[%s1859_s29 + $0x248] sm:$0xff]  ;;  %863 = vmatprep.subr.mxu1 %v451_v58  ;;  %793 = vmatpush2.msra.mxu0 %v322_v59 }
  0x50   : > { %v447_v62 = vld [vmem:[%s1859_s29 + $0x648] sm:$0xff]  ;;  %v318_v0 = vld [vmem:[%s1859_s29 + $0x240] sm:$0xff]  ;;  %864 = vmatpush2.msra.mxu1 %v450_v60  ;;  %794 = vmatprep.subr.mxu0 %v319_v61 }
  0x51   : > { %v446_v1 = vld [vmem:[%s1859_s29 + $0x640] sm:$0xff]  ;;  %v315_v3 = vld [vmem:[%s1859_s29 + $0x228] sm:$0xff]  ;;  %865 = vmatprep.subr.mxu1 %v447_v62  ;;  %795 = vmatpush2.msra.mxu0 %v318_v0 }
  0x52   : > { %v443_v4 = vld [vmem:[%s1859_s29 + $0x628] sm:$0xff]  ;;  %v314_v5 = vld [vmem:[%s1859_s29 + $0x220] sm:$0xff]  ;;  %866 = vmatpush2.msra.mxu1 %v446_v1  ;;  %796 = vmatprep.subr.mxu0 %v315_v3 }
  0x53   : > { %v442_v6 = vld [vmem:[%s1859_s29 + $0x620] sm:$0xff]  ;;  %v311_v7 = vld [vmem:[%s1859_s29 + $0x208] sm:$0xff]  ;;  %867 = vmatprep.subr.mxu1 %v443_v4  ;;  %797 = vmatpush2.msra.mxu0 %v314_v5 }
  0x54   : > { %v439_v8 = vld [vmem:[%s1859_s29 + $0x608] sm:$0xff]  ;;  %v310_v10 = vld [vmem:[%s1859_s29 + $0x200] sm:$0xff]  ;;  %868 = vmatpush2.msra.mxu1 %v442_v6  ;;  %798 = vmatprep.subr.mxu0 %v311_v7 }
  0x55   : > { %v438_v12 = vld [vmem:[%s1859_s29 + $0x600] sm:$0xff]  ;;  %869 = vmatprep.subr.mxu1 %v439_v8  ;;  %799 = vmatpush2.msra.mxu0 %v310_v10  ;;  %v563_v13 = vld [vmem:[%s1859_s29 + $0x9e8] sm:$0xff] }
  0x56   : > { %800 = vmatprep.mubr.f32.mxu0 %v2002_v9  ;;  %v691_v14 = vld [vmem:[%s1859_s29 + $0xde8] sm:$0xff]  ;;  %870 = vmatpush2.msra.mxu1 %v438_v12  ;;  %v562_v15 = vld [vmem:[%s1859_s29 + $0x9e0] sm:$0xff] }
  0x57   : > { %871 = vmatprep.mubr.f32.mxu1 %v2007_v11  ;;  %v690_v16 = vld [vmem:[%s1859_s29 + $0xde0] sm:$0xff]  ;;  %801 = vmatmul.mubr.f32.vlgmr.msra.gmra.mxu0 %v1987_v63  ;;  %v559_v17 = vld [vmem:[%s1859_s29 + $0x9c8] sm:$0xff] }
  0x58   : > { %872 = vmatmul.mubr.f32.vlgmr.msra.gmra.mxu1 %v1992_v2  ;;  %v687_v18 = vld [vmem:[%s1859_s29 + $0xdc8] sm:$0xff]  ;;  %878 = vmatprep.subr.mxu0 %v563_v13  ;;  %v558_v19 = vld [vmem:[%s1859_s29 + $0x9c0] sm:$0xff] }
  0x59   : > { %949 = vmatprep.subr.mxu1 %v691_v14  ;;  %v686_v20 = vld [vmem:[%s1859_s29 + $0xdc0] sm:$0xff]  ;;  %879 = vmatpush1.msra.mxu0 %v562_v15  ;;  %v555_v21 = vld [vmem:[%s1859_s29 + $0x9a8] sm:$0xff] }
  0x5a   : > { %950 = vmatpush1.msra.mxu1 %v690_v16  ;;  %v683_v22 = vld [vmem:[%s1859_s29 + $0xda8] sm:$0xff]  ;;  %880 = vmatprep.subr.mxu0 %v559_v17  ;;  %v554_v23 = vld [vmem:[%s1859_s29 + $0x9a0] sm:$0xff] }
  0x5b   : > { %951 = vmatprep.subr.mxu1 %v687_v18  ;;  %v682_v24 = vld [vmem:[%s1859_s29 + $0xda0] sm:$0xff]  ;;  %881 = vmatpush1.msra.mxu0 %v558_v19  ;;  %v551_v25 = vld [vmem:[%s1859_s29 + $0x988] sm:$0xff] }
  0x5c   : > { %952 = vmatpush1.msra.mxu1 %v686_v20  ;;  %v679_v26 = vld [vmem:[%s1859_s29 + $0xd88] sm:$0xff]  ;;  %882 = vmatprep.subr.mxu0 %v555_v21  ;;  %v550_v27 = vld [vmem:[%s1859_s29 + $0x980] sm:$0xff] }
  0x5d   : > { %953 = vmatprep.subr.mxu1 %v683_v22  ;;  %v678_v28 = vld [vmem:[%s1859_s29 + $0xd80] sm:$0xff]  ;;  %883 = vmatpush1.msra.mxu0 %v554_v23  ;;  %v547_v29 = vld [vmem:[%s1859_s29 + $0x968] sm:$0xff]  ;;  %v309_v23 = vld [vmem:[%s1859_s29 + $0x1f8] sm:$0xff] }
  0x5e   : > { %954 = vmatpush1.msra.mxu1 %v682_v24  ;;  %v675_v30 = vld [vmem:[%s1859_s29 + $0xd68] sm:$0xff]  ;;  %884 = vmatprep.subr.mxu0 %v551_v25  ;;  %v546_v31 = vld [vmem:[%s1859_s29 + $0x960] sm:$0xff]  ;;  %v308_v25 = vld [vmem:[%s1859_s29 + $0x1f0] sm:$0xff] }
  0x5f   : > { %955 = vmatprep.subr.mxu1 %v679_v26  ;;  %v674_v32 = vld [vmem:[%s1859_s29 + $0xd60] sm:$0xff]  ;;  %885 = vmatpush1.msra.mxu0 %v550_v27  ;;  %v543_v33 = vld [vmem:[%s1859_s29 + $0x948] sm:$0xff]  ;;  %v1807_v26 = vmov 0.0  }
  0x60   : > { %956 = vmatpush1.msra.mxu1 %v678_v28  ;;  %v671_v34 = vld [vmem:[%s1859_s29 + $0xd48] sm:$0xff]  ;;  %886 = vmatprep.subr.mxu0 %v547_v29  ;;  %v542_v35 = vld [vmem:[%s1859_s29 + $0x940] sm:$0xff]  ;;  %v305_v28 = vld [vmem:[%s1859_s29 + $0x1d8] sm:$0xff] }
  0x61   : > { %957 = vmatprep.subr.mxu1 %v675_v30  ;;  %v670_v36 = vld [vmem:[%s1859_s29 + $0xd40] sm:$0xff]  ;;  %887 = vmatpush1.msra.mxu0 %v546_v31  ;;  %v539_v37 = vld [vmem:[%s1859_s29 + $0x928] sm:$0xff]  ;;  %v304_v30 = vld [vmem:[%s1859_s29 + $0x1d0] sm:$0xff] }
  0x62   : > { %958 = vmatpush1.msra.mxu1 %v674_v32  ;;  %v667_v38 = vld [vmem:[%s1859_s29 + $0xd28] sm:$0xff]  ;;  %888 = vmatprep.subr.mxu0 %v543_v33  ;;  %v538_v39 = vld [vmem:[%s1859_s29 + $0x920] sm:$0xff]  ;;  %v301_v32 = vld [vmem:[%s1859_s29 + $0x1b8] sm:$0xff] }
  0x63   : > { %959 = vmatprep.subr.mxu1 %v671_v34  ;;  %v666_v40 = vld [vmem:[%s1859_s29 + $0xd20] sm:$0xff]  ;;  %889 = vmatpush1.msra.mxu0 %v542_v35  ;;  %v535_v41 = vld [vmem:[%s1859_s29 + $0x908] sm:$0xff]  ;;  %v300_v34 = vld [vmem:[%s1859_s29 + $0x1b0] sm:$0xff] }
  0x64   : > { %960 = vmatpush1.msra.mxu1 %v670_v36  ;;  %v663_v42 = vld [vmem:[%s1859_s29 + $0xd08] sm:$0xff]  ;;  %890 = vmatprep.subr.mxu0 %v539_v37  ;;  %v534_v44 = vld [vmem:[%s1859_s29 + $0x900] sm:$0xff]  ;;  %v297_v36 = vld [vmem:[%s1859_s29 + $0x198] sm:$0xff] }
  0x65   : > { %961 = vmatprep.subr.mxu1 %v667_v38  ;;  %v662_v45 = vld [vmem:[%s1859_s29 + $0xd00] sm:$0xff]  ;;  %891 = vmatpush1.msra.mxu0 %v538_v39  ;;  %v531_v46 = vld [vmem:[%s1859_s29 + $0x8e8] sm:$0xff]  ;;  %v296_v38 = vld [vmem:[%s1859_s29 + $0x190] sm:$0xff] }
  0x66   : > { %962 = vmatpush1.msra.mxu1 %v666_v40  ;;  %v659_v47 = vld [vmem:[%s1859_s29 + $0xce8] sm:$0xff]  ;;  %892 = vmatprep.subr.mxu0 %v535_v41  ;;  %v530_v48 = vld [vmem:[%s1859_s29 + $0x8e0] sm:$0xff]  ;;  %v293_v40 = vld [vmem:[%s1859_s29 + $0x178] sm:$0xff] }
  0x67   : > { %963 = vmatprep.subr.mxu1 %v663_v42  ;;  %v658_v49 = vld [vmem:[%s1859_s29 + $0xce0] sm:$0xff]  ;;  %893 = vmatpush1.msra.mxu0 %v534_v44  ;;  %v527_v50 = vld [vmem:[%s1859_s29 + $0x8c8] sm:$0xff]  ;;  %v292_v42 = vld [vmem:[%s1859_s29 + $0x170] sm:$0xff] }
  0x68   : > { %964 = vmatpush1.msra.mxu1 %v662_v45  ;;  %v655_v51 = vld [vmem:[%s1859_s29 + $0xcc8] sm:$0xff]  ;;  %894 = vmatprep.subr.mxu0 %v531_v46  ;;  %v526_v52 = vld [vmem:[%s1859_s29 + $0x8c0] sm:$0xff]  ;;  %v289_v45 = vld [vmem:[%s1859_s29 + $0x158] sm:$0xff] }
  0x69   : > { %965 = vmatprep.subr.mxu1 %v659_v47  ;;  %v654_v54 = vld [vmem:[%s1859_s29 + $0xcc0] sm:$0xff]  ;;  %895 = vmatpush1.msra.mxu0 %v530_v48  ;;  %v523_v55 = vld [vmem:[%s1859_s29 + $0x8a8] sm:$0xff]  ;;  %v288_v47 = vld [vmem:[%s1859_s29 + $0x150] sm:$0xff] }
  0x6a   : > { %966 = vmatpush1.msra.mxu1 %v658_v49  ;;  %v651_v56 = vld [vmem:[%s1859_s29 + $0xca8] sm:$0xff]  ;;  %896 = vmatprep.subr.mxu0 %v527_v50  ;;  %v522_v57 = vld [vmem:[%s1859_s29 + $0x8a0] sm:$0xff]  ;;  %v285_v49 = vld [vmem:[%s1859_s29 + $0x138] sm:$0xff] }
  0x6b   : > { %967 = vmatprep.subr.mxu1 %v655_v51  ;;  %v650_v58 = vld [vmem:[%s1859_s29 + $0xca0] sm:$0xff]  ;;  %897 = vmatpush1.msra.mxu0 %v526_v52  ;;  %v519_v59 = vld [vmem:[%s1859_s29 + $0x888] sm:$0xff]  ;;  %v284_v51 = vld [vmem:[%s1859_s29 + $0x130] sm:$0xff] }
  0x6c   : > { %968 = vmatpush1.msra.mxu1 %v654_v54  ;;  %v647_v60 = vld [vmem:[%s1859_s29 + $0xc88] sm:$0xff]  ;;  %898 = vmatprep.subr.mxu0 %v523_v55  ;;  %v518_v61 = vld [vmem:[%s1859_s29 + $0x880] sm:$0xff]  ;;  %v281_v54 = vld [vmem:[%s1859_s29 + $0x118] sm:$0xff] }
  0x6d   : > { %969 = vmatprep.subr.mxu1 %v651_v56  ;;  %v646_v62 = vld [vmem:[%s1859_s29 + $0xc80] sm:$0xff]  ;;  %899 = vmatpush1.msra.mxu0 %v522_v57  ;;  %v515_v0 = vld [vmem:[%s1859_s29 + $0x868] sm:$0xff]  ;;  %v280_v56 = vld [vmem:[%s1859_s29 + $0x110] sm:$0xff] }
  0x6e   : > { %970 = vmatpush1.msra.mxu1 %v650_v58  ;;  %v643_v1 = vld [vmem:[%s1859_s29 + $0xc68] sm:$0xff]  ;;  %900 = vmatprep.subr.mxu0 %v519_v59  ;;  %v514_v3 = vld [vmem:[%s1859_s29 + $0x860] sm:$0xff]  ;;  %v277_v58 = vld [vmem:[%s1859_s29 + $0xf8] sm:$0xff] }
  0x6f   : > { %971 = vmatprep.subr.mxu1 %v647_v60  ;;  %v642_v4 = vld [vmem:[%s1859_s29 + $0xc60] sm:$0xff]  ;;  %v2067_v5 = vld [vmem:[%s1854_s25 + $0x8] sm:$0x3f]  ;;  %901 = vmatpush1.msra.mxu0 %v518_v61  ;;  %v276_v60 = vld [vmem:[%s1859_s29 + $0xf0] sm:$0xff] }
  0x70   : > { %972 = vmatpush1.msra.mxu1 %v646_v62  ;;  %v511_v6 = vld [vmem:[%s1859_s29 + $0x848] sm:$0xff]  ;;  %902 = vmatprep.subr.mxu0 %v515_v0  ;;  %v510_v8 = vld [vmem:[%s1859_s29 + $0x840] sm:$0xff]  ;;  %v713_v14 = vcombine.high %v2067_v5, %v2067_v5  ;;  %v273_v62 = vld [vmem:[%s1859_s29 + $0xd8] sm:$0xff] }
  0x71   : > { %v639_v7 = vld [vmem:[%s1859_s29 + $0xc48] sm:$0xff]  ;;  %973 = vmatprep.subr.mxu1 %v643_v1  ;;  %v638_v10 = vld [vmem:[%s1859_s29 + $0xc40] sm:$0xff]  ;;  %903 = vmatpush1.msra.mxu0 %v514_v3  ;;  %v272_v1 = vld [vmem:[%s1859_s29 + $0xd0] sm:$0xff] }
  0x72   : > { %974 = vmatpush1.msra.mxu1 %v642_v4  ;;  %v507_v12 = vld [vmem:[%s1859_s29 + $0x828] sm:$0xff]  ;;  %904 = vmatprep.subr.mxu0 %v511_v6  ;;  %v506_v15 = vld [vmem:[%s1859_s29 + $0x820] sm:$0xff]  ;;  %v2085_v22 = vrot.slane %v713_v14, %v1976_v53  ;;  %v269_v4 = vld [vmem:[%s1859_s29 + $0xb8] sm:$0xff] }
  0x73   : > { %v635_v13 = vld [vmem:[%s1859_s29 + $0xc28] sm:$0xff]  ;;  %975 = vmatprep.subr.mxu1 %v639_v7  ;;  %v634_v16 = vld [vmem:[%s1859_s29 + $0xc20] sm:$0xff]  ;;  %905 = vmatpush1.msra.mxu0 %v510_v8  ;;  %v268_v7 = vld [vmem:[%s1859_s29 + $0xb0] sm:$0xff] }
  0x74   : > { %976 = vmatpush1.msra.mxu1 %v638_v10  ;;  %v503_v17 = vld [vmem:[%s1859_s29 + $0x808] sm:$0xff]  ;;  %906 = vmatprep.subr.mxu0 %v507_v12  ;;  %v502_v19 = vld [vmem:[%s1859_s29 + $0x800] sm:$0xff]  ;;  %v265_v10 = vld [vmem:[%s1859_s29 + $0x98] sm:$0xff] }
  0x75   : > { %v631_v18 = vld [vmem:[%s1859_s29 + $0xc08] sm:$0xff]  ;;  %977 = vmatprep.subr.mxu1 %v635_v13  ;;  %v630_v20 = vld [vmem:[%s1859_s29 + $0xc00] sm:$0xff]  ;;  %907 = vmatpush1.msra.mxu0 %v506_v15  ;;  %v264_v13 = vld [vmem:[%s1859_s29 + $0x90] sm:$0xff] }
  0x76   : > { %978 = vmatpush1.msra.mxu1 %v634_v16  ;;  %v627_v21 = vld [vmem:[%s1859_s29 + $0xbe8] sm:$0xff]  ;;  %908 = vmatprep.subr.mxu0 %v503_v17  ;;  %v626_v24 = vld [vmem:[%s1859_s29 + $0xbe0] sm:$0xff]  ;;  %v261_v15 = vld [vmem:[%s1859_s29 + $0x78] sm:$0xff] }
  0x77   : > { %979 = vmatprep.subr.mxu1 %v631_v18  ;;  %909 = vmatpush1.msra.mxu0 %v502_v19  ;;  %v623_v27 = vld [vmem:[%s1859_s29 + $0xbc8] sm:$0xff]  ;;  %v622_v29 = vld [vmem:[%s1859_s29 + $0xbc0] sm:$0xff]  ;;  %v260_v17 = vld [vmem:[%s1859_s29 + $0x70] sm:$0xff] }
  0x78   : > { %980 = vmatpush1.msra.mxu1 %v630_v20  ;;  %1013 = vmatprep.mubr.f32.mxu1 %v1807_v26  ;;  %v619_v31 = vld [vmem:[%s1859_s29 + $0xba8] sm:$0xff]  ;;  %v618_v33 = vld [vmem:[%s1859_s29 + $0xba0] sm:$0xff]  ;;  %v257_v19 = vld [vmem:[%s1859_s29 + $0x58] sm:$0xff]  ;;  %v2144_v20 = vrot.slane %v2067_v5, %v1976_v53 }
  0x79   : > { %910 = vmatprep.subr.mxu0 %v627_v21  ;;  %1014 = vmatmul.mubr.f32.vlgmr.msra.gmra.mxu1 %v2085_v22  ;;  %v615_v35 = vld [vmem:[%s1859_s29 + $0xb88] sm:$0xff]  ;;  %v614_v37 = vld [vmem:[%s1859_s29 + $0xb80] sm:$0xff] }
  0x7a   : > { %1020 = vmatprep.subr.mxu1 %v309_v23  ;;  %911 = vmatpush2.msra.mxu0 %v626_v24  ;;  %v611_v39 = vld [vmem:[%s1859_s29 + $0xb68] sm:$0xff]  ;;  %v610_v41 = vld [vmem:[%s1859_s29 + $0xb60] sm:$0xff]  ;;  %v256_v23 = vld [vmem:[%s1859_s29 + $0x50] sm:$0xff] }
  0x7b   : > { %1021 = vmatpush1.msra.mxu1 %v308_v25  ;;  %912 = vmatprep.subr.mxu0 %v623_v27  ;;  %v607_v44 = vld [vmem:[%s1859_s29 + $0xb48] sm:$0xff]  ;;  %v606_v46 = vld [vmem:[%s1859_s29 + $0xb40] sm:$0xff]  ;;  %v253_v25 = vld [vmem:[%s1859_s29 + $0x38] sm:$0xff] }
  0x7c   : > { %1022 = vmatprep.subr.mxu1 %v305_v28  ;;  %913 = vmatpush2.msra.mxu0 %v622_v29  ;;  %v603_v48 = vld [vmem:[%s1859_s29 + $0xb28] sm:$0xff]  ;;  %v602_v50 = vld [vmem:[%s1859_s29 + $0xb20] sm:$0xff]  ;;  %v252_v28 = vld [vmem:[%s1859_s29 + $0x30] sm:$0xff] }
  0x7d   : > { %1023 = vmatpush1.msra.mxu1 %v304_v30  ;;  %914 = vmatprep.subr.mxu0 %v619_v31  ;;  %v599_v52 = vld [vmem:[%s1859_s29 + $0xb08] sm:$0xff]  ;;  %v598_v55 = vld [vmem:[%s1859_s29 + $0xb00] sm:$0xff]  ;;  %v249_v29 = vld [vmem:[%s1859_s29 + $0x18] sm:$0xff]  ;;  %v2156_v30 = vcombine.high %v2144_v20, %v2144_v20 }
  0x7e   : > { %1024 = vmatprep.subr.mxu1 %v301_v32  ;;  %915 = vmatpush2.msra.mxu0 %v618_v33  ;;  %v595_v57 = vld [vmem:[%s1859_s29 + $0xae8] sm:$0xff]  ;;  %v594_v59 = vld [vmem:[%s1859_s29 + $0xae0] sm:$0xff]  ;;  %v248_v32 = vld [vmem:[%s1859_s29 + $0x10] sm:$0xff] }
  0x7f   : > { %1025 = vmatpush1.msra.mxu1 %v300_v34  ;;  %916 = vmatprep.subr.mxu0 %v615_v35  ;;  %v591_v61 = vld [vmem:[%s1859_s29 + $0xac8] sm:$0xff]  ;;  %v590_v0 = vld [vmem:[%s1859_s29 + $0xac0] sm:$0xff]  ;;  %v373_v33 = vld [vmem:[%s1859_s29 + $0x3f8] sm:$0xff] }
  0x80   : > { %1026 = vmatprep.subr.mxu1 %v297_v36  ;;  %917 = vmatpush2.msra.mxu0 %v614_v37  ;;  %v587_v3 = vld [vmem:[%s1859_s29 + $0xaa8] sm:$0xff]  ;;  %v586_v6 = vld [vmem:[%s1859_s29 + $0xaa0] sm:$0xff]  ;;  %v437_v34 = vld [vmem:[%s1859_s29 + $0x5f8] sm:$0xff] }
  0x81   : > { %1027 = vmatpush1.msra.mxu1 %v296_v38  ;;  %918 = vmatprep.subr.mxu0 %v611_v39  ;;  %v583_v8 = vld [vmem:[%s1859_s29 + $0xa88] sm:$0xff]  ;;  %v582_v12 = vld [vmem:[%s1859_s29 + $0xa80] sm:$0xff]  ;;  %v372_v35 = vld [vmem:[%s1859_s29 + $0x3f0] sm:$0xff] }
  0x82   : > { %1028 = vmatprep.subr.mxu1 %v293_v40  ;;  %919 = vmatpush2.msra.mxu0 %v610_v41  ;;  %v579_v14 = vld [vmem:[%s1859_s29 + $0xa68] sm:$0xff]  ;;  %v578_v16 = vld [vmem:[%s1859_s29 + $0xa60] sm:$0xff]  ;;  %v436_v36 = vld [vmem:[%s1859_s29 + $0x5f0] sm:$0xff] }
  0x83   : > { %1029 = vmatpush1.msra.mxu1 %v292_v42  ;;  %920 = vmatprep.subr.mxu0 %v607_v44  ;;  %v575_v18 = vld [vmem:[%s1859_s29 + $0xa48] sm:$0xff]  ;;  %v574_v21 = vld [vmem:[%s1859_s29 + $0xa40] sm:$0xff]  ;;  %v369_v37 = vld [vmem:[%s1859_s29 + $0x3d8] sm:$0xff] }
  0x84   : > { %1030 = vmatprep.subr.mxu1 %v289_v45  ;;  %921 = vmatpush2.msra.mxu0 %v606_v46  ;;  %v571_v24 = vld [vmem:[%s1859_s29 + $0xa28] sm:$0xff]  ;;  %v570_v27 = vld [vmem:[%s1859_s29 + $0xa20] sm:$0xff]  ;;  %v433_v38 = vld [vmem:[%s1859_s29 + $0x5d8] sm:$0xff] }
  0x85   : > { %1031 = vmatpush1.msra.mxu1 %v288_v47  ;;  %922 = vmatprep.subr.mxu0 %v603_v48  ;;  %v567_v5 = vld [vmem:[%s1859_s29 + $0xa08] sm:$0xff]  ;;  %v566_v31 = vld [vmem:[%s1859_s29 + $0xa00] sm:$0xff]  ;;  %v368_v39 = vld [vmem:[%s1859_s29 + $0x3d0] sm:$0xff] }
  0x86   : > { %1032 = vmatprep.subr.mxu1 %v285_v49  ;;  %923 = vmatpush2.msra.mxu0 %v602_v50  ;;  %v432_v40 = vld [vmem:[%s1859_s29 + $0x5d0] sm:$0xff]  ;;  %v365_v41 = vld [vmem:[%s1859_s29 + $0x3b8] sm:$0xff] }
  0x87   : > { %1033 = vmatpush1.msra.mxu1 %v284_v51  ;;  %924 = vmatprep.subr.mxu0 %v599_v52  ;;  %v429_v42 = vld [vmem:[%s1859_s29 + $0x5b8] sm:$0xff]  ;;  %v364_v44 = vld [vmem:[%s1859_s29 + $0x3b0] sm:$0xff] }
  0x88   : > { %1034 = vmatprep.subr.mxu1 %v281_v54  ;;  %925 = vmatpush2.msra.mxu0 %v598_v55  ;;  %v428_v45 = vld [vmem:[%s1859_s29 + $0x5b0] sm:$0xff]  ;;  %v361_v46 = vld [vmem:[%s1859_s29 + $0x398] sm:$0xff] }
  0x89   : > { %1035 = vmatpush1.msra.mxu1 %v280_v56  ;;  %926 = vmatprep.subr.mxu0 %v595_v57  ;;  %v425_v47 = vld [vmem:[%s1859_s29 + $0x598] sm:$0xff]  ;;  %v360_v48 = vld [vmem:[%s1859_s29 + $0x390] sm:$0xff] }
  0x8a   : > { %1036 = vmatprep.subr.mxu1 %v277_v58  ;;  %927 = vmatpush2.msra.mxu0 %v594_v59  ;;  %v424_v49 = vld [vmem:[%s1859_s29 + $0x590] sm:$0xff]  ;;  %v357_v50 = vld [vmem:[%s1859_s29 + $0x378] sm:$0xff] }
  0x8b   : > { %1037 = vmatpush1.msra.mxu1 %v276_v60  ;;  %928 = vmatprep.subr.mxu0 %v591_v61  ;;  %v421_v51 = vld [vmem:[%s1859_s29 + $0x578] sm:$0xff]  ;;  %v356_v52 = vld [vmem:[%s1859_s29 + $0x370] sm:$0xff] }
  0x8c   : > { %1038 = vmatprep.subr.mxu1 %v273_v62  ;;  %929 = vmatpush2.msra.mxu0 %v590_v0  ;;  %v420_v54 = vld [vmem:[%s1859_s29 + $0x570] sm:$0xff]  ;;  %v353_v55 = vld [vmem:[%s1859_s29 + $0x358] sm:$0xff] }
  0x8d   : > { %1039 = vmatpush1.msra.mxu1 %v272_v1  ;;  %930 = vmatprep.subr.mxu0 %v587_v3  ;;  %v417_v56 = vld [vmem:[%s1859_s29 + $0x558] sm:$0xff]  ;;  %v352_v57 = vld [vmem:[%s1859_s29 + $0x350] sm:$0xff] }
  0x8e   : > { %1040 = vmatprep.subr.mxu1 %v269_v4  ;;  %931 = vmatpush2.msra.mxu0 %v586_v6  ;;  %v416_v58 = vld [vmem:[%s1859_s29 + $0x550] sm:$0xff]  ;;  %v349_v59 = vld [vmem:[%s1859_s29 + $0x338] sm:$0xff] }
  0x8f   : > { %1041 = vmatpush1.msra.mxu1 %v268_v7  ;;  %932 = vmatprep.subr.mxu0 %v583_v8  ;;  %v413_v60 = vld [vmem:[%s1859_s29 + $0x538] sm:$0xff]  ;;  %v348_v61 = vld [vmem:[%s1859_s29 + $0x330] sm:$0xff] }
  0x90   : > { %1042 = vmatprep.subr.mxu1 %v265_v10  ;;  %933 = vmatpush2.msra.mxu0 %v582_v12  ;;  %v412_v62 = vld [vmem:[%s1859_s29 + $0x530] sm:$0xff]  ;;  %v345_v0 = vld [vmem:[%s1859_s29 + $0x318] sm:$0xff] }
  0x91   : > { %1043 = vmatpush1.msra.mxu1 %v264_v13  ;;  %934 = vmatprep.subr.mxu0 %v579_v14  ;;  %v409_v1 = vld [vmem:[%s1859_s29 + $0x518] sm:$0xff]  ;;  %v344_v3 = vld [vmem:[%s1859_s29 + $0x310] sm:$0xff] }
  0x92   : > { %1044 = vmatprep.subr.mxu1 %v261_v15  ;;  %935 = vmatpush2.msra.mxu0 %v578_v16  ;;  %v408_v4 = vld [vmem:[%s1859_s29 + $0x510] sm:$0xff]  ;;  %v341_v6 = vld [vmem:[%s1859_s29 + $0x2f8] sm:$0xff] }
  0x93   : > { %1045 = vmatpush1.msra.mxu1 %v260_v17  ;;  %936 = vmatprep.subr.mxu0 %v575_v18  ;;  %v405_v7 = vld [vmem:[%s1859_s29 + $0x4f8] sm:$0xff]  ;;  %v340_v8 = vld [vmem:[%s1859_s29 + $0x2f0] sm:$0xff] }
  0x94   : > { %1046 = vmatprep.subr.mxu1 %v257_v19  ;;  %937 = vmatpush2.msra.mxu0 %v574_v21  ;;  %v404_v10 = vld [vmem:[%s1859_s29 + $0x4f0] sm:$0xff]  ;;  %v337_v12 = vld [vmem:[%s1859_s29 + $0x2d8] sm:$0xff] }
  0x95   : > { %1047 = vmatpush1.msra.mxu1 %v256_v23  ;;  %938 = vmatprep.subr.mxu0 %v571_v24  ;;  %v401_v13 = vld [vmem:[%s1859_s29 + $0x4d8] sm:$0xff]  ;;  %v336_v14 = vld [vmem:[%s1859_s29 + $0x2d0] sm:$0xff] }
  0x96   : > { %1048 = vmatprep.subr.mxu1 %v253_v25  ;;  %939 = vmatpush2.msra.mxu0 %v570_v27  ;;  %v400_v15 = vld [vmem:[%s1859_s29 + $0x4d0] sm:$0xff]  ;;  %v333_v16 = vld [vmem:[%s1859_s29 + $0x2b8] sm:$0xff] }
  0x97   : > { %1049 = vmatpush1.msra.mxu1 %v252_v28  ;;  %940 = vmatprep.subr.mxu0 %v567_v5  ;;  %v397_v17 = vld [vmem:[%s1859_s29 + $0x4b8] sm:$0xff]  ;;  %v332_v18 = vld [vmem:[%s1859_s29 + $0x2b0] sm:$0xff] }
  0x98   : > { %1050 = vmatprep.subr.mxu1 %v249_v29  ;;  %941 = vmatpush2.msra.mxu0 %v566_v31  ;;  %v396_v19 = vld [vmem:[%s1859_s29 + $0x4b0] sm:$0xff]  ;;  %v329_v21 = vld [vmem:[%s1859_s29 + $0x298] sm:$0xff] }
  0x99   : > { %942 = vmatprep.mubr.f32.mxu0 %v2156_v30  ;;  %1051 = vmatpush1.msra.mxu1 %v248_v32  ;;  %v393_v23 = vld [vmem:[%s1859_s29 + $0x498] sm:$0xff]  ;;  %v328_v24 = vld [vmem:[%s1859_s29 + $0x290] sm:$0xff] }
  0x9a   : > { %943 = vmatmul.mubr.f32.vlgmr.msra.gmra.mxu0 %v2144_v20  ;;  %1052 = vmatprep.subr.mxu1 %v373_v33  ;;  %v392_v25 = vld [vmem:[%s1859_s29 + $0x490] sm:$0xff]  ;;  %v325_v27 = vld [vmem:[%s1859_s29 + $0x278] sm:$0xff] }
  0x9b   : > { %1091 = vmatprep.subr.mxu0 %v437_v34  ;;  %1053 = vmatpush2.msra.mxu1 %v372_v35  ;;  %v389_v28 = vld [vmem:[%s1859_s29 + $0x478] sm:$0xff]  ;;  %v324_v5 = vld [vmem:[%s1859_s29 + $0x270] sm:$0xff] }
  0x9c   : > { %1092 = vmatpush1.msra.mxu0 %v436_v36  ;;  %1054 = vmatprep.subr.mxu1 %v369_v37  ;;  %v388_v29 = vld [vmem:[%s1859_s29 + $0x470] sm:$0xff]  ;;  %v321_v31 = vld [vmem:[%s1859_s29 + $0x258] sm:$0xff] }
  0x9d   : > { %1093 = vmatprep.subr.mxu0 %v433_v38  ;;  %1055 = vmatpush2.msra.mxu1 %v368_v39  ;;  %v385_v32 = vld [vmem:[%s1859_s29 + $0x458] sm:$0xff]  ;;  %v320_v33 = vld [vmem:[%s1859_s29 + $0x250] sm:$0xff] }
  0x9e   : > { %1094 = vmatpush1.msra.mxu0 %v432_v40  ;;  %1056 = vmatprep.subr.mxu1 %v365_v41  ;;  %v384_v34 = vld [vmem:[%s1859_s29 + $0x450] sm:$0xff]  ;;  %v317_v35 = vld [vmem:[%s1859_s29 + $0x238] sm:$0xff] }
  0x9f   : > { %1095 = vmatprep.subr.mxu0 %v429_v42  ;;  %1057 = vmatpush2.msra.mxu1 %v364_v44  ;;  %v381_v36 = vld [vmem:[%s1859_s29 + $0x438] sm:$0xff]  ;;  %v316_v37 = vld [vmem:[%s1859_s29 + $0x230] sm:$0xff] }
  0xa0   : > { %1096 = vmatpush1.msra.mxu0 %v428_v45  ;;  %1058 = vmatprep.subr.mxu1 %v361_v46  ;;  %v380_v38 = vld [vmem:[%s1859_s29 + $0x430] sm:$0xff]  ;;  %v313_v39 = vld [vmem:[%s1859_s29 + $0x218] sm:$0xff] }
  0xa1   : > { %1097 = vmatprep.subr.mxu0 %v425_v47  ;;  %1059 = vmatpush2.msra.mxu1 %v360_v48  ;;  %v377_v40 = vld [vmem:[%s1859_s29 + $0x418] sm:$0xff]  ;;  %v312_v41 = vld [vmem:[%s1859_s29 + $0x210] sm:$0xff] }
  0xa2   : > { %1098 = vmatpush1.msra.mxu0 %v424_v49  ;;  %1060 = vmatprep.subr.mxu1 %v357_v50  ;;  %v376_v42 = vld [vmem:[%s1859_s29 + $0x410] sm:$0xff]  ;;  %v501_v44 = vld [vmem:[%s1859_s29 + $0x7f8] sm:$0xff] }
  0xa3   : > { %1099 = vmatprep.subr.mxu0 %v421_v51  ;;  %1061 = vmatpush2.msra.mxu1 %v356_v52  ;;  %v565_v45 = vld [vmem:[%s1859_s29 + $0x9f8] sm:$0xff]  ;;  %v500_v46 = vld [vmem:[%s1859_s29 + $0x7f0] sm:$0xff] }
  0xa4   : > { %1100 = vmatpush1.msra.mxu0 %v420_v54  ;;  %1062 = vmatprep.subr.mxu1 %v353_v55  ;;  %v564_v47 = vld [vmem:[%s1859_s29 + $0x9f0] sm:$0xff]  ;;  %v497_v48 = vld [vmem:[%s1859_s29 + $0x7d8] sm:$0xff] }
  0xa5   : > { %1101 = vmatprep.subr.mxu0 %v417_v56  ;;  %1063 = vmatpush2.msra.mxu1 %v352_v57  ;;  %v561_v49 = vld [vmem:[%s1859_s29 + $0x9d8] sm:$0xff]  ;;  %v496_v50 = vld [vmem:[%s1859_s29 + $0x7d0] sm:$0xff] }
  0xa6   : > { %1102 = vmatpush1.msra.mxu0 %v416_v58  ;;  %1064 = vmatprep.subr.mxu1 %v349_v59  ;;  %v560_v51 = vld [vmem:[%s1859_s29 + $0x9d0] sm:$0xff]  ;;  %v557_v52 = vld [vmem:[%s1859_s29 + $0x9b8] sm:$0xff] }
  0xa7   : > { %1103 = vmatprep.subr.mxu0 %v413_v60  ;;  %1065 = vmatpush2.msra.mxu1 %v348_v61  ;;  %v492_v54 = vld [vmem:[%s1859_s29 + $0x7b0] sm:$0xff]  ;;  %v489_v55 = vld [vmem:[%s1859_s29 + $0x798] sm:$0xff] }
  0xa8   : > { %1104 = vmatpush1.msra.mxu0 %v412_v62  ;;  %1066 = vmatprep.subr.mxu1 %v345_v0  ;;  %v553_v56 = vld [vmem:[%s1859_s29 + $0x998] sm:$0xff]  ;;  %v488_v57 = vld [vmem:[%s1859_s29 + $0x790] sm:$0xff] }
  0xa9   : > { %1105 = vmatprep.subr.mxu0 %v409_v1  ;;  %1067 = vmatpush2.msra.mxu1 %v344_v3  ;;  %v552_v58 = vld [vmem:[%s1859_s29 + $0x990] sm:$0xff]  ;;  %v485_v59 = vld [vmem:[%s1859_s29 + $0x778] sm:$0xff] }
  0xaa   : > { %1106 = vmatpush1.msra.mxu0 %v408_v4  ;;  %1068 = vmatprep.subr.mxu1 %v341_v6  ;;  %v549_v60 = vld [vmem:[%s1859_s29 + $0x978] sm:$0xff]  ;;  %v484_v61 = vld [vmem:[%s1859_s29 + $0x770] sm:$0xff] }
  0xab   : > { %1107 = vmatprep.subr.mxu0 %v405_v7  ;;  %1069 = vmatpush2.msra.mxu1 %v340_v8  ;;  %v548_v62 = vld [vmem:[%s1859_s29 + $0x970] sm:$0xff]  ;;  %v481_v0 = vld [vmem:[%s1859_s29 + $0x758] sm:$0xff] }
  0xac   : > { %1108 = vmatpush1.msra.mxu0 %v404_v10  ;;  %1070 = vmatprep.subr.mxu1 %v337_v12  ;;  %v545_v1 = vld [vmem:[%s1859_s29 + $0x958] sm:$0xff]  ;;  %v480_v3 = vld [vmem:[%s1859_s29 + $0x750] sm:$0xff] }
  0xad   : > { %1109 = vmatprep.subr.mxu0 %v401_v13  ;;  %1071 = vmatpush2.msra.mxu1 %v336_v14  ;;  %v544_v4 = vld [vmem:[%s1859_s29 + $0x950] sm:$0xff]  ;;  %v477_v6 = vld [vmem:[%s1859_s29 + $0x738] sm:$0xff] }
  0xae   : > { %1110 = vmatpush1.msra.mxu0 %v400_v15  ;;  %1072 = vmatprep.subr.mxu1 %v333_v16  ;;  %v541_v7 = vld [vmem:[%s1859_s29 + $0x938] sm:$0xff]  ;;  %v476_v8 = vld [vmem:[%s1859_s29 + $0x730] sm:$0xff] }
  0xaf   : > { %1111 = vmatprep.subr.mxu0 %v397_v17  ;;  %1073 = vmatpush2.msra.mxu1 %v332_v18  ;;  %v540_v10 = vld [vmem:[%s1859_s29 + $0x930] sm:$0xff]  ;;  %v473_v12 = vld [vmem:[%s1859_s29 + $0x718] sm:$0xff] }
  0xb0   : > { %1112 = vmatpush1.msra.mxu0 %v396_v19  ;;  %1074 = vmatprep.subr.mxu1 %v329_v21  ;;  %v537_v13 = vld [vmem:[%s1859_s29 + $0x918] sm:$0xff]  ;;  %v472_v14 = vld [vmem:[%s1859_s29 + $0x710] sm:$0xff] }
  0xb1   : > { %1113 = vmatprep.subr.mxu0 %v393_v23  ;;  %1075 = vmatpush2.msra.mxu1 %v328_v24  ;;  %v536_v15 = vld [vmem:[%s1859_s29 + $0x910] sm:$0xff]  ;;  %v469_v16 = vld [vmem:[%s1859_s29 + $0x6f8] sm:$0xff] }
  0xb2   : > { %1114 = vmatpush1.msra.mxu0 %v392_v25  ;;  %1076 = vmatprep.subr.mxu1 %v325_v27  ;;  %v533_v17 = vld [vmem:[%s1859_s29 + $0x8f8] sm:$0xff]  ;;  %v468_v18 = vld [vmem:[%s1859_s29 + $0x6f0] sm:$0xff] }
  0xb3   : > { %1115 = vmatprep.subr.mxu0 %v389_v28  ;;  %1077 = vmatpush2.msra.mxu1 %v324_v5  ;;  %v532_v19 = vld [vmem:[%s1859_s29 + $0x8f0] sm:$0xff]  ;;  %v465_v21 = vld [vmem:[%s1859_s29 + $0x6d8] sm:$0xff] }
  0xb4   : > { %1116 = vmatpush1.msra.mxu0 %v388_v29  ;;  %1078 = vmatprep.subr.mxu1 %v321_v31  ;;  %v529_v23 = vld [vmem:[%s1859_s29 + $0x8d8] sm:$0xff]  ;;  %v464_v24 = vld [vmem:[%s1859_s29 + $0x6d0] sm:$0xff] }
  0xb5   : > { %1117 = vmatprep.subr.mxu0 %v385_v32  ;;  %1079 = vmatpush2.msra.mxu1 %v320_v33  ;;  %v528_v25 = vld [vmem:[%s1859_s29 + $0x8d0] sm:$0xff]  ;;  %v461_v27 = vld [vmem:[%s1859_s29 + $0x6b8] sm:$0xff] }
  0xb6   : > { %1118 = vmatpush1.msra.mxu0 %v384_v34  ;;  %1080 = vmatprep.subr.mxu1 %v317_v35  ;;  %v525_v28 = vld [vmem:[%s1859_s29 + $0x8b8] sm:$0xff]  ;;  %v460_v5 = vld [vmem:[%s1859_s29 + $0x6b0] sm:$0xff] }
  0xb7   : > { %1119 = vmatprep.subr.mxu0 %v381_v36  ;;  %1081 = vmatpush2.msra.mxu1 %v316_v37  ;;  %v524_v29 = vld [vmem:[%s1859_s29 + $0x8b0] sm:$0xff]  ;;  %v457_v31 = vld [vmem:[%s1859_s29 + $0x698] sm:$0xff] }
  0xb8   : > { %1120 = vmatpush1.msra.mxu0 %v380_v38  ;;  %1082 = vmatprep.subr.mxu1 %v313_v39  ;;  %v521_v32 = vld [vmem:[%s1859_s29 + $0x898] sm:$0xff]  ;;  %v456_v33 = vld [vmem:[%s1859_s29 + $0x690] sm:$0xff] }
  0xb9   : > { %1121 = vmatprep.subr.mxu0 %v377_v40  ;;  %1083 = vmatpush2.msra.mxu1 %v312_v41  ;;  %v520_v34 = vld [vmem:[%s1859_s29 + $0x890] sm:$0xff]  ;;  %v453_v35 = vld [vmem:[%s1859_s29 + $0x678] sm:$0xff] }
  0xba   : > { %1084 = vmatprep.mubr.f32.mxu1 %v2002_v9  ;;  %1122 = vmatpush1.msra.mxu0 %v376_v42  ;;  %v493_v9 = vld [vmem:[%s1859_s29 + $0x7b8] sm:$0xff]  ;;  %v452_v37 = vld [vmem:[%s1859_s29 + $0x670] sm:$0xff] }
  0xbb   : > { %1085 = vmatmul.mubr.f32.vlgmr.msra.gmra.mxu1 %v1987_v63  ;;  %1123 = vmatprep.subr.mxu0 %v501_v44  ;;  %v556_v63 = vld [vmem:[%s1859_s29 + $0x9b0] sm:$0xff]  ;;  %v517_v36 = vld [vmem:[%s1859_s29 + $0x878] sm:$0xff] }
  0xbc   : > { %1162 = vmatprep.subr.mxu1 %v565_v45  ;;  %1124 = vmatpush2.msra.mxu0 %v500_v46  ;;  %v516_v38 = vld [vmem:[%s1859_s29 + $0x870] sm:$0xff]  ;;  %v449_v39 = vld [vmem:[%s1859_s29 + $0x658] sm:$0xff] }
  0xbd   : > { %1163 = vmatpush1.msra.mxu1 %v564_v47  ;;  %1125 = vmatprep.subr.mxu0 %v497_v48  ;;  %v513_v40 = vld [vmem:[%s1859_s29 + $0x858] sm:$0xff]  ;;  %v448_v41 = vld [vmem:[%s1859_s29 + $0x650] sm:$0xff] }
  0xbe   : > { %1164 = vmatprep.subr.mxu1 %v561_v49  ;;  %1126 = vmatpush2.msra.mxu0 %v496_v50  ;;  %v512_v42 = vld [vmem:[%s1859_s29 + $0x850] sm:$0xff]  ;;  %v445_v44 = vld [vmem:[%s1859_s29 + $0x638] sm:$0xff] }
  0xbf   : > { %1165 = vmatpush1.msra.mxu1 %v560_v51  ;;  %1127 = vmatprep.subr.mxu0 %v493_v9  ;;  %v509_v45 = vld [vmem:[%s1859_s29 + $0x838] sm:$0xff]  ;;  %v444_v46 = vld [vmem:[%s1859_s29 + $0x630] sm:$0xff] }
  0xc0   : > { %1166 = vmatprep.subr.mxu1 %v557_v52  ;;  %1128 = vmatpush2.msra.mxu0 %v492_v54  ;;  %v508_v47 = vld [vmem:[%s1859_s29 + $0x830] sm:$0xff]  ;;  %v441_v48 = vld [vmem:[%s1859_s29 + $0x618] sm:$0xff] }
  0xc1   : > { %1167 = vmatpush1.msra.mxu1 %v556_v63  ;;  %1129 = vmatprep.subr.mxu0 %v489_v55  ;;  %v505_v49 = vld [vmem:[%s1859_s29 + $0x818] sm:$0xff]  ;;  %v440_v50 = vld [vmem:[%s1859_s29 + $0x610] sm:$0xff] }
  0xc2   : > { %1168 = vmatprep.subr.mxu1 %v553_v56  ;;  %1130 = vmatpush2.msra.mxu0 %v488_v57  ;;  %v504_v51 = vld [vmem:[%s1859_s29 + $0x810] sm:$0xff]  ;;  %v629_v9 = vld [vmem:[%s1859_s29 + $0xbf8] sm:$0xff] }
  0xc3   : > { %1169 = vmatpush1.msra.mxu1 %v552_v58  ;;  %1131 = vmatprep.subr.mxu0 %v485_v59  ;;  %v693_v52 = vld [vmem:[%s1859_s29 + $0xdf8] sm:$0xff]  ;;  %v628_v54 = vld [vmem:[%s1859_s29 + $0xbf0] sm:$0xff] }
  0xc4   : > { %1170 = vmatprep.subr.mxu1 %v549_v60  ;;  %1132 = vmatpush2.msra.mxu0 %v484_v61  ;;  %v692_v63 = vld [vmem:[%s1859_s29 + $0xdf0] sm:$0xff]  ;;  %v625_v55 = vld [vmem:[%s1859_s29 + $0xbd8] sm:$0xff] }
  0xc5   : > { %1171 = vmatpush1.msra.mxu1 %v548_v62  ;;  %1133 = vmatprep.subr.mxu0 %v481_v0  ;;  %v689_v56 = vld [vmem:[%s1859_s29 + $0xdd8] sm:$0xff]  ;;  %v624_v57 = vld [vmem:[%s1859_s29 + $0xbd0] sm:$0xff] }
  0xc6   : > { %1172 = vmatprep.subr.mxu1 %v545_v1  ;;  %1134 = vmatpush2.msra.mxu0 %v480_v3  ;;  %v688_v58 = vld [vmem:[%s1859_s29 + $0xdd0] sm:$0xff]  ;;  %v685_v59 = vld [vmem:[%s1859_s29 + $0xdb8] sm:$0xff] }
  0xc7   : > { %1173 = vmatpush1.msra.mxu1 %v544_v4  ;;  %1135 = vmatprep.subr.mxu0 %v477_v6  ;;  %v620_v60 = vld [vmem:[%s1859_s29 + $0xbb0] sm:$0xff]  ;;  %v617_v61 = vld [vmem:[%s1859_s29 + $0xb98] sm:$0xff] }
  0xc8   : > { %1174 = vmatprep.subr.mxu1 %v541_v7  ;;  %1136 = vmatpush2.msra.mxu0 %v476_v8  ;;  %v681_v62 = vld [vmem:[%s1859_s29 + $0xd98] sm:$0xff]  ;;  %v616_v0 = vld [vmem:[%s1859_s29 + $0xb90] sm:$0xff] }
  0xc9   : > { %1175 = vmatpush1.msra.mxu1 %v540_v10  ;;  %1137 = vmatprep.subr.mxu0 %v473_v12  ;;  %v680_v1 = vld [vmem:[%s1859_s29 + $0xd90] sm:$0xff]  ;;  %v613_v3 = vld [vmem:[%s1859_s29 + $0xb78] sm:$0xff] }
  0xca   : > { %1176 = vmatprep.subr.mxu1 %v537_v13  ;;  %1138 = vmatpush2.msra.mxu0 %v472_v14  ;;  %v677_v4 = vld [vmem:[%s1859_s29 + $0xd78] sm:$0xff]  ;;  %v612_v6 = vld [vmem:[%s1859_s29 + $0xb70] sm:$0xff] }
  0xcb   : > { %1177 = vmatpush1.msra.mxu1 %v536_v15  ;;  %1139 = vmatprep.subr.mxu0 %v469_v16  ;;  %v676_v7 = vld [vmem:[%s1859_s29 + $0xd70] sm:$0xff]  ;;  %v609_v8 = vld [vmem:[%s1859_s29 + $0xb58] sm:$0xff] }
  0xcc   : > { %1178 = vmatprep.subr.mxu1 %v533_v17  ;;  %1140 = vmatpush2.msra.mxu0 %v468_v18  ;;  %v673_v10 = vld [vmem:[%s1859_s29 + $0xd58] sm:$0xff]  ;;  %v608_v12 = vld [vmem:[%s1859_s29 + $0xb50] sm:$0xff] }
  0xcd   : > { %1179 = vmatpush1.msra.mxu1 %v532_v19  ;;  %1141 = vmatprep.subr.mxu0 %v465_v21  ;;  %v672_v13 = vld [vmem:[%s1859_s29 + $0xd50] sm:$0xff]  ;;  %v605_v14 = vld [vmem:[%s1859_s29 + $0xb38] sm:$0xff] }
  0xce   : > { %1180 = vmatprep.subr.mxu1 %v529_v23  ;;  %1142 = vmatpush2.msra.mxu0 %v464_v24  ;;  %v669_v15 = vld [vmem:[%s1859_s29 + $0xd38] sm:$0xff]  ;;  %v604_v16 = vld [vmem:[%s1859_s29 + $0xb30] sm:$0xff] }
  0xcf   : > { %1181 = vmatpush1.msra.mxu1 %v528_v25  ;;  %1143 = vmatprep.subr.mxu0 %v461_v27  ;;  %v668_v17 = vld [vmem:[%s1859_s29 + $0xd30] sm:$0xff]  ;;  %v601_v18 = vld [vmem:[%s1859_s29 + $0xb18] sm:$0xff] }
  0xd0   : > { %1182 = vmatprep.subr.mxu1 %v525_v28  ;;  %1144 = vmatpush2.msra.mxu0 %v460_v5  ;;  %v665_v19 = vld [vmem:[%s1859_s29 + $0xd18] sm:$0xff]  ;;  %v600_v21 = vld [vmem:[%s1859_s29 + $0xb10] sm:$0xff] }
  0xd1   : > { %1183 = vmatpush1.msra.mxu1 %v524_v29  ;;  %1145 = vmatprep.subr.mxu0 %v457_v31  ;;  %v664_v23 = vld [vmem:[%s1859_s29 + $0xd10] sm:$0xff]  ;;  %v597_v24 = vld [vmem:[%s1859_s29 + $0xaf8] sm:$0xff] }
  0xd2   : > { %1184 = vmatprep.subr.mxu1 %v521_v32  ;;  %1146 = vmatpush2.msra.mxu0 %v456_v33  ;;  %v661_v25 = vld [vmem:[%s1859_s29 + $0xcf8] sm:$0xff]  ;;  %v596_v27 = vld [vmem:[%s1859_s29 + $0xaf0] sm:$0xff] }
  0xd3   : > { %1185 = vmatpush1.msra.mxu1 %v520_v34  ;;  %1147 = vmatprep.subr.mxu0 %v453_v35  ;;  %v660_v28 = vld [vmem:[%s1859_s29 + $0xcf0] sm:$0xff]  ;;  %v593_v5 = vld [vmem:[%s1859_s29 + $0xad8] sm:$0xff] }
  0xd4   : > { %1186 = vmatprep.subr.mxu1 %v517_v36  ;;  %1148 = vmatpush2.msra.mxu0 %v452_v37  ;;  %v657_v29 = vld [vmem:[%s1859_s29 + $0xcd8] sm:$0xff]  ;;  %v592_v31 = vld [vmem:[%s1859_s29 + $0xad0] sm:$0xff] }
  0xd5   : > { %1187 = vmatpush1.msra.mxu1 %v516_v38  ;;  %1149 = vmatprep.subr.mxu0 %v449_v39  ;;  %v656_v32 = vld [vmem:[%s1859_s29 + $0xcd0] sm:$0xff]  ;;  %v589_v33 = vld [vmem:[%s1859_s29 + $0xab8] sm:$0xff] }
  0xd6   : > { %1188 = vmatprep.subr.mxu1 %v513_v40  ;;  %1150 = vmatpush2.msra.mxu0 %v448_v41  ;;  %v653_v34 = vld [vmem:[%s1859_s29 + $0xcb8] sm:$0xff]  ;;  %v588_v35 = vld [vmem:[%s1859_s29 + $0xab0] sm:$0xff] }
  0xd7   : > { %1189 = vmatpush1.msra.mxu1 %v512_v42  ;;  %1151 = vmatprep.subr.mxu0 %v445_v44  ;;  %v652_v36 = vld [vmem:[%s1859_s29 + $0xcb0] sm:$0xff]  ;;  %v585_v37 = vld [vmem:[%s1859_s29 + $0xa98] sm:$0xff] }
  0xd8   : > { %1190 = vmatprep.subr.mxu1 %v509_v45  ;;  %1152 = vmatpush2.msra.mxu0 %v444_v46  ;;  %v649_v38 = vld [vmem:[%s1859_s29 + $0xc98] sm:$0xff]  ;;  %v584_v39 = vld [vmem:[%s1859_s29 + $0xa90] sm:$0xff] }
  0xd9   : > { %1191 = vmatpush1.msra.mxu1 %v508_v47  ;;  %1153 = vmatprep.subr.mxu0 %v441_v48  ;;  %v648_v40 = vld [vmem:[%s1859_s29 + $0xc90] sm:$0xff]  ;;  %v581_v41 = vld [vmem:[%s1859_s29 + $0xa78] sm:$0xff] }
  0xda   : > { %1192 = vmatprep.subr.mxu1 %v505_v49  ;;  %1154 = vmatpush2.msra.mxu0 %v440_v50  ;;  %v645_v42 = vld [vmem:[%s1859_s29 + $0xc78] sm:$0xff]  ;;  %v580_v44 = vld [vmem:[%s1859_s29 + $0xa70] sm:$0xff] }
  0xdb   : > { %1155 = vmatprep.mubr.f32.mxu0 %v2007_v11  ;;  %1193 = vmatpush1.msra.mxu1 %v504_v51  ;;  %v621_v11 = vld [vmem:[%s1859_s29 + $0xbb8] sm:$0xff]  ;;  %v644_v45 = vld [vmem:[%s1859_s29 + $0xc70] sm:$0xff] }
  0xdc   : > { %1156 = vmatmul.mubr.f32.vlgmr.msra.gmra.mxu0 %v1992_v2  ;;  %1194 = vmatprep.subr.mxu1 %v629_v9  ;;  %v684_v2 = vld [vmem:[%s1859_s29 + $0xdb0] sm:$0xff]  ;;  %v577_v46 = vld [vmem:[%s1859_s29 + $0xa58] sm:$0xff] }
  0xdd   : > { %1233 = vmatprep.subr.mxu0 %v693_v52  ;;  %1195 = vmatpush2.msra.mxu1 %v628_v54  ;;  %v641_v47 = vld [vmem:[%s1859_s29 + $0xc58] sm:$0xff]  ;;  %v576_v48 = vld [vmem:[%s1859_s29 + $0xa50] sm:$0xff] }
  0xde   : > { %1234 = vmatpush1.msra.mxu0 %v692_v63  ;;  %1196 = vmatprep.subr.mxu1 %v625_v55  ;;  %v640_v49 = vld [vmem:[%s1859_s29 + $0xc50] sm:$0xff]  ;;  %v573_v50 = vld [vmem:[%s1859_s29 + $0xa38] sm:$0xff] }
  0xdf   : > { %1235 = vmatprep.subr.mxu0 %v689_v56  ;;  %1197 = vmatpush2.msra.mxu1 %v624_v57  ;;  %v637_v51 = vld [vmem:[%s1859_s29 + $0xc38] sm:$0xff]  ;;  %v572_v9 = vld [vmem:[%s1859_s29 + $0xa30] sm:$0xff] }
  0xe0   : > { %1236 = vmatpush1.msra.mxu0 %v688_v58  ;;  %1198 = vmatprep.subr.mxu1 %v621_v11  ;;  %v636_v52 = vld [vmem:[%s1859_s29 + $0xc30] sm:$0xff]  ;;  %v569_v54 = vld [vmem:[%s1859_s29 + $0xa18] sm:$0xff] }
  0xe1   : > { %1237 = vmatprep.subr.mxu0 %v685_v59  ;;  %1199 = vmatpush2.msra.mxu1 %v620_v60  ;;  %v633_v63 = vld [vmem:[%s1859_s29 + $0xc18] sm:$0xff]  ;;  %v568_v55 = vld [vmem:[%s1859_s29 + $0xa10] sm:$0xff] }
  0xe2   : > { %1238 = vmatpush1.msra.mxu0 %v684_v2  ;;  %1200 = vmatprep.subr.mxu1 %v617_v61  ;;  %v632_v56 = vld [vmem:[%s1859_s29 + $0xc10] sm:$0xff] }
  0xe3   : > { %1239 = vmatprep.subr.mxu0 %v681_v62  ;;  %1201 = vmatpush2.msra.mxu1 %v616_v0 }
  0xe4   : > { %1240 = vmatpush1.msra.mxu0 %v680_v1  ;;  %1202 = vmatprep.subr.mxu1 %v613_v3 }
  0xe5   : > { %1241 = vmatprep.subr.mxu0 %v677_v4  ;;  %1203 = vmatpush2.msra.mxu1 %v612_v6 }
  0xe6   : > { %1242 = vmatpush1.msra.mxu0 %v676_v7  ;;  %1204 = vmatprep.subr.mxu1 %v609_v8 }
  0xe7   : > { %1243 = vmatprep.subr.mxu0 %v673_v10  ;;  %1205 = vmatpush2.msra.mxu1 %v608_v12 }
  0xe8   : > { %1244 = vmatpush1.msra.mxu0 %v672_v13  ;;  %1206 = vmatprep.subr.mxu1 %v605_v14 }
  0xe9   : > { %1245 = vmatprep.subr.mxu0 %v669_v15  ;;  %1207 = vmatpush2.msra.mxu1 %v604_v16 }
  0xea   : > { %1246 = vmatpush1.msra.mxu0 %v668_v17  ;;  %1208 = vmatprep.subr.mxu1 %v601_v18 }
  0xeb   : > { %1247 = vmatprep.subr.mxu0 %v665_v19  ;;  %1209 = vmatpush2.msra.mxu1 %v600_v21 }
  0xec   : > { %1248 = vmatpush1.msra.mxu0 %v664_v23  ;;  %1210 = vmatprep.subr.mxu1 %v597_v24 }
  0xed   : > { %1249 = vmatprep.subr.mxu0 %v661_v25  ;;  %1211 = vmatpush2.msra.mxu1 %v596_v27  ;;  %v243_v27 = vld [vmem:[#allocation2] sm:$0xff] }
  0xee   : > { %1250 = vmatpush1.msra.mxu0 %v660_v28  ;;  %1212 = vmatprep.subr.mxu1 %v593_v5 }
  0xef   : > { %1251 = vmatprep.subr.mxu0 %v657_v29  ;;  %1213 = vmatpush2.msra.mxu1 %v592_v31 }
  0xf0   : > { %1252 = vmatpush1.msra.mxu0 %v656_v32  ;;  %1214 = vmatprep.subr.mxu1 %v589_v33 }
  0xf1   : > { %1253 = vmatprep.subr.mxu0 %v653_v34  ;;  %1215 = vmatpush2.msra.mxu1 %v588_v35 }
  0xf2   : > { %1254 = vmatpush1.msra.mxu0 %v652_v36  ;;  %1216 = vmatprep.subr.mxu1 %v585_v37 }
  0xf3   : > { %1255 = vmatprep.subr.mxu0 %v649_v38  ;;  %1217 = vmatpush2.msra.mxu1 %v584_v39 }
  0xf4   : > { %1256 = vmatpush1.msra.mxu0 %v648_v40  ;;  %1218 = vmatprep.subr.mxu1 %v581_v41 }
  0xf5   : > { %1257 = vmatprep.subr.mxu0 %v645_v42  ;;  %1219 = vmatpush2.msra.mxu1 %v580_v44 }
  0xf6   : > { %1258 = vmatpush1.msra.mxu0 %v644_v45  ;;  %1220 = vmatprep.subr.mxu1 %v577_v46 }
  0xf7   : > { %1259 = vmatprep.subr.mxu0 %v641_v47  ;;  %1221 = vmatpush2.msra.mxu1 %v576_v48 }
  0xf8   : > { %1260 = vmatpush1.msra.mxu0 %v640_v49  ;;  %1222 = vmatprep.subr.mxu1 %v573_v50 }
  0xf9   : > { %1261 = vmatprep.subr.mxu0 %v637_v51  ;;  %1223 = vmatpush2.msra.mxu1 %v572_v9 }
  0xfa   : > { %1262 = vmatpush1.msra.mxu0 %v636_v52  ;;  %1224 = vmatprep.subr.mxu1 %v569_v54 }
  0xfb   : > { %1263 = vmatprep.subr.mxu0 %v633_v63  ;;  %1225 = vmatpush2.msra.mxu1 %v568_v55 }
  0xfc   : > { %1226 = vmatprep.mubr.f32.mxu1 %v2156_v30  ;;  %1264 = vmatpush1.msra.mxu0 %v632_v56 }
  0xfd   : > { %1297 = vmatprep.mubr.f32.mxu0 %v1807_v26  ;;  %1227 = vmatmul.mubr.f32.vlgmr.msra.gmra.mxu1 %v2144_v20 }
  0xfe   : > { %1298 = vmatmul.mubr.f32.vlgmr.msra.gmra.mxu0 %v2085_v22 }
 0x117   : > { %v802_v57 = vpop.f32.mrf.mxu0 }
 0x118   : > { %v873_v58 = vpop.f32.mrf.mxu1 }
 0x119   : > { %v804_v11 = vpop.f32.mrf.mxu0  ;;  %v874_v4 = vadd.f32 %v873_v58, %v802_v57 }
 0x11a   : > { %v875_v59 = vpop.f32.mrf.mxu1 }
 0x11b   : > { %v876_v3 = vadd.f32 %v875_v59, %v804_v11 }
 0x139   : > { %v1015_v60 = vpop.f32.mrf.mxu1 }
 0x13b   : > { %v1017_v61 = vpop.f32.mrf.mxu1 }
 0x15a   : > { %v944_v2 = vpop.f32.mrf.mxu0 }
 0x15b   : > { %v945_v26 = vadd.f32 %v944_v2, %v874_v4 }
 0x15c   : > { %v946_v62 = vpop.f32.mrf.mxu0 }
 0x15d   : > { %v947_v30 = vadd.f32 %v946_v62, %v876_v3  ;;  %v1016_v15 = vadd.f32 %v1015_v60, %v945_v26 }
 0x15f   : > { %v1018_v22 = vadd.f32 %v1017_v61, %v947_v30 }
 0x161   : > { %v1308_v18 = vcombine.low %v1016_v15, %v1018_v22 }
 0x163   : > { %v1316_v24 = vrot.slane %v1308_v18, %v1976_v53 }
 0x17b   : > { %v1086_v0 = vpop.f32.mrf.mxu1 }
 0x17d   : > { %v1088_v6 = vpop.f32.mrf.mxu1 }
 0x19c   : > { %v1157_v1 = vpop.f32.mrf.mxu0 }
 0x19d   : > { %v1158_v8 = vadd.f32 %v1157_v1, %v1086_v0 }
 0x19e   : > { %v1159_v7 = vpop.f32.mrf.mxu0 }
 0x19f   : > { %v1160_v12 = vadd.f32 %v1159_v7, %v1088_v6 }
 0x1bd   : > { %v1228_v20 = vpop.f32.mrf.mxu1 }
 0x1be   : > { %v1299_v10 = vpop.f32.mrf.mxu0  ;;  %v1229_v13 = vadd.f32 %v1228_v20, %v1158_v8 }
 0x1bf   : > { %v1230_v14 = vpop.f32.mrf.mxu1 }
 0x1c0   : > { %v1231_v16 = vadd.f32 %v1230_v14, %v1160_v12  ;;  %v1301_v17 = vpop.f32.mrf.mxu0  ;;  %v1300_v19 = vadd.f32 %v1299_v10, %v1229_v13 }
 0x1c2   : > { %v1302_v21 = vadd.f32 %v1301_v17, %v1231_v16 }
 0x1c4   : > { %v1309_v23 = vcombine.low %v1300_v19, %v1302_v21 }
 0x1c6   : > { %v1323_v25 = vrot.slane %v1309_v23, %v1976_v53 }
 0x1c8   : > { %v1324_v28 = vcombine.low %v1316_v24, %v1323_v25  ;;  %1331 = sbr.rel (%p1672_p6) target bundleno = 698 (0x2ba), region = 48 }
 0x1ca   : > { %v1326_v5 = vadd.f32 %v1324_v28, %v243_v27 }
 0x1cc   : > { %1327 = vst [vmem:[#allocation2] sm:$0xff] %v1326_v5 }
 0x1cd   : > { %v1402_v29 = vld [vmem:[%s2589_s3 + $0xf8] sm:$0xff]  ;;  %v1401_v34 = vld [vmem:[%s2589_s3 + $0xf0] sm:$0xff]  ;;  %v1400_v38 = vld [vmem:[%s2589_s3 + $0xe8] sm:$0xff]  ;;  %v1337_v26 = vsub.s32 0, %v1964_v43  ;;  %v1341_v8 = vsub.s32 1, %v1964_v43  ;;  %v1345_v20 = vsub.s32 2, %v1964_v43 }
 0x1ce   : > { %v1434_v31 = vld [vmem:[%s2589_s3 + $0x1f8] sm:$0xff]  ;;  %1679 = vmatprep.subr.mxu0 %v1402_v29  ;;  %v1433_v35 = vld [vmem:[%s2589_s3 + $0x1f0] sm:$0xff]  ;;  %v1432_v39 = vld [vmem:[%s2589_s3 + $0x1e8] sm:$0xff]  ;;  %v1349_v12 = vsub.s32 3, %v1964_v43  ;;  %vm1604_vm0 = vcmask 9216  }
 0x1cf   : > { %v1386_v32 = vld [vmem:[%s2589_s3 + $0x78] sm:$0xff]  ;;  %1714 = vmatprep.subr.mxu1 %v1434_v31  ;;  %v1385_v36 = vld [vmem:[%s2589_s3 + $0x70] sm:$0xff]  ;;  %v1384_v40 = vld [vmem:[%s2589_s3 + $0x68] sm:$0xff] }
 0x1d0   : > { %v1418_v33 = vld [vmem:[%s2589_s3 + $0x178] sm:$0xff]  ;;  %1680 = vmatpush3.msra.mxu0 %v1386_v32  ;;  %v1417_v37 = vld [vmem:[%s2589_s3 + $0x170] sm:$0xff]  ;;  %v1416_v41 = vld [vmem:[%s2589_s3 + $0x168] sm:$0xff] }
 0x1d1   : > { %1715 = vmatpush3.msra.mxu1 %v1418_v33  ;;  %1681 = vmatprep.subr.mxu0 %v1401_v34  ;;  %v1399_v42 = vld [vmem:[%s2589_s3 + $0xe0] sm:$0xff]  ;;  %v1398_v47 = vld [vmem:[%s2589_s3 + $0xd8] sm:$0xff]  ;;  %v1397_v51 = vld [vmem:[%s2589_s3 + $0xd0] sm:$0xff] }
 0x1d2   : > { %1716 = vmatprep.subr.mxu1 %v1433_v35  ;;  %1682 = vmatpush3.msra.mxu0 %v1385_v36  ;;  %v1431_v44 = vld [vmem:[%s2589_s3 + $0x1e0] sm:$0xff]  ;;  %v1430_v48 = vld [vmem:[%s2589_s3 + $0x1d8] sm:$0xff]  ;;  %v1429_v9 = vld [vmem:[%s2589_s3 + $0x1d0] sm:$0xff] }
 0x1d3   : > { %1717 = vmatpush3.msra.mxu1 %v1417_v37  ;;  %1683 = vmatprep.subr.mxu0 %v1400_v38  ;;  %v1383_v45 = vld [vmem:[%s2589_s3 + $0x60] sm:$0xff]  ;;  %v1382_v49 = vld [vmem:[%s2589_s3 + $0x58] sm:$0xff]  ;;  %v1381_v52 = vld [vmem:[%s2589_s3 + $0x50] sm:$0xff] }
 0x1d4   : > { %1718 = vmatprep.subr.mxu1 %v1432_v39  ;;  %v1415_v46 = vld [vmem:[%s2589_s3 + $0x160] sm:$0xff]  ;;  %1684 = vmatpush3.msra.mxu0 %v1384_v40  ;;  %v1414_v50 = vld [vmem:[%s2589_s3 + $0x158] sm:$0xff]  ;;  %v1413_v54 = vld [vmem:[%s2589_s3 + $0x150] sm:$0xff] }
 0x1d5   : > { %1719 = vmatpush3.msra.mxu1 %v1416_v41  ;;  %1685 = vmatprep.subr.mxu0 %v1399_v42  ;;  %v1396_v63 = vld [vmem:[%s2589_s3 + $0xc8] sm:$0xff]  ;;  %v1395_v58 = vld [vmem:[%s2589_s3 + $0xc0] sm:$0xff]  ;;  %v1394_v2 = vld [vmem:[%s2589_s3 + $0xb8] sm:$0xff] }
 0x1d6   : > { %1720 = vmatprep.subr.mxu1 %v1431_v44  ;;  %1686 = vmatpush3.msra.mxu0 %v1383_v45  ;;  %v1428_v55 = vld [vmem:[%s2589_s3 + $0x1c8] sm:$0xff]  ;;  %v1427_v11 = vld [vmem:[%s2589_s3 + $0x1c0] sm:$0xff]  ;;  %v1426_v61 = vld [vmem:[%s2589_s3 + $0x1b8] sm:$0xff] }
 0x1d7   : > { %1721 = vmatpush3.msra.mxu1 %v1415_v46  ;;  %1687 = vmatprep.subr.mxu0 %v1398_v47  ;;  %v1380_v56 = vld [vmem:[%s2589_s3 + $0x48] sm:$0xff]  ;;  %v1379_v59 = vld [vmem:[%s2589_s3 + $0x40] sm:$0xff]  ;;  %v1378_v62 = vld [vmem:[%s2589_s3 + $0x38] sm:$0xff] }
 0x1d8   : > { %1722 = vmatprep.subr.mxu1 %v1430_v48  ;;  %1688 = vmatpush3.msra.mxu0 %v1382_v49  ;;  %v1412_v57 = vld [vmem:[%s2589_s3 + $0x148] sm:$0xff]  ;;  %v1411_v60 = vld [vmem:[%s2589_s3 + $0x140] sm:$0xff]  ;;  %v1410_v0 = vld [vmem:[%s2589_s3 + $0x138] sm:$0xff] }
 0x1d9   : > { %1723 = vmatpush3.msra.mxu1 %v1414_v50  ;;  %1689 = vmatprep.subr.mxu0 %v1397_v51  ;;  %v1393_v1 = vld [vmem:[%s2589_s3 + $0xb0] sm:$0xff]  ;;  %v1392_v6 = vld [vmem:[%s2589_s3 + $0xa8] sm:$0xff]  ;;  %v1391_v13 = vld [vmem:[%s2589_s3 + $0xa0] sm:$0xff] }
 0x1da   : > { %1724 = vmatprep.subr.mxu1 %v1429_v9  ;;  %1690 = vmatpush3.msra.mxu0 %v1381_v52  ;;  %v1425_v3 = vld [vmem:[%s2589_s3 + $0x1b0] sm:$0xff]  ;;  %v1424_v7 = vld [vmem:[%s2589_s3 + $0x1a8] sm:$0xff]  ;;  %v1423_v14 = vld [vmem:[%s2589_s3 + $0x1a0] sm:$0xff] }
 0x1db   : > { %1725 = vmatpush3.msra.mxu1 %v1413_v54  ;;  %1691 = vmatprep.subr.mxu0 %v1396_v63  ;;  %v1377_v4 = vld [vmem:[%s2589_s3 + $0x30] sm:$0xff]  ;;  %v1376_v10 = vld [vmem:[%s2589_s3 + $0x28] sm:$0xff]  ;;  %v1375_v15 = vld [vmem:[%s2589_s3 + $0x20] sm:$0xff] }
 0x1dc   : > { %1726 = vmatprep.subr.mxu1 %v1428_v55  ;;  %1692 = vmatpush3.msra.mxu0 %v1380_v56  ;;  %v1409_v30 = vld [vmem:[%s2589_s3 + $0x130] sm:$0xff]  ;;  %v1408_v22 = vld [vmem:[%s2589_s3 + $0x128] sm:$0xff]  ;;  %v1407_v43 = vld [vmem:[%s2589_s3 + $0x120] sm:$0xff] }
 0x1dd   : > { %1727 = vmatpush3.msra.mxu1 %v1412_v57  ;;  %1693 = vmatprep.subr.mxu0 %v1395_v58  ;;  %v1333_v16 = vld [vmem:[%s2588_s2] sm:$0xf]  ;;  %v1390_v17 = vld [vmem:[%s2589_s3 + $0x98] sm:$0xff]  ;;  %v1389_v28 = vld [vmem:[%s2589_s3 + $0x90] sm:$0xff] }
 0x1de   : > { %1728 = vmatprep.subr.mxu1 %v1427_v11  ;;  %1694 = vmatpush3.msra.mxu0 %v1379_v59  ;;  %v1422_v18 = vld [vmem:[%s2589_s3 + $0x198] sm:$0xff]  ;;  %v1338_v19 = vrot.slane %v1333_v16, %v1337_v26  ;;  %v1342_v21 = vrot.slane %v1333_v16, %v1341_v8  ;;  %v1346_v23 = vrot.slane %v1333_v16, %v1345_v20  ;;  %v1421_v5 = vld [vmem:[%s2589_s3 + $0x190] sm:$0xff]  ;;  %v1388_v34 = vld [vmem:[%s2589_s3 + $0x88] sm:$0xff] }
 0x1df   : > { %1729 = vmatpush3.msra.mxu1 %v1411_v60  ;;  %1695 = vmatprep.subr.mxu0 %v1394_v2  ;;  %v1374_v24 = vld [vmem:[%s2589_s3 + $0x18] sm:$0xff]  ;;  %v1350_v27 = vrot.slane %v1333_v16, %v1349_v12  ;;  %v1373_v31 = vld [vmem:[%s2589_s3 + $0x10] sm:$0xff]  ;;  %v1420_v35 = vld [vmem:[%s2589_s3 + $0x188] sm:$0xff] }
 0x1e0   : > { %1730 = vmatprep.subr.mxu1 %v1426_v61  ;;  %1696 = vmatpush3.msra.mxu0 %v1378_v62  ;;  %v1406_v25 = vld [vmem:[%s2589_s3 + $0x118] sm:$0xff]  ;;  %v1351_v29 = vcombine.low %v1338_v19, %v1342_v21  ;;  %v1405_v32 = vld [vmem:[%s2589_s3 + $0x110] sm:$0xff]  ;;  %v1372_v37 = vld [vmem:[%s2589_s3 + $0x8] sm:$0xff] }
 0x1e1   : > { %1731 = vmatpush3.msra.mxu1 %v1410_v0  ;;  %1697 = vmatprep.subr.mxu0 %v1393_v1  ;;  %v1352_v33 = vcombine.low %v1346_v23, %v1350_v27  ;;  %v1404_v38 = vld [vmem:[%s2589_s3 + $0x108] sm:$0xff]  ;;  %v1387_v40 = vld [vmem:[%s2589_s3 + $0x80] sm:$0xff] }
 0x1e2   : > { %1732 = vmatprep.subr.mxu1 %v1425_v3  ;;  %1698 = vmatpush3.msra.mxu0 %v1377_v4  ;;  %v1359_v36 = vrot.slane %v1351_v29, %v1976_v53  ;;  %v1419_v41 = vld [vmem:[%s2589_s3 + $0x180] sm:$0xff] }
 0x1e3   : > { %1733 = vmatpush3.msra.mxu1 %v1409_v30  ;;  %1699 = vmatprep.subr.mxu0 %v1392_v6  ;;  %v1366_v39 = vrot.slane %v1352_v33, %v1976_v53  ;;  %v1332_v42 = vld [vmem:[#allocation2] sm:$0xff] }
 0x1e4   : > { %1734 = vmatprep.subr.mxu1 %v1424_v7  ;;  %1700 = vmatpush3.msra.mxu0 %v1376_v10  ;;  %v1371_v44 = vld [vmem:[%s2589_s3] sm:$0xff] }
 0x1e5   : > { %1735 = vmatpush3.msra.mxu1 %v1408_v22  ;;  %1701 = vmatprep.subr.mxu0 %v1391_v13  ;;  %v1367_v45 = vcombine.low %v1359_v36, %v1366_v39  ;;  %v1403_v46 = vld [vmem:[%s2589_s3 + $0x100] sm:$0xff] }
 0x1e6   : > { %1736 = vmatprep.subr.mxu1 %v1423_v14  ;;  %1702 = vmatpush3.msra.mxu0 %v1375_v15  ;;  %v1673_v55 = vld [vmem:[%s2590_s4] ss:$0 sm:$0xff] }
 0x1e7   : > { %1737 = vmatpush3.msra.mxu1 %v1407_v43  ;;  %1703 = vmatprep.subr.mxu0 %v1390_v17  ;;  %v1369_v47 = vadd.f32 %v1367_v45, %v1332_v42 }
 0x1e8   : > { %1738 = vmatprep.subr.mxu1 %v1422_v18  ;;  %1704 = vmatpush3.msra.mxu0 %v1374_v24 }
 0x1e9   : > { %1739 = vmatpush3.msra.mxu1 %v1406_v25  ;;  %1705 = vmatprep.subr.mxu0 %v1389_v28  ;;  %v1370_v48 = vmax.f32 %v1369_v47, 0.0 }
 0x1ea   : > { %1740 = vmatprep.subr.mxu1 %v1421_v5  ;;  %1706 = vmatpush3.msra.mxu0 %v1373_v31 }
 0x1eb   : > { %1741 = vmatpush3.msra.mxu1 %v1405_v32  ;;  %1707 = vmatprep.subr.mxu0 %v1388_v34  ;;  %v1450_v49 = vrot.slane %v1370_v48, %v1976_v53  ;;  %v1443_v50 = vcombine.high %v1370_v48, %v1370_v48 }
 0x1ec   : > { %1742 = vmatprep.subr.mxu1 %v1420_v35  ;;  %1708 = vmatpush3.msra.mxu0 %v1372_v37 }
 0x1ed   : > { %1743 = vmatpush3.msra.mxu1 %v1404_v38  ;;  %1709 = vmatprep.subr.mxu0 %v1387_v40  ;;  %v1458_v51 = vcombine.high %v1450_v49, %v1450_v49  ;;  %v1457_v9 = vrot.slane %v1443_v50, %v1976_v53 }
 0x1ee   : > { %1744 = vmatprep.subr.mxu1 %v1419_v41  ;;  %1710 = vmatpush3.msra.mxu0 %v1371_v44 }
 0x1ef   : > { %1745 = vmatpush3.msra.mxu1 %v1403_v46  ;;  %1528 = vmatprep.mubr.f32.mxu0 %v1458_v51  ;;  %v1459_v52 = vcombine.high %v1457_v9, %v1457_v9 }
 0x1f0   : > { %1529 = vmatmul.mubr.f32.vlgmr.msra.gmra.mxu0 %v1450_v49 }
 0x1f1   : > { %1598 = vmatprep.mubr.f32.mxu1 %v1459_v52 }
 0x1f2   : > { %1599 = vmatmul.mubr.f32.vlgmr.msra.gmra.mxu1 %v1457_v9 }
 0x2b0   : > { %v1711_v54 = vpop.f32.mrf.mxu0 }
 0x2b2   : > { %v1746_v63 = vpop.f32.mrf.mxu1  ;;  %v1712_v56 = vpop.f32.mrf.mxu0 }
 0x2b3   : > { %v1713_v57 = vadd.f32 %v1712_v56, %v1711_v54 }
 0x2b4   : > { %v1747_v58 = vpop.f32.mrf.mxu1 }
 0x2b5   : > { %v1531_v11 = vadd.f32 %v1713_v57, %v1673_v55  ;;  %v1748_v59 = vadd.f32 %v1747_v58, %v1746_v63 }
 0x2b7   : > { %v1601_v60 = vadd.f32 %v1748_v59, %v1531_v11 }
 0x2b9   : > { %1605 = vst.msk [vmem:[#allocation3] sm:$0x3] %vm1604_vm0, %v1601_v60 }
 0x2ba PF: > { %p1753_p7 = scmp.eq.s32.totalorder %s1845_s19, 4  ;;  %s1808_s24 = smov [#allocation3]  }
 0x2bb   : > { %s1613_s25 = sshll.u32 %s1808_s24, 4  ;;  %s1614_s25 = int_to_ptr.vmem [resolvable:$true] %s1613_s25 }
 0x2bc   : > { %s1769_s26 = scalar_lea.vmem %s1614_s25, 32  ;;  %p1776_p11 = scmp.lt.s32.totalorder %s1614_s25, %s1614_s25 }
 0x2bd   : > { %p1770_p8 = scmp.ne.s32.totalorder %s1614_s25, %s1769_s26  ;;  %p1777_p12 = scmp.lt.s32.totalorder %s1769_s26, %s1769_s26 }
 0x2bf   : > { %p1771_p9 = pnand %p1770_p8, %p1753_p7  ;;  %p1778_p13 = por %p1777_p12, %p1776_p11 }
 0x2c1   : > { %p1772_p10 = pneg %p1771_p9 }
 0x2c3   : > { %p1779_p0 = pnand %p1778_p13, %p1772_p10 }
 0x2c5   : > { %1782 = shalt.err (!%p1779_p0)
}
 0x2c6   : > { %1750 = dma.vmem_to_hbm [thread:$0]  (%p1753_p7), %s1614_s25, 32, %s2591_s5, [#allocation4]  }
 0x2c7   : > { %1798 = dma.done.wait (%p1753_p7), [#allocation4], 32  }
 0x2c8   : > { %1800 = vsyncadd (%p1753_p7), [#allocation4], 4294967264 }
 0x2c9 PF: > { %s16_s18 = sadd.s32 1, %s1803_s18  }
 0x2ca   : > { %p13_p1 = scmp.ge.s32.totalorder %s16_s18, 7  }
 0x2cc   :  { %15 = sbr.rel (!%p13_p1) target bundleno = 1 (0x1), region = 78 }
 0x2d1   :  { %1626 = vsyncpa [#allocation4], 1 }
 0x2d2   :  { %1628 = vsyncpa [#allocation4 + $0x1], 1 }

</bundles_post_ra>
